<compile_context>
chip_gen: v5e
topology: v5e:2x2
jax: 0.10.0
libtpu: 0.0.40
codegen_flags: <defaults>
</compile_context>

<pallas_src>
import functools

import jax
import jax.numpy as jnp
from jax.experimental import pallas as pl
from jax.experimental.pallas import tpu as pltpu

Z_DIM = 20
Z_PAD = 128  # lane-dense padded latent width used inside the kernel


def _round_up(x, m):
    return (x + m - 1) // m * m


def _mlp_kernel(x_ref,
                w1, b1, w2, b2, w3, b3,      # encoder params (w: bf16, b: f32)
                w4, b4, w5, b5, w6, b6,      # decoder params
                z_ref, xr_ref):
    """Whole encoder+decoder forward for one batch tile, fully in VMEM."""
    x = x_ref[...].astype(jnp.bfloat16)

    # ---- Encoder: Linear -> (Dropout=id) -> LeakyReLU, x2, then Linear ----
    h = jnp.dot(x, w1[...], preferred_element_type=jnp.float32) + b1[...]
    h = jnp.where(h > 0, h, jnp.float32(0.01) * h)            # LeakyReLU(0.01)

    h = jnp.dot(h.astype(jnp.bfloat16), w2[...],
                preferred_element_type=jnp.float32) + b2[...]
    h = jnp.where(h > 0, h, jnp.float32(0.01) * h)            # LeakyReLU(0.01)

    z = jnp.dot(h.astype(jnp.bfloat16), w3[...],
                preferred_element_type=jnp.float32) + b3[...]
    z_ref[...] = z.astype(z_ref.dtype)                        # padded latent

    # ---- Decoder: Linear -> (Dropout=id) -> ReLU, x3 ----
    d = jnp.dot(z.astype(jnp.bfloat16), w4[...],
                preferred_element_type=jnp.float32) + b4[...]
    d = jnp.maximum(d, 0.0)                                   # ReLU

    d = jnp.dot(d.astype(jnp.bfloat16), w5[...],
                preferred_element_type=jnp.float32) + b5[...]
    d = jnp.maximum(d, 0.0)                                   # ReLU

    d = jnp.dot(d.astype(jnp.bfloat16), w6[...],
                preferred_element_type=jnp.float32) + b6[...]
    xr_ref[...] = jnp.maximum(d, 0.0).astype(xr_ref.dtype)    # ReLU


def init_params(key, input_dim, z_dim):
    """PyTorch-style uniform(+-1/sqrt(fan_in)) init. Weights stored [in, out]."""
    dims = [
        (input_dim, 2048),  # enc L1
        (2048, 256),        # enc L2
        (256, z_dim),       # enc L3
        (z_dim, 256),       # dec L1
        (256, 2048),        # dec L2
        (2048, input_dim),  # dec L3
    ]
    params = []
    for fan_in, fan_out in dims:
        key, kw, kb = jax.random.split(key, 3)
        bound = 1.0 / (fan_in ** 0.5)
        w = jax.random.uniform(kw, (fan_in, fan_out), jnp.float32, -bound, bound)
        b = jax.random.uniform(kb, (1, fan_out), jnp.float32, -bound, bound)
        params.append((w, b))
    return params


def prepare_params(params, z_dim, z_pad=Z_PAD):
    """Pad the latent dim to a lane-dense width and cast weights to bf16.

    Padded weight / bias columns (and rows of the decoder's first weight) are
    zero, so the padded latent columns are exactly zero and do not perturb the
    decoder output.
    """
    (w1, b1), (w2, b2), (w3, b3), (w4, b4), (w5, b5), (w6, b6) = params
    w3p = jnp.zeros((w3.shape[0], z_pad), jnp.float32).at[:, :z_dim].set(w3)
    b3p = jnp.zeros((1, z_pad), jnp.float32).at[:, :z_dim].set(b3)
    w4p = jnp.zeros((z_pad, w4.shape[1]), jnp.float32).at[:z_dim, :].set(w4)
    prepared = [(w1, b1), (w2, b2), (w3p, b3p), (w4p, b4), (w5, b5), (w6, b6)]
    # bf16 weights (halve HBM traffic, native MXU path); biases stay f32.
    return [(w.astype(jnp.bfloat16), b) for (w, b) in prepared]


@functools.partial(jax.jit, static_argnames=("input_dim", "z_dim", "block_m"))
def model_forward(x, prepared, *, input_dim, z_dim, block_m=256):
    batch = x.shape[0]
    # Batch tile: multiple of 8 sublanes, capped at block_m.
    bm = min(block_m, _round_up(batch, 8))
    padded = _round_up(batch, bm)
    if padded != batch:
        x = jnp.pad(x, ((0, padded - batch), (0, 0)))

    flat = []
    for w, b in prepared:
        flat.extend([w, b])

    def const_spec(arr):
        # Full-array block, same block index every step -> weights stay resident.
        return pl.BlockSpec(arr.shape, lambda i: (0, 0))

    in_specs = [pl.BlockSpec((bm, input_dim), lambda i: (i, 0))]
    in_specs += [const_spec(a) for a in flat]
    out_specs = (
        pl.BlockSpec((bm, Z_PAD), lambda i: (i, 0)),
        pl.BlockSpec((bm, input_dim), lambda i: (i, 0)),
    )

    z_padded, x_rec = pl.pallas_call(
        _mlp_kernel,
        out_shape=(
            jax.ShapeDtypeStruct((padded, Z_PAD), jnp.float32),
            jax.ShapeDtypeStruct((padded, input_dim), jnp.float32),
        ),
        grid=(padded // bm,),
        in_specs=in_specs,
        out_specs=out_specs,
        compiler_params=pltpu.CompilerParams(
            dimension_semantics=("parallel",),
            vmem_limit_bytes=32 << 20,
        ),
    )(x, *flat)

    return z_padded[:batch, :z_dim], x_rec[:batch]


def reference_forward(x, prepared, z_dim):
    """Pure-JAX reference doing the same bf16-weight / f32-accumulate math."""

    def mm(h, w, b):
        return jnp.dot(h.astype(jnp.bfloat16), w,
                       preferred_element_type=jnp.float32) + b

    (w1, b1), (w2, b2), (w3, b3), (w4, b4), (w5, b5), (w6, b6) = prepared
    h = jax.nn.leaky_relu(mm(x, w1, b1), 0.01)
    h = jax.nn.leaky_relu(mm(h, w2, b2), 0.01)
    z = mm(h, w3, b3)
    d = jax.nn.relu(mm(z, w4, b4))
    d = jax.nn.relu(mm(d, w5, b5))
    x_rec = jax.nn.relu(mm(d, w6, b6))
    return z[:, :z_dim], x_rec


if __name__ == "__main__":
    input_dim = 64
    batch = 64

    key = jax.random.PRNGKey(0)
    k_params, k_x = jax.random.split(key)

    params = init_params(k_params, input_dim, Z_DIM)
    prepared = prepare_params(params, Z_DIM)
    x = jax.random.normal(k_x, (batch, input_dim), dtype=jnp.float32)

    # block_m=32 so the (padded) 64-row batch exercises a 2-step grid.
    z, x_rec = model_forward(x, prepared, input_dim=input_dim, z_dim=Z_DIM,
                             block_m=32)
    jax.block_until_ready((z, x_rec))

    z_ref, x_rec_ref = reference_forward(x, prepared, Z_DIM)
    assert z.shape == (batch, Z_DIM)
    assert x_rec.shape == (batch, input_dim)
    # bf16 matmul inputs -> looser tolerance than the old pure-f32 version.
    assert jnp.allclose(z, z_ref, atol=2e-2, rtol=2e-2)
    assert jnp.allclose(x_rec, x_rec_ref, atol=2e-2, rtol=2e-2)

    print("KERNEL_OK")
</pallas_src>

<mosaic_0001>
module attributes {stable_mosaic.version = 11 : i64} {
  func.func @_mlp_kernel(%arg0: i32, %arg1: memref<32x64xf32, #tpu.memory_space<vmem>>, %arg2: memref<64x2048xbf16, #tpu.memory_space<vmem>>, %arg3: memref<1x2048xf32, #tpu.memory_space<vmem>>, %arg4: memref<2048x256xbf16, #tpu.memory_space<vmem>>, %arg5: memref<1x256xf32, #tpu.memory_space<vmem>>, %arg6: memref<256x128xbf16, #tpu.memory_space<vmem>>, %arg7: memref<1x128xf32, #tpu.memory_space<vmem>>, %arg8: memref<128x256xbf16, #tpu.memory_space<vmem>>, %arg9: memref<1x256xf32, #tpu.memory_space<vmem>>, %arg10: memref<256x2048xbf16, #tpu.memory_space<vmem>>, %arg11: memref<1x2048xf32, #tpu.memory_space<vmem>>, %arg12: memref<2048x64xbf16, #tpu.memory_space<vmem>>, %arg13: memref<1x64xf32, #tpu.memory_space<vmem>>, %arg14: memref<32x128xf32, #tpu.memory_space<vmem>>, %arg15: memref<32x64xf32, #tpu.memory_space<vmem>>) attributes {dimension_semantics = [#tpu.dimension_semantics<parallel>], iteration_bounds = array<i64: 2>, scalar_prefetch = 0 : i64, scratch_operands = 0 : i64, tpu.core_type = #tpu.core_type<tc>, window_params = [{transform_indices = @transform_0, window_bounds = array<i64: 32, 64>}, {pipeline_mode = #tpu.pipeline_mode<synchronous>, transform_indices = @transform_1, window_bounds = array<i64: 64, 2048>}, {pipeline_mode = #tpu.pipeline_mode<synchronous>, transform_indices = @transform_2, window_bounds = array<i64: 1, 2048>}, {pipeline_mode = #tpu.pipeline_mode<synchronous>, transform_indices = @transform_3, window_bounds = array<i64: 2048, 256>}, {pipeline_mode = #tpu.pipeline_mode<synchronous>, transform_indices = @transform_4, window_bounds = array<i64: 1, 256>}, {pipeline_mode = #tpu.pipeline_mode<synchronous>, transform_indices = @transform_5, window_bounds = array<i64: 256, 128>}, {pipeline_mode = #tpu.pipeline_mode<synchronous>, transform_indices = @transform_6, window_bounds = array<i64: 1, 128>}, {pipeline_mode = #tpu.pipeline_mode<synchronous>, transform_indices = @transform_7, window_bounds = array<i64: 128, 256>}, {pipeline_mode = #tpu.pipeline_mode<synchronous>, transform_indices = @transform_8, window_bounds = array<i64: 1, 256>}, {pipeline_mode = #tpu.pipeline_mode<synchronous>, transform_indices = @transform_9, window_bounds = array<i64: 256, 2048>}, {pipeline_mode = #tpu.pipeline_mode<synchronous>, transform_indices = @transform_10, window_bounds = array<i64: 1, 2048>}, {pipeline_mode = #tpu.pipeline_mode<synchronous>, transform_indices = @transform_11, window_bounds = array<i64: 2048, 64>}, {pipeline_mode = #tpu.pipeline_mode<synchronous>, transform_indices = @transform_12, window_bounds = array<i64: 1, 64>}, {transform_indices = @transform_13, window_bounds = array<i64: 32, 128>}, {transform_indices = @transform_14, window_bounds = array<i64: 32, 64>}]} {
    %c0 = arith.constant 0 : index
    %c0_0 = arith.constant 0 : index
    %0 = vector.load %arg1[%c0, %c0_0] : memref<32x64xf32, #tpu.memory_space<vmem>>, vector<32x64xf32>
    %1 = arith.truncf %0 : vector<32x64xf32> to vector<32x64xbf16>
    %c0_1 = arith.constant 0 : index
    %c0_2 = arith.constant 0 : index
    %2 = vector.load %arg2[%c0_1, %c0_2] : memref<64x2048xbf16, #tpu.memory_space<vmem>>, vector<64x2048xbf16>
    %cst = arith.constant dense<0.000000e+00> : vector<32x2048xf32>
    %3 = tpu.matmul %1, %2, %cst {dimension_numbers = #tpu.dot_dimension_numbers<[1], [0], [0], [1], [0, 0, 1, 1], [], []>} : vector<32x64xbf16>, vector<64x2048xbf16>, vector<32x2048xf32> -> vector<32x2048xf32>
    %c0_3 = arith.constant 0 : index
    %c0_4 = arith.constant 0 : index
    %4 = vector.load %arg3[%c0_3, %c0_4] : memref<1x2048xf32, #tpu.memory_space<vmem>>, vector<1x2048xf32>
    %5 = vector.broadcast %4 : vector<1x2048xf32> to vector<32x2048xf32>
    %6 = arith.addf %3, %5 : vector<32x2048xf32>
    %cst_5 = arith.constant 0.000000e+00 : f32
    %7 = vector.broadcast %cst_5 : f32 to vector<32x2048xf32>
    %8 = arith.cmpf ogt, %6, %7 : vector<32x2048xf32>
    %cst_6 = arith.constant 0.00999999977 : f32
    %9 = vector.broadcast %cst_6 : f32 to vector<32x2048xf32>
    %10 = arith.mulf %9, %6 : vector<32x2048xf32>
    %11 = arith.select %8, %6, %10 : vector<32x2048xi1>, vector<32x2048xf32>
    %12 = arith.truncf %11 : vector<32x2048xf32> to vector<32x2048xbf16>
    %c0_7 = arith.constant 0 : index
    %c0_8 = arith.constant 0 : index
    %13 = vector.load %arg4[%c0_7, %c0_8] : memref<2048x256xbf16, #tpu.memory_space<vmem>>, vector<2048x256xbf16>
    %cst_9 = arith.constant dense<0.000000e+00> : vector<32x256xf32>
    %14 = tpu.matmul %12, %13, %cst_9 {dimension_numbers = #tpu.dot_dimension_numbers<[1], [0], [0], [1], [0, 0, 1, 1], [], []>} : vector<32x2048xbf16>, vector<2048x256xbf16>, vector<32x256xf32> -> vector<32x256xf32>
    %c0_10 = arith.constant 0 : index
    %c0_11 = arith.constant 0 : index
    %15 = vector.load %arg5[%c0_10, %c0_11] : memref<1x256xf32, #tpu.memory_space<vmem>>, vector<1x256xf32>
    %16 = vector.broadcast %15 : vector<1x256xf32> to vector<32x256xf32>
    %17 = arith.addf %14, %16 : vector<32x256xf32>
    %cst_12 = arith.constant 0.000000e+00 : f32
    %18 = vector.broadcast %cst_12 : f32 to vector<32x256xf32>
    %19 = arith.cmpf ogt, %17, %18 : vector<32x256xf32>
    %cst_13 = arith.constant 0.00999999977 : f32
    %20 = vector.broadcast %cst_13 : f32 to vector<32x256xf32>
    %21 = arith.mulf %20, %17 : vector<32x256xf32>
    %22 = arith.select %19, %17, %21 : vector<32x256xi1>, vector<32x256xf32>
    %23 = arith.truncf %22 : vector<32x256xf32> to vector<32x256xbf16>
    %c0_14 = arith.constant 0 : index
    %c0_15 = arith.constant 0 : index
    %24 = vector.load %arg6[%c0_14, %c0_15] : memref<256x128xbf16, #tpu.memory_space<vmem>>, vector<256x128xbf16>
    %cst_16 = arith.constant dense<0.000000e+00> : vector<32x128xf32>
    %25 = tpu.matmul %23, %24, %cst_16 {dimension_numbers = #tpu.dot_dimension_numbers<[1], [0], [0], [1], [0, 0, 1, 1], [], []>} : vector<32x256xbf16>, vector<256x128xbf16>, vector<32x128xf32> -> vector<32x128xf32>
    %c0_17 = arith.constant 0 : index
    %c0_18 = arith.constant 0 : index
    %26 = vector.load %arg7[%c0_17, %c0_18] : memref<1x128xf32, #tpu.memory_space<vmem>>, vector<1x128xf32>
    %27 = vector.broadcast %26 : vector<1x128xf32> to vector<32x128xf32>
    %28 = arith.addf %25, %27 : vector<32x128xf32>
    %c0_19 = arith.constant 0 : index
    %c0_20 = arith.constant 0 : index
    %29 = vector.load %arg14[%c0_19, %c0_20] : memref<32x128xf32, #tpu.memory_space<vmem>>, vector<32x128xf32>
    tpu.vector_store %arg14[%c0_19, %c0_20], %28 {strides = array<i32>} : memref<32x128xf32, #tpu.memory_space<vmem>>, vector<32x128xf32>,
    %30 = arith.truncf %28 : vector<32x128xf32> to vector<32x128xbf16>
    %c0_21 = arith.constant 0 : index
    %c0_22 = arith.constant 0 : index
    %31 = vector.load %arg8[%c0_21, %c0_22] : memref<128x256xbf16, #tpu.memory_space<vmem>>, vector<128x256xbf16>
    %cst_23 = arith.constant dense<0.000000e+00> : vector<32x256xf32>
    %32 = tpu.matmul %30, %31, %cst_23 {dimension_numbers = #tpu.dot_dimension_numbers<[1], [0], [0], [1], [0, 0, 1, 1], [], []>} : vector<32x128xbf16>, vector<128x256xbf16>, vector<32x256xf32> -> vector<32x256xf32>
    %c0_24 = arith.constant 0 : index
    %c0_25 = arith.constant 0 : index
    %33 = vector.load %arg9[%c0_24, %c0_25] : memref<1x256xf32, #tpu.memory_space<vmem>>, vector<1x256xf32>
    %34 = vector.broadcast %33 : vector<1x256xf32> to vector<32x256xf32>
    %35 = arith.addf %32, %34 : vector<32x256xf32>
    %cst_26 = arith.constant 0.000000e+00 : f32
    %36 = vector.broadcast %cst_26 : f32 to vector<32x256xf32>
    %37 = arith.maximumf %35, %36 : vector<32x256xf32>
    %38 = arith.truncf %37 : vector<32x256xf32> to vector<32x256xbf16>
    %c0_27 = arith.constant 0 : index
    %c0_28 = arith.constant 0 : index
    %39 = vector.load %arg10[%c0_27, %c0_28] : memref<256x2048xbf16, #tpu.memory_space<vmem>>, vector<256x2048xbf16>
    %cst_29 = arith.constant dense<0.000000e+00> : vector<32x2048xf32>
    %40 = tpu.matmul %38, %39, %cst_29 {dimension_numbers = #tpu.dot_dimension_numbers<[1], [0], [0], [1], [0, 0, 1, 1], [], []>} : vector<32x256xbf16>, vector<256x2048xbf16>, vector<32x2048xf32> -> vector<32x2048xf32>
    %c0_30 = arith.constant 0 : index
    %c0_31 = arith.constant 0 : index
    %41 = vector.load %arg11[%c0_30, %c0_31] : memref<1x2048xf32, #tpu.memory_space<vmem>>, vector<1x2048xf32>
    %42 = vector.broadcast %41 : vector<1x2048xf32> to vector<32x2048xf32>
    %43 = arith.addf %40, %42 : vector<32x2048xf32>
    %cst_32 = arith.constant 0.000000e+00 : f32
    %44 = vector.broadcast %cst_32 : f32 to vector<32x2048xf32>
    %45 = arith.maximumf %43, %44 : vector<32x2048xf32>
    %46 = arith.truncf %45 : vector<32x2048xf32> to vector<32x2048xbf16>
    %c0_33 = arith.constant 0 : index
    %c0_34 = arith.constant 0 : index
    %47 = vector.load %arg12[%c0_33, %c0_34] : memref<2048x64xbf16, #tpu.memory_space<vmem>>, vector<2048x64xbf16>
    %cst_35 = arith.constant dense<0.000000e+00> : vector<32x64xf32>
    %48 = tpu.matmul %46, %47, %cst_35 {dimension_numbers = #tpu.dot_dimension_numbers<[1], [0], [0], [1], [0, 0, 1, 1], [], []>} : vector<32x2048xbf16>, vector<2048x64xbf16>, vector<32x64xf32> -> vector<32x64xf32>
    %c0_36 = arith.constant 0 : index
    %c0_37 = arith.constant 0 : index
    %49 = vector.load %arg13[%c0_36, %c0_37] : memref<1x64xf32, #tpu.memory_space<vmem>>, vector<1x64xf32>
    %50 = vector.broadcast %49 : vector<1x64xf32> to vector<32x64xf32>
    %51 = arith.addf %48, %50 : vector<32x64xf32>
    %cst_38 = arith.constant 0.000000e+00 : f32
    %52 = vector.broadcast %cst_38 : f32 to vector<32x64xf32>
    %53 = arith.maximumf %51, %52 : vector<32x64xf32>
    %c0_39 = arith.constant 0 : index
    %c0_40 = arith.constant 0 : index
    %54 = vector.load %arg15[%c0_39, %c0_40] : memref<32x64xf32, #tpu.memory_space<vmem>>, vector<32x64xf32>
    tpu.vector_store %arg15[%c0_39, %c0_40], %53 {strides = array<i32>} : memref<32x64xf32, #tpu.memory_space<vmem>>, vector<32x64xf32>,
    return
  }
  func.func @transform_0(%arg0: i32) -> (i32, i32) {
    %c0_i32 = arith.constant 0 : i32
    %c0_i32_0 = arith.constant 0 : i32
    return %arg0, %c0_i32 : i32, i32
  }
  func.func @transform_1(%arg0: i32) -> (i32, i32) {
    %c0_i32 = arith.constant 0 : i32
    %c0_i32_0 = arith.constant 0 : i32
    %c0_i32_1 = arith.constant 0 : i32
    return %c0_i32, %c0_i32_0 : i32, i32
  }
  func.func @transform_2(%arg0: i32) -> (i32, i32) {
    %c0_i32 = arith.constant 0 : i32
    %c0_i32_0 = arith.constant 0 : i32
    %c0_i32_1 = arith.constant 0 : i32
    return %c0_i32, %c0_i32_0 : i32, i32
  }
  func.func @transform_3(%arg0: i32) -> (i32, i32) {
    %c0_i32 = arith.constant 0 : i32
    %c0_i32_0 = arith.constant 0 : i32
    %c0_i32_1 = arith.constant 0 : i32
    return %c0_i32, %c0_i32_0 : i32, i32
  }
  func.func @transform_4(%arg0: i32) -> (i32, i32) {
    %c0_i32 = arith.constant 0 : i32
    %c0_i32_0 = arith.constant 0 : i32
    %c0_i32_1 = arith.constant 0 : i32
    return %c0_i32, %c0_i32_0 : i32, i32
  }
  func.func @transform_5(%arg0: i32) -> (i32, i32) {
    %c0_i32 = arith.constant 0 : i32
    %c0_i32_0 = arith.constant 0 : i32
    %c0_i32_1 = arith.constant 0 : i32
    return %c0_i32, %c0_i32_0 : i32, i32
  }
  func.func @transform_6(%arg0: i32) -> (i32, i32) {
    %c0_i32 = arith.constant 0 : i32
    %c0_i32_0 = arith.constant 0 : i32
    %c0_i32_1 = arith.constant 0 : i32
    return %c0_i32, %c0_i32_0 : i32, i32
  }
  func.func @transform_7(%arg0: i32) -> (i32, i32) {
    %c0_i32 = arith.constant 0 : i32
    %c0_i32_0 = arith.constant 0 : i32
    %c0_i32_1 = arith.constant 0 : i32
    return %c0_i32, %c0_i32_0 : i32, i32
  }
  func.func @transform_8(%arg0: i32) -> (i32, i32) {
    %c0_i32 = arith.constant 0 : i32
    %c0_i32_0 = arith.constant 0 : i32
    %c0_i32_1 = arith.constant 0 : i32
    return %c0_i32, %c0_i32_0 : i32, i32
  }
  func.func @transform_9(%arg0: i32) -> (i32, i32) {
    %c0_i32 = arith.constant 0 : i32
    %c0_i32_0 = arith.constant 0 : i32
    %c0_i32_1 = arith.constant 0 : i32
    return %c0_i32, %c0_i32_0 : i32, i32
  }
  func.func @transform_10(%arg0: i32) -> (i32, i32) {
    %c0_i32 = arith.constant 0 : i32
    %c0_i32_0 = arith.constant 0 : i32
    %c0_i32_1 = arith.constant 0 : i32
    return %c0_i32, %c0_i32_0 : i32, i32
  }
  func.func @transform_11(%arg0: i32) -> (i32, i32) {
    %c0_i32 = arith.constant 0 : i32
    %c0_i32_0 = arith.constant 0 : i32
    %c0_i32_1 = arith.constant 0 : i32
    return %c0_i32, %c0_i32_0 : i32, i32
  }
  func.func @transform_12(%arg0: i32) -> (i32, i32) {
    %c0_i32 = arith.constant 0 : i32
    %c0_i32_0 = arith.constant 0 : i32
    %c0_i32_1 = arith.constant 0 : i32
    return %c0_i32, %c0_i32_0 : i32, i32
  }
  func.func @transform_13(%arg0: i32) -> (i32, i32) {
    %c0_i32 = arith.constant 0 : i32
    %c0_i32_0 = arith.constant 0 : i32
    return %arg0, %c0_i32 : i32, i32
  }
  func.func @transform_14(%arg0: i32) -> (i32, i32) {
    %c0_i32 = arith.constant 0 : i32
    %c0_i32_0 = arith.constant 0 : i32
    return %arg0, %c0_i32 : i32, i32
  }
}

</mosaic_0001>

<bundles_post_ra>
// kernel: model_forward.1
= control target key start
LH: loop header
LB: loop body
LE: loop exit
PB: predicated region body
PF: predicated region fallthrough
CT: control target
= control target key end

     0   :  { %s13810_s0 = inlined_call_operand.vmem [shape: f32[64,64], index: 0, kind: input, shape index: {}]   ;;  %s13811_s1 = inlined_call_operand.vmem [shape: bf16[64,2048], index: 1, kind: input, shape index: {}]   ;;  %s13812_s2 = inlined_call_operand.vmem [shape: f32[1,2048], index: 2, kind: input, shape index: {}]   ;;  %s13813_s3 = inlined_call_operand.hbm [shape: bf16[2048,256], index: 3, kind: input, shape index: {}]   ;;  %s13814_s4 = inlined_call_operand.vmem [shape: f32[1,256], index: 4, kind: input, shape index: {}]   ;;  %s13815_s5 = inlined_call_operand.vmem [shape: bf16[256,128], index: 5, kind: input, shape index: {}]   ;;  %s13816_s6 = inlined_call_operand.vmem [shape: f32[1,128], index: 6, kind: input, shape index: {}]   ;;  %s13817_s7 = inlined_call_operand.vmem [shape: bf16[128,256], index: 7, kind: input, shape index: {}]   ;;  %s13818_s8 = inlined_call_operand.vmem [shape: f32[1,256], index: 8, kind: input, shape index: {}]   ;;  %s13819_s9 = inlined_call_operand.hbm [shape: bf16[256,2048], index: 9, kind: input, shape index: {}]   ;;  %s13820_s10 = inlined_call_operand.vmem [shape: f32[1,2048], index: 10, kind: input, shape index: {}]   ;;  %s13821_s11 = inlined_call_operand.vmem [shape: bf16[2048,64], index: 11, kind: input, shape index: {}]   ;;  %s13822_s12 = inlined_call_operand.vmem [shape: f32[1,64], index: 12, kind: input, shape index: {}]   ;;  %s13823_s13 = inlined_call_operand.vmem [shape: f32[64,128], index: 13, kind: output, shape index: {0}]   ;;  %s13824_s14 = inlined_call_operand.hbm [shape: f32[64,64], index: 14, kind: output, shape index: {1}]  }
   0x1   :  { %13831 = sst [smem:[#allocation16_spill]] %s13810_s0 }
   0x2   :  { %13832 = sst [smem:[#allocation17_spill]] %s13813_s3 }
   0x3   :  { %20 = vsyncpa [#allocation3], 0 }
   0x4   :  { %21 = vsyncpa [#allocation6], 0 }
   0x5   :  { %22 = vsyncpa [#allocation4], 0 }
   0x6   :  { %24 = vsyncpa [#allocation4 + $0x1], 0  ;;  %s11750_s29 = smov 0   ;;  %s11752_s30 = smov 0  }
   0x7   :  { %s11754_s15 = smov 0   ;;  %s11756_s16 = smov 0  }
   0x8 LB: > { %13833 = sst [smem:[#allocation11_spill]] %s11653_s29  ;;  %s11771_s17 = sadd.s32 4294967295, %s11665_s16   ;;  %s11665_s16 = sphi %s11756_s16, %s13846_s16   ;;  %s11661_s15 = sphi %s11754_s15, %s13848_s15   ;;  %s11657_s30 = sphi %s11752_s30, %s13850_s30   ;;  %s11653_s29 = sphi %s11750_s29, %s13849_s29  }
   0x9   : > { %13834 = sst [smem:[#allocation12_spill]] %s11661_s15  ;;  %s7735_s18 = sadd.s32 4294967294, %s11665_s16  }
   0xa   : > { %s11775_s19 = sadd.s32 1, %s11665_s16   ;;  %s341_s20 = sadd.s32 1, %s11661_s15 }
   0xb   : > { %13835 = sst [smem:[#allocation13_spill]] %s11775_s19  ;;  %s338_s21 = ssub.s32 %s11665_s16, %s11775_s19 }
   0xc   : > { %p351_p0 = scmp.ne.s32.totalorder %s11661_s15, %s11657_s30  ;;  %p339_p1 = scmp.eq.s32.totalorder %s338_s21, 0 }
   0xd   : > { %p352_p2 = scmp.eq.s32.totalorder %s11771_s17, 1  ;;  %p357_p3 = scmp.ne.s32.totalorder %s11657_s30, %s11653_s29 }
   0xe   : > { %p358_p4 = scmp.eq.s32.totalorder %s7735_s18, 1  ;;  %p7736_p7 = scmp.ge.s32.totalorder %s11665_s16, 1 }
   0xf   : > { %s11786_s22 = scalar_select %p339_p1, %s11661_s15, %s341_s20  }
  0x10   : > { %p11788_p5 = por %p352_p2, %p351_p0  ;;  %p11792_p6 = por %p358_p4, %p357_p3 }
  0x11   : > { %13836 = sst [smem:[#allocation14_spill]] %s11786_s22  ;;  %p365_p8 = scmp.lt.s32.totalorder %s11665_s16, 3 }
  0x12   : > { %s13838_s24 = scalar_select %p11792_p6, 1, 0 }
  0x13   : > { %p11487_p9 = scmp.eq.s32.totalorder %s11771_s17, 0  ;;  %p11799_p10 = pnand %p7736_p7, %p365_p8 }
  0x14   : > { %13839 = sst [smem:[#allocation15_spill]] %s13838_s24  ;;  %s11667_s18 = smov [#allocation2]  }
  0x15   : > { %s13841_s3 = sld [smem:[#allocation17_spill]]  ;;  %p11476_p11 = pneg %p11799_p10 }
  0x16   : > { %s384_s20 = sshll.u32 %s11667_s18, 4  ;;  %s411_s15 = sshll.u32 %s13819_s9, 4  ;;  %s385_s20 = int_to_ptr.vmem [resolvable:$true] %s384_s20  ;;  %s412_s15 = int_to_ptr.hbm [resolvable:$true] %s411_s15 }
  0x17   : > { %p11477_p12 = pnand %p11487_p9, %p11476_p11  ;;  %s11668_s19 = smov 128  }
  0x18   : > { %s11669_s24 = smov 8   ;;  %s11670_s29 = smov [#allocation5]  }
  0x19   : > { %s413_s26 = sshll.u32 %s11670_s29, 4  ;;  %s11671_s27 = smov 1024   ;;  %s414_s26 = int_to_ptr.vmem [resolvable:$true] %s413_s26 }
  0x1a   : > { %447 = sbr.rel (%p11799_p10) target bundleno = 1396 (0x574), region = 72 }
  0x1b   : > { %s382_s28 = sshll.u32 %s13841_s3, 4  ;;  %s11672_s3 = smov 64   ;;  %s383_s28 = int_to_ptr.hbm [resolvable:$true] %s382_s28 }
  0x1c   : > { %11479 = dma.hbm_to_vmem [thread:$0]  (!%p11477_p12), %s383_s28, 32768, %s385_s20, [#allocation3], %s11668_s19, %s11668_s19, %s11669_s24  }
  0x1d   : > { %11482 = dma.hbm_to_vmem [thread:$0]  (!%p11477_p12), %s412_s15, 32768, %s414_s26, [#allocation6], %s11671_s27, %s11671_s27, %s11672_s3  }
  0x1f   : > { %11640 = dma.done.wait (%p11487_p9), [#allocation3], 32768  }
  0x20   : > { %11642 = vsyncadd (%p11487_p9), [#allocation3], 4294934528 }
  0x21   : > { %11644 = dma.done.wait (%p11487_p9), [#allocation6], 32768  }
  0x22   : > { %11646 = vsyncadd (%p11487_p9), [#allocation6], 4294934528  ;;  %s7744_s29 = sshll.u32 %s11771_s17, 2  ;;  %v7942_v0 = vld [vmem:[%s13811_s1 + $0x180] sm:$0xf]  ;;  %s13842_s0 = sld [smem:[#allocation16_spill]] }
  0x23   : > { %p505_p13 = scmp.lt.s32.totalorder %s7744_s29, 7  ;;  %v10785_v1 = vld [vmem:[%s13811_s1 + $0x1bc] sm:$0xf0]  ;;  %v10777_v2 = vld [vmem:[%s13811_s1 + $0x184] sm:$0xf]  ;;  %vm944_vm0 = vcmask 523264  }
  0x24   : > { %v7943_v3 = vor.u32 %v10785_v1, %v7942_v0  ;;  %v7944_v4 = vld [vmem:[%s13811_s1 + $0x1c0] sm:$0xf0]  ;;  %v7950_v5 = vld [vmem:[%s13811_s1 + $0x188] sm:$0xf]  ;;  %v10778_v9 = vld [vmem:[%s13811_s1 + $0x18c] sm:$0xf] }
  0x25   : > { %s13852_s29 = smov (!%p505_p13, %s7744_s29), 7  ;;  %v10786_v6 = vld [vmem:[%s13811_s1 + $0x1c4] sm:$0xf0]  ;;  %v7947_v7 = vor.u32 %v10777_v2, %v7944_v4  ;;  %v7952_v10 = vld [vmem:[%s13811_s1 + $0x1c8] sm:$0xf0]  ;;  %s11465_s20 = sshll.u32 %s11771_s17, 5 }
  0x26   : > { %s13830_s3 = sshll.u32 %s13852_s29, 3  ;;  %v7951_v8 = vor.u32 %v10786_v6, %v7950_v5  ;;  %v7878_v11 = vld [vmem:[%s13811_s1 + $0x100] sm:$0xf]  ;;  %955 = vmatpush.bf16.msra.mxu0 %v7943_v3  ;;  %v7955_v12 = vor.u32 %v10778_v9, %v7952_v10  ;;  %v10761_v14 = vld [vmem:[%s13811_s1 + $0x104] sm:$0xf]  ;;  %s13843_s22 = sshll.u32 %s13852_s29, 3 }
  0x27   : > { %v10769_v13 = vld [vmem:[%s13811_s1 + $0x13c] sm:$0xf0]  ;;  %v7880_v15 = vld [vmem:[%s13811_s1 + $0x140] sm:$0xf0]  ;;  %974 = vmatpush.bf16.msra.mxu1 %v7947_v7  ;;  %v7886_v18 = vld [vmem:[%s13811_s1 + $0x108] sm:$0xf]  ;;  %s12995_s28 = scalar_lea.vmem %s13823_s13, %s13843_s22  ;;  %s7622_s27 = scalar_lea.hbm %s13824_s14, %s11465_s20 }
  0x28   : > { %993 = vmatpush.bf16.msra.mxu2 %v7951_v8  ;;  %v7879_v16 = vor.u32 %v10769_v13, %v7878_v11  ;;  %v7883_v17 = vor.u32 %v10761_v14, %v7880_v15  ;;  %v10770_v19 = vld [vmem:[%s13811_s1 + $0x144] sm:$0xf0]  ;;  %v10762_v20 = vld [vmem:[%s13811_s1 + $0x10c] sm:$0xf]  ;;  %1012 = vmatpush.bf16.msra.mxu3 %v7955_v12  ;;  %v7814_v23 = vld [vmem:[%s13811_s1 + $0x80] sm:$0xf]  ;;  %s11904_s18 = scalar_lea.vmem %s13842_s0, %s13830_s3 }
  0x29   : > { %v7887_v21 = vor.u32 %v10770_v19, %v7886_v18  ;;  %v7888_v22 = vld [vmem:[%s13811_s1 + $0x148] sm:$0xf0]  ;;  %v10753_v24 = vld [vmem:[%s13811_s1 + $0xbc] sm:$0xf0]  ;;  %v10745_v26 = vld [vmem:[%s13811_s1 + $0x84] sm:$0xf] }
  0x2a   : > { %v7891_v25 = vor.u32 %v10762_v20, %v7888_v22  ;;  %v7816_v27 = vld [vmem:[%s13811_s1 + $0xc0] sm:$0xf0]  ;;  %v7822_v28 = vld [vmem:[%s13811_s1 + $0x88] sm:$0xf]  ;;  %956 = vmatpush.bf16.msra.mxu0 %v7879_v16  ;;  %v7815_v29 = vor.u32 %v10753_v24, %v7814_v23  ;;  %v10746_v31 = vld [vmem:[%s13811_s1 + $0x8c] sm:$0xf] }
  0x2b   : > { %v10754_v30 = vld [vmem:[%s13811_s1 + $0xc4] sm:$0xf0]  ;;  %v7824_v32 = vld [vmem:[%s13811_s1 + $0xc8] sm:$0xf0]  ;;  %975 = vmatpush.bf16.msra.mxu1 %v7883_v17  ;;  %v7819_v33 = vor.u32 %v10745_v26, %v7816_v27  ;;  %v7750_v35 = vld [vmem:[%s13811_s1] sm:$0xf] }
  0x2c   : > { %994 = vmatpush.bf16.msra.mxu2 %v7887_v21  ;;  %v7823_v34 = vor.u32 %v10754_v30, %v7822_v28  ;;  %v10737_v36 = vld [vmem:[%s13811_s1 + $0x3c] sm:$0xf0]  ;;  %v10729_v37 = vld [vmem:[%s13811_s1 + $0x4] sm:$0xf]  ;;  %1013 = vmatpush.bf16.msra.mxu3 %v7891_v25  ;;  %v7827_v38 = vor.u32 %v10746_v31, %v7824_v32  ;;  %v7758_v40 = vld [vmem:[%s13811_s1 + $0x8] sm:$0xf] }
  0x2d   : > { %v7752_v39 = vld [vmem:[%s13811_s1 + $0x40] sm:$0xf0]  ;;  %v10738_v41 = vld [vmem:[%s13811_s1 + $0x44] sm:$0xf0]  ;;  %v10730_v42 = vld [vmem:[%s13811_s1 + $0xc] sm:$0xf]  ;;  %v7751_v45 = vor.u32 %v10737_v36, %v7750_v35 }
  0x2e   : > { %v7760_v43 = vld [vmem:[%s13811_s1 + $0x48] sm:$0xf0]  ;;  %v518_v44 = vld [vmem:[%s11904_s18] sm:$0xff]  ;;  %957 = vmatpush.bf16.msra.mxu0 %v7815_v29  ;;  %v7966_v47 = vld [vmem:[%s13811_s1 + $0x198] sm:$0xf]  ;;  %v7755_v49 = vor.u32 %v10729_v37, %v7752_v39  ;;  %v7759_v50 = vor.u32 %v10738_v41, %v7758_v40  ;;  %s501_s29 = sand.u32 1, %s11657_s30  }
  0x2f   : > { %v519_v46 = vld [vmem:[%s11904_s18 + $0x8] sm:$0xff]  ;;  %v10788_v48 = vld [vmem:[%s13811_s1 + $0x1d4] sm:$0xf0]  ;;  %976 = vmatpush.bf16.msra.mxu1 %v7819_v33  ;;  %v10780_v51 = vld [vmem:[%s13811_s1 + $0x19c] sm:$0xf]  ;;  %v7763_v53 = vor.u32 %v10730_v42, %v7760_v43  ;;  %s7743_s0 = sshll.u32 %s501_s29, 5 }
  0x30   : > { %995 = vmatpush.bf16.msra.mxu2 %v7823_v34  ;;  %v7968_v52 = vld [vmem:[%s13811_s1 + $0x1d8] sm:$0xf0]  ;;  %1014 = vmatpush.bf16.msra.mxu3 %v7827_v38  ;;  %v7967_v54 = vor.u32 %v10788_v48, %v7966_v47  ;;  %v7958_v55 = vld [vmem:[%s13811_s1 + $0x190] sm:$0xf]  ;;  %v7902_v57 = vld [vmem:[%s13811_s1 + $0x118] sm:$0xf]  ;;  %v11953_v58 = vpack.c.bf16 %v519_v46, %v518_v44 }
  0x31   : > { %v10787_v56 = vld [vmem:[%s13811_s1 + $0x1cc] sm:$0xf0]  ;;  %v7971_v59 = vor.u32 %v10780_v51, %v7968_v52  ;;  %v10772_v60 = vld [vmem:[%s13811_s1 + $0x154] sm:$0xf0]  ;;  %v10779_v61 = vld [vmem:[%s13811_s1 + $0x194] sm:$0xf] }
  0x32   : > { %v7960_v62 = vld [vmem:[%s13811_s1 + $0x1d0] sm:$0xf0]  ;;  %958 = vmatpush.bf16.msra.mxu0 %v7751_v45  ;;  %v10764_v63 = vld [vmem:[%s13811_s1 + $0x11c] sm:$0xf]  ;;  %v7959_v1 = vor.u32 %v10787_v56, %v7958_v55  ;;  %v7903_v2 = vor.u32 %v10772_v60, %v7902_v57  ;;  %v7894_v4 = vld [vmem:[%s13811_s1 + $0x110] sm:$0xf] }
  0x33   : > { %v7904_v0 = vld [vmem:[%s13811_s1 + $0x158] sm:$0xf0]  ;;  %977 = vmatpush.bf16.msra.mxu1 %v7755_v49  ;;  %v7963_v3 = vor.u32 %v10779_v61, %v7960_v62  ;;  %v10771_v5 = vld [vmem:[%s13811_s1 + $0x14c] sm:$0xf0]  ;;  %v7838_v6 = vld [vmem:[%s13811_s1 + $0x98] sm:$0xf] }
  0x34   : > { %996 = vmatpush.bf16.msra.mxu2 %v7759_v50  ;;  %1015 = vmatpush.bf16.msra.mxu3 %v7763_v53  ;;  %v7907_v7 = vor.u32 %v10764_v63, %v7904_v0  ;;  %v10756_v8 = vld [vmem:[%s13811_s1 + $0xd4] sm:$0xf0]  ;;  %v10763_v9 = vld [vmem:[%s13811_s1 + $0x114] sm:$0xf]  ;;  %v10748_v11 = vld [vmem:[%s13811_s1 + $0x9c] sm:$0xf]  ;;  %v7895_v13 = vor.u32 %v10771_v5, %v7894_v4 }
  0x35   : > { %8004 = vmatmul.msk.bf16.vlgmr.msra.gmra.mxu0 %vm944_vm0, %v11953_v58  ;;  %v7896_v10 = vld [vmem:[%s13811_s1 + $0x150] sm:$0xf0]  ;;  %v7840_v12 = vld [vmem:[%s13811_s1 + $0xd8] sm:$0xf0]  ;;  %v7830_v14 = vld [vmem:[%s13811_s1 + $0x90] sm:$0xf]  ;;  %v7839_v15 = vor.u32 %v10756_v8, %v7838_v6 }
  0x36   : > { %8006 = vmatmul.msk.bf16.vlgmr.msra.gmra.mxu1 %vm944_vm0, %v11953_v58  ;;  %1031 = vmatpush.bf16.msrb.mxu0 %v7959_v1  ;;  %v7899_v16 = vor.u32 %v10763_v9, %v7896_v10  ;;  %v10755_v17 = vld [vmem:[%s13811_s1 + $0xcc] sm:$0xf0]  ;;  %v7774_v18 = vld [vmem:[%s13811_s1 + $0x18] sm:$0xf]  ;;  %v7843_v20 = vor.u32 %v10748_v11, %v7840_v12  ;;  %v10747_v21 = vld [vmem:[%s13811_s1 + $0x94] sm:$0xf] }
  0x37   : > { %8008 = vmatmul.msk.bf16.vlgmr.msra.gmra.mxu2 %vm944_vm0, %v11953_v58  ;;  %8010 = vmatmul.msk.bf16.vlgmr.msra.gmra.mxu3 %vm944_vm0, %v11953_v58  ;;  %v10740_v19 = vld [vmem:[%s13811_s1 + $0x54] sm:$0xf0]  ;;  %v7832_v22 = vld [vmem:[%s13811_s1 + $0xd0] sm:$0xf0]  ;;  %v10732_v23 = vld [vmem:[%s13811_s1 + $0x1c] sm:$0xf]  ;;  %v7831_v27 = vor.u32 %v10755_v17, %v7830_v14 }
  0x38   : > { %1069 = vmatpush.bf16.msrb.mxu2 %v7967_v54  ;;  %1088 = vmatpush.bf16.msrb.mxu3 %v7971_v59  ;;  %v7776_v24 = vld [vmem:[%s13811_s1 + $0x58] sm:$0xf0]  ;;  %v7982_v25 = vld [vmem:[%s13811_s1 + $0x1a8] sm:$0xf]  ;;  %v7766_v28 = vld [vmem:[%s13811_s1 + $0x10] sm:$0xf]  ;;  %v7775_v33 = vor.u32 %v10740_v19, %v7774_v18  ;;  %v7835_v34 = vor.u32 %v10747_v21, %v7832_v22 }
  0x39   : > { %1050 = vmatpush.bf16.msrb.mxu1 %v7963_v3  ;;  %v10790_v26 = vld [vmem:[%s13811_s1 + $0x1e4] sm:$0xf0]  ;;  %v10782_v29 = vld [vmem:[%s13811_s1 + $0x1ac] sm:$0xf]  ;;  %v520_v31 = vld [vmem:[%s11904_s18 + $0x10] sm:$0xff]  ;;  %v7779_v38 = vor.u32 %v10732_v23, %v7776_v24  ;;  %s13766_s3 = scalar_lea.vmem [#allocation7], %s7743_s0 }
  0x3a   : > { %1032 = vmatpush.bf16.msrb.mxu0 %v7895_v13  ;;  %v7984_v30 = vld [vmem:[%s13811_s1 + $0x1e8] sm:$0xf0]  ;;  %v521_v32 = vld [vmem:[%s11904_s18 + $0x18] sm:$0xff]  ;;  %v10739_v35 = vld [vmem:[%s13811_s1 + $0x4c] sm:$0xf0]  ;;  %v7983_v39 = vor.u32 %v10790_v26, %v7982_v25  ;;  %s7623_s18 = sshll.u32 %s13766_s3, 4  ;;  %s7624_s18 = int_to_ptr.vmem [resolvable:$true] %s7623_s18 }
  0x3b   : > { %v10731_v36 = vld [vmem:[%s13811_s1 + $0x14] sm:$0xf]  ;;  %v7974_v40 = vld [vmem:[%s13811_s1 + $0x1a0] sm:$0xf]  ;;  %v7987_v42 = vor.u32 %v10782_v29, %v7984_v30  ;;  %v7918_v43 = vld [vmem:[%s13811_s1 + $0x128] sm:$0xf]  ;;  %v7767_v45 = vor.u32 %v10739_v35, %v7766_v28  ;;  %v12070_v50 = vpack.c.bf16 %v521_v32, %v520_v31 }
  0x3c   : > { %1070 = vmatpush.bf16.msrb.mxu2 %v7903_v2  ;;  %1089 = vmatpush.bf16.msrb.mxu3 %v7907_v7  ;;  %v7768_v37 = vld [vmem:[%s13811_s1 + $0x50] sm:$0xf0]  ;;  %v10789_v41 = vld [vmem:[%s13811_s1 + $0x1dc] sm:$0xf0]  ;;  %v10774_v44 = vld [vmem:[%s13811_s1 + $0x164] sm:$0xf0] }
  0x3d   : > { %1051 = vmatpush.bf16.msrb.mxu1 %v7899_v16  ;;  %v7771_v46 = vor.u32 %v10731_v36, %v7768_v37  ;;  %v7975_v47 = vor.u32 %v10789_v41, %v7974_v40  ;;  %v10781_v48 = vld [vmem:[%s13811_s1 + $0x1a4] sm:$0xf]  ;;  %v7919_v51 = vor.u32 %v10774_v44, %v7918_v43  ;;  %v10766_v52 = vld [vmem:[%s13811_s1 + $0x12c] sm:$0xf]  ;;  %v7910_v56 = vld [vmem:[%s13811_s1 + $0x120] sm:$0xf] }
  0x3e   : > { %1033 = vmatpush.bf16.msrb.mxu0 %v7831_v27  ;;  %v7976_v49 = vld [vmem:[%s13811_s1 + $0x1e0] sm:$0xf0]  ;;  %v7920_v53 = vld [vmem:[%s13811_s1 + $0x168] sm:$0xf0]  ;;  %v10773_v57 = vld [vmem:[%s13811_s1 + $0x15c] sm:$0xf0] }
  0x3f   : > { %v7979_v54 = vor.u32 %v10781_v48, %v7976_v49  ;;  %v7923_v55 = vor.u32 %v10766_v52, %v7920_v53  ;;  %v7854_v59 = vld [vmem:[%s13811_s1 + $0xa8] sm:$0xf]  ;;  %v7911_v60 = vor.u32 %v10773_v57, %v7910_v56  ;;  %v10765_v62 = vld [vmem:[%s13811_s1 + $0x124] sm:$0xf]  ;;  %v10750_v2 = vld [vmem:[%s13811_s1 + $0xac] sm:$0xf] }
  0x40   : > { %1071 = vmatpush.bf16.msrb.mxu2 %v7839_v15  ;;  %1090 = vmatpush.bf16.msrb.mxu3 %v7843_v20  ;;  %v10758_v61 = vld [vmem:[%s13811_s1 + $0xe4] sm:$0xf0]  ;;  %v7912_v63 = vld [vmem:[%s13811_s1 + $0x160] sm:$0xf0]  ;;  %v7856_v3 = vld [vmem:[%s13811_s1 + $0xe8] sm:$0xf0] }
  0x41   : > { %1052 = vmatpush.bf16.msrb.mxu1 %v7835_v34  ;;  %v7855_v0 = vor.u32 %v10758_v61, %v7854_v59  ;;  %v7915_v1 = vor.u32 %v10765_v62, %v7912_v63  ;;  %v7846_v4 = vld [vmem:[%s13811_s1 + $0xa0] sm:$0xf]  ;;  %v7859_v5 = vor.u32 %v10750_v2, %v7856_v3  ;;  %v7790_v7 = vld [vmem:[%s13811_s1 + $0x28] sm:$0xf]  ;;  %v10749_v11 = vld [vmem:[%s13811_s1 + $0xa4] sm:$0xf] }
  0x42   : > { %1034 = vmatpush.bf16.msrb.mxu0 %v7767_v45  ;;  %v10757_v6 = vld [vmem:[%s13811_s1 + $0xdc] sm:$0xf0]  ;;  %v10742_v8 = vld [vmem:[%s13811_s1 + $0x64] sm:$0xf0]  ;;  %v7848_v12 = vld [vmem:[%s13811_s1 + $0xe0] sm:$0xf0] }
  0x43   : > { %v7847_v9 = vor.u32 %v10757_v6, %v7846_v4  ;;  %v7791_v10 = vor.u32 %v10742_v8, %v7790_v7  ;;  %v10734_v13 = vld [vmem:[%s13811_s1 + $0x2c] sm:$0xf]  ;;  %v7851_v14 = vor.u32 %v10749_v11, %v7848_v12  ;;  %v7782_v16 = vld [vmem:[%s13811_s1 + $0x20] sm:$0xf]  ;;  %v10733_v19 = vld [vmem:[%s13811_s1 + $0x24] sm:$0xf] }
  0x44   : > { %1072 = vmatpush.bf16.msrb.mxu2 %v7775_v33  ;;  %1091 = vmatpush.bf16.msrb.mxu3 %v7779_v38  ;;  %v7792_v15 = vld [vmem:[%s13811_s1 + $0x68] sm:$0xf0]  ;;  %v10741_v17 = vld [vmem:[%s13811_s1 + $0x5c] sm:$0xf0]  ;;  %v7784_v20 = vld [vmem:[%s13811_s1 + $0x60] sm:$0xf0] }
  0x45   : > { %1053 = vmatpush.bf16.msrb.mxu1 %v7771_v46  ;;  %8005 = vmatmul.msk.bf16.gmra.mxu0 %vm944_vm0, %v12070_v50  ;;  %v7795_v18 = vor.u32 %v10734_v13, %v7792_v15  ;;  %v7783_v21 = vor.u32 %v10741_v17, %v7782_v16  ;;  %v7787_v22 = vor.u32 %v10733_v19, %v7784_v20  ;;  %v7998_v23 = vld [vmem:[%s13811_s1 + $0x1b8] sm:$0xf]  ;;  %v10784_v25 = vld [vmem:[%s13811_s1 + $0x1bc] sm:$0xf]  ;;  %v7990_v28 = vld [vmem:[%s13811_s1 + $0x1b0] sm:$0xf] }
  0x46   : > { %1107 = vmatpush.bf16.msra.mxu0 %v7975_v47  ;;  %8007 = vmatmul.msk.bf16.gmra.mxu1 %vm944_vm0, %v12070_v50  ;;  %v10792_v24 = vld [vmem:[%s13811_s1 + $0x1f4] sm:$0xf0]  ;;  %v8000_v27 = vld [vmem:[%s13811_s1 + $0x1f8] sm:$0xf0]  ;;  %v10791_v29 = vld [vmem:[%s13811_s1 + $0x1ec] sm:$0xf0] }
  0x47   : > { %8009 = vmatmul.msk.bf16.gmra.mxu2 %vm944_vm0, %v12070_v50  ;;  %8011 = vmatmul.msk.bf16.gmra.mxu3 %vm944_vm0, %v12070_v50  ;;  %v7999_v26 = vor.u32 %v10792_v24, %v7998_v23  ;;  %v8003_v30 = vor.u32 %v10784_v25, %v8000_v27  ;;  %v7991_v31 = vor.u32 %v10791_v29, %v7990_v28  ;;  %v7934_v32 = vld [vmem:[%s13811_s1 + $0x138] sm:$0xf]  ;;  %v10783_v34 = vld [vmem:[%s13811_s1 + $0x1b4] sm:$0xf]  ;;  %v10768_v37 = vld [vmem:[%s13811_s1 + $0x13c] sm:$0xf] }
  0x48   : > { %1145 = vmatpush.bf16.msra.mxu2 %v7983_v39  ;;  %1164 = vmatpush.bf16.msra.mxu3 %v7987_v42  ;;  %v10776_v33 = vld [vmem:[%s13811_s1 + $0x174] sm:$0xf0]  ;;  %v7992_v36 = vld [vmem:[%s13811_s1 + $0x1f0] sm:$0xf0]  ;;  %v7936_v38 = vld [vmem:[%s13811_s1 + $0x178] sm:$0xf0] }
  0x49   : > { %1126 = vmatpush.bf16.msra.mxu1 %v7979_v54  ;;  %v7935_v35 = vor.u32 %v10776_v33, %v7934_v32  ;;  %v7995_v39 = vor.u32 %v10783_v34, %v7992_v36  ;;  %v7939_v40 = vor.u32 %v10768_v37, %v7936_v38  ;;  %v7926_v41 = vld [vmem:[%s13811_s1 + $0x130] sm:$0xf]  ;;  %v7870_v43 = vld [vmem:[%s13811_s1 + $0xb8] sm:$0xf]  ;;  %v10767_v46 = vld [vmem:[%s13811_s1 + $0x134] sm:$0xf] }
  0x4a   : > { %1108 = vmatpush.bf16.msra.mxu0 %v7911_v60  ;;  %v10775_v42 = vld [vmem:[%s13811_s1 + $0x16c] sm:$0xf0]  ;;  %v10760_v45 = vld [vmem:[%s13811_s1 + $0xf4] sm:$0xf0]  ;;  %v7928_v47 = vld [vmem:[%s13811_s1 + $0x170] sm:$0xf0] }
  0x4b   : > { %v7927_v44 = vor.u32 %v10775_v42, %v7926_v41  ;;  %v7871_v48 = vor.u32 %v10760_v45, %v7870_v43  ;;  %v7931_v49 = vor.u32 %v10767_v46, %v7928_v47  ;;  %v7872_v52 = vld [vmem:[%s13811_s1 + $0xf8] sm:$0xf0]  ;;  %v7862_v53 = vld [vmem:[%s13811_s1 + $0xb0] sm:$0xf]  ;;  %v7806_v56 = vld [vmem:[%s13811_s1 + $0x38] sm:$0xf] }
  0x4c   : > { %1146 = vmatpush.bf16.msra.mxu2 %v7919_v51  ;;  %1165 = vmatpush.bf16.msra.mxu3 %v7923_v55  ;;  %v10752_v51 = vld [vmem:[%s13811_s1 + $0xbc] sm:$0xf]  ;;  %v10759_v55 = vld [vmem:[%s13811_s1 + $0xec] sm:$0xf0]  ;;  %v10744_v57 = vld [vmem:[%s13811_s1 + $0x74] sm:$0xf0] }
  0x4d   : > { %1127 = vmatpush.bf16.msra.mxu1 %v7915_v1  ;;  %v7875_v54 = vor.u32 %v10752_v51, %v7872_v52  ;;  %v7863_v59 = vor.u32 %v10759_v55, %v7862_v53  ;;  %v7807_v60 = vor.u32 %v10744_v57, %v7806_v56  ;;  %v10751_v61 = vld [vmem:[%s13811_s1 + $0xb4] sm:$0xf]  ;;  %v10736_v63 = vld [vmem:[%s13811_s1 + $0x3c] sm:$0xf]  ;;  %v7798_v2 = vld [vmem:[%s13811_s1 + $0x30] sm:$0xf] }
  0x4e   : > { %1109 = vmatpush.bf16.msra.mxu0 %v7847_v9  ;;  %v7864_v62 = vld [vmem:[%s13811_s1 + $0xf0] sm:$0xf0]  ;;  %v7808_v1 = vld [vmem:[%s13811_s1 + $0x78] sm:$0xf0]  ;;  %v10743_v3 = vld [vmem:[%s13811_s1 + $0x6c] sm:$0xf0] }
  0x4f   : > { %v7811_v4 = vor.u32 %v10736_v63, %v7808_v1  ;;  %v7800_v6 = vld [vmem:[%s13811_s1 + $0x70] sm:$0xf0]  ;;  %v7799_v7 = vor.u32 %v10743_v3, %v7798_v2  ;;  %v8094_v9 = vld [vmem:[#allocation2 + $0x70] sm:$0xf]  ;;  %v10824_v13 = vld [vmem:[#allocation2 + $0xf4] sm:$0xf0] }
  0x50   : > { %1147 = vmatpush.bf16.msra.mxu2 %v7855_v0  ;;  %1166 = vmatpush.bf16.msra.mxu3 %v7859_v5  ;;  %v7867_v0 = vor.u32 %v10751_v61, %v7864_v62  ;;  %v10735_v5 = vld [vmem:[%s13811_s1 + $0x34] sm:$0xf]  ;;  %v8158_v11 = vld [vmem:[#allocation2 + $0xf0] sm:$0xf]  ;;  %v8086_v15 = vld [vmem:[#allocation2 + $0x60] sm:$0xf] }
  0x51   : > { %1128 = vmatpush.bf16.msra.mxu1 %v7851_v14  ;;  %v7803_v8 = vor.u32 %v10735_v5, %v7800_v6  ;;  %v8159_v14 = vor.u32 %v10824_v13, %v8158_v11  ;;  %v10806_v16 = vld [vmem:[#allocation2 + $0x64] sm:$0xf0]  ;;  %v8150_v17 = vld [vmem:[#allocation2 + $0xe0] sm:$0xf]  ;;  %v8222_v20 = vld [vmem:[#allocation2 + $0x170] sm:$0xf] }
  0x52   : > { %1110 = vmatpush.bf16.msra.mxu0 %v7783_v21  ;;  %v10822_v19 = vld [vmem:[#allocation2 + $0xe4] sm:$0xf0]  ;;  %v10840_v21 = vld [vmem:[#allocation2 + $0x174] sm:$0xf0]  ;;  %v8286_v24 = vld [vmem:[#allocation2 + $0x1f0] sm:$0xf] }
  0x53   : > { %v8223_v23 = vor.u32 %v10840_v21, %v8222_v20  ;;  %v10856_v25 = vld [vmem:[#allocation2 + $0x1f4] sm:$0xf0]  ;;  %v8142_v29 = vld [vmem:[#allocation2 + $0xd0] sm:$0xf]  ;;  %v8214_v33 = vld [vmem:[#allocation2 + $0x160] sm:$0xf] }
  0x54   : > { %1148 = vmatpush.bf16.msra.mxu2 %v7791_v10  ;;  %1167 = vmatpush.bf16.msra.mxu3 %v7795_v18  ;;  %v10808_v10 = vld [vmem:[#allocation2 + $0x74] sm:$0xf0]  ;;  %v8087_v18 = vor.u32 %v10806_v16, %v8086_v15  ;;  %v8287_v27 = vor.u32 %v10856_v25, %v8286_v24  ;;  %v10838_v34 = vld [vmem:[#allocation2 + $0x164] sm:$0xf0]  ;;  %v8070_v38 = vld [vmem:[#allocation2 + $0x40] sm:$0xf] }
  0x55   : > { %1129 = vmatpush.bf16.msra.mxu1 %v7787_v22  ;;  %8012 = vmatmul.msk.bf16.vlgmr.msrb.gmra.mxu0 %vm944_vm0, %v11953_v58  ;;  %v8095_v12 = vor.u32 %v10808_v10, %v8094_v9  ;;  %v8151_v22 = vor.u32 %v10822_v19, %v8150_v17  ;;  %v10804_v28 = vld [vmem:[#allocation2 + $0x54] sm:$0xf0]  ;;  %v8215_v36 = vor.u32 %v10838_v34, %v8214_v33  ;;  %v10854_v37 = vld [vmem:[#allocation2 + $0x1e4] sm:$0xf0]  ;;  %v8134_v41 = vld [vmem:[#allocation2 + $0xc0] sm:$0xf] }
  0x56   : > { %8014 = vmatmul.msk.bf16.vlgmr.msrb.gmra.mxu1 %vm944_vm0, %v11953_v58  ;;  %1183 = vmatpush.bf16.msrb.mxu0 %v7991_v31  ;;  %v10818_v42 = vld [vmem:[#allocation2 + $0xc4] sm:$0xf0]  ;;  %v8206_v43 = vld [vmem:[#allocation2 + $0x150] sm:$0xf]  ;;  %v10836_v45 = vld [vmem:[#allocation2 + $0x154] sm:$0xf0] }
  0x57   : > { %8016 = vmatmul.msk.bf16.vlgmr.msrb.gmra.mxu2 %vm944_vm0, %v11953_v58  ;;  %8018 = vmatmul.msk.bf16.vlgmr.msrb.gmra.mxu3 %vm944_vm0, %v11953_v58  ;;  %v8270_v46 = vld [vmem:[#allocation2 + $0x1d0] sm:$0xf]  ;;  %v10852_v47 = vld [vmem:[#allocation2 + $0x1d4] sm:$0xf0]  ;;  %v8262_v61 = vld [vmem:[#allocation2 + $0x1c0] sm:$0xf] }
  0x58   : > { %1221 = vmatpush.bf16.msrb.mxu2 %v7999_v26  ;;  %1240 = vmatpush.bf16.msrb.mxu3 %v8003_v30  ;;  %v8078_v26 = vld [vmem:[#allocation2 + $0x50] sm:$0xf]  ;;  %v10820_v30 = vld [vmem:[#allocation2 + $0xd4] sm:$0xf0]  ;;  %v8271_v51 = vor.u32 %v10852_v47, %v8270_v46  ;;  %v10850_v63 = vld [vmem:[#allocation2 + $0x1c4] sm:$0xf0] }
  0x59   : > { %1202 = vmatpush.bf16.msrb.mxu1 %v7995_v39  ;;  %v8079_v31 = vor.u32 %v10804_v28, %v8078_v26  ;;  %v8143_v32 = vor.u32 %v10820_v30, %v8142_v29  ;;  %v10802_v39 = vld [vmem:[#allocation2 + $0x44] sm:$0xf0]  ;;  %v8062_v52 = vld [vmem:[#allocation2 + $0x30] sm:$0xf]  ;;  %v10800_v53 = vld [vmem:[#allocation2 + $0x34] sm:$0xf0] }
  0x5a   : > { %1184 = vmatpush.bf16.msrb.mxu0 %v7927_v44  ;;  %v8071_v44 = vor.u32 %v10802_v39, %v8070_v38  ;;  %v8063_v55 = vor.u32 %v10800_v53, %v8062_v52  ;;  %v10816_v56 = vld [vmem:[#allocation2 + $0xb4] sm:$0xf0]  ;;  %v8054_v1 = vld [vmem:[#allocation2 + $0x20] sm:$0xf]  ;;  %v10798_v2 = vld [vmem:[#allocation2 + $0x24] sm:$0xf0] }
  0x5b   : > { %v8118_v3 = vld [vmem:[#allocation2 + $0xa0] sm:$0xf]  ;;  %v10814_v5 = vld [vmem:[#allocation2 + $0xa4] sm:$0xf0]  ;;  %v8254_v10 = vld [vmem:[#allocation2 + $0x1b0] sm:$0xf] }
  0x5c   : > { %1222 = vmatpush.bf16.msrb.mxu2 %v7935_v35  ;;  %1241 = vmatpush.bf16.msrb.mxu3 %v7939_v40  ;;  %v8278_v35 = vld [vmem:[#allocation2 + $0x1e0] sm:$0xf]  ;;  %v8119_v6 = vor.u32 %v10814_v5, %v8118_v3  ;;  %v10848_v11 = vld [vmem:[#allocation2 + $0x1b4] sm:$0xf0]  ;;  %v8046_v13 = vld [vmem:[#allocation2 + $0x10] sm:$0xf] }
  0x5d   : > { %1203 = vmatpush.bf16.msrb.mxu1 %v7931_v49  ;;  %v8279_v40 = vor.u32 %v10854_v37, %v8278_v35  ;;  %v8207_v49 = vor.u32 %v10836_v45, %v8206_v43  ;;  %v8110_v15 = vld [vmem:[#allocation2 + $0x90] sm:$0xf]  ;;  %v10812_v17 = vld [vmem:[#allocation2 + $0x94] sm:$0xf0]  ;;  %v10830_v19 = vld [vmem:[#allocation2 + $0x124] sm:$0xf0] }
  0x5e   : > { %1185 = vmatpush.bf16.msrb.mxu0 %v7863_v59  ;;  %v8198_v59 = vld [vmem:[#allocation2 + $0x140] sm:$0xf]  ;;  %v10794_v25 = vld [vmem:[#allocation2 + $0x4] sm:$0xf0]  ;;  %v8174_v30 = vld [vmem:[#allocation2 + $0x110] sm:$0xf] }
  0x5f   : > { %v8246_v20 = vld [vmem:[#allocation2 + $0x1a0] sm:$0xf]  ;;  %v10810_v28 = vld [vmem:[#allocation2 + $0x84] sm:$0xf0]  ;;  %v10844_v34 = vld [vmem:[#allocation2 + $0x194] sm:$0xf0] }
  0x60   : > { %1223 = vmatpush.bf16.msrb.mxu2 %v7871_v48  ;;  %1242 = vmatpush.bf16.msrb.mxu3 %v7875_v54  ;;  %v8135_v48 = vor.u32 %v10818_v42, %v8134_v41  ;;  %v8126_v54 = vld [vmem:[#allocation2 + $0xb0] sm:$0xf]  ;;  %v8038_v24 = vld [vmem:[#allocation2] sm:$0xf]  ;;  %v10872_v37 = vld [vmem:[#allocation2 + $0x274] sm:$0xf0] }
  0x61   : > { %1204 = vmatpush.bf16.msrb.mxu1 %v7867_v0  ;;  %v8127_v57 = vor.u32 %v10816_v56, %v8126_v54  ;;  %v8263_v0 = vor.u32 %v10850_v63, %v8262_v61  ;;  %v8102_v26 = vld [vmem:[#allocation2 + $0x80] sm:$0xf]  ;;  %v8414_v38 = vld [vmem:[#allocation2 + $0x2f0] sm:$0xf]  ;;  %v10826_v43 = vld [vmem:[#allocation2 + $0x104] sm:$0xf0] }
  0x62   : > { %1186 = vmatpush.bf16.msrb.mxu0 %v7799_v7  ;;  %v8190_v7 = vld [vmem:[#allocation2 + $0x130] sm:$0xf]  ;;  %v8103_v29 = vor.u32 %v10810_v28, %v8102_v26  ;;  %v8166_v42 = vld [vmem:[#allocation2 + $0x100] sm:$0xf]  ;;  %v10842_v46 = vld [vmem:[#allocation2 + $0x184] sm:$0xf0] }
  0x63   : > { %v8167_v45 = vor.u32 %v10826_v43, %v8166_v42  ;;  %v10886_v53 = vld [vmem:[#allocation2 + $0x2e4] sm:$0xf0]  ;;  %v10904_v56 = vld [vmem:[#allocation2 + $0x374] sm:$0xf0]  ;;  %v8382_v26 = vld [vmem:[#allocation2 + $0x2b0] sm:$0xf] }
  0x64   : > { %1224 = vmatpush.bf16.msrb.mxu2 %v7807_v60  ;;  %1243 = vmatpush.bf16.msrb.mxu3 %v7811_v4  ;;  %v10834_v60 = vld [vmem:[#allocation2 + $0x144] sm:$0xf0]  ;;  %v8055_v4 = vor.u32 %v10798_v2, %v8054_v1  ;;  %v10868_v63 = vld [vmem:[#allocation2 + $0x254] sm:$0xf0]  ;;  %s7625_s15 = sshll.u32 %s7622_s27, 4  ;;  %s7607_s17 = scalar_lea.sflag [#allocation4], %s501_s29  ;;  %s7626_s15 = int_to_ptr.hbm [resolvable:$true] %s7625_s15 }
  0x65   : > { %8013 = vmatmul.msk.bf16.gmra.mxu0 %vm944_vm0, %v12070_v50  ;;  %1205 = vmatpush.bf16.msrb.mxu1 %v7803_v8  ;;  %v8199_v62 = vor.u32 %v10834_v60, %v8198_v59  ;;  %v10832_v8 = vld [vmem:[#allocation2 + $0x134] sm:$0xf0]  ;;  %v10902_v5 = vld [vmem:[#allocation2 + $0x364] sm:$0xf0]  ;;  %s11609_s19 = sshra.s32 %s7626_s15, 4  ;;  %s11610_s19 = int_to_ptr.hbm [resolvable:$true] %s11609_s19 }
  0x66   : > { %8015 = vmatmul.msk.bf16.gmra.mxu1 %vm944_vm0, %v12070_v50  ;;  %v8191_v9 = vor.u32 %v10832_v8, %v8190_v7  ;;  %v10920_v60 = vld [vmem:[#allocation2 + $0x3f4] sm:$0xf0]  ;;  %v10918_v8 = vld [vmem:[#allocation2 + $0x3e4] sm:$0xf0]  ;;  %s11611_s22 = scalar_lea.hbm %s11610_s19, 32  ;;  %p11616_p3 = scmp.lt.s32.totalorder %s11610_s19, %s13824_s14 }
  0x67   : > { %8017 = vmatmul.msk.bf16.gmra.mxu2 %vm944_vm0, %v12070_v50  ;;  %8019 = vmatmul.msk.bf16.gmra.mxu3 %vm944_vm0, %v12070_v50  ;;  %v10884_v2 = vld [vmem:[#allocation2 + $0x2d4] sm:$0xf0]  ;;  %v10862_v43 = vld [vmem:[#allocation2 + $0x224] sm:$0xf0]  ;;  %p11612_p0 = scmp.ne.s32.totalorder %s11610_s19, %s11611_s22 }
  0x69   : > { %p11613_p1 = pnand %p11612_p0, %p11788_p5 }
  0x6b   : > { %p11614_p2 = pneg %p11613_p1 }
  0x75   : > { %8020 = vmatmul.msk.bf16.vlgmr.msra.gmra.mxu0 %vm944_vm0, %v11953_v58 }
  0x76   : > { %8022 = vmatmul.msk.bf16.vlgmr.msra.gmra.mxu1 %vm944_vm0, %v11953_v58  ;;  %3021 = vmatpush.bf16.msra.mxu0 %v8095_v12  ;;  %v8255_v12 = vor.u32 %v10848_v11, %v8254_v10  ;;  %v8326_v10 = vld [vmem:[#allocation2 + $0x240] sm:$0xf]  ;;  %v10866_v11 = vld [vmem:[#allocation2 + $0x244] sm:$0xf0] }
  0x77   : > { %8024 = vmatmul.msk.bf16.vlgmr.msra.gmra.mxu2 %vm944_vm0, %v11953_v58  ;;  %8026 = vmatmul.msk.bf16.vlgmr.msra.gmra.mxu3 %vm944_vm0, %v11953_v58 }
  0x78   : > { %3040 = vmatpush.bf16.msra.mxu1 %v8159_v14  ;;  %3059 = vmatpush.bf16.msra.mxu2 %v8223_v23  ;;  %v10796_v14 = vld [vmem:[#allocation2 + $0x14] sm:$0xf0] }
  0x79   : > { %3078 = vmatpush.bf16.msra.mxu3 %v8287_v27  ;;  %v8047_v16 = vor.u32 %v10796_v14, %v8046_v13  ;;  %v8039_v27 = vor.u32 %v10794_v25, %v8038_v24  ;;  %v8318_v24 = vld [vmem:[#allocation2 + $0x230] sm:$0xf]  ;;  %v10864_v25 = vld [vmem:[#allocation2 + $0x234] sm:$0xf0] }
  0x7a   : > { %3022 = vmatpush.bf16.msra.mxu0 %v8087_v18  ;;  %v8182_v18 = vld [vmem:[#allocation2 + $0x120] sm:$0xf] }
  0x7b   : > { %v8183_v21 = vor.u32 %v10830_v19, %v8182_v18  ;;  %v10900_v18 = vld [vmem:[#allocation2 + $0x354] sm:$0xf0]  ;;  %v8526_v19 = vld [vmem:[#allocation2 + $0x3d0] sm:$0xf] }
  0x7c   : > { %3041 = vmatpush.bf16.msra.mxu1 %v8151_v22  ;;  %3060 = vmatpush.bf16.msra.mxu2 %v8215_v36  ;;  %v10846_v22 = vld [vmem:[#allocation2 + $0x1a4] sm:$0xf0]  ;;  %v8350_v36 = vld [vmem:[#allocation2 + $0x270] sm:$0xf] }
  0x7d   : > { %3079 = vmatpush.bf16.msra.mxu3 %v8279_v40  ;;  %v8247_v23 = vor.u32 %v10846_v22, %v8246_v20  ;;  %v8351_v39 = vor.u32 %v10872_v37, %v8350_v36  ;;  %v10888_v40 = vld [vmem:[#allocation2 + $0x2f4] sm:$0xf0]  ;;  %v10914_v37 = vld [vmem:[#allocation2 + $0x3c4] sm:$0xf0] }
  0x7e   : > { %3023 = vmatpush.bf16.msra.mxu0 %v8079_v31  ;;  %v10828_v31 = vld [vmem:[#allocation2 + $0x114] sm:$0xf0]  ;;  %v8415_v41 = vor.u32 %v10888_v40, %v8414_v38 }
  0x7f   : > { %v8175_v33 = vor.u32 %v10828_v31, %v8174_v30  ;;  %v10880_v30 = vld [vmem:[#allocation2 + $0x2b4] sm:$0xf0] }
  0x80   : > { %3042 = vmatpush.bf16.msra.mxu1 %v8143_v32  ;;  %3061 = vmatpush.bf16.msra.mxu2 %v8207_v49  ;;  %v8238_v32 = vld [vmem:[#allocation2 + $0x190] sm:$0xf]  ;;  %v10870_v49 = vld [vmem:[#allocation2 + $0x264] sm:$0xf0] }
  0x81   : > { %3080 = vmatpush.bf16.msra.mxu3 %v8271_v51  ;;  %v8239_v35 = vor.u32 %v10844_v34, %v8238_v32  ;;  %v8406_v51 = vld [vmem:[#allocation2 + $0x2e0] sm:$0xf]  ;;  %v8383_v32 = vor.u32 %v10880_v30, %v8382_v26  ;;  %v10898_v34 = vld [vmem:[#allocation2 + $0x344] sm:$0xf0] }
  0x82   : > { %3024 = vmatpush.bf16.msra.mxu0 %v8071_v44  ;;  %v8230_v44 = vld [vmem:[#allocation2 + $0x180] sm:$0xf]  ;;  %v8407_v54 = vor.u32 %v10886_v53, %v8406_v51  ;;  %v8510_v53 = vld [vmem:[#allocation2 + $0x3b0] sm:$0xf] }
  0x83   : > { %v8231_v47 = vor.u32 %v10842_v46, %v8230_v44  ;;  %v8374_v44 = vld [vmem:[#allocation2 + $0x2a0] sm:$0xf]  ;;  %v10878_v46 = vld [vmem:[#allocation2 + $0x2a4] sm:$0xf0] }
  0x84   : > { %3043 = vmatpush.bf16.msra.mxu1 %v8135_v48  ;;  %3062 = vmatpush.bf16.msra.mxu2 %v8199_v62  ;;  %v8342_v48 = vld [vmem:[#allocation2 + $0x260] sm:$0xf]  ;;  %v8334_v62 = vld [vmem:[#allocation2 + $0x250] sm:$0xf]  ;;  %v8375_v51 = vor.u32 %v10878_v46, %v8374_v44 }
  0x85   : > { %8021 = vmatmul.msk.bf16.gmra.mxu0 %vm944_vm0, %v12070_v50  ;;  %3081 = vmatpush.bf16.msra.mxu3 %v8263_v0  ;;  %v8343_v52 = vor.u32 %v10870_v49, %v8342_v48  ;;  %v8398_v0 = vld [vmem:[#allocation2 + $0x2d0] sm:$0xf]  ;;  %v8335_v1 = vor.u32 %v10868_v63, %v8334_v62  ;;  %v8358_v26 = vld [vmem:[#allocation2 + $0x280] sm:$0xf] }
  0x86   : > { %8023 = vmatmul.msk.bf16.gmra.mxu1 %vm944_vm0, %v12070_v50  ;;  %3025 = vmatpush.bf16.msra.mxu0 %v8063_v55  ;;  %v8478_v55 = vld [vmem:[#allocation2 + $0x370] sm:$0xf]  ;;  %v8399_v3 = vor.u32 %v10884_v2, %v8398_v0 }
  0x87   : > { %8025 = vmatmul.msk.bf16.gmra.mxu2 %vm944_vm0, %v12070_v50  ;;  %8027 = vmatmul.msk.bf16.gmra.mxu3 %vm944_vm0, %v12070_v50  ;;  %v8479_v59 = vor.u32 %v10904_v56, %v8478_v55 }
  0x88   : > { %3044 = vmatpush.bf16.msra.mxu1 %v8127_v57  ;;  %3063 = vmatpush.bf16.msra.mxu2 %v8191_v9  ;;  %v8542_v57 = vld [vmem:[#allocation2 + $0x3f0] sm:$0xf] }
  0x89   : > { %3082 = vmatpush.bf16.msra.mxu3 %v8255_v12  ;;  %v8543_v61 = vor.u32 %v10920_v60, %v8542_v57  ;;  %v8390_v12 = vld [vmem:[#allocation2 + $0x2c0] sm:$0xf]  ;;  %v8302_v60 = vld [vmem:[#allocation2 + $0x210] sm:$0xf] }
  0x8a   : > { %3026 = vmatpush.bf16.msra.mxu0 %v8055_v4  ;;  %v8470_v4 = vld [vmem:[#allocation2 + $0x360] sm:$0xf] }
  0x8b   : > { %v8471_v7 = vor.u32 %v10902_v5, %v8470_v4  ;;  %v10876_v4 = vld [vmem:[#allocation2 + $0x294] sm:$0xf0] }
  0x8c   : > { %3045 = vmatpush.bf16.msra.mxu1 %v8119_v6  ;;  %3064 = vmatpush.bf16.msra.mxu2 %v8183_v21  ;;  %v8534_v6 = vld [vmem:[#allocation2 + $0x3e0] sm:$0xf]  ;;  %v10916_v21 = vld [vmem:[#allocation2 + $0x3d4] sm:$0xf0] }
  0x8d   : > { %3083 = vmatpush.bf16.msra.mxu3 %v8247_v23  ;;  %v8535_v9 = vor.u32 %v10918_v8, %v8534_v6  ;;  %v8527_v23 = vor.u32 %v10916_v21, %v8526_v19  ;;  %v8502_v19 = vld [vmem:[#allocation2 + $0x3a0] sm:$0xf] }
  0x8e   : > { %3027 = vmatpush.bf16.msra.mxu0 %v8047_v16  ;;  %v10882_v16 = vld [vmem:[#allocation2 + $0x2c4] sm:$0xf0]  ;;  %v8294_v21 = vld [vmem:[#allocation2 + $0x200] sm:$0xf] }
  0x90   : > { %3065 = vmatpush.bf16.msra.mxu2 %v8175_v33  ;;  %v8454_v33 = vld [vmem:[#allocation2 + $0x340] sm:$0xf] }
  0x91   : > { %3084 = vmatpush.bf16.msra.mxu3 %v8239_v35  ;;  %v8518_v35 = vld [vmem:[#allocation2 + $0x3c0] sm:$0xf]  ;;  %v8455_v36 = vor.u32 %v10898_v34, %v8454_v33  ;;  %v10892_v33 = vld [vmem:[#allocation2 + $0x314] sm:$0xf0]  ;;  %v8494_v34 = vld [vmem:[#allocation2 + $0x390] sm:$0xf] }
  0x92   : > { %3028 = vmatpush.bf16.msra.mxu0 %v8039_v27  ;;  %v8519_v40 = vor.u32 %v10914_v37, %v8518_v35 }
  0x94   : > { %3066 = vmatpush.bf16.msra.mxu2 %v8167_v45 }
  0x95   : > { %8028 = vmatmul.msk.bf16.vlgmr.msrb.gmra.mxu0 %vm944_vm0, %v11953_v58  ;;  %3085 = vmatpush.bf16.msra.mxu3 %v8231_v47  ;;  %v8446_v47 = vld [vmem:[#allocation2 + $0x330] sm:$0xf] }
  0x96   : > { %8030 = vmatmul.msk.bf16.vlgmr.msrb.gmra.mxu1 %vm944_vm0, %v11953_v58  ;;  %3097 = vmatpush.bf16.msrb.mxu0 %v8351_v39 }
  0x97   : > { %8032 = vmatmul.msk.bf16.vlgmr.msrb.gmra.mxu2 %vm944_vm0, %v11953_v58  ;;  %8034 = vmatmul.msk.bf16.vlgmr.msrb.gmra.mxu3 %vm944_vm0, %v11953_v58  ;;  %v8111_v58 = vor.u32 %v10812_v17, %v8110_v15  ;;  %v8327_v15 = vor.u32 %v10866_v11, %v8326_v10  ;;  %v8391_v17 = vor.u32 %v10882_v16, %v8390_v12  ;;  %v10894_v16 = vld [vmem:[#allocation2 + $0x324] sm:$0xf0] }
  0x98   : > { %3135 = vmatpush.bf16.msrb.mxu2 %v8479_v59  ;;  %v10912_v59 = vld [vmem:[#allocation2 + $0x3b4] sm:$0xf0] }
  0x99   : > { %3046 = vmatpush.bf16.msra.mxu1 %v8111_v58  ;;  %3154 = vmatpush.bf16.msrb.mxu3 %v8543_v61  ;;  %v8462_v58 = vld [vmem:[#allocation2 + $0x350] sm:$0xf]  ;;  %v10860_v61 = vld [vmem:[#allocation2 + $0x214] sm:$0xf0] }
  0x9a   : > { %3098 = vmatpush.bf16.msrb.mxu0 %v8343_v52  ;;  %v8463_v20 = vor.u32 %v10900_v18, %v8462_v58  ;;  %v10896_v52 = vld [vmem:[#allocation2 + $0x334] sm:$0xf0]  ;;  %v8303_v2 = vor.u32 %v10860_v61, %v8302_v60 }
  0x9b   : > { %v8447_v57 = vor.u32 %v10896_v52, %v8446_v47 }
  0x9c   : > { %3136 = vmatpush.bf16.msrb.mxu2 %v8471_v7 }
  0x9d   : > { %3047 = vmatpush.bf16.msra.mxu1 %v8103_v29  ;;  %3155 = vmatpush.bf16.msrb.mxu3 %v8535_v9  ;;  %v8319_v29 = vor.u32 %v10864_v25, %v8318_v24  ;;  %v8438_v9 = vld [vmem:[#allocation2 + $0x320] sm:$0xf]  ;;  %v10858_v25 = vld [vmem:[#allocation2 + $0x204] sm:$0xf0] }
  0x9e   : > { %3099 = vmatpush.bf16.msrb.mxu0 %v8335_v1  ;;  %v8511_v1 = vor.u32 %v10912_v59, %v8510_v53  ;;  %v8439_v18 = vor.u32 %v10894_v16, %v8438_v9 }
  0xa0   : > { %3137 = vmatpush.bf16.msrb.mxu2 %v8463_v20  ;;  %v10910_v20 = vld [vmem:[#allocation2 + $0x3a4] sm:$0xf0] }
  0xa1   : > { %3116 = vmatpush.bf16.msrb.mxu1 %v8415_v41  ;;  %3156 = vmatpush.bf16.msrb.mxu3 %v8527_v23  ;;  %v8310_v41 = vld [vmem:[#allocation2 + $0x220] sm:$0xf]  ;;  %v8503_v24 = vor.u32 %v10910_v20, %v8502_v19  ;;  %v8798_v19 = vld [vmem:[#allocation2 + $0x5f0] sm:$0xf] }
  0xa2   : > { %3100 = vmatpush.bf16.msrb.mxu0 %v8327_v15  ;;  %v8311_v45 = vor.u32 %v10862_v43, %v8310_v41  ;;  %v10908_v41 = vld [vmem:[#allocation2 + $0x394] sm:$0xf0] }
  0xa3   : > { %v10936_v43 = vld [vmem:[#allocation2 + $0x474] sm:$0xf0] }
  0xa4   : > { %3138 = vmatpush.bf16.msrb.mxu2 %v8455_v36 }
  0xa5   : > { %8029 = vmatmul.msk.bf16.gmra.mxu0 %vm944_vm0, %v12070_v50  ;;  %3117 = vmatpush.bf16.msrb.mxu1 %v8407_v54 }
  0xa6   : > { %8031 = vmatmul.msk.bf16.gmra.mxu1 %vm944_vm0, %v12070_v50  ;;  %3101 = vmatpush.bf16.msrb.mxu0 %v8319_v29 }
  0xa7   : > { %8033 = vmatmul.msk.bf16.gmra.mxu2 %vm944_vm0, %v12070_v50  ;;  %8035 = vmatmul.msk.bf16.gmra.mxu3 %vm944_vm0, %v12070_v50  ;;  %v12293_v50 = vld [vmem:[%s13812_s2] sm:$0xff] }
  0xa8   : > { %v12296_v13 = vperm.slane %v12293_v50, 0  ;;  %v12299_v14 = vperm.slane %v12293_v50, 1  ;;  %v12306_v38 = vperm.slane %v12293_v50, 2  ;;  %v12309_v39 = vperm.slane %v12293_v50, 3  ;;  %3157 = vmatpush.bf16.msrb.mxu3 %v8519_v40  ;;  %3139 = vmatpush.bf16.msrb.mxu2 %v8447_v57 }
  0xa9   : > { %3118 = vmatpush.bf16.msrb.mxu1 %v8399_v3  ;;  %v8366_v3 = vld [vmem:[#allocation2 + $0x290] sm:$0xf]  ;;  %v12325_v7 = vperm.slane %v12293_v50, 4  ;;  %v12343_v46 = vperm.slane %v12293_v50, 5  ;;  %v12346_v47 = vperm.slane %v12293_v50, 6 }
  0xaa   : > { %3102 = vmatpush.bf16.msrb.mxu0 %v8311_v45  ;;  %v8367_v8 = vor.u32 %v10876_v4, %v8366_v3 }
  0xac   : > { %3158 = vmatpush.bf16.msrb.mxu3 %v8511_v1  ;;  %3140 = vmatpush.bf16.msrb.mxu2 %v8439_v18  ;;  %v10890_v1 = vld [vmem:[#allocation2 + $0x304] sm:$0xf0]  ;;  %v10968_v18 = vld [vmem:[#allocation2 + $0x574] sm:$0xf0] }
  0xad   : > { %3119 = vmatpush.bf16.msrb.mxu1 %v8391_v17 }
  0xae   : > { %3103 = vmatpush.bf16.msrb.mxu0 %v8303_v2 }
  0xb0   : > { %3159 = vmatpush.bf16.msrb.mxu3 %v8503_v24 }
  0xb1   : > { %3120 = vmatpush.bf16.msrb.mxu1 %v8383_v32  ;;  %v8430_v32 = vld [vmem:[#allocation2 + $0x310] sm:$0xf] }
  0xb2   : > { %v960_v22 = vpop.f32.mrf.mxu0  ;;  %v8431_v40 = vor.u32 %v10892_v33, %v8430_v32 }
  0xb3   : > { %v12302_v27 = vadd.f32 %v960_v22, %v12296_v13  ;;  %v979_v28 = vpop.f32.mrf.mxu1 }
  0xb4   : > { %v980_v31 = vadd.f32 %v979_v28, %v12299_v14  ;;  %v10874_v28 = vld [vmem:[#allocation2 + $0x284] sm:$0xf0]  ;;  %3141 = vmatpush.bf16.msrb.mxu2 %v8431_v40 }
  0xb5   : > { %v1319_v42 = vmul.f32 0.01, %v12302_v27  ;;  %vm1255_vm1 = vcmp.gt.f32.partialorder %v12302_v27, 0.0  ;;  %3121 = vmatpush.bf16.msrb.mxu1 %v8375_v51  ;;  %v10952_v51 = vld [vmem:[#allocation2 + $0x4f4] sm:$0xf0] }
  0xb6   : > { %vm1256_vm2 = vcmp.gt.f32.partialorder %v980_v31, 0.0  ;;  %v1320_v48 = vmul.f32 0.01, %v980_v31 }
  0xb7   : > { %v1383_v17 = vsel %vm1255_vm1, %v12302_v27, %v1319_v42  ;;  %v8359_v27 = vor.u32 %v10874_v28, %v8358_v26  ;;  %v8606_v42 = vld [vmem:[#allocation2 + $0x470] sm:$0xf]  ;;  %v10932_v28 = vld [vmem:[#allocation2 + $0x454] sm:$0xf0] }
  0xb8   : > { %v1384_v12 = vsel %vm1256_vm2, %v980_v31, %v1320_v48  ;;  %v8295_v31 = vor.u32 %v10858_v25, %v8294_v21  ;;  %v8495_v48 = vor.u32 %v10908_v41, %v8494_v34  ;;  %v10984_v25 = vld [vmem:[#allocation2 + $0x5f4] sm:$0xf0]  ;;  %v8590_v26 = vld [vmem:[#allocation2 + $0x450] sm:$0xf]  ;;  %v8726_v41 = vld [vmem:[#allocation2 + $0x560] sm:$0xf] }
  0xb9   : > { %3122 = vmatpush.bf16.msrb.mxu1 %v8367_v8  ;;  %v8799_v33 = vor.u32 %v10984_v25, %v8798_v19  ;;  %v8654_v34 = vld [vmem:[#allocation2 + $0x4d0] sm:$0xf]  ;;  %v8591_v40 = vor.u32 %v10932_v28, %v8590_v26  ;;  %v8710_v26 = vld [vmem:[#allocation2 + $0x540] sm:$0xf] }
  0xba   : > { %v998_v49 = vpop.f32.mrf.mxu2  ;;  %v1017_v55 = vpop.f32.mrf.mxu3  ;;  %3104 = vmatpush.bf16.msrb.mxu0 %v8295_v31  ;;  %3160 = vmatpush.bf16.msrb.mxu3 %v8495_v48  ;;  %v8638_v19 = vld [vmem:[#allocation2 + $0x4b0] sm:$0xf] }
  0xbb   : > { %v12314_v54 = vadd.f32 %v998_v49, %v12306_v38  ;;  %v962_v56 = vpop.f32.mrf.mxu0  ;;  %v12317_v62 = vadd.f32 %v1017_v55, %v12309_v39  ;;  %v981_v0 = vpop.f32.mrf.mxu1  ;;  %v8670_v49 = vld [vmem:[#allocation2 + $0x4f0] sm:$0xf]  ;;  %v8607_v55 = vor.u32 %v10936_v43, %v8606_v42 }
  0xbc   : > { %v963_v63 = vadd.f32 %v962_v56, %v12296_v13  ;;  %v982_v6 = vadd.f32 %v981_v0, %v12299_v14  ;;  %v8422_v56 = vld [vmem:[#allocation2 + $0x300] sm:$0xf]  ;;  %v8671_v0 = vor.u32 %v10952_v51, %v8670_v49 }
  0xbd   : > { %v12321_v5 = vmul.f32 0.01, %v12314_v54  ;;  %vm1257_vm3 = vcmp.gt.f32.partialorder %v12314_v54, 0.0  ;;  %v1322_v10 = vmul.f32 0.01, %v12317_v62  ;;  %vm1258_vm5 = vcmp.gt.f32.partialorder %v12317_v62, 0.0  ;;  %3123 = vmatpush.bf16.msrb.mxu1 %v8359_v27 }
  0xbe   : > { %vm1271_vm4 = vcmp.gt.f32.partialorder %v963_v63, 0.0  ;;  %v1335_v11 = vmul.f32 0.01, %v963_v63  ;;  %vm1272_vm6 = vcmp.gt.f32.partialorder %v982_v6, 0.0  ;;  %v1336_v15 = vmul.f32 0.01, %v982_v6 }
  0xbf   : > { %v1385_v57 = vsel %vm1257_vm3, %v12314_v54, %v12321_v5  ;;  %v1386_v59 = vsel %vm1258_vm5, %v12317_v62, %v1322_v10  ;;  %v8423_v4 = vor.u32 %v10890_v1, %v8422_v56  ;;  %v8486_v5 = vld [vmem:[#allocation2 + $0x380] sm:$0xf]  ;;  %v10906_v62 = vld [vmem:[#allocation2 + $0x384] sm:$0xf0] }
  0xc0   : > { %v1399_v58 = vsel %vm1271_vm4, %v963_v63, %v1335_v11  ;;  %v1400_v23 = vsel %vm1272_vm6, %v982_v6, %v1336_v15  ;;  %v8598_v6 = vld [vmem:[#allocation2 + $0x460] sm:$0xf]  ;;  %v8487_v9 = vor.u32 %v10906_v62, %v8486_v5  ;;  %v10934_v10 = vld [vmem:[#allocation2 + $0x464] sm:$0xf0]  ;;  %v10964_v5 = vld [vmem:[#allocation2 + $0x554] sm:$0xf0] }
  0xc1   : > { %v12334_v22 = vpack.c.bf16 %v1399_v58, %v1383_v17  ;;  %v12336_v29 = vpack.c.bf16 %v1400_v23, %v1384_v12  ;;  %v8662_v11 = vld [vmem:[#allocation2 + $0x4e0] sm:$0xf]  ;;  %v10950_v12 = vld [vmem:[#allocation2 + $0x4e4] sm:$0xf0]  ;;  %v8599_v16 = vor.u32 %v10934_v10, %v8598_v6  ;;  %v8734_v58 = vld [vmem:[#allocation2 + $0x570] sm:$0xf]  ;;  %3142 = vmatpush.bf16.msrb.mxu2 %v8423_v4 }
  0xc2   : > { %v1000_v30 = vpop.f32.mrf.mxu2  ;;  %v1019_v36 = vpop.f32.mrf.mxu3  ;;  %v8663_v17 = vor.u32 %v10950_v12, %v8662_v11  ;;  %v8735_v24 = vor.u32 %v10968_v18, %v8734_v58  ;;  %3161 = vmatpush.bf16.msrb.mxu3 %v8487_v9  ;;  %v8582_v56 = vld [vmem:[#allocation2 + $0x440] sm:$0xf]  ;;  %v8718_v4 = vld [vmem:[#allocation2 + $0x550] sm:$0xf]  ;;  %v10980_v12 = vld [vmem:[#allocation2 + $0x5d4] sm:$0xf0] }
  0xc3   : > { %v1001_v35 = vadd.f32 %v1000_v30, %v12306_v38  ;;  %v965_v37 = vpop.f32.mrf.mxu0  ;;  %3029 = vmatmul.bf16.vlgmr.msra.gmra.mxu0 %v12334_v22  ;;  %v1020_v44 = vadd.f32 %v1019_v36, %v12309_v39  ;;  %v984_v45 = vpop.f32.mrf.mxu1  ;;  %3048 = vmatmul.bf16.vlgmr.msra.gmra.mxu1 %v12336_v29  ;;  %v8782_v62 = vld [vmem:[#allocation2 + $0x5d0] sm:$0xf]  ;;  %v8719_v11 = vor.u32 %v10964_v5, %v8718_v4 }
  0xc4   : > { %v12349_v53 = vadd.f32 %v984_v45, %v12299_v14  ;;  %3173 = vmatpush.bf16.msra.mxu0 %v8607_v55  ;;  %v966_v54 = vadd.f32 %v965_v37, %v12296_v13  ;;  %3192 = vmatpush.bf16.msra.mxu1 %v8671_v0  ;;  %v10966_v45 = vld [vmem:[#allocation2 + $0x564] sm:$0xf0] }
  0xc5   : > { %vm1273_vm7 = vcmp.gt.f32.partialorder %v1001_v35, 0.0  ;;  %v1337_v52 = vmul.f32 0.01, %v1001_v35  ;;  %vm1274_vm8 = vcmp.gt.f32.partialorder %v1020_v44, 0.0  ;;  %v1338_v60 = vmul.f32 0.01, %v1020_v44 }
  0xc6   : > { %v1352_v63 = vmul.f32 0.01, %v12349_v53  ;;  %vm1288_vm9 = vcmp.gt.f32.partialorder %v12349_v53, 0.0  ;;  %v1351_v30 = vmul.f32 0.01, %v966_v54  ;;  %vm1287_vm10 = vcmp.gt.f32.partialorder %v966_v54, 0.0 }
  0xc7   : > { %v1401_v61 = vsel %vm1273_vm7, %v1001_v35, %v1337_v52  ;;  %v1402_v3 = vsel %vm1274_vm8, %v1020_v44, %v1338_v60  ;;  %v10948_v35 = vld [vmem:[#allocation2 + $0x4d4] sm:$0xf0]  ;;  %v8727_v51 = vor.u32 %v10966_v45, %v8726_v41  ;;  %v8790_v52 = vld [vmem:[#allocation2 + $0x5e0] sm:$0xf]  ;;  %v10982_v55 = vld [vmem:[#allocation2 + $0x5e4] sm:$0xf0] }
  0xc8   : > { %v12360_v2 = vpack.c.bf16 %v1401_v61, %v1385_v57  ;;  %v12363_v8 = vpack.c.bf16 %v1402_v3, %v1386_v59  ;;  %3174 = vmatpush.bf16.msra.mxu0 %v8599_v16  ;;  %3193 = vmatpush.bf16.msra.mxu1 %v8663_v17  ;;  %v1416_v43 = vsel %vm1288_vm9, %v12349_v53, %v1352_v63  ;;  %v10930_v53 = vld [vmem:[#allocation2 + $0x444] sm:$0xf0]  ;;  %v8646_v61 = vld [vmem:[#allocation2 + $0x4c0] sm:$0xf]  ;;  %v10928_v16 = vld [vmem:[#allocation2 + $0x434] sm:$0xf0] }
  0xc9   : > { %v1415_v48 = vsel %vm1287_vm10, %v966_v54, %v1351_v30  ;;  %v8791_v60 = vor.u32 %v10982_v55, %v8790_v52  ;;  %v10946_v63 = vld [vmem:[#allocation2 + $0x4c4] sm:$0xf0]  ;;  %v8583_v3 = vor.u32 %v10930_v53, %v8582_v56  ;;  %v12402_v30 = vperm.slane %v12293_v50, 7 }
  0xca   : > { %v1003_v15 = vpop.f32.mrf.mxu2  ;;  %3067 = vmatmul.bf16.vlgmr.msra.gmra.mxu2 %v12360_v2  ;;  %v1022_v21 = vpop.f32.mrf.mxu3  ;;  %3086 = vmatmul.bf16.vlgmr.msra.gmra.mxu3 %v12363_v8  ;;  %v8647_v54 = vor.u32 %v10946_v63, %v8646_v61  ;;  %v10926_v45 = vld [vmem:[#allocation2 + $0x424] sm:$0xf0]  ;;  %v8702_v63 = vld [vmem:[#allocation2 + $0x530] sm:$0xf] }
  0xcb   : > { %v12367_v20 = vadd.f32 %v1003_v15, %v12306_v38  ;;  %v967_v23 = vpop.f32.mrf.mxu0  ;;  %v12371_v31 = vadd.f32 %v1022_v21, %v12309_v39  ;;  %v986_v32 = vpop.f32.mrf.mxu1  ;;  %3211 = vmatpush.bf16.msra.mxu2 %v8735_v24  ;;  %3230 = vmatpush.bf16.msra.mxu3 %v8799_v33  ;;  %v8574_v15 = vld [vmem:[#allocation2 + $0x430] sm:$0xf]  ;;  %v10944_v21 = vld [vmem:[#allocation2 + $0x4b4] sm:$0xf0]  ;;  %v10942_v52 = vld [vmem:[#allocation2 + $0x4a4] sm:$0xf0] }
  0xcc   : > { %v968_v27 = vadd.f32 %v967_v23, %v12296_v13  ;;  %v987_v37 = vadd.f32 %v986_v32, %v12299_v14  ;;  %v8655_v14 = vor.u32 %v10948_v35, %v8654_v34  ;;  %3175 = vmatpush.bf16.msra.mxu0 %v8591_v40  ;;  %v8575_v25 = vor.u32 %v10928_v16, %v8574_v15  ;;  %v12411_v34 = vld [vmem:[%s13812_s2 + $0x8] sm:$0xff] }
  0xcd   : > { %v12375_v36 = vmul.f32 0.01, %v12367_v20  ;;  %v12379_v42 = vmul.f32 0.01, %v12371_v31  ;;  %vm1289_vm13 = vcmp.gt.f32.partialorder %v12367_v20, 0.0  ;;  %vm1290_vm14 = vcmp.gt.f32.partialorder %v12371_v31, 0.0 }
  0xce   : > { %v1367_v13 = vmul.f32 0.01, %v968_v27  ;;  %vm1303_vm11 = vcmp.gt.f32.partialorder %v968_v27, 0.0  ;;  %v1368_v44 = vmul.f32 0.01, %v987_v37  ;;  %vm1304_vm12 = vcmp.gt.f32.partialorder %v987_v37, 0.0  ;;  %3194 = vmatpush.bf16.msra.mxu1 %v8655_v14 }
  0xcf   : > { %3212 = vmatpush.bf16.msra.mxu2 %v8727_v51  ;;  %3231 = vmatpush.bf16.msra.mxu3 %v8791_v60  ;;  %v1417_v32 = vsel %vm1289_vm13, %v12367_v20, %v12375_v36  ;;  %v8639_v35 = vor.u32 %v10944_v21, %v8638_v19  ;;  %v1418_v40 = vsel %vm1290_vm14, %v12371_v31, %v12379_v42  ;;  %v8774_v20 = vld [vmem:[#allocation2 + $0x5c0] sm:$0xf]  ;;  %v10978_v36 = vld [vmem:[#allocation2 + $0x5c4] sm:$0xf0]  ;;  %v12427_v31 = vperm.slane %v12411_v34, 1 }
  0xd0   : > { %v1431_v49 = vsel %vm1303_vm11, %v968_v27, %v1367_v13  ;;  %v1432_v59 = vsel %vm1304_vm12, %v987_v37, %v1368_v44  ;;  %3176 = vmatpush.bf16.msra.mxu0 %v8583_v3  ;;  %v10962_v37 = vld [vmem:[#allocation2 + $0x544] sm:$0xf0]  ;;  %v8566_v14 = vld [vmem:[#allocation2 + $0x420] sm:$0xf]  ;;  %v8775_v42 = vor.u32 %v10978_v36, %v8774_v20  ;;  %v12430_v55 = vperm.slane %v12411_v34, 2 }
  0xd1   : > { %v12385_v57 = vpack.c.bf16 %v1431_v49, %v1415_v48  ;;  %v12387_v1 = vpack.c.bf16 %v1432_v59, %v1416_v43  ;;  %v12423_v43 = vperm.slane %v12411_v34, 0  ;;  %v8711_v44 = vor.u32 %v10962_v37, %v8710_v26  ;;  %v8630_v51 = vld [vmem:[#allocation2 + $0x4a0] sm:$0xf]  ;;  %v8766_v3 = vld [vmem:[#allocation2 + $0x5b0] sm:$0xf] }
  0xd2   : > { %v1005_v0 = vpop.f32.mrf.mxu2  ;;  %v1024_v9 = vpop.f32.mrf.mxu3  ;;  %3195 = vmatpush.bf16.msra.mxu1 %v8647_v54  ;;  %v8567_v49 = vor.u32 %v10926_v45, %v8566_v14  ;;  %v8631_v61 = vor.u32 %v10942_v52, %v8630_v51  ;;  %v12441_v15 = vperm.slane %v12411_v34, 3  ;;  %v10922_v20 = vld [vmem:[#allocation2 + $0x404] sm:$0xf0] }
  0xd3   : > { %v1006_v6 = vadd.f32 %v1005_v0, %v12306_v38  ;;  %v1036_v10 = vpop.f32.mrf.mxu0  ;;  %3034 = vmatmul.bf16.gmra.mxu0 %v12385_v57  ;;  %v1025_v17 = vadd.f32 %v1024_v9, %v12309_v39  ;;  %v1055_v18 = vpop.f32.mrf.mxu1  ;;  %3053 = vmatmul.bf16.gmra.mxu1 %v12387_v1  ;;  %v8783_v38 = vor.u32 %v10980_v12, %v8782_v62  ;;  %v10960_v0 = vld [vmem:[#allocation2 + $0x534] sm:$0xf0]  ;;  %v8558_v9 = vld [vmem:[#allocation2 + $0x410] sm:$0xf]  ;;  %v10938_v45 = vld [vmem:[#allocation2 + $0x484] sm:$0xf0] }
  0xd4   : > { %v12393_v58 = vadd.f32 %v1036_v10, %v12325_v7  ;;  %v1056_v24 = vadd.f32 %v1055_v18, %v12343_v46  ;;  %3213 = vmatpush.bf16.msra.mxu2 %v8719_v11  ;;  %3177 = vmatpush.bf16.msra.mxu0 %v8575_v25  ;;  %v8703_v62 = vor.u32 %v10960_v0, %v8702_v63  ;;  %v10924_v10 = vld [vmem:[#allocation2 + $0x414] sm:$0xf0] }
  0xd5   : > { %v1369_v23 = vmul.f32 0.01, %v1006_v6  ;;  %vm1305_vm15 = vcmp.gt.f32.partialorder %v1006_v6, 0.0  ;;  %v1370_v39 = vmul.f32 0.01, %v1025_v17  ;;  %vm1306_vm1 = vcmp.gt.f32.partialorder %v1025_v17, 0.0  ;;  %3232 = vmatpush.bf16.msra.mxu3 %v8783_v38 }
  0xd6   : > { %v12399_v28 = vmul.f32 0.01, %v12393_v58  ;;  %v1324_v27 = vmul.f32 0.01, %v1056_v24  ;;  %vm1260_vm2 = vcmp.gt.f32.partialorder %v1056_v24, 0.0  ;;  %vm1259_vm3 = vcmp.gt.f32.partialorder %v12393_v58, 0.0  ;;  %3196 = vmatpush.bf16.msra.mxu1 %v8639_v35 }
  0xd7   : > { %v1433_v33 = vsel %vm1305_vm15, %v1006_v6, %v1369_v23  ;;  %v1434_v41 = vsel %vm1306_vm1, %v1025_v17, %v1370_v39  ;;  %v10976_v6 = vld [vmem:[#allocation2 + $0x5b4] sm:$0xf0]  ;;  %v8622_v17 = vld [vmem:[#allocation2 + $0x490] sm:$0xf]  ;;  %v8559_v21 = vor.u32 %v10924_v10, %v8558_v9  ;;  %v8694_v39 = vld [vmem:[#allocation2 + $0x520] sm:$0xf] }
  0xd8   : > { %v12413_v50 = vpack.c.bf16 %v1433_v33, %v1417_v32  ;;  %v12420_v13 = vpack.c.bf16 %v1434_v41, %v1418_v40  ;;  %v1388_v56 = vsel %vm1260_vm2, %v1056_v24, %v1324_v27  ;;  %3214 = vmatpush.bf16.msra.mxu2 %v8711_v44  ;;  %3178 = vmatpush.bf16.msra.mxu0 %v8567_v49  ;;  %v10940_v23 = vld [vmem:[#allocation2 + $0x494] sm:$0xf0]  ;;  %v10958_v27 = vld [vmem:[#allocation2 + $0x524] sm:$0xf0]  ;;  %v8758_v32 = vld [vmem:[#allocation2 + $0x5a0] sm:$0xf] }
  0xd9   : > { %3233 = vmatpush.bf16.msra.mxu3 %v8775_v42  ;;  %v8767_v16 = vor.u32 %v10976_v6, %v8766_v3  ;;  %v1387_v24 = vsel %vm1259_vm3, %v12393_v58, %v12399_v28  ;;  %v8623_v26 = vor.u32 %v10940_v23, %v8622_v17  ;;  %v8695_v37 = vor.u32 %v10958_v27, %v8694_v39  ;;  %v10974_v40 = vld [vmem:[#allocation2 + $0x5a4] sm:$0xf0]  ;;  %v8550_v41 = vld [vmem:[#allocation2 + $0x400] sm:$0xf] }
  0xda   : > { %v1074_v48 = vpop.f32.mrf.mxu2  ;;  %3072 = vmatmul.bf16.gmra.mxu2 %v12413_v50  ;;  %v1093_v60 = vpop.f32.mrf.mxu3  ;;  %3091 = vmatmul.bf16.gmra.mxu3 %v12420_v13  ;;  %v8759_v14 = vor.u32 %v10974_v40, %v8758_v32  ;;  %v8551_v58 = vor.u32 %v10922_v20, %v8550_v41  ;;  %v8614_v28 = vld [vmem:[#allocation2 + $0x480] sm:$0xf]  ;;  %v10954_v39 = vld [vmem:[#allocation2 + $0x504] sm:$0xf0] }
  0xdb   : > { %v1075_v59 = vadd.f32 %v1074_v48, %v12346_v47  ;;  %v1038_v53 = vpop.f32.mrf.mxu0  ;;  %v12436_v54 = vadd.f32 %v1093_v60, %v12402_v30  ;;  %v1057_v5 = vpop.f32.mrf.mxu1  ;;  %3197 = vmatpush.bf16.msra.mxu1 %v8631_v61  ;;  %v8686_v48 = vld [vmem:[#allocation2 + $0x510] sm:$0xf]  ;;  %v8615_v60 = vor.u32 %v10938_v45, %v8614_v28  ;;  %v10972_v61 = vld [vmem:[#allocation2 + $0x594] sm:$0xf0]  ;;  %v8742_v27 = vld [vmem:[#allocation2 + $0x580] sm:$0xf] }
  0xdc   : > { %v1039_v4 = vadd.f32 %v1038_v53, %v12325_v7  ;;  %v1058_v12 = vadd.f32 %v1057_v5, %v12343_v46  ;;  %3215 = vmatpush.bf16.msra.mxu2 %v8703_v62  ;;  %3179 = vmatpush.bf16.msra.mxu0 %v8559_v21  ;;  %v10956_v53 = vld [vmem:[#allocation2 + $0x514] sm:$0xf0]  ;;  %v8926_v62 = vld [vmem:[#allocation2 + $0x6f0] sm:$0xf]  ;;  %v8678_v21 = vld [vmem:[#allocation2 + $0x500] sm:$0xf] }
  0xdd   : > { %v1325_v11 = vmul.f32 0.01, %v1075_v59  ;;  %vm1261_vm4 = vcmp.gt.f32.partialorder %v1075_v59, 0.0  ;;  %v12444_v18 = vmul.f32 0.01, %v12436_v54  ;;  %vm1262_vm6 = vcmp.gt.f32.partialorder %v12436_v54, 0.0  ;;  %3234 = vmatpush.bf16.msra.mxu3 %v8767_v16 }
  0xde   : > { %vm1275_vm5 = vcmp.gt.f32.partialorder %v1039_v4, 0.0  ;;  %v1339_v38 = vmul.f32 0.01, %v1039_v4  ;;  %vm1276_vm7 = vcmp.gt.f32.partialorder %v1058_v12, 0.0  ;;  %v1340_v19 = vmul.f32 0.01, %v1058_v12 }
  0xdf   : > { %3198 = vmatpush.bf16.msra.mxu1 %v8623_v26  ;;  %v1389_v42 = vsel %vm1261_vm4, %v1075_v59, %v1325_v11  ;;  %v8687_v59 = vor.u32 %v10956_v53, %v8686_v48  ;;  %v11000_v5 = vld [vmem:[#allocation2 + $0x674] sm:$0xf0]  ;;  %v1390_v23 = vsel %vm1262_vm6, %v12436_v54, %v12444_v18  ;;  %v10970_v32 = vld [vmem:[#allocation2 + $0x584] sm:$0xf0]  ;;  %v8854_v41 = vld [vmem:[#allocation2 + $0x660] sm:$0xf] }
  0xe0   : > { %v1403_v25 = vsel %vm1275_vm5, %v1039_v4, %v1339_v38  ;;  %v1404_v35 = vsel %vm1276_vm7, %v1058_v12, %v1340_v19  ;;  %3216 = vmatpush.bf16.msra.mxu2 %v8695_v37  ;;  %v8862_v4 = vld [vmem:[#allocation2 + $0x670] sm:$0xf]  ;;  %3180 = vmatpush.bf16.msra.mxu0 %v8551_v58  ;;  %v11016_v11 = vld [vmem:[#allocation2 + $0x6f4] sm:$0xf0]  ;;  %v8679_v37 = vor.u32 %v10954_v39, %v8678_v21  ;;  %v10998_v20 = vld [vmem:[#allocation2 + $0x664] sm:$0xf0] }
  0xe1   : > { %v12451_v33 = vpack.c.bf16 %v1403_v25, %v1387_v24  ;;  %v12453_v36 = vpack.c.bf16 %v1404_v35, %v1388_v56  ;;  %v8750_v56 = vld [vmem:[#allocation2 + $0x590] sm:$0xf]  ;;  %3235 = vmatpush.bf16.msra.mxu3 %v8759_v14  ;;  %v8863_v19 = vor.u32 %v11000_v5, %v8862_v4  ;;  %v8927_v26 = vor.u32 %v11016_v11, %v8926_v62  ;;  %v11014_v18 = vld [vmem:[#allocation2 + $0x6e4] sm:$0xf0]  ;;  %v11032_v28 = vld [vmem:[#allocation2 + $0x774] sm:$0xf0] }
  0xe2   : > { %v1076_v44 = vpop.f32.mrf.mxu2  ;;  %v1095_v51 = vpop.f32.mrf.mxu3  ;;  %v8751_v10 = vor.u32 %v10972_v61, %v8750_v56  ;;  %v8743_v40 = vor.u32 %v10970_v32, %v8742_v27  ;;  %v8855_v54 = vor.u32 %v10998_v20, %v8854_v41  ;;  %v8990_v58 = vld [vmem:[#allocation2 + $0x770] sm:$0xf]  ;;  %v11012_v5 = vld [vmem:[#allocation2 + $0x6d4] sm:$0xf0]  ;;  %v11030_v21 = vld [vmem:[#allocation2 + $0x764] sm:$0xf0] }
  0xe3   : > { %v1077_v49 = vadd.f32 %v1076_v44, %v12346_v47  ;;  %v1041_v52 = vpop.f32.mrf.mxu0  ;;  %3105 = vmatmul.bf16.vlgmr.msrb.gmra.mxu0 %v12451_v33  ;;  %v1096_v63 = vadd.f32 %v1095_v51, %v12402_v30  ;;  %v1060_v3 = vpop.f32.mrf.mxu1  ;;  %3124 = vmatmul.bf16.vlgmr.msrb.gmra.mxu1 %v12453_v36  ;;  %v8918_v44 = vld [vmem:[#allocation2 + $0x6e0] sm:$0xf]  ;;  %v8991_v51 = vor.u32 %v11032_v28, %v8990_v58  ;;  %v8846_v53 = vld [vmem:[#allocation2 + $0x650] sm:$0xf]  ;;  %v11010_v20 = vld [vmem:[#allocation2 + $0x6c4] sm:$0xf0] }
  0xe4   : > { %v12460_v0 = vadd.f32 %v1041_v52, %v12325_v7  ;;  %v1061_v9 = vadd.f32 %v1060_v3, %v12343_v46  ;;  %3199 = vmatpush.bf16.msra.mxu1 %v8615_v60  ;;  %3217 = vmatpush.bf16.msra.mxu2 %v8687_v59  ;;  %v9054_v52 = vld [vmem:[#allocation2 + $0x7f0] sm:$0xf]  ;;  %v11048_v60 = vld [vmem:[#allocation2 + $0x7f4] sm:$0xf0]  ;;  %v8838_v39 = vld [vmem:[#allocation2 + $0x640] sm:$0xf] }
  0xe5   : > { %vm1277_vm8 = vcmp.gt.f32.partialorder %v1077_v49, 0.0  ;;  %v1341_v6 = vmul.f32 0.01, %v1077_v49  ;;  %vm1278_vm9 = vcmp.gt.f32.partialorder %v1096_v63, 0.0  ;;  %v1342_v12 = vmul.f32 0.01, %v1096_v63  ;;  %3236 = vmatpush.bf16.msra.mxu3 %v8751_v10  ;;  %3249 = vmatpush.bf16.msrb.mxu0 %v8863_v19 }
  0xe6   : > { %v12465_v16 = vmul.f32 0.01, %v12460_v0  ;;  %vm1291_vm10 = vcmp.gt.f32.partialorder %v12460_v0, 0.0  ;;  %v1356_v38 = vmul.f32 0.01, %v1061_v9  ;;  %vm1292_vm11 = vcmp.gt.f32.partialorder %v1061_v9, 0.0 }
  0xe7   : > { %v1405_v17 = vsel %vm1277_vm8, %v1077_v49, %v1341_v6  ;;  %v1406_v25 = vsel %vm1278_vm9, %v1096_v63, %v1342_v12  ;;  %v8919_v49 = vor.u32 %v11014_v18, %v8918_v44  ;;  %v9055_v3 = vor.u32 %v11048_v60, %v9054_v52  ;;  %v10996_v59 = vld [vmem:[#allocation2 + $0x654] sm:$0xf0]  ;;  %v8910_v4 = vld [vmem:[#allocation2 + $0x6d0] sm:$0xf]  ;;  %v8982_v12 = vld [vmem:[#allocation2 + $0x760] sm:$0xf] }
  0xe8   : > { %v12472_v24 = vpack.c.bf16 %v1405_v17, %v1389_v42  ;;  %v12474_v35 = vpack.c.bf16 %v1406_v25, %v1390_v23  ;;  %3268 = vmatpush.bf16.msrb.mxu1 %v8927_v26  ;;  %3218 = vmatpush.bf16.msra.mxu2 %v8679_v37  ;;  %v1420_v10 = vsel %vm1292_vm11, %v1061_v9, %v1356_v38  ;;  %v9046_v25 = vld [vmem:[#allocation2 + $0x7e0] sm:$0xf]  ;;  %v11046_v26 = vld [vmem:[#allocation2 + $0x7e4] sm:$0xf0]  ;;  %v11028_v18 = vld [vmem:[#allocation2 + $0x754] sm:$0xf0] }
  0xe9   : > { %3237 = vmatpush.bf16.msra.mxu3 %v8743_v40  ;;  %3250 = vmatpush.bf16.msrb.mxu0 %v8855_v54  ;;  %v8847_v11 = vor.u32 %v10996_v59, %v8846_v53  ;;  %v1419_v9 = vsel %vm1291_vm10, %v12460_v0, %v12465_v16  ;;  %v8983_v23 = vor.u32 %v11030_v21, %v8982_v12  ;;  %v10994_v40 = vld [vmem:[#allocation2 + $0x644] sm:$0xf0]  ;;  %v8902_v41 = vld [vmem:[#allocation2 + $0x6c0] sm:$0xf]  ;;  %v8974_v16 = vld [vmem:[#allocation2 + $0x750] sm:$0xf] }
  0xea   : > { %v1079_v14 = vpop.f32.mrf.mxu2  ;;  %3143 = vmatmul.bf16.vlgmr.msrb.gmra.mxu2 %v12472_v24  ;;  %v1098_v48 = vpop.f32.mrf.mxu3  ;;  %3162 = vmatmul.bf16.vlgmr.msrb.gmra.mxu3 %v12474_v35  ;;  %v9047_v37 = vor.u32 %v11046_v26, %v9046_v25  ;;  %v8839_v54 = vor.u32 %v10994_v40, %v8838_v39  ;;  %v8903_v0 = vor.u32 %v11010_v20, %v8902_v41  ;;  %v9038_v58 = vld [vmem:[#allocation2 + $0x7d0] sm:$0xf]  ;;  %v10992_v60 = vld [vmem:[#allocation2 + $0x634] sm:$0xf0]  ;;  %v8966_v12 = vld [vmem:[#allocation2 + $0x740] sm:$0xf] }
  0xeb   : > { %v12478_v45 = vadd.f32 %v1079_v14, %v12346_v47  ;;  %v1043_v42 = vpop.f32.mrf.mxu0  ;;  %v12482_v56 = vadd.f32 %v1098_v48, %v12402_v30  ;;  %v1062_v63 = vpop.f32.mrf.mxu1  ;;  %v8830_v52 = vld [vmem:[#allocation2 + $0x630] sm:$0xf]  ;;  %v11042_v25 = vld [vmem:[#allocation2 + $0x7c4] sm:$0xf0]  ;;  %v8886_v41 = vld [vmem:[#allocation2 + $0x6a0] sm:$0xf] }
  0xec   : > { %v1044_v61 = vadd.f32 %v1043_v42, %v12325_v7  ;;  %v1063_v6 = vadd.f32 %v1062_v63, %v12343_v46  ;;  %3287 = vmatpush.bf16.msrb.mxu2 %v8991_v51  ;;  %3269 = vmatpush.bf16.msrb.mxu1 %v8919_v49  ;;  %v8911_v46 = vor.u32 %v11012_v5, %v8910_v4  ;;  %v11044_v51 = vld [vmem:[#allocation2 + $0x7d4] sm:$0xf0]  ;;  %v8894_v59 = vld [vmem:[#allocation2 + $0x6b0] sm:$0xf]  ;;  %v10990_v40 = vld [vmem:[#allocation2 + $0x624] sm:$0xf0] }
  0xed   : > { %v1357_v62 = vmul.f32 0.01, %v12478_v45  ;;  %v12489_v17 = vmul.f32 0.01, %v12482_v56  ;;  %vm1293_vm13 = vcmp.gt.f32.partialorder %v12478_v45, 0.0  ;;  %3306 = vmatpush.bf16.msrb.mxu3 %v9055_v3  ;;  %vm1294_vm15 = vcmp.gt.f32.partialorder %v12482_v56, 0.0  ;;  %3251 = vmatpush.bf16.msrb.mxu0 %v8847_v11 }
  0xee   : > { %v1371_v7 = vmul.f32 0.01, %v1044_v61  ;;  %vm1307_vm12 = vcmp.gt.f32.partialorder %v1044_v61, 0.0  ;;  %v1372_v19 = vmul.f32 0.01, %v1063_v6  ;;  %vm1308_vm14 = vcmp.gt.f32.partialorder %v1063_v6, 0.0 }
  0xef   : > { %v8975_v49 = vor.u32 %v11028_v18, %v8974_v16  ;;  %v9039_v3 = vor.u32 %v11044_v51, %v9038_v58  ;;  %v11008_v4 = vld [vmem:[#allocation2 + $0x6b4] sm:$0xf0] }
  0xf0   : > { %v1435_v38 = vsel %vm1307_vm12, %v1044_v61, %v1371_v7  ;;  %v1436_v32 = vsel %vm1308_vm14, %v1063_v6, %v1372_v19  ;;  %3270 = vmatpush.bf16.msrb.mxu1 %v8911_v46  ;;  %3288 = vmatpush.bf16.msrb.mxu2 %v8983_v23  ;;  %v8895_v11 = vor.u32 %v11008_v4, %v8894_v59  ;;  %v11026_v46 = vld [vmem:[#allocation2 + $0x744] sm:$0xf0]  ;;  %v9030_v23 = vld [vmem:[#allocation2 + $0x7c0] sm:$0xf]  ;;  %v11040_v51 = vld [vmem:[#allocation2 + $0x7b4] sm:$0xf0] }
  0xf1   : > { %v12497_v27 = vpack.c.bf16 %v1435_v38, %v1419_v9  ;;  %v12499_v14 = vpack.c.bf16 %v1436_v32, %v1420_v10  ;;  %3307 = vmatpush.bf16.msrb.mxu3 %v9047_v37  ;;  %3252 = vmatpush.bf16.msrb.mxu0 %v8839_v54  ;;  %v8831_v10 = vor.u32 %v10992_v60, %v8830_v52  ;;  %v12523_v38 = vperm.slane %v12411_v34, 4  ;;  %v8822_v37 = vld [vmem:[#allocation2 + $0x620] sm:$0xf]  ;;  %v10988_v59 = vld [vmem:[#allocation2 + $0x614] sm:$0xf0] }
  0xf2   : > { %v1081_v44 = vpop.f32.mrf.mxu2  ;;  %v1100_v48 = vpop.f32.mrf.mxu3  ;;  %v1422_v19 = vsel %vm1294_vm15, %v12482_v56, %v12489_v17  ;;  %v8967_v39 = vor.u32 %v11026_v46, %v8966_v12  ;;  %v9031_v32 = vor.u32 %v11042_v25, %v9030_v23  ;;  %v12529_v17 = vperm.slane %v12411_v34, 5  ;;  %v8878_v4 = vld [vmem:[#allocation2 + $0x690] sm:$0xf]  ;;  %v8950_v46 = vld [vmem:[#allocation2 + $0x720] sm:$0xf] }
  0xf3   : > { %v1082_v28 = vadd.f32 %v1081_v44, %v12346_v47  ;;  %v1112_v42 = vpop.f32.mrf.mxu0  ;;  %3110 = vmatmul.bf16.gmra.mxu0 %v12497_v27  ;;  %v1101_v53 = vadd.f32 %v1100_v48, %v12402_v30  ;;  %v1131_v63 = vpop.f32.mrf.mxu1  ;;  %3129 = vmatmul.bf16.gmra.mxu1 %v12499_v14  ;;  %v1421_v47 = vsel %vm1293_vm13, %v12478_v45, %v1357_v62  ;;  %v11006_v44 = vld [vmem:[#allocation2 + $0x6a4] sm:$0xf0]  ;;  %v12532_v54 = vperm.slane %v12411_v34, 6  ;;  %v9014_v25 = vld [vmem:[#allocation2 + $0x7a0] sm:$0xf] }
  0xf4   : > { %v12505_v61 = vadd.f32 %v1112_v42, %v12423_v43  ;;  %v1132_v6 = vadd.f32 %v1131_v63, %v12427_v31  ;;  %3271 = vmatpush.bf16.msrb.mxu1 %v8903_v0  ;;  %3289 = vmatpush.bf16.msrb.mxu2 %v8975_v49  ;;  %v8823_v20 = vor.u32 %v10990_v40, %v8822_v37  ;;  %v8958_v0 = vld [vmem:[#allocation2 + $0x730] sm:$0xf]  ;;  %v11024_v42 = vld [vmem:[#allocation2 + $0x734] sm:$0xf0]  ;;  %v11022_v23 = vld [vmem:[#allocation2 + $0x724] sm:$0xf0] }
  0xf5   : > { %v1373_v5 = vmul.f32 0.01, %v1082_v28  ;;  %vm1309_vm1 = vcmp.gt.f32.partialorder %v1082_v28, 0.0  ;;  %v1374_v30 = vmul.f32 0.01, %v1101_v53  ;;  %vm1310_vm3 = vcmp.gt.f32.partialorder %v1101_v53, 0.0  ;;  %3308 = vmatpush.bf16.msrb.mxu3 %v9039_v3  ;;  %3253 = vmatpush.bf16.msrb.mxu0 %v8831_v10 }
  0xf6   : > { %vm1263_vm2 = vcmp.gt.f32.partialorder %v12505_v61, 0.0  ;;  %v12514_v7 = vmul.f32 0.01, %v12505_v61  ;;  %v1328_v45 = vmul.f32 0.01, %v1132_v6  ;;  %vm1264_vm4 = vcmp.gt.f32.partialorder %v1132_v6, 0.0 }
  0xf7   : > { %v1437_v62 = vsel %vm1309_vm1, %v1082_v28, %v1373_v5  ;;  %v1438_v9 = vsel %vm1310_vm3, %v1101_v53, %v1374_v30  ;;  %v8887_v48 = vor.u32 %v11006_v44, %v8886_v41  ;;  %v9022_v49 = vld [vmem:[#allocation2 + $0x7b0] sm:$0xf]  ;;  %v8959_v63 = vor.u32 %v11024_v42, %v8958_v0  ;;  %v8870_v44 = vld [vmem:[#allocation2 + $0x680] sm:$0xf] }
  0xf8   : > { %v12520_v21 = vpack.c.bf16 %v1437_v62, %v1421_v47  ;;  %v12525_v26 = vpack.c.bf16 %v1438_v9, %v1422_v19  ;;  %3272 = vmatpush.bf16.msrb.mxu1 %v8895_v11  ;;  %v1392_v16 = vsel %vm1264_vm4, %v1132_v6, %v1328_v45  ;;  %3290 = vmatpush.bf16.msrb.mxu2 %v8967_v39  ;;  %v8814_v3 = vld [vmem:[#allocation2 + $0x610] sm:$0xf]  ;;  %v12548_v10 = vperm.slane %v12411_v34, 7  ;;  %v11004_v11 = vld [vmem:[#allocation2 + $0x694] sm:$0xf0] }
  0xf9   : > { %3309 = vmatpush.bf16.msrb.mxu3 %v9031_v32  ;;  %v9023_v47 = vor.u32 %v11040_v51, %v9022_v49  ;;  %3254 = vmatpush.bf16.msrb.mxu0 %v8823_v20  ;;  %v8815_v30 = vor.u32 %v10988_v59, %v8814_v3  ;;  %v8879_v19 = vor.u32 %v11004_v11, %v8878_v4  ;;  %v11038_v39 = vld [vmem:[#allocation2 + $0x7a4] sm:$0xf0]  ;;  %v10807_v3 = vld [vmem:[#allocation2 + $0x74] sm:$0xf]  ;;  %v8160_v11 = vld [vmem:[#allocation2 + $0xf8] sm:$0xf0] }
  0xfa   : > { %v1150_v56 = vpop.f32.mrf.mxu2  ;;  %3148 = vmatmul.bf16.gmra.mxu2 %v12520_v21  ;;  %v1169_v58 = vpop.f32.mrf.mxu3  ;;  %3167 = vmatmul.bf16.gmra.mxu3 %v12525_v26  ;;  %v1391_v34 = vsel %vm1263_vm2, %v12505_v61, %v12514_v7  ;;  %v8951_v40 = vor.u32 %v11022_v23, %v8950_v46  ;;  %v9015_v41 = vor.u32 %v11038_v39, %v9014_v25  ;;  %v10986_v20 = vld [vmem:[#allocation2 + $0x604] sm:$0xf0]  ;;  %v8942_v7 = vld [vmem:[#allocation2 + $0x710] sm:$0xf]  ;;  %v8934_v46 = vld [vmem:[#allocation2 + $0x700] sm:$0xf] }
  0xfb   : > { %v12536_v18 = vadd.f32 %v1150_v56, %v12430_v55  ;;  %v1114_v28 = vpop.f32.mrf.mxu0  ;;  %v12540_v52 = vadd.f32 %v1169_v58, %v12441_v15  ;;  %v1133_v53 = vpop.f32.mrf.mxu1  ;;  %v8806_v56 = vld [vmem:[#allocation2 + $0x600] sm:$0xf]  ;;  %v11002_v61 = vld [vmem:[#allocation2 + $0x684] sm:$0xf0] }
  0xfc   : > { %v1115_v60 = vadd.f32 %v1114_v28, %v12423_v43  ;;  %v1134_v6 = vadd.f32 %v1133_v53, %v12427_v31  ;;  %3273 = vmatpush.bf16.msrb.mxu1 %v8887_v48  ;;  %3291 = vmatpush.bf16.msrb.mxu2 %v8959_v63  ;;  %v8807_v28 = vor.u32 %v10986_v20, %v8806_v56  ;;  %v11020_v48 = vld [vmem:[#allocation2 + $0x714] sm:$0xf0]  ;;  %v9006_v63 = vld [vmem:[#allocation2 + $0x790] sm:$0xf] }
  0xfd   : > { %v12544_v5 = vmul.f32 0.01, %v12536_v18  ;;  %vm1265_vm5 = vcmp.gt.f32.partialorder %v12536_v18, 0.0  ;;  %v1330_v12 = vmul.f32 0.01, %v12540_v52  ;;  %vm1266_vm7 = vcmp.gt.f32.partialorder %v12540_v52, 0.0  ;;  %3310 = vmatpush.bf16.msrb.mxu3 %v9023_v47  ;;  %3255 = vmatpush.bf16.msrb.mxu0 %v8815_v30 }
  0xfe   : > { %vm1279_vm6 = vcmp.gt.f32.partialorder %v1115_v60, 0.0  ;;  %v1343_v45 = vmul.f32 0.01, %v1115_v60  ;;  %vm1280_vm8 = vcmp.gt.f32.partialorder %v1134_v6, 0.0  ;;  %v1344_v62 = vmul.f32 0.01, %v1134_v6 }
  0xff   : > { %v8943_v53 = vor.u32 %v11020_v48, %v8942_v7  ;;  %v11036_v47 = vld [vmem:[#allocation2 + $0x794] sm:$0xf0]  ;;  %v10823_v30 = vld [vmem:[#allocation2 + $0xf4] sm:$0xf]  ;;  %v8152_v7 = vld [vmem:[#allocation2 + $0xe8] sm:$0xf0] }
 0x100   : > { %v1407_v9 = vsel %vm1279_vm6, %v1115_v60, %v1343_v45  ;;  %v1408_v37 = vsel %vm1280_vm8, %v1134_v6, %v1344_v62  ;;  %3274 = vmatpush.bf16.msrb.mxu1 %v8879_v19  ;;  %3292 = vmatpush.bf16.msrb.mxu2 %v8951_v40  ;;  %v8871_v60 = vor.u32 %v11002_v61, %v8870_v44  ;;  %v8096_v6 = vld [vmem:[#allocation2 + $0x78] sm:$0xf0]  ;;  %v11018_v40 = vld [vmem:[#allocation2 + $0x704] sm:$0xf0]  ;;  %v10821_v61 = vld [vmem:[#allocation2 + $0xe4] sm:$0xf] }
 0x101   : > { %v12557_v32 = vpack.c.bf16 %v1407_v9, %v1391_v34  ;;  %v12559_v0 = vpack.c.bf16 %v1408_v37, %v1392_v16  ;;  %3311 = vmatpush.bf16.msrb.mxu3 %v9015_v41  ;;  %v9007_v4 = vor.u32 %v11036_v47, %v9006_v63  ;;  %3256 = vmatpush.bf16.msrb.mxu0 %v8807_v28  ;;  %v11034_v44 = vld [vmem:[#allocation2 + $0x784] sm:$0xf0]  ;;  %v8088_v28 = vld [vmem:[#allocation2 + $0x68] sm:$0xf0] }
 0x102   : > { %v1152_v58 = vpop.f32.mrf.mxu2  ;;  %v1171_v49 = vpop.f32.mrf.mxu3  ;;  %v8099_v19 = vor.u32 %v10807_v3, %v8096_v6  ;;  %v1393_v34 = vsel %vm1265_vm5, %v12536_v18, %v12544_v5  ;;  %v1394_v9 = vsel %vm1266_vm7, %v12540_v52, %v1330_v12  ;;  %v8163_v37 = vor.u32 %v10823_v30, %v8160_v11  ;;  %v8998_v5 = vld [vmem:[#allocation2 + $0x780] sm:$0xf]  ;;  %v10805_v52 = vld [vmem:[#allocation2 + $0x64] sm:$0xf]  ;;  %v8080_v6 = vld [vmem:[#allocation2 + $0x58] sm:$0xf0] }
 0x103   : > { %v1153_v42 = vadd.f32 %v1152_v58, %v12430_v55  ;;  %v1117_v51 = vpop.f32.mrf.mxu0  ;;  %3181 = vmatmul.bf16.vlgmr.msra.gmra.mxu0 %v12557_v32  ;;  %v1172_v16 = vadd.f32 %v1171_v49, %v12441_v15  ;;  %v1136_v59 = vpop.f32.mrf.mxu1  ;;  %3200 = vmatmul.bf16.vlgmr.msra.gmra.mxu1 %v12559_v0  ;;  %v8935_v18 = vor.u32 %v11018_v40, %v8934_v46  ;;  %v10837_v40 = vld [vmem:[#allocation2 + $0x164] sm:$0xf] }
 0x104   : > { %v1137_v62 = vadd.f32 %v1136_v59, %v12427_v31  ;;  %3275 = vmatpush.bf16.msrb.mxu1 %v8871_v60  ;;  %3293 = vmatpush.bf16.msrb.mxu2 %v8943_v53  ;;  %v1118_v20 = vadd.f32 %v1117_v51, %v12423_v43  ;;  %v8999_v58 = vor.u32 %v11034_v44, %v8998_v5  ;;  %v10839_v60 = vld [vmem:[#allocation2 + $0x174] sm:$0xf]  ;;  %v8224_v53 = vld [vmem:[#allocation2 + $0x178] sm:$0xf0]  ;;  %v8216_v44 = vld [vmem:[#allocation2 + $0x168] sm:$0xf0] }
 0x105   : > { %vm1281_vm9 = vcmp.gt.f32.partialorder %v1153_v42, 0.0  ;;  %v1345_v45 = vmul.f32 0.01, %v1153_v42  ;;  %vm1282_vm10 = vcmp.gt.f32.partialorder %v1172_v16, 0.0  ;;  %v1346_v23 = vmul.f32 0.01, %v1172_v16  ;;  %3325 = vmatpush.bf16.msra.mxu0 %v8099_v19  ;;  %3312 = vmatpush.bf16.msrb.mxu3 %v9007_v4 }
 0x106   : > { %vm1296_vm11 = vcmp.gt.f32.partialorder %v1137_v62, 0.0  ;;  %v1360_v39 = vmul.f32 0.01, %v1137_v62  ;;  %v8155_v49 = vor.u32 %v10821_v61, %v8152_v7  ;;  %v10855_v51 = vld [vmem:[#allocation2 + $0x1f4] sm:$0xf]  ;;  %vm1295_vm12 = vcmp.gt.f32.partialorder %v1118_v20, 0.0 }
 0x107   : > { %v1409_v25 = vsel %vm1281_vm9, %v1153_v42, %v1345_v45  ;;  %v1410_v56 = vsel %vm1282_vm10, %v1172_v16, %v1346_v23  ;;  %v8091_v42 = vor.u32 %v10805_v52, %v8088_v28  ;;  %v8227_v16 = vor.u32 %v10839_v60, %v8224_v53  ;;  %v8288_v59 = vld [vmem:[#allocation2 + $0x1f8] sm:$0xf0]  ;;  %v10803_v4 = vld [vmem:[#allocation2 + $0x54] sm:$0xf]  ;;  %v10853_v52 = vld [vmem:[#allocation2 + $0x1e4] sm:$0xf] }
 0x108   : > { %v12573_v41 = vpack.c.bf16 %v1409_v25, %v1393_v34  ;;  %v12576_v12 = vpack.c.bf16 %v1410_v56, %v1394_v9  ;;  %3344 = vmatpush.bf16.msra.mxu1 %v8163_v37  ;;  %3294 = vmatpush.bf16.msrb.mxu2 %v8935_v18  ;;  %v1359_v30 = vmul.f32 0.01, %v1118_v20  ;;  %v8291_v46 = vor.u32 %v10855_v51, %v8288_v59  ;;  %v10819_v34 = vld [vmem:[#allocation2 + $0xd4] sm:$0xf]  ;;  %v8144_v9 = vld [vmem:[#allocation2 + $0xd8] sm:$0xf0] }
 0x109   : > { %3313 = vmatpush.bf16.msrb.mxu3 %v8999_v58  ;;  %3326 = vmatpush.bf16.msra.mxu0 %v8091_v42  ;;  %v1424_v25 = vsel %vm1296_vm11, %v1137_v62, %v1360_v39  ;;  %v8083_v37 = vor.u32 %v10803_v4, %v8080_v6  ;;  %v8147_v5 = vor.u32 %v10819_v34, %v8144_v9  ;;  %v8280_v58 = vld [vmem:[#allocation2 + $0x1e8] sm:$0xf0]  ;;  %v10801_v28 = vld [vmem:[#allocation2 + $0x44] sm:$0xf]  ;;  %v10851_v59 = vld [vmem:[#allocation2 + $0x1d4] sm:$0xf] }
 0x10a   : > { %v1155_v48 = vpop.f32.mrf.mxu2  ;;  %3219 = vmatmul.bf16.vlgmr.msra.gmra.mxu2 %v12573_v41  ;;  %v1174_v47 = vpop.f32.mrf.mxu3  ;;  %3238 = vmatmul.bf16.vlgmr.msra.gmra.mxu3 %v12576_v12  ;;  %v8219_v39 = vor.u32 %v10837_v40, %v8216_v44  ;;  %v8072_v42 = vld [vmem:[#allocation2 + $0x48] sm:$0xf0]  ;;  %v8064_v34 = vld [vmem:[#allocation2 + $0x38] sm:$0xf0]  ;;  %v10815_v40 = vld [vmem:[#allocation2 + $0xb4] sm:$0xf] }
 0x10b   : > { %v12580_v63 = vadd.f32 %v1155_v48, %v12430_v55  ;;  %v1119_v3 = vpop.f32.mrf.mxu0  ;;  %v12584_v11 = vadd.f32 %v1174_v47, %v12441_v15  ;;  %v1138_v19 = vpop.f32.mrf.mxu1  ;;  %v8283_v48 = vor.u32 %v10853_v52, %v8280_v58  ;;  %v8136_v60 = vld [vmem:[#allocation2 + $0xc8] sm:$0xf0]  ;;  %v8075_v47 = vor.u32 %v10801_v28, %v8072_v42 }
 0x10c   : > { %v1120_v45 = vadd.f32 %v1119_v3, %v12423_v43  ;;  %v1139_v23 = vadd.f32 %v1138_v19, %v12427_v31  ;;  %3345 = vmatpush.bf16.msra.mxu1 %v8155_v49  ;;  %3363 = vmatpush.bf16.msra.mxu2 %v8227_v16  ;;  %v1423_v31 = vsel %vm1295_vm12, %v1118_v20, %v1359_v30  ;;  %v10817_v49 = vld [vmem:[#allocation2 + $0xc4] sm:$0xf]  ;;  %v10835_v3 = vld [vmem:[#allocation2 + $0x154] sm:$0xf]  ;;  %v8208_v16 = vld [vmem:[#allocation2 + $0x158] sm:$0xf0] }
 0x10d   : > { %vm1297_vm13 = vcmp.gt.f32.partialorder %v12580_v63, 0.0  ;;  %v1361_v56 = vmul.f32 0.01, %v12580_v63  ;;  %3382 = vmatpush.bf16.msra.mxu3 %v8291_v46  ;;  %vm1298_vm15 = vcmp.gt.f32.partialorder %v12584_v11, 0.0  ;;  %3327 = vmatpush.bf16.msra.mxu0 %v8083_v37  ;;  %v8139_v20 = vor.u32 %v10817_v49, %v8136_v60  ;;  %v8272_v19 = vld [vmem:[#allocation2 + $0x1d8] sm:$0xf0] }
 0x10e   : > { %vm1311_vm14 = vcmp.gt.f32.partialorder %v1120_v45, 0.0  ;;  %v1375_v43 = vmul.f32 0.01, %v1120_v45  ;;  %vm1312_vm1 = vcmp.gt.f32.partialorder %v1139_v23, 0.0  ;;  %v1376_v18 = vmul.f32 0.01, %v1139_v23 }
 0x10f   : > { %v10799_v46 = vld [vmem:[#allocation2 + $0x34] sm:$0xf]  ;;  %v1362_v9 = vmul.f32 0.01, %v12584_v11 }
 0x110   : > { %v1439_v62 = vsel %vm1311_vm14, %v1120_v45, %v1375_v43  ;;  %v1440_v7 = vsel %vm1312_vm1, %v1139_v23, %v1376_v18  ;;  %3346 = vmatpush.bf16.msra.mxu1 %v8147_v5  ;;  %3364 = vmatpush.bf16.msra.mxu2 %v8219_v39  ;;  %v8211_v45 = vor.u32 %v10835_v3, %v8208_v16  ;;  %v8128_v43 = vld [vmem:[#allocation2 + $0xb8] sm:$0xf0]  ;;  %v8056_v3 = vld [vmem:[#allocation2 + $0x28] sm:$0xf0]  ;;  %v10813_v16 = vld [vmem:[#allocation2 + $0xa4] sm:$0xf] }
 0x111   : > { %v12593_v61 = vpack.c.bf16 %v1439_v62, %v1423_v31  ;;  %v12595_v51 = vpack.c.bf16 %v1440_v7, %v1424_v25  ;;  %3383 = vmatpush.bf16.msra.mxu3 %v8283_v48  ;;  %3328 = vmatpush.bf16.msra.mxu0 %v8075_v47  ;;  %v8067_v44 = vor.u32 %v10799_v46, %v8064_v34  ;;  %v10833_v31 = vld [vmem:[#allocation2 + $0x144] sm:$0xf]  ;;  %v8200_v7 = vld [vmem:[#allocation2 + $0x148] sm:$0xf0] }
 0x112   : > { %v1157_v53 = vpop.f32.mrf.mxu2  ;;  %v1176_v6 = vpop.f32.mrf.mxu3  ;;  %v1425_v62 = vsel %vm1297_vm13, %v12580_v63, %v1361_v56  ;;  %v8131_v28 = vor.u32 %v10815_v40, %v8128_v43  ;;  %v1426_v42 = vsel %vm1298_vm15, %v12584_v11, %v1362_v9  ;;  %v8203_v60 = vor.u32 %v10833_v31, %v8200_v7  ;;  %v8264_v63 = vld [vmem:[#allocation2 + $0x1c8] sm:$0xf0]  ;;  %v10797_v56 = vld [vmem:[#allocation2 + $0x24] sm:$0xf]  ;;  %v8192_v11 = vld [vmem:[#allocation2 + $0x138] sm:$0xf0] }
 0x113   : > { %v1158_v4 = vadd.f32 %v1157_v53, %v12430_v55  ;;  %v1188_v30 = vpop.f32.mrf.mxu0  ;;  %3186 = vmatmul.bf16.gmra.mxu0 %v12593_v61  ;;  %v1177_v23 = vadd.f32 %v1176_v6, %v12441_v15  ;;  %v1207_v37 = vpop.f32.mrf.mxu1  ;;  %3205 = vmatmul.bf16.gmra.mxu1 %v12595_v51  ;;  %v8275_v55 = vor.u32 %v10851_v59, %v8272_v19  ;;  %v10849_v53 = vld [vmem:[#allocation2 + $0x1c4] sm:$0xf]  ;;  %v8120_v59 = vld [vmem:[#allocation2 + $0xa8] sm:$0xf0]  ;;  %v10847_v19 = vld [vmem:[#allocation2 + $0x1b4] sm:$0xf] }
 0x114   : > { %v12602_v25 = vadd.f32 %v1188_v30, %v12523_v38  ;;  %v12606_v5 = vadd.f32 %v1207_v37, %v12529_v17  ;;  %3347 = vmatpush.bf16.msra.mxu1 %v8139_v20  ;;  %3365 = vmatpush.bf16.msra.mxu2 %v8211_v45  ;;  %v8267_v20 = vor.u32 %v10849_v53, %v8264_v63  ;;  %v10831_v45 = vld [vmem:[#allocation2 + $0x134] sm:$0xf]  ;;  %v8256_v37 = vld [vmem:[#allocation2 + $0x1b8] sm:$0xf0]  ;;  %v10829_v7 = vld [vmem:[#allocation2 + $0x124] sm:$0xf] }
 0x115   : > { %vm1313_vm2 = vcmp.gt.f32.partialorder %v1158_v4, 0.0  ;;  %v1377_v18 = vmul.f32 0.01, %v1158_v4  ;;  %vm1314_vm3 = vcmp.gt.f32.partialorder %v1177_v23, 0.0  ;;  %v1378_v15 = vmul.f32 0.01, %v1177_v23  ;;  %3384 = vmatpush.bf16.msra.mxu3 %v8275_v55  ;;  %3329 = vmatpush.bf16.msra.mxu0 %v8067_v44 }
 0x116   : > { %vm1267_vm4 = vcmp.gt.f32.partialorder %v12602_v25, 0.0  ;;  %v1331_v39 = vmul.f32 0.01, %v12602_v25  ;;  %v1332_v52 = vmul.f32 0.01, %v12606_v5  ;;  %v8059_v6 = vor.u32 %v10797_v56, %v8056_v3 }
 0x117   : > { %v1441_v58 = vsel %vm1313_vm2, %v1158_v4, %v1377_v18  ;;  %v1442_v49 = vsel %vm1314_vm3, %v1177_v23, %v1378_v15  ;;  %v8123_v30 = vor.u32 %v10813_v16, %v8120_v59  ;;  %v8195_v23 = vor.u32 %v10831_v45, %v8192_v11  ;;  %v10795_v55 = vld [vmem:[#allocation2 + $0x14] sm:$0xf]  ;;  %v8048_v40 = vld [vmem:[#allocation2 + $0x18] sm:$0xf0]  ;;  %v10845_v3 = vld [vmem:[#allocation2 + $0x1a4] sm:$0xf] }
 0x118   : > { %v12614_v48 = vpack.c.bf16 %v1441_v58, %v1425_v62  ;;  %v12619_v47 = vpack.c.bf16 %v1442_v49, %v1426_v42  ;;  %3348 = vmatpush.bf16.msra.mxu1 %v8131_v28  ;;  %3366 = vmatpush.bf16.msra.mxu2 %v8203_v60  ;;  %vm1268_vm5 = vcmp.gt.f32.partialorder %v12606_v5, 0.0  ;;  %v8259_v31 = vor.u32 %v10847_v19, %v8256_v37  ;;  %v10811_v15 = vld [vmem:[#allocation2 + $0x94] sm:$0xf]  ;;  %v8112_v62 = vld [vmem:[#allocation2 + $0x98] sm:$0xf0] }
 0x119   : > { %3385 = vmatpush.bf16.msra.mxu3 %v8267_v20  ;;  %3330 = vmatpush.bf16.msra.mxu0 %v8059_v6  ;;  %v8051_v28 = vor.u32 %v10795_v55, %v8048_v40  ;;  %v8184_v42 = vld [vmem:[#allocation2 + $0x128] sm:$0xf0]  ;;  %v1395_v49 = vsel %vm1267_vm4, %v12602_v25, %v1331_v39  ;;  %v1396_v63 = vsel %vm1268_vm5, %v12606_v5, %v1332_v52  ;;  %v10793_v59 = vld [vmem:[#allocation2 + $0x4] sm:$0xf]  ;;  %v8176_v37 = vld [vmem:[#allocation2 + $0x118] sm:$0xf0] }
 0x11a   : > { %v1226_v4 = vpop.f32.mrf.mxu2  ;;  %3224 = vmatmul.bf16.gmra.mxu2 %v12614_v48  ;;  %v1245_v34 = vpop.f32.mrf.mxu3  ;;  %3243 = vmatmul.bf16.gmra.mxu3 %v12619_v47  ;;  %v8115_v20 = vor.u32 %v10811_v15, %v8112_v62  ;;  %v8187_v25 = vor.u32 %v10829_v7, %v8184_v42  ;;  %v8248_v39 = vld [vmem:[#allocation2 + $0x1a8] sm:$0xf0]  ;;  %v10809_v45 = vld [vmem:[#allocation2 + $0x84] sm:$0xf]  ;;  %v10843_v15 = vld [vmem:[#allocation2 + $0x194] sm:$0xf] }
 0x11b   : > { %v12623_v46 = vadd.f32 %v1226_v4, %v12532_v54  ;;  %v1190_v9 = vpop.f32.mrf.mxu0  ;;  %v12628_v43 = vadd.f32 %v1245_v34, %v12548_v10  ;;  %v1209_v44 = vpop.f32.mrf.mxu1  ;;  %v8251_v52 = vor.u32 %v10845_v3, %v8248_v39  ;;  %v8240_v62 = vld [vmem:[#allocation2 + $0x198] sm:$0xf0] }
 0x11c   : > { %v1191_v18 = vadd.f32 %v1190_v9, %v12523_v38  ;;  %v1210_v58 = vadd.f32 %v1209_v44, %v12529_v17  ;;  %3349 = vmatpush.bf16.msra.mxu1 %v8123_v30  ;;  %3367 = vmatpush.bf16.msra.mxu2 %v8195_v23  ;;  %v8040_v30 = vld [vmem:[#allocation2 + $0x8] sm:$0xf0]  ;;  %v10827_v23 = vld [vmem:[#allocation2 + $0x114] sm:$0xf]  ;;  %v8243_v42 = vor.u32 %v10843_v15, %v8240_v62 }
 0x11d   : > { %v1333_v60 = vmul.f32 0.01, %v12623_v46  ;;  %vm1269_vm8 = vcmp.gt.f32.partialorder %v12623_v46, 0.0  ;;  %vm1270_vm9 = vcmp.gt.f32.partialorder %v12628_v43, 0.0  ;;  %3386 = vmatpush.bf16.msra.mxu3 %v8259_v31  ;;  %3331 = vmatpush.bf16.msra.mxu0 %v8051_v28  ;;  %v1334_v4 = vmul.f32 0.01, %v12628_v43 }
 0x11e   : > { %vm1283_vm6 = vcmp.gt.f32.partialorder %v1191_v18, 0.0  ;;  %v1347_v53 = vmul.f32 0.01, %v1191_v18  ;;  %vm1284_vm7 = vcmp.gt.f32.partialorder %v1210_v58, 0.0  ;;  %v1348_v56 = vmul.f32 0.01, %v1210_v58 }
 0x11f   : > { %v8043_v34 = vor.u32 %v10793_v59, %v8040_v30  ;;  %v8104_v9 = vld [vmem:[#allocation2 + $0x88] sm:$0xf0]  ;;  %v8179_v31 = vor.u32 %v10827_v23, %v8176_v37  ;;  %v1398_v39 = vsel %vm1270_vm9, %v12628_v43, %v1334_v4  ;;  %v10869_v4 = vld [vmem:[#allocation2 + $0x264] sm:$0xf] }
 0x120   : > { %v1411_v16 = vsel %vm1283_vm6, %v1191_v18, %v1347_v53  ;;  %v1412_v5 = vsel %vm1284_vm7, %v1210_v58, %v1348_v56  ;;  %3350 = vmatpush.bf16.msra.mxu1 %v8115_v20  ;;  %3368 = vmatpush.bf16.msra.mxu2 %v8187_v25  ;;  %v8107_v44 = vor.u32 %v10809_v45, %v8104_v9  ;;  %v10871_v58 = vld [vmem:[#allocation2 + $0x274] sm:$0xf]  ;;  %v8168_v45 = vld [vmem:[#allocation2 + $0x108] sm:$0xf0]  ;;  %v10841_v9 = vld [vmem:[#allocation2 + $0x184] sm:$0xf] }
 0x121   : > { %v12642_v6 = vpack.c.bf16 %v1411_v16, %v1395_v49  ;;  %v12644_v11 = vpack.c.bf16 %v1412_v5, %v1396_v63  ;;  %3387 = vmatpush.bf16.msra.mxu3 %v8251_v52  ;;  %v8352_v49 = vld [vmem:[#allocation2 + $0x278] sm:$0xf0]  ;;  %v10887_v53 = vld [vmem:[#allocation2 + $0x2f4] sm:$0xf]  ;;  %3332 = vmatpush.bf16.msra.mxu0 %v8043_v34  ;;  %v10825_v16 = vld [vmem:[#allocation2 + $0x104] sm:$0xf]  ;;  %v1397_v25 = vsel %vm1269_vm8, %v12623_v46, %v1333_v60 }
 0x122   : > { %v1228_v19 = vpop.f32.mrf.mxu2  ;;  %v1247_v40 = vpop.f32.mrf.mxu3  ;;  %v8416_v63 = vld [vmem:[#allocation2 + $0x2f8] sm:$0xf0]  ;;  %v8355_v3 = vor.u32 %v10871_v58, %v8352_v49  ;;  %v8171_v60 = vor.u32 %v10825_v16, %v8168_v45  ;;  %v8232_v43 = vld [vmem:[#allocation2 + $0x188] sm:$0xf0]  ;;  %v10903_v58 = vld [vmem:[#allocation2 + $0x374] sm:$0xf] }
 0x123   : > { %v1229_v55 = vadd.f32 %v1228_v19, %v12532_v54  ;;  %v1193_v18 = vpop.f32.mrf.mxu0  ;;  %3257 = vmatmul.bf16.vlgmr.msrb.gmra.mxu0 %v12642_v6  ;;  %v1248_v28 = vadd.f32 %v1247_v40, %v12548_v10  ;;  %v1212_v7 = vpop.f32.mrf.mxu1  ;;  %3276 = vmatmul.bf16.vlgmr.msrb.gmra.mxu1 %v12644_v11  ;;  %v8419_v30 = vor.u32 %v10887_v53, %v8416_v63  ;;  %v10885_v40 = vld [vmem:[#allocation2 + $0x2e4] sm:$0xf]  ;;  %v8544_v63 = vld [vmem:[#allocation2 + $0x3f8] sm:$0xf0] }
 0x124   : > { %v12651_v20 = vadd.f32 %v1212_v7, %v12529_v17  ;;  %3351 = vmatpush.bf16.msra.mxu1 %v8107_v44  ;;  %3369 = vmatpush.bf16.msra.mxu2 %v8179_v31  ;;  %v1194_v46 = vadd.f32 %v1193_v18, %v12523_v38  ;;  %v8235_v37 = vor.u32 %v10841_v9, %v8232_v43  ;;  %v8408_v44 = vld [vmem:[#allocation2 + $0x2e8] sm:$0xf0]  ;;  %v10919_v18 = vld [vmem:[#allocation2 + $0x3f4] sm:$0xf] }
 0x125   : > { %vm1285_vm10 = vcmp.gt.f32.partialorder %v1229_v55, 0.0  ;;  %v1349_v56 = vmul.f32 0.01, %v1229_v55  ;;  %vm1286_vm11 = vcmp.gt.f32.partialorder %v1248_v28, 0.0  ;;  %v1350_v59 = vmul.f32 0.01, %v1248_v28  ;;  %3401 = vmatpush.bf16.msrb.mxu0 %v8355_v3  ;;  %3388 = vmatpush.bf16.msra.mxu3 %v8243_v42 }
 0x126   : > { %vm1300_vm12 = vcmp.gt.f32.partialorder %v12651_v20, 0.0  ;;  %v1364_v52 = vmul.f32 0.01, %v12651_v20  ;;  %v8411_v62 = vor.u32 %v10885_v40, %v8408_v44  ;;  %v8336_v3 = vld [vmem:[#allocation2 + $0x258] sm:$0xf0]  ;;  %vm1299_vm13 = vcmp.gt.f32.partialorder %v1194_v46, 0.0 }
 0x127   : > { %v1413_v5 = vsel %vm1285_vm10, %v1229_v55, %v1349_v56  ;;  %v1414_v34 = vsel %vm1286_vm11, %v1248_v28, %v1350_v59  ;;  %v8344_v55 = vld [vmem:[#allocation2 + $0x268] sm:$0xf0]  ;;  %v8480_v28 = vld [vmem:[#allocation2 + $0x378] sm:$0xf0]  ;;  %v10867_v56 = vld [vmem:[#allocation2 + $0x254] sm:$0xf]  ;;  %v8547_v59 = vor.u32 %v10919_v18, %v8544_v63 }
 0x128   : > { %v12661_v19 = vpack.c.bf16 %v1413_v5, %v1397_v25  ;;  %v12664_v23 = vpack.c.bf16 %v1414_v34, %v1398_v39  ;;  %3420 = vmatpush.bf16.msrb.mxu1 %v8419_v30  ;;  %v8347_v15 = vor.u32 %v10869_v4, %v8344_v55  ;;  %3370 = vmatpush.bf16.msra.mxu2 %v8171_v60  ;;  %v1363_v16 = vmul.f32 0.01, %v1194_v46  ;;  %v10883_v5 = vld [vmem:[#allocation2 + $0x2d4] sm:$0xf]  ;;  %v8400_v30 = vld [vmem:[#allocation2 + $0x2d8] sm:$0xf0] }
 0x129   : > { %v8483_v53 = vor.u32 %v10903_v58, %v8480_v28  ;;  %3389 = vmatpush.bf16.msra.mxu3 %v8235_v37  ;;  %v8339_v34 = vor.u32 %v10867_v56, %v8336_v3  ;;  %v10901_v60 = vld [vmem:[#allocation2 + $0x364] sm:$0xf]  ;;  %v8403_v37 = vor.u32 %v10883_v5, %v8400_v30  ;;  %v8472_v55 = vld [vmem:[#allocation2 + $0x368] sm:$0xf0]  ;;  %v10899_v3 = vld [vmem:[#allocation2 + $0x354] sm:$0xf] }
 0x12a   : > { %v1231_v31 = vpop.f32.mrf.mxu2  ;;  %3295 = vmatmul.bf16.vlgmr.msrb.gmra.mxu2 %v12661_v19  ;;  %v1250_v42 = vpop.f32.mrf.mxu3  ;;  %3314 = vmatmul.bf16.vlgmr.msrb.gmra.mxu3 %v12664_v23  ;;  %v1427_v40 = vsel %vm1299_vm13, %v1194_v46, %v1363_v16  ;;  %v10865_v58 = vld [vmem:[#allocation2 + $0x244] sm:$0xf]  ;;  %v8328_v18 = vld [vmem:[#allocation2 + $0x248] sm:$0xf0]  ;;  %v8464_v16 = vld [vmem:[#allocation2 + $0x358] sm:$0xf0] }
 0x12b   : > { %v12668_v7 = vadd.f32 %v1231_v31, %v12532_v54  ;;  %v1195_v49 = vpop.f32.mrf.mxu0  ;;  %v1214_v39 = vpop.f32.mrf.mxu1  ;;  %3402 = vmatpush.bf16.msrb.mxu0 %v8347_v15  ;;  %v8475_v31 = vor.u32 %v10901_v60, %v8472_v55  ;;  %v10917_v15 = vld [vmem:[#allocation2 + $0x3e4] sm:$0xf]  ;;  %v8467_v5 = vor.u32 %v10899_v3, %v8464_v16  ;;  %v8528_v30 = vld [vmem:[#allocation2 + $0x3d8] sm:$0xf0]  ;;  %v8312_v3 = vld [vmem:[#allocation2 + $0x228] sm:$0xf0] }
 0x12c   : > { %v1196_v25 = vadd.f32 %v1195_v49, %v12523_v38  ;;  %v1215_v45 = vadd.f32 %v1214_v39, %v12529_v17  ;;  %3421 = vmatpush.bf16.msrb.mxu1 %v8411_v62  ;;  %3439 = vmatpush.bf16.msrb.mxu2 %v8483_v53  ;;  %v1428_v38 = vsel %vm1300_vm12, %v12651_v20, %v1364_v52  ;;  %v8536_v62 = vld [vmem:[#allocation2 + $0x3e8] sm:$0xf0]  ;;  %v10881_v49 = vld [vmem:[#allocation2 + $0x2c4] sm:$0xf]  ;;  %v8384_v55 = vld [vmem:[#allocation2 + $0x2b8] sm:$0xf0] }
 0x12d   : > { %v1365_v9 = vmul.f32 0.01, %v12668_v7  ;;  %3458 = vmatpush.bf16.msrb.mxu3 %v8547_v59  ;;  %vm1301_vm15 = vcmp.gt.f32.partialorder %v12668_v7, 0.0  ;;  %v1251_v17 = vadd.f32 %v1250_v42, %v12548_v10  ;;  %v8539_v52 = vor.u32 %v10917_v15, %v8536_v62  ;;  %v8392_v53 = vld [vmem:[#allocation2 + $0x2c8] sm:$0xf0] }
 0x12e   : > { %vm1315_vm14 = vcmp.gt.f32.partialorder %v1196_v25, 0.0  ;;  %v1379_v43 = vmul.f32 0.01, %v1196_v25  ;;  %vm1316_vm1 = vcmp.gt.f32.partialorder %v1215_v45, 0.0  ;;  %v1380_v4 = vmul.f32 0.01, %v1215_v45 }
 0x12f   : > { %3403 = vmatpush.bf16.msrb.mxu0 %v8339_v34  ;;  %v8331_v42 = vor.u32 %v10865_v58, %v8328_v18  ;;  %v8395_v46 = vor.u32 %v10881_v49, %v8392_v53  ;;  %v8320_v34 = vld [vmem:[#allocation2 + $0x238] sm:$0xf0]  ;;  %v1366_v60 = vmul.f32 0.01, %v1251_v17  ;;  %vm1302_vm2 = vcmp.gt.f32.partialorder %v1251_v17, 0.0 }
 0x130   : > { %v1443_v44 = vsel %vm1315_vm14, %v1196_v25, %v1379_v43  ;;  %v1444_v20 = vsel %vm1316_vm1, %v1215_v45, %v1380_v4  ;;  %3422 = vmatpush.bf16.msrb.mxu1 %v8403_v37  ;;  %3440 = vmatpush.bf16.msrb.mxu2 %v8475_v31  ;;  %v10915_v25 = vld [vmem:[#allocation2 + $0x3d4] sm:$0xf]  ;;  %v8456_v15 = vld [vmem:[#allocation2 + $0x348] sm:$0xf0]  ;;  %v12694_v58 = vld [vmem:[%s13814_s4] sm:$0x3] }
 0x131   : > { %v12680_v28 = vpack.c.bf16 %v1443_v44, %v1427_v40  ;;  %v12682_v56 = vpack.c.bf16 %v1444_v20, %v1428_v38  ;;  %3459 = vmatpush.bf16.msrb.mxu3 %v8539_v52  ;;  %v10863_v45 = vld [vmem:[#allocation2 + $0x234] sm:$0xf]  ;;  %v8531_v38 = vor.u32 %v10915_v25, %v8528_v30  ;;  %v10897_v44 = vld [vmem:[#allocation2 + $0x344] sm:$0xf]  ;;  %v8520_v18 = vld [vmem:[#allocation2 + $0x3c8] sm:$0xf0] }
 0x132   : > { %v1233_v63 = vpop.f32.mrf.mxu2  ;;  %v1252_v59 = vpop.f32.mrf.mxu3  ;;  %v8323_v4 = vor.u32 %v10863_v45, %v8320_v34  ;;  %v10879_v37 = vld [vmem:[#allocation2 + $0x2b4] sm:$0xf]  ;;  %v8459_v20 = vor.u32 %v10897_v44, %v8456_v15  ;;  %v10913_v52 = vld [vmem:[#allocation2 + $0x3c4] sm:$0xf]  ;;  %v8512_v45 = vld [vmem:[#allocation2 + $0x3b8] sm:$0xf0] }
 0x133   : > { %v1234_v39 = vadd.f32 %v1233_v63, %v12532_v54  ;;  %3262 = vmatmul.bf16.gmra.mxu0 %v12680_v28  ;;  %v1253_v43 = vadd.f32 %v1252_v59, %v12548_v10  ;;  %3281 = vmatmul.bf16.gmra.mxu1 %v12682_v56  ;;  %v8387_v40 = vor.u32 %v10879_v37, %v8384_v55  ;;  %v10861_v49 = vld [vmem:[#allocation2 + $0x224] sm:$0xf]  ;;  %v10895_v59 = vld [vmem:[#allocation2 + $0x334] sm:$0xf]  ;;  %v8368_v55 = vld [vmem:[#allocation2 + $0x298] sm:$0xf0] }
 0x134   : > { %3404 = vmatpush.bf16.msrb.mxu0 %v8331_v42  ;;  %3423 = vmatpush.bf16.msrb.mxu1 %v8395_v46  ;;  %v1429_v10 = vsel %vm1301_vm15, %v12668_v7, %v1365_v9  ;;  %v1430_v63 = vsel %vm1302_vm2, %v1251_v17, %v1366_v60  ;;  %v8523_v46 = vor.u32 %v10913_v52, %v8520_v18  ;;  %v10877_v7 = vld [vmem:[#allocation2 + $0x2a4] sm:$0xf]  ;;  %v8376_v9 = vld [vmem:[#allocation2 + $0x2a8] sm:$0xf0]  ;;  %v10911_v30 = vld [vmem:[#allocation2 + $0x3b4] sm:$0xf] }
 0x135   : > { %vm1317_vm3 = vcmp.gt.f32.partialorder %v1234_v39, 0.0  ;;  %v1381_v54 = vmul.f32 0.01, %v1234_v39  ;;  %vm1318_vm4 = vcmp.gt.f32.partialorder %v1253_v43, 0.0  ;;  %v1382_v31 = vmul.f32 0.01, %v1253_v43  ;;  %3441 = vmatpush.bf16.msrb.mxu2 %v8467_v5  ;;  %3460 = vmatpush.bf16.msrb.mxu3 %v8531_v38 }
 0x136   : > { %v8315_v25 = vor.u32 %v10861_v49, %v8312_v3  ;;  %v8448_v5 = vld [vmem:[#allocation2 + $0x338] sm:$0xf0]  ;;  %v10859_v34 = vld [vmem:[#allocation2 + $0x214] sm:$0xf]  ;;  %v12704_v38 = vperm.slane %v12694_v58, 0 }
 0x137   : > { %v1445_v62 = vsel %vm1317_vm3, %v1234_v39, %v1381_v54  ;;  %v1446_v42 = vsel %vm1318_vm4, %v1253_v43, %v1382_v31  ;;  %v8379_v39 = vor.u32 %v10877_v7, %v8376_v9  ;;  %v8451_v17 = vor.u32 %v10895_v59, %v8448_v5  ;;  %v8304_v60 = vld [vmem:[#allocation2 + $0x218] sm:$0xf0]  ;;  %v10875_v43 = vld [vmem:[#allocation2 + $0x294] sm:$0xf]  ;;  %v8440_v44 = vld [vmem:[#allocation2 + $0x328] sm:$0xf0] }
 0x138   : > { %v12696_v53 = vpack.c.bf16 %v1445_v62, %v1429_v10  ;;  %3405 = vmatpush.bf16.msrb.mxu0 %v8323_v4  ;;  %v12699_v16 = vpack.c.bf16 %v1446_v42, %v1430_v63  ;;  %3424 = vmatpush.bf16.msrb.mxu1 %v8387_v40  ;;  %v8515_v4 = vor.u32 %v10911_v30, %v8512_v45  ;;  %v10893_v40 = vld [vmem:[#allocation2 + $0x324] sm:$0xf]  ;;  %v8504_v15 = vld [vmem:[#allocation2 + $0x3a8] sm:$0xf0]  ;;  %v10891_v9 = vld [vmem:[#allocation2 + $0x314] sm:$0xf] }
 0x139   : > { %3442 = vmatpush.bf16.msrb.mxu2 %v8459_v20  ;;  %3461 = vmatpush.bf16.msrb.mxu3 %v8523_v46  ;;  %v8307_v37 = vor.u32 %v10859_v34, %v8304_v60  ;;  %v8371_v54 = vor.u32 %v10875_v43, %v8368_v55  ;;  %v10909_v31 = vld [vmem:[#allocation2 + $0x3a4] sm:$0xf]  ;;  %v8443_v10 = vor.u32 %v10893_v40, %v8440_v44  ;;  %v8296_v20 = vld [vmem:[#allocation2 + $0x208] sm:$0xf0]  ;;  %v8496_v59 = vld [vmem:[#allocation2 + $0x398] sm:$0xf0] }
 0x13a   : > { %3300 = vmatmul.bf16.gmra.mxu2 %v12696_v53  ;;  %3319 = vmatmul.bf16.gmra.mxu3 %v12699_v16  ;;  %v10857_v62 = vld [vmem:[#allocation2 + $0x204] sm:$0xf]  ;;  %v8507_v49 = vor.u32 %v10909_v31, %v8504_v15  ;;  %v8360_v63 = vld [vmem:[#allocation2 + $0x288] sm:$0xf0]  ;;  %v10935_v45 = vld [vmem:[#allocation2 + $0x474] sm:$0xf] }
 0x13b   : > { %v10873_v52 = vld [vmem:[#allocation2 + $0x284] sm:$0xf]  ;;  %v8299_v3 = vor.u32 %v10857_v62, %v8296_v20  ;;  %v10951_v34 = vld [vmem:[#allocation2 + $0x4f4] sm:$0xf]  ;;  %v8488_v44 = vld [vmem:[#allocation2 + $0x388] sm:$0xf0] }
 0x13c   : > { %3406 = vmatpush.bf16.msrb.mxu0 %v8315_v25  ;;  %3425 = vmatpush.bf16.msrb.mxu1 %v8379_v39  ;;  %v8363_v7 = vor.u32 %v10873_v52, %v8360_v63  ;;  %v8432_v25 = vld [vmem:[#allocation2 + $0x318] sm:$0xf0]  ;;  %v10907_v39 = vld [vmem:[#allocation2 + $0x394] sm:$0xf]  ;;  %v10889_v55 = vld [vmem:[#allocation2 + $0x304] sm:$0xf] }
 0x13d   : > { %3443 = vmatpush.bf16.msrb.mxu2 %v8451_v17  ;;  %3462 = vmatpush.bf16.msrb.mxu3 %v8515_v4  ;;  %v8435_v30 = vor.u32 %v10891_v9, %v8432_v25  ;;  %v8608_v17 = vld [vmem:[#allocation2 + $0x478] sm:$0xf0]  ;;  %v8499_v60 = vor.u32 %v10907_v39, %v8496_v59  ;;  %v10905_v40 = vld [vmem:[#allocation2 + $0x384] sm:$0xf]  ;;  %v8600_v15 = vld [vmem:[#allocation2 + $0x468] sm:$0xf0] }
 0x13e   : > { %v8611_v43 = vor.u32 %v10935_v45, %v8608_v17  ;;  %v8672_v4 = vld [vmem:[#allocation2 + $0x4f8] sm:$0xf0]  ;;  %v10933_v31 = vld [vmem:[#allocation2 + $0x464] sm:$0xf]  ;;  %v8664_v52 = vld [vmem:[#allocation2 + $0x4e8] sm:$0xf0] }
 0x13f   : > { %v8603_v20 = vor.u32 %v10933_v31, %v8600_v15  ;;  %v8800_v9 = vld [vmem:[#allocation2 + $0x5f8] sm:$0xf0]  ;;  %v10931_v59 = vld [vmem:[#allocation2 + $0x454] sm:$0xf]  ;;  %v8584_v31 = vld [vmem:[#allocation2 + $0x448] sm:$0xf0] }
 0x140   : > { %v3030_v18 = vpop.f32.mrf.mxu0  ;;  %3407 = vmatpush.bf16.msrb.mxu0 %v8307_v37  ;;  %v3049_v46 = vpop.f32.mrf.mxu1  ;;  %3426 = vmatpush.bf16.msrb.mxu1 %v8371_v54  ;;  %v8675_v37 = vor.u32 %v10951_v34, %v8672_v4  ;;  %v8424_v54 = vld [vmem:[#allocation2 + $0x308] sm:$0xf0]  ;;  %v10947_v45 = vld [vmem:[#allocation2 + $0x4d4] sm:$0xf]  ;;  %v8656_v34 = vld [vmem:[#allocation2 + $0x4d8] sm:$0xf0] }
 0x141   : > { %v3031_v42 = vadd.f32 %v3030_v18, %v12704_v38  ;;  %3444 = vmatpush.bf16.msrb.mxu2 %v8443_v10  ;;  %3463 = vmatpush.bf16.msrb.mxu3 %v8507_v49  ;;  %v10949_v10 = vld [vmem:[#allocation2 + $0x4e4] sm:$0xf]  ;;  %v8728_v4 = vld [vmem:[#allocation2 + $0x568] sm:$0xf0] }
 0x142   : > { %v8667_v63 = vor.u32 %v10949_v10, %v8664_v52  ;;  %v10945_v15 = vld [vmem:[#allocation2 + $0x4c4] sm:$0xf] }
 0x143   : > { %v3050_v5 = vadd.f32 %v3049_v46, %v3031_v42  ;;  %3333 = vmatmul.bf16.vlgmr.msra.gmra.mxu0 %v12334_v22  ;;  %3352 = vmatmul.bf16.vlgmr.msra.gmra.mxu1 %v12336_v29  ;;  %v8427_v22 = vor.u32 %v10889_v55, %v8424_v54  ;;  %v8491_v29 = vor.u32 %v10905_v40, %v8488_v44  ;;  %v10967_v42 = vld [vmem:[#allocation2 + $0x574] sm:$0xf]  ;;  %v8736_v46 = vld [vmem:[#allocation2 + $0x578] sm:$0xf0]  ;;  %v8792_v40 = vld [vmem:[#allocation2 + $0x5e8] sm:$0xf0] }
 0x144   : > { %3408 = vmatpush.bf16.msrb.mxu0 %v8299_v3  ;;  %3427 = vmatpush.bf16.msrb.mxu1 %v8363_v7  ;;  %v10983_v3 = vld [vmem:[#allocation2 + $0x5f4] sm:$0xf]  ;;  %v8739_v7 = vor.u32 %v10967_v42, %v8736_v46 }
 0x145   : > { %3445 = vmatpush.bf16.msrb.mxu2 %v8435_v30  ;;  %3464 = vmatpush.bf16.msrb.mxu3 %v8499_v60  ;;  %v8803_v39 = vor.u32 %v10983_v3, %v8800_v9  ;;  %v8592_v30 = vld [vmem:[#allocation2 + $0x458] sm:$0xf0]  ;;  %v10979_v42 = vld [vmem:[#allocation2 + $0x5d4] sm:$0xf] }
 0x146   : > { %v8595_v17 = vor.u32 %v10931_v59, %v8592_v30  ;;  %v8784_v3 = vld [vmem:[#allocation2 + $0x5d8] sm:$0xf0]  ;;  %v10943_v30 = vld [vmem:[#allocation2 + $0x4b4] sm:$0xf] }
 0x147   : > { %v8787_v9 = vor.u32 %v10979_v42, %v8784_v3  ;;  %v8576_v59 = vld [vmem:[#allocation2 + $0x438] sm:$0xf0]  ;;  %v10923_v3 = vld [vmem:[#allocation2 + $0x414] sm:$0xf] }
 0x148   : > { %3477 = vmatpush.bf16.msra.mxu0 %v8611_v43  ;;  %3496 = vmatpush.bf16.msra.mxu1 %v8675_v37  ;;  %v3032_v62 = vpop.f32.mrf.mxu0  ;;  %v3051_v49 = vpop.f32.mrf.mxu1  ;;  %v8659_v43 = vor.u32 %v10947_v45, %v8656_v34  ;;  %v10981_v37 = vld [vmem:[#allocation2 + $0x5e4] sm:$0xf] }
 0x149   : > { %v3033_v18 = vadd.f32 %v3032_v62, %v12704_v38  ;;  %3446 = vmatpush.bf16.msrb.mxu2 %v8427_v22  ;;  %3465 = vmatpush.bf16.msrb.mxu3 %v8491_v29  ;;  %v8795_v44 = vor.u32 %v10981_v37, %v8792_v40  ;;  %v10929_v22 = vld [vmem:[#allocation2 + $0x444] sm:$0xf] }
 0x14a   : > { %3371 = vmatmul.bf16.vlgmr.msra.gmra.mxu2 %v12360_v2  ;;  %3390 = vmatmul.bf16.vlgmr.msra.gmra.mxu3 %v12363_v8  ;;  %v10965_v2 = vld [vmem:[#allocation2 + $0x564] sm:$0xf]  ;;  %v8587_v29 = vor.u32 %v10929_v22, %v8584_v31 }
 0x14b   : > { %v3052_v25 = vadd.f32 %v3051_v49, %v3033_v18  ;;  %v8731_v8 = vor.u32 %v10965_v2, %v8728_v4  ;;  %v10963_v49 = vld [vmem:[#allocation2 + $0x554] sm:$0xf]  ;;  %v8712_v2 = vld [vmem:[#allocation2 + $0x548] sm:$0xf0]  ;;  %v10977_v4 = vld [vmem:[#allocation2 + $0x5c4] sm:$0xf] }
 0x14c   : > { %3478 = vmatpush.bf16.msra.mxu0 %v8603_v20  ;;  %3497 = vmatpush.bf16.msra.mxu1 %v8667_v63  ;;  %v8648_v20 = vld [vmem:[#allocation2 + $0x4c8] sm:$0xf0]  ;;  %v8720_v63 = vld [vmem:[#allocation2 + $0x558] sm:$0xf0]  ;;  %v10925_v40 = vld [vmem:[#allocation2 + $0x424] sm:$0xf] }
 0x14d   : > { %v3068_v60 = vpop.f32.mrf.mxu2  ;;  %3515 = vmatpush.bf16.msra.mxu2 %v8739_v7  ;;  %3534 = vmatpush.bf16.msra.mxu3 %v8803_v39  ;;  %v3087_v54 = vpop.f32.mrf.mxu3  ;;  %v8723_v46 = vor.u32 %v10963_v49, %v8720_v63  ;;  %v10927_v39 = vld [vmem:[#allocation2 + $0x434] sm:$0xf]  ;;  %v10941_v22 = vld [vmem:[#allocation2 + $0x4a4] sm:$0xf]  ;;  %v8768_v63 = vld [vmem:[#allocation2 + $0x5b8] sm:$0xf0] }
 0x14e   : > { %v3069_v55 = vadd.f32 %v3068_v60, %v3050_v5  ;;  %v8651_v5 = vor.u32 %v10945_v15, %v8648_v20  ;;  %v8579_v45 = vor.u32 %v10927_v39, %v8576_v59  ;;  %v8624_v59 = vld [vmem:[#allocation2 + $0x498] sm:$0xf0] }
 0x150   : > { %3479 = vmatpush.bf16.msra.mxu0 %v8595_v17  ;;  %v12712_v10 = vadd.f32 %v3087_v54, %v3069_v55  ;;  %v3035_v62 = vpop.f32.mrf.mxu0  ;;  %3498 = vmatpush.bf16.msra.mxu1 %v8659_v43  ;;  %v3054_v18 = vpop.f32.mrf.mxu1  ;;  %v8640_v17 = vld [vmem:[#allocation2 + $0x4b8] sm:$0xf0]  ;;  %v10961_v43 = vld [vmem:[#allocation2 + $0x544] sm:$0xf]  ;;  %v8776_v54 = vld [vmem:[#allocation2 + $0x5c8] sm:$0xf0] }
 0x151   : > { %v3036_v52 = vadd.f32 %v3035_v62, %v12704_v38  ;;  %3516 = vmatpush.bf16.msra.mxu2 %v8731_v8  ;;  %3535 = vmatpush.bf16.msra.mxu3 %v8795_v44  ;;  %v8643_v60 = vor.u32 %v10943_v30, %v8640_v17  ;;  %v8779_v8 = vor.u32 %v10977_v4, %v8776_v54  ;;  %v8568_v44 = vld [vmem:[#allocation2 + $0x428] sm:$0xf0]  ;;  %v10957_v17 = vld [vmem:[#allocation2 + $0x524] sm:$0xf] }
 0x152   : > { %v8571_v15 = vor.u32 %v10925_v40, %v8568_v44  ;;  %v8632_v62 = vld [vmem:[#allocation2 + $0x4a8] sm:$0xf0] }
 0x153   : > { %v3055_v7 = vadd.f32 %v3054_v18, %v3036_v52  ;;  %3338 = vmatmul.bf16.gmra.mxu0 %v12385_v57  ;;  %3357 = vmatmul.bf16.gmra.mxu1 %v12387_v1  ;;  %v8715_v57 = vor.u32 %v10961_v43, %v8712_v2  ;;  %v10959_v52 = vld [vmem:[#allocation2 + $0x534] sm:$0xf]  ;;  %v8704_v18 = vld [vmem:[#allocation2 + $0x538] sm:$0xf0]  ;;  %v8760_v4 = vld [vmem:[#allocation2 + $0x5a8] sm:$0xf0] }
 0x154   : > { %3480 = vmatpush.bf16.msra.mxu0 %v8587_v29  ;;  %3499 = vmatpush.bf16.msra.mxu1 %v8651_v5  ;;  %v10975_v5 = vld [vmem:[#allocation2 + $0x5b4] sm:$0xf]  ;;  %v8707_v49 = vor.u32 %v10959_v52, %v8704_v18  ;;  %v8616_v44 = vld [vmem:[#allocation2 + $0x488] sm:$0xf0]  ;;  %v8864_v18 = vld [vmem:[#allocation2 + $0x678] sm:$0xf0] }
 0x155   : > { %v3070_v34 = vpop.f32.mrf.mxu2  ;;  %3517 = vmatpush.bf16.msra.mxu2 %v8723_v46  ;;  %v3089_v55 = vpop.f32.mrf.mxu3  ;;  %3536 = vmatpush.bf16.msra.mxu3 %v8787_v9  ;;  %v8771_v46 = vor.u32 %v10975_v5, %v8768_v63  ;;  %v8560_v9 = vld [vmem:[#allocation2 + $0x418] sm:$0xf0]  ;;  %v10999_v52 = vld [vmem:[#allocation2 + $0x674] sm:$0xf] }
 0x156   : > { %v3071_v37 = vadd.f32 %v3070_v34, %v3052_v25  ;;  %v8635_v25 = vor.u32 %v10941_v22, %v8632_v62  ;;  %v8563_v39 = vor.u32 %v10923_v3, %v8560_v9  ;;  %v8696_v34 = vld [vmem:[#allocation2 + $0x528] sm:$0xf0]  ;;  %v10971_v62 = vld [vmem:[#allocation2 + $0x594] sm:$0xf]  ;;  %v8928_v63 = vld [vmem:[#allocation2 + $0x6f8] sm:$0xf0] }
 0x157   : > { %v8699_v2 = vor.u32 %v10957_v17, %v8696_v34  ;;  %v11015_v5 = vld [vmem:[#allocation2 + $0x6f4] sm:$0xf]  ;;  %v10953_v9 = vld [vmem:[#allocation2 + $0x504] sm:$0xf] }
 0x158   : > { %3481 = vmatpush.bf16.msra.mxu0 %v8579_v45  ;;  %v12717_v1 = vadd.f32 %v3089_v55, %v3071_v37  ;;  %v3037_v31 = vpop.f32.mrf.mxu0  ;;  %v3056_v20 = vpop.f32.mrf.mxu1  ;;  %3500 = vmatpush.bf16.msra.mxu1 %v8643_v60  ;;  %v10921_v37 = vld [vmem:[#allocation2 + $0x404] sm:$0xf]  ;;  %v8552_v55 = vld [vmem:[#allocation2 + $0x408] sm:$0xf0]  ;;  %v8931_v3 = vor.u32 %v11015_v5, %v8928_v63 }
 0x159   : > { %v3038_v29 = vadd.f32 %v3037_v31, %v12704_v38  ;;  %3518 = vmatpush.bf16.msra.mxu2 %v8715_v57  ;;  %3537 = vmatpush.bf16.msra.mxu3 %v8779_v8  ;;  %v10939_v38 = vld [vmem:[#allocation2 + $0x494] sm:$0xf]  ;;  %v10937_v57 = vld [vmem:[#allocation2 + $0x484] sm:$0xf]  ;;  %v8555_v40 = vor.u32 %v10921_v37, %v8552_v55  ;;  %v8992_v55 = vld [vmem:[#allocation2 + $0x778] sm:$0xf0] }
 0x15a   : > { %3376 = vmatmul.bf16.gmra.mxu2 %v12413_v50  ;;  %3395 = vmatmul.bf16.gmra.mxu3 %v12420_v13  ;;  %v8627_v45 = vor.u32 %v10939_v38, %v8624_v59  ;;  %v10973_v50 = vld [vmem:[#allocation2 + $0x5a4] sm:$0xf]  ;;  %v10955_v31 = vld [vmem:[#allocation2 + $0x514] sm:$0xf]  ;;  %v8680_v38 = vld [vmem:[#allocation2 + $0x508] sm:$0xf0] }
 0x15b   : > { %v3057_v42 = vadd.f32 %v3056_v20, %v3038_v29  ;;  %v8763_v13 = vor.u32 %v10973_v50, %v8760_v4  ;;  %v8752_v20 = vld [vmem:[#allocation2 + $0x598] sm:$0xf0]  ;;  %v10997_v34 = vld [vmem:[#allocation2 + $0x664] sm:$0xf]  ;;  %v8920_v4 = vld [vmem:[#allocation2 + $0x6e8] sm:$0xf0] }
 0x15c   : > { %3482 = vmatpush.bf16.msra.mxu0 %v8571_v15  ;;  %3501 = vmatpush.bf16.msra.mxu1 %v8635_v25  ;;  %v8688_v15 = vld [vmem:[#allocation2 + $0x518] sm:$0xf0]  ;;  %v8755_v25 = vor.u32 %v10971_v62, %v8752_v20  ;;  %v11013_v50 = vld [vmem:[#allocation2 + $0x6e4] sm:$0xf]  ;;  %v11031_v37 = vld [vmem:[#allocation2 + $0x774] sm:$0xf] }
 0x15d   : > { %v3073_v30 = vpop.f32.mrf.mxu2  ;;  %3519 = vmatpush.bf16.msra.mxu2 %v8707_v49  ;;  %v3092_v43 = vpop.f32.mrf.mxu3  ;;  %3538 = vmatpush.bf16.msra.mxu3 %v8771_v46  ;;  %v8691_v29 = vor.u32 %v10955_v31, %v8688_v15  ;;  %v8867_v49 = vor.u32 %v10999_v52, %v8864_v18  ;;  %v10995_v31 = vld [vmem:[#allocation2 + $0x654] sm:$0xf]  ;;  %v8848_v15 = vld [vmem:[#allocation2 + $0x658] sm:$0xf0]  ;;  %v11029_v18 = vld [vmem:[#allocation2 + $0x764] sm:$0xf] }
 0x15e   : > { %v3074_v60 = vadd.f32 %v3073_v30, %v3055_v7  ;;  %v8619_v7 = vor.u32 %v10937_v57, %v8616_v44  ;;  %v11047_v57 = vld [vmem:[#allocation2 + $0x7f4] sm:$0xf]  ;;  %v9056_v44 = vld [vmem:[#allocation2 + $0x7f8] sm:$0xf0]  ;;  %v11045_v5 = vld [vmem:[#allocation2 + $0x7e4] sm:$0xf] }
 0x15f   : > { %v11011_v62 = vld [vmem:[#allocation2 + $0x6d4] sm:$0xf]  ;;  %v8912_v20 = vld [vmem:[#allocation2 + $0x6d8] sm:$0xf0] }
 0x160   : > { %3483 = vmatpush.bf16.msra.mxu0 %v8563_v39  ;;  %v12722_v54 = vadd.f32 %v3092_v43, %v3074_v60  ;;  %v12724_v8 = vpop.f32.mrf.mxu0  ;;  %v12726_v22 = vpop.f32.mrf.mxu1  ;;  %3502 = vmatpush.bf16.msra.mxu1 %v8627_v45  ;;  %v10969_v39 = vld [vmem:[#allocation2 + $0x584] sm:$0xf]  ;;  %v8744_v45 = vld [vmem:[#allocation2 + $0x588] sm:$0xf0]  ;;  %v8915_v52 = vor.u32 %v11011_v62, %v8912_v20 }
 0x161   : > { %3520 = vmatpush.bf16.msra.mxu2 %v8699_v2  ;;  %3539 = vmatpush.bf16.msra.mxu3 %v8763_v13  ;;  %v8747_v17 = vor.u32 %v10969_v39, %v8744_v45  ;;  %v11041_v62 = vld [vmem:[#allocation2 + $0x7c4] sm:$0xf]  ;;  %v9032_v20 = vld [vmem:[#allocation2 + $0x7c8] sm:$0xf0] }
 0x163   : > { %3409 = vmatmul.bf16.vlgmr.msrb.gmra.mxu0 %v12451_v33  ;;  %3428 = vmatmul.bf16.vlgmr.msrb.gmra.mxu1 %v12453_v36  ;;  %v8683_v33 = vor.u32 %v10953_v9, %v8680_v38  ;;  %v8856_v36 = vld [vmem:[#allocation2 + $0x668] sm:$0xf0]  ;;  %v11009_v38 = vld [vmem:[#allocation2 + $0x6c4] sm:$0xf] }
 0x164   : > { %3484 = vmatpush.bf16.msra.mxu0 %v8555_v40  ;;  %3503 = vmatpush.bf16.msra.mxu1 %v8619_v7  ;;  %v8859_v2 = vor.u32 %v10997_v34, %v8856_v36  ;;  %v8995_v40 = vor.u32 %v11031_v37, %v8992_v55  ;;  %v9059_v7 = vor.u32 %v11047_v57, %v9056_v44  ;;  %v8840_v9 = vld [vmem:[#allocation2 + $0x648] sm:$0xf0]  ;;  %v8976_v34 = vld [vmem:[#allocation2 + $0x758] sm:$0xf0]  ;;  %v11043_v36 = vld [vmem:[#allocation2 + $0x7d4] sm:$0xf] }
 0x165   : > { %v3075_v46 = vpop.f32.mrf.mxu2  ;;  %3521 = vmatpush.bf16.msra.mxu2 %v8691_v29  ;;  %v3094_v30 = vpop.f32.mrf.mxu3  ;;  %3540 = vmatpush.bf16.msra.mxu3 %v8755_v25  ;;  %v8851_v29 = vor.u32 %v10995_v31, %v8848_v15  ;;  %v8832_v37 = vld [vmem:[#allocation2 + $0x638] sm:$0xf0]  ;;  %v11007_v55 = vld [vmem:[#allocation2 + $0x6b4] sm:$0xf]  ;;  %v11025_v31 = vld [vmem:[#allocation2 + $0x744] sm:$0xf] }
 0x166   : > { %v3076_v59 = vadd.f32 %v3075_v46, %v3057_v42  ;;  %v8923_v42 = vor.u32 %v11013_v50, %v8920_v4  ;;  %v8968_v15 = vld [vmem:[#allocation2 + $0x748] sm:$0xf0] }
 0x168   : > { %3553 = vmatpush.bf16.msrb.mxu0 %v8867_v49  ;;  %3572 = vmatpush.bf16.msrb.mxu1 %v8931_v3  ;;  %v12730_v60 = vadd.f32 %v3094_v30, %v3076_v59  ;;  %v12732_v43 = vpop.f32.mrf.mxu0  ;;  %v12734_v13 = vpop.f32.mrf.mxu1  ;;  %v10993_v3 = vld [vmem:[#allocation2 + $0x644] sm:$0xf]  ;;  %v8904_v30 = vld [vmem:[#allocation2 + $0x6c8] sm:$0xf0] }
 0x169   : > { %3522 = vmatpush.bf16.msra.mxu2 %v8683_v33  ;;  %3541 = vmatpush.bf16.msra.mxu3 %v8747_v17  ;;  %v8843_v59 = vor.u32 %v10993_v3, %v8840_v9  ;;  %v8907_v45 = vor.u32 %v11009_v38, %v8904_v30  ;;  %v11027_v17 = vld [vmem:[#allocation2 + $0x754] sm:$0xf]  ;;  %v8960_v38 = vld [vmem:[#allocation2 + $0x738] sm:$0xf0] }
 0x16a   : > { %3447 = vmatmul.bf16.vlgmr.msrb.gmra.mxu2 %v12472_v24  ;;  %3466 = vmatmul.bf16.vlgmr.msrb.gmra.mxu3 %v12474_v35  ;;  %v8984_v24 = vld [vmem:[#allocation2 + $0x768] sm:$0xf0]  ;;  %v8979_v50 = vor.u32 %v11027_v17, %v8976_v34  ;;  %v11023_v9 = vld [vmem:[#allocation2 + $0x734] sm:$0xf] }
 0x16b   : > { %v8987_v63 = vor.u32 %v11029_v18, %v8984_v24  ;;  %v9048_v35 = vld [vmem:[#allocation2 + $0x7e8] sm:$0xf0]  ;;  %v10989_v18 = vld [vmem:[#allocation2 + $0x624] sm:$0xf]  ;;  %v8963_v30 = vor.u32 %v11023_v9, %v8960_v38  ;;  %v10987_v34 = vld [vmem:[#allocation2 + $0x614] sm:$0xf] }
 0x16c   : > { %3554 = vmatpush.bf16.msrb.mxu0 %v8859_v2  ;;  %3573 = vmatpush.bf16.msrb.mxu1 %v8923_v42  ;;  %v9051_v46 = vor.u32 %v11045_v5, %v9048_v35  ;;  %v9040_v2 = vld [vmem:[#allocation2 + $0x7d8] sm:$0xf0]  ;;  %v10991_v42 = vld [vmem:[#allocation2 + $0x634] sm:$0xf]  ;;  %v8824_v24 = vld [vmem:[#allocation2 + $0x628] sm:$0xf0] }
 0x16d   : > { %3591 = vmatpush.bf16.msrb.mxu2 %v8995_v40  ;;  %v12738_v25 = vpop.f32.mrf.mxu2  ;;  %3610 = vmatpush.bf16.msrb.mxu3 %v9059_v7  ;;  %v12740_v49 = vpop.f32.mrf.mxu3  ;;  %v9043_v4 = vor.u32 %v11043_v36, %v9040_v2  ;;  %v8835_v57 = vor.u32 %v10991_v42, %v8832_v37  ;;  %v8896_v40 = vld [vmem:[#allocation2 + $0x6b8] sm:$0xf0]  ;;  %v8888_v35 = vld [vmem:[#allocation2 + $0x6a8] sm:$0xf0] }
 0x16e   : > { %v8899_v7 = vor.u32 %v11007_v55, %v8896_v40  ;;  %v8816_v36 = vld [vmem:[#allocation2 + $0x618] sm:$0xf0]  ;;  %v11021_v55 = vld [vmem:[#allocation2 + $0x724] sm:$0xf] }
 0x16f   : > { %v8819_v2 = vor.u32 %v10987_v34, %v8816_v36  ;;  %v9008_v38 = vld [vmem:[#allocation2 + $0x798] sm:$0xf0]  ;;  %v8936_v34 = vld [vmem:[#allocation2 + $0x708] sm:$0xf0]  ;;  %v11033_v36 = vld [vmem:[#allocation2 + $0x784] sm:$0xf] }
 0x170   : > { %3555 = vmatpush.bf16.msrb.mxu0 %v8851_v29  ;;  %v12742_v39 = vpop.f32.mrf.mxu0  ;;  %3574 = vmatpush.bf16.msrb.mxu1 %v8915_v52  ;;  %v12744_v33 = vpop.f32.mrf.mxu1  ;;  %v9035_v52 = vor.u32 %v11041_v62, %v9032_v20  ;;  %v8808_v62 = vld [vmem:[#allocation2 + $0x608] sm:$0xf0] }
 0x171   : > { %3592 = vmatpush.bf16.msrb.mxu2 %v8987_v63  ;;  %3611 = vmatpush.bf16.msrb.mxu3 %v9051_v46  ;;  %v8827_v63 = vor.u32 %v10989_v18, %v8824_v24  ;;  %v8872_v18 = vld [vmem:[#allocation2 + $0x688] sm:$0xf0] }
 0x173   : > { %3414 = vmatmul.bf16.gmra.mxu0 %v12497_v27  ;;  %3433 = vmatmul.bf16.gmra.mxu1 %v12499_v14  ;;  %v8971_v27 = vor.u32 %v11025_v31, %v8968_v15  ;;  %v11005_v14 = vld [vmem:[#allocation2 + $0x6a4] sm:$0xf] }
 0x174   : > { %3556 = vmatpush.bf16.msrb.mxu0 %v8843_v59  ;;  %3575 = vmatpush.bf16.msrb.mxu1 %v8907_v45  ;;  %v8891_v3 = vor.u32 %v11005_v14, %v8888_v35  ;;  %v11039_v59 = vld [vmem:[#allocation2 + $0x7b4] sm:$0xf]  ;;  %v9024_v45 = vld [vmem:[#allocation2 + $0x7b8] sm:$0xf0]  ;;  %v10985_v15 = vld [vmem:[#allocation2 + $0x604] sm:$0xf] }
 0x175   : > { %v12748_v44 = vpop.f32.mrf.mxu2  ;;  %3593 = vmatpush.bf16.msrb.mxu2 %v8979_v50  ;;  %v12750_v29 = vpop.f32.mrf.mxu3  ;;  %3612 = vmatpush.bf16.msrb.mxu3 %v9043_v4  ;;  %v9027_v17 = vor.u32 %v11039_v59, %v9024_v45  ;;  %v11003_v50 = vld [vmem:[#allocation2 + $0x694] sm:$0xf]  ;;  %v8880_v4 = vld [vmem:[#allocation2 + $0x698] sm:$0xf0] }
 0x176   : > { %v8883_v37 = vor.u32 %v11003_v50, %v8880_v4  ;;  %v8944_v35 = vld [vmem:[#allocation2 + $0x718] sm:$0xf0] }
 0x178   : > { %v12752_v5 = vpop.f32.mrf.mxu0  ;;  %3557 = vmatpush.bf16.msrb.mxu0 %v8835_v57  ;;  %v12754_v46 = vpop.f32.mrf.mxu1  ;;  %3576 = vmatpush.bf16.msrb.mxu1 %v8899_v7  ;;  %v8952_v57 = vld [vmem:[#allocation2 + $0x728] sm:$0xf0] }
 0x179   : > { %3594 = vmatpush.bf16.msrb.mxu2 %v8971_v27  ;;  %3613 = vmatpush.bf16.msrb.mxu3 %v9035_v52  ;;  %v8955_v7 = vor.u32 %v11021_v55, %v8952_v57  ;;  %v11001_v27 = vld [vmem:[#allocation2 + $0x684] sm:$0xf]  ;;  %v8811_v52 = vor.u32 %v10985_v15, %v8808_v62  ;;  %v11054_v57 = vld [vmem:[%s13815_s5 + $0x28] sm:$0xff] }
 0x17a   : > { %3452 = vmatmul.bf16.gmra.mxu2 %v12520_v21  ;;  %3471 = vmatmul.bf16.gmra.mxu3 %v12525_v26  ;;  %v11037_v21 = vld [vmem:[#allocation2 + $0x7a4] sm:$0xf]  ;;  %v9016_v26 = vld [vmem:[#allocation2 + $0x7a8] sm:$0xf0]  ;;  %v8875_v14 = vor.u32 %v11001_v27, %v8872_v18  ;;  %v3109_v18 = vadd.f32 %v12732_v43, %v12717_v1 }
 0x17b   : > { %v9019_v31 = vor.u32 %v11037_v21, %v9016_v26  ;;  %v11050_v1 = vld [vmem:[%s13815_s5 + $0x8] sm:$0xff] }
 0x17c   : > { %3558 = vmatpush.bf16.msrb.mxu0 %v8827_v63  ;;  %3577 = vmatpush.bf16.msrb.mxu1 %v8891_v3  ;;  %v11019_v63 = vld [vmem:[#allocation2 + $0x714] sm:$0xf] }
 0x17d   : > { %v12758_v42 = vpop.f32.mrf.mxu2  ;;  %3595 = vmatpush.bf16.msrb.mxu2 %v8963_v30  ;;  %v12760_v40 = vpop.f32.mrf.mxu3  ;;  %3614 = vmatpush.bf16.msrb.mxu3 %v9027_v17  ;;  %v11035_v3 = vld [vmem:[#allocation2 + $0x794] sm:$0xf]  ;;  %v8947_v9 = vor.u32 %v11019_v63, %v8944_v35  ;;  %v11056_v30 = vld [vmem:[%s13815_s5 + $0x38] sm:$0xff]  ;;  %v11017_v17 = vld [vmem:[#allocation2 + $0x704] sm:$0xf] }
 0x17e   : > { %v9011_v59 = vor.u32 %v11035_v3, %v9008_v38 }
 0x180   : > { %v12762_v20 = vpop.f32.mrf.mxu0  ;;  %3559 = vmatpush.bf16.msrb.mxu0 %v8819_v2  ;;  %v12764_v24 = vpop.f32.mrf.mxu1  ;;  %3578 = vmatpush.bf16.msrb.mxu1 %v8883_v37  ;;  %v9000_v2 = vld [vmem:[#allocation2 + $0x788] sm:$0xf0]  ;;  %v11055_v37 = vld [vmem:[%s13815_s5 + $0x30] sm:$0xff] }
 0x181   : > { %3596 = vmatpush.bf16.msrb.mxu2 %v8955_v7  ;;  %3615 = vmatpush.bf16.msrb.mxu3 %v9019_v31  ;;  %v9003_v4 = vor.u32 %v11033_v36, %v9000_v2  ;;  %v11053_v31 = vld [vmem:[%s13815_s5 + $0x20] sm:$0xff] }
 0x183   : > { %3485 = vmatmul.bf16.vlgmr.msra.gmra.mxu0 %v12557_v32  ;;  %3504 = vmatmul.bf16.vlgmr.msra.gmra.mxu1 %v12559_v0  ;;  %v8939_v32 = vor.u32 %v11017_v17, %v8936_v34  ;;  %v3114_v17 = vadd.f32 %v12752_v5, %v12730_v60 }
 0x184   : > { %3560 = vmatpush.bf16.msrb.mxu0 %v8811_v52  ;;  %3579 = vmatpush.bf16.msrb.mxu1 %v8875_v14 }
 0x185   : > { %v12771_v45 = vpop.f32.mrf.mxu2  ;;  %3597 = vmatpush.bf16.msrb.mxu2 %v8947_v9  ;;  %v12773_v50 = vpop.f32.mrf.mxu3  ;;  %3616 = vmatpush.bf16.msrb.mxu3 %v9011_v59 }
 0x188   : > { %3789 = vmatpush.bf16.msra.mxu0 %v11056_v30  ;;  %v3184_v0 = vpop.f32.mrf.mxu0  ;;  %v3203_v55 = vpop.f32.mrf.mxu1 }
 0x189   : > { %3598 = vmatpush.bf16.msrb.mxu2 %v8939_v32  ;;  %3617 = vmatpush.bf16.msrb.mxu3 %v9003_v4 }
 0x18a   : > { %3523 = vmatmul.bf16.vlgmr.msra.gmra.mxu2 %v12573_v41  ;;  %3542 = vmatmul.bf16.vlgmr.msra.gmra.mxu3 %v12576_v12  ;;  %v3107_v41 = vadd.f32 %v12724_v8, %v12712_v10  ;;  %v11052_v12 = vld [vmem:[%s13815_s5 + $0x18] sm:$0xff]  ;;  %v3128_v10 = vadd.f32 %v12734_v13, %v3109_v18  ;;  %v3112_v13 = vadd.f32 %v12742_v39, %v12722_v54 }
 0x18c   : > { %3790 = vmatpush.bf16.msra.mxu0 %v11055_v37  ;;  %v3126_v27 = vadd.f32 %v12726_v22, %v3107_v41  ;;  %v3147_v43 = vadd.f32 %v12748_v44, %v3128_v10  ;;  %v3131_v59 = vadd.f32 %v12744_v33, %v3112_v13 }
 0x18d   : > { %v3220_v21 = vpop.f32.mrf.mxu2  ;;  %v3239_v7 = vpop.f32.mrf.mxu3 }
 0x18e   : > { %v3145_v14 = vadd.f32 %v12738_v25, %v3126_v27  ;;  %v3150_v54 = vadd.f32 %v12758_v42, %v3131_v59 }
 0x190   : > { %3791 = vmatpush.bf16.msra.mxu0 %v11054_v57  ;;  %v3187_v26 = vpop.f32.mrf.mxu0  ;;  %v12786_v15 = vpop.f32.mrf.mxu1  ;;  %v3164_v8 = vadd.f32 %v12740_v49, %v3145_v14  ;;  %v3166_v49 = vadd.f32 %v12750_v29, %v3147_v43  ;;  %v3169_v33 = vadd.f32 %v12760_v40, %v3150_v54 }
 0x192   : > { %v3183_v25 = vadd.f32 %v12762_v20, %v3164_v8  ;;  %v3185_v44 = vadd.f32 %v3184_v0, %v3166_v49  ;;  %v3188_v60 = vadd.f32 %v3187_v26, %v3169_v33 }
 0x193   : > { %3490 = vmatmul.bf16.gmra.mxu0 %v12593_v61  ;;  %3509 = vmatmul.bf16.gmra.mxu1 %v12595_v51  ;;  %v11051_v61 = vld [vmem:[%s13815_s5 + $0x10] sm:$0xff] }
 0x194   : > { %3792 = vmatpush.bf16.msra.mxu0 %v11053_v31  ;;  %v3202_v9 = vadd.f32 %v12764_v24, %v3183_v25  ;;  %v3204_v39 = vadd.f32 %v3203_v55, %v3185_v44 }
 0x195   : > { %v3222_v62 = vpop.f32.mrf.mxu2  ;;  %v3241_v52 = vpop.f32.mrf.mxu3 }
 0x196   : > { %v3221_v38 = vadd.f32 %v3220_v21, %v3202_v9  ;;  %v3223_v36 = vadd.f32 %v3222_v62, %v3204_v39 }
 0x198   : > { %v3189_v63 = vpop.f32.mrf.mxu0  ;;  %3793 = vmatpush.bf16.msra.mxu0 %v11052_v12  ;;  %v3208_v51 = vpop.f32.mrf.mxu1  ;;  %v3240_v29 = vadd.f32 %v3239_v7, %v3221_v38  ;;  %v3242_v5 = vadd.f32 %v3241_v52, %v3223_v36 }
 0x19a   : > { %3528 = vmatmul.bf16.gmra.mxu2 %v12614_v48  ;;  %3547 = vmatmul.bf16.gmra.mxu3 %v12619_v47  ;;  %v11049_v48 = vld [vmem:[%s13815_s5] sm:$0xff] }
 0x19c   : > { %3794 = vmatpush.bf16.msra.mxu0 %v11051_v61 }
 0x19d   : > { %v3225_v22 = vpop.f32.mrf.mxu2  ;;  %v3244_v35 = vpop.f32.mrf.mxu3 }
 0x1a0   : > { %v3258_v3 = vpop.f32.mrf.mxu0  ;;  %3795 = vmatpush.bf16.msra.mxu0 %v11050_v1  ;;  %v3277_v47 = vpop.f32.mrf.mxu1 }
 0x1a3   : > { %3561 = vmatmul.bf16.vlgmr.msrb.gmra.mxu0 %v12642_v6  ;;  %3580 = vmatmul.bf16.vlgmr.msrb.gmra.mxu1 %v12644_v11  ;;  %v3259_v6 = vadd.f32 %v3258_v3, %v3240_v29  ;;  %v3133_v11 = vadd.f32 %v12754_v46, %v3114_v17 }
 0x1a4   : > { %3796 = vmatpush.bf16.msra.mxu0 %v11049_v48 }
 0x1a5   : > { %v3227_v20 = vpop.f32.mrf.mxu2  ;;  %v3246_v30 = vpop.f32.mrf.mxu3  ;;  %v3152_v2 = vadd.f32 %v12771_v45, %v3133_v11  ;;  %v3278_v42 = vadd.f32 %v3277_v47, %v3259_v6 }
 0x1a7   : > { %v3171_v21 = vadd.f32 %v12773_v50, %v3152_v2 }
 0x1a8   : > { %v3260_v34 = vpop.f32.mrf.mxu0  ;;  %v3279_v24 = vpop.f32.mrf.mxu1 }
 0x1a9   : > { %v3261_v0 = vadd.f32 %v3260_v34, %v3242_v5 }
 0x1aa   : > { %3599 = vmatmul.bf16.vlgmr.msrb.gmra.mxu2 %v12661_v19  ;;  %3618 = vmatmul.bf16.vlgmr.msrb.gmra.mxu3 %v12664_v23  ;;  %v3207_v19 = vadd.f32 %v12786_v15, %v3188_v60  ;;  %v3190_v23 = vadd.f32 %v3189_v63, %v3171_v21 }
 0x1ab   : > { %v3280_v40 = vadd.f32 %v3279_v24, %v3261_v0 }
 0x1ac   : > { %v3226_v46 = vadd.f32 %v3225_v22, %v3207_v19  ;;  %v3209_v41 = vadd.f32 %v3208_v51, %v3190_v23  ;;  %v12836_v51 = vperm.slane %v12694_v58, 1 }
 0x1ad   : > { %v3296_v32 = vpop.f32.mrf.mxu2  ;;  %v3315_v4 = vpop.f32.mrf.mxu3 }
 0x1ae   : > { %v3297_v37 = vadd.f32 %v3296_v32, %v3278_v42  ;;  %v3245_v12 = vadd.f32 %v3244_v35, %v3226_v46  ;;  %v3228_v18 = vadd.f32 %v3227_v20, %v3209_v41 }
 0x1b0   : > { %v3263_v55 = vpop.f32.mrf.mxu0  ;;  %v3282_v57 = vpop.f32.mrf.mxu1  ;;  %v3316_v7 = vadd.f32 %v3315_v4, %v3297_v37  ;;  %v3247_v10 = vadd.f32 %v3246_v30, %v3228_v18 }
 0x1b1   : > { %v3264_v15 = vadd.f32 %v3263_v55, %v3245_v12 }
 0x1b2   : > { %v3637_v62 = vmul.f32 0.01, %v3316_v7  ;;  %vm3629_vm5 = vcmp.gt.f32.partialorder %v3316_v7, 0.0 }
 0x1b3   : > { %3566 = vmatmul.bf16.gmra.mxu0 %v12680_v28  ;;  %3585 = vmatmul.bf16.gmra.mxu1 %v12682_v56  ;;  %v3283_v8 = vadd.f32 %v3282_v57, %v3264_v15  ;;  %v11063_v15 = vld [vmem:[%s13815_s5 + $0x70] sm:$0xff] }
 0x1b4   : > { %v3645_v14 = vsel %vm3629_vm5, %v3316_v7, %v3637_v62 }
 0x1b5   : > { %v3298_v45 = vpop.f32.mrf.mxu2  ;;  %v3317_v31 = vpop.f32.mrf.mxu3 }
 0x1b6   : > { %v3299_v26 = vadd.f32 %v3298_v45, %v3280_v40 }
 0x1b8   : > { %v3318_v27 = vadd.f32 %v3317_v31, %v3299_v26  ;;  %v3265_v52 = vpop.f32.mrf.mxu0  ;;  %v3284_v50 = vpop.f32.mrf.mxu1 }
 0x1b9   : > { %v3266_v22 = vadd.f32 %v3265_v52, %v3247_v10  ;;  %v11064_v52 = vld [vmem:[%s13815_s5 + $0x78] sm:$0xff]  ;;  %v11061_v10 = vld [vmem:[%s13815_s5 + $0x60] sm:$0xff] }
 0x1ba   : > { %vm3631_vm6 = vcmp.gt.f32.partialorder %v3318_v27, 0.0  ;;  %v3639_v28 = vmul.f32 0.01, %v3318_v27  ;;  %3604 = vmatmul.bf16.gmra.mxu2 %v12696_v53  ;;  %3623 = vmatmul.bf16.gmra.mxu3 %v12699_v16 }
 0x1bb   : > { %v3285_v53 = vadd.f32 %v3284_v50, %v3266_v22  ;;  %3808 = vmatpush.bf16.msra.mxu1 %v11064_v52 }
 0x1bc   : > { %v3647_v56 = vsel %vm3631_vm6, %v3318_v27, %v3639_v28 }
 0x1bd   : > { %v3653_v63 = vpack.c.bf16 %v3647_v56, %v3645_v14  ;;  %v3301_v61 = vpop.f32.mrf.mxu2  ;;  %v3320_v1 = vpop.f32.mrf.mxu3  ;;  %v11062_v56 = vld [vmem:[%s13815_s5 + $0x68] sm:$0xff] }
 0x1be   : > { %v3302_v43 = vadd.f32 %v3301_v61, %v3283_v8 }
 0x1bf   : > { %3809 = vmatpush.bf16.msra.mxu1 %v11063_v15 }
 0x1c0   : > { %v3334_v25 = vpop.f32.mrf.mxu0  ;;  %v3353_v3 = vpop.f32.mrf.mxu1  ;;  %v3321_v16 = vadd.f32 %v3320_v1, %v3302_v43  ;;  %v11060_v43 = vld [vmem:[%s13815_s5 + $0x58] sm:$0xff] }
 0x1c1   : > { %v3335_v35 = vadd.f32 %v3334_v25, %v12836_v51 }
 0x1c2   : > { %v3641_v9 = vmul.f32 0.01, %v3321_v16  ;;  %vm3633_vm7 = vcmp.gt.f32.partialorder %v3321_v16, 0.0 }
 0x1c3   : > { %v3354_v48 = vadd.f32 %v3353_v3, %v3335_v35  ;;  %3797 = vmatmul.bf16.vlgmr.msra.gmra.mxu0 %v3653_v63  ;;  %3810 = vmatpush.bf16.msra.mxu1 %v11062_v56 }
 0x1c4   : > { %v3649_v59 = vsel %vm3633_vm7, %v3321_v16, %v3641_v9  ;;  %v11059_v16 = vld [vmem:[%s13815_s5 + $0x50] sm:$0xff] }
 0x1c5   : > { %v3303_v47 = vpop.f32.mrf.mxu2  ;;  %v3322_v49 = vpop.f32.mrf.mxu3 }
 0x1c6   : > { %v3304_v13 = vadd.f32 %v3303_v47, %v3285_v53 }
 0x1c7   : > { %3811 = vmatpush.bf16.msra.mxu1 %v11061_v10 }
 0x1c8   : > { %v3323_v44 = vadd.f32 %v3322_v49, %v3304_v13  ;;  %v3336_v58 = vpop.f32.mrf.mxu0  ;;  %v3355_v38 = vpop.f32.mrf.mxu1 }
 0x1c9   : > { %v3337_v8 = vadd.f32 %v3336_v58, %v12836_v51 }
 0x1ca   : > { %vm3635_vm8 = vcmp.gt.f32.partialorder %v3323_v44, 0.0  ;;  %v3643_v20 = vmul.f32 0.01, %v3323_v44 }
 0x1cb   : > { %v3356_v25 = vadd.f32 %v3355_v38, %v3337_v8  ;;  %3812 = vmatpush.bf16.msra.mxu1 %v11060_v43 }
 0x1cc   : > { %v3651_v30 = vsel %vm3635_vm8, %v3323_v44, %v3643_v20  ;;  %v11058_v44 = vld [vmem:[%s13815_s5 + $0x48] sm:$0xff] }
 0x1cd   : > { %v3372_v17 = vpop.f32.mrf.mxu2  ;;  %v3655_v54 = vpack.c.bf16 %v3651_v30, %v3649_v59  ;;  %v3391_v29 = vpop.f32.mrf.mxu3 }
 0x1ce   : > { %v3373_v39 = vadd.f32 %v3372_v17, %v3354_v48  ;;  %v11057_v17 = vld [vmem:[%s13815_s5 + $0x40] sm:$0xff] }
 0x1cf   : > { %3813 = vmatpush.bf16.msra.mxu1 %v11059_v16 }
 0x1d0   : > { %v3392_v34 = vadd.f32 %v3391_v29, %v3373_v39  ;;  %v3339_v24 = vpop.f32.mrf.mxu0  ;;  %v3358_v6 = vpop.f32.mrf.mxu1 }
 0x1d1   : > { %v3340_v36 = vadd.f32 %v3339_v24, %v12836_v51 }
 0x1d3   : > { %v3359_v11 = vadd.f32 %v3358_v6, %v3340_v36  ;;  %3802 = vmatmul.bf16.gmra.mxu0 %v3655_v54  ;;  %3814 = vmatpush.bf16.msra.mxu1 %v11058_v44 }
 0x1d5   : > { %v3374_v33 = vpop.f32.mrf.mxu2  ;;  %v3393_v32 = vpop.f32.mrf.mxu3 }
 0x1d6   : > { %v3375_v48 = vadd.f32 %v3374_v33, %v3356_v25 }
 0x1d7   : > { %3815 = vmatpush.bf16.msra.mxu1 %v11057_v17  ;;  %v11077_v17 = vld [vmem:[%s13817_s7 + $0x64] sm:$0xf] }
 0x1d8   : > { %v3341_v2 = vpop.f32.mrf.mxu0  ;;  %v12840_v60 = vpop.f32.mrf.mxu1  ;;  %v3394_v13 = vadd.f32 %v3393_v32, %v3375_v48 }
 0x1d9   : > { %v3342_v59 = vadd.f32 %v3341_v2, %v12836_v51 }
 0x1db   : > { %v3361_v6 = vadd.f32 %v12840_v60, %v3342_v59  ;;  %v9174_v59 = vld [vmem:[%s13817_s7 + $0x60] sm:$0xf] }
 0x1dd   : > { %v3377_v5 = vpop.f32.mrf.mxu2  ;;  %v3396_v4 = vpop.f32.mrf.mxu3 }
 0x1de   : > { %v3378_v42 = vadd.f32 %v3377_v5, %v3359_v11 }
 0x1e0   : > { %v12842_v0 = vadd.f32 %v3396_v4, %v3378_v42  ;;  %v3410_v37 = vpop.f32.mrf.mxu0  ;;  %v3429_v55 = vpop.f32.mrf.mxu1 }
 0x1e1   : > { %v3411_v53 = vadd.f32 %v3410_v37, %v3392_v34 }
 0x1e3   : > { %v3430_v49 = vadd.f32 %v3429_v55, %v3411_v53 }
 0x1e5   : > { %v3379_v57 = vpop.f32.mrf.mxu2  ;;  %v12844_v21 = vpop.f32.mrf.mxu3 }
 0x1e6   : > { %v3380_v33 = vadd.f32 %v3379_v57, %v3361_v6 }
 0x1e8   : > { %v3412_v19 = vpop.f32.mrf.mxu0  ;;  %v3431_v23 = vpop.f32.mrf.mxu1  ;;  %v3399_v4 = vadd.f32 %v12844_v21, %v3380_v33  ;;  %v9166_v33 = vld [vmem:[%s13817_s7 + $0x50] sm:$0xf] }
 0x1e9   : > { %v3413_v58 = vadd.f32 %v3412_v19, %v3394_v13 }
 0x1eb   : > { %v3432_v54 = vadd.f32 %v3431_v23, %v3413_v58 }
 0x1ed   : > { %v3448_v46 = vpop.f32.mrf.mxu2  ;;  %v3467_v40 = vpop.f32.mrf.mxu3 }
 0x1ee   : > { %v3449_v38 = vadd.f32 %v3448_v46, %v3430_v49  ;;  %v11079_v49 = vld [vmem:[%s13817_s7 + $0x74] sm:$0xf] }
 0x1f0   : > { %v3415_v7 = vpop.f32.mrf.mxu0  ;;  %v12846_v45 = vpop.f32.mrf.mxu1  ;;  %v3468_v39 = vadd.f32 %v3467_v40, %v3449_v38  ;;  %v9184_v38 = vld [vmem:[%s13817_s7 + $0x78] sm:$0xf0] }
 0x1f1   : > { %v3416_v32 = vadd.f32 %v3415_v7, %v12842_v0 }
 0x1f3   : > { %v3435_v19 = vadd.f32 %v12846_v45, %v3416_v32  ;;  %v11076_v32 = vld [vmem:[%s13817_s7 + $0x54] sm:$0xf0] }
 0x1f5   : > { %v3450_v26 = vpop.f32.mrf.mxu2  ;;  %v3469_v31 = vpop.f32.mrf.mxu3 }
 0x1f6   : > { %v3451_v34 = vadd.f32 %v3450_v26, %v3432_v54 }
 0x1f8   : > { %v3417_v41 = vpop.f32.mrf.mxu0  ;;  %v12848_v12 = vpop.f32.mrf.mxu1  ;;  %v3470_v5 = vadd.f32 %v3469_v31, %v3451_v34  ;;  %v9176_v34 = vld [vmem:[%s13817_s7 + $0x68] sm:$0xf0] }
 0x1f9   : > { %v3418_v46 = vadd.f32 %v3417_v41, %v3399_v4  ;;  %v9168_v4 = vld [vmem:[%s13817_s7 + $0x58] sm:$0xf0] }
 0x1fb   : > { %v3437_v0 = vadd.f32 %v12848_v12, %v3418_v46 }
 0x1fd   : > { %v3453_v62 = vpop.f32.mrf.mxu2  ;;  %v12850_v27 = vpop.f32.mrf.mxu3 }
 0x1fe   : > { %v3454_v40 = vadd.f32 %v3453_v62, %v3435_v19  ;;  %v9167_v19 = vor.u32 %v11076_v32, %v9166_v33  ;;  %v11321_v32 = vld [vmem:[#allocation5 + $0x784] sm:$0xf] }
 0x200   : > { %v3486_v50 = vpop.f32.mrf.mxu0  ;;  %v3505_v18 = vpop.f32.mrf.mxu1  ;;  %v3473_v7 = vadd.f32 %v12850_v27, %v3454_v40  ;;  %v11074_v40 = vld [vmem:[%s13817_s7 + $0x44] sm:$0xf0] }
 0x201   : > { %v3487_v24 = vadd.f32 %v3486_v50, %v3468_v39 }
 0x203   : > { %v3506_v51 = vadd.f32 %v3505_v18, %v3487_v24 }
 0x205   : > { %v3455_v28 = vpop.f32.mrf.mxu2  ;;  %v12858_v14 = vpop.f32.mrf.mxu3 }
 0x206   : > { %v3456_v31 = vadd.f32 %v3455_v28, %v3437_v0 }
 0x208   : > { %v3488_v63 = vpop.f32.mrf.mxu0  ;;  %v3507_v61 = vpop.f32.mrf.mxu1  ;;  %v3475_v41 = vadd.f32 %v12858_v14, %v3456_v31  ;;  %v9182_v14 = vld [vmem:[%s13817_s7 + $0x70] sm:$0xf] }
 0x209   : > { %v3489_v2 = vadd.f32 %v3488_v63, %v3470_v5 }
 0x20b   : > { %v3508_v26 = vadd.f32 %v3507_v61, %v3489_v2 }
 0x20d   : > { %v3524_v1 = vpop.f32.mrf.mxu2  ;;  %v3543_v22 = vpop.f32.mrf.mxu3 }
 0x20e   : > { %v3525_v42 = vadd.f32 %v3524_v1, %v3506_v51 }
 0x210   : > { %v3491_v35 = vpop.f32.mrf.mxu0  ;;  %v3510_v3 = vpop.f32.mrf.mxu1  ;;  %v3544_v52 = vadd.f32 %v3543_v22, %v3525_v42  ;;  %v11075_v42 = vld [vmem:[%s13817_s7 + $0x54] sm:$0xf] }
 0x211   : > { %v3492_v15 = vadd.f32 %v3491_v35, %v3473_v7  ;;  %v9171_v46 = vor.u32 %v11075_v42, %v9168_v4 }
 0x213   : > { %v3511_v62 = vadd.f32 %v3510_v3, %v3492_v15  ;;  %v11080_v3 = vld [vmem:[%s13817_s7 + $0x74] sm:$0xf0] }
 0x214   : > { %v9183_v58 = vor.u32 %v11080_v3, %v9182_v14  ;;  %v11072_v15 = vld [vmem:[%s13817_s7 + $0x34] sm:$0xf0]  ;;  %v9136_v14 = vld [vmem:[%s13817_s7 + $0x18] sm:$0xf0] }
 0x215   : > { %v3526_v47 = vpop.f32.mrf.mxu2  ;;  %v3545_v9 = vpop.f32.mrf.mxu3 }
 0x216   : > { %v3527_v50 = vadd.f32 %v3526_v47, %v3508_v26  ;;  %3935 = vmatpush.bf16.msra.mxu2 %v9183_v58  ;;  %v11073_v26 = vld [vmem:[%s13817_s7 + $0x44] sm:$0xf] }
 0x218   : > { %v3493_v20 = vpop.f32.mrf.mxu0  ;;  %v3512_v30 = vpop.f32.mrf.mxu1  ;;  %v3546_v21 = vadd.f32 %v3545_v9, %v3527_v50 }
 0x219   : > { %v3494_v61 = vadd.f32 %v3493_v20, %v3475_v41  ;;  %v9187_v20 = vor.u32 %v11079_v49, %v9184_v38  ;;  %v9126_v49 = vld [vmem:[%s13817_s7] sm:$0xf]  ;;  %v9128_v38 = vld [vmem:[%s13817_s7 + $0x8] sm:$0xf0] }
 0x21b   : > { %v3513_v28 = vadd.f32 %v3512_v30, %v3494_v61  ;;  %v11078_v30 = vld [vmem:[%s13817_s7 + $0x64] sm:$0xf0]  ;;  %3954 = vmatpush.bf16.msra.mxu3 %v9187_v20 }
 0x21d   : > { %v3529_v29 = vpop.f32.mrf.mxu2  ;;  %v3548_v36 = vpop.f32.mrf.mxu3 }
 0x21e   : > { %v3530_v22 = vadd.f32 %v3529_v29, %v3511_v62  ;;  %v9175_v29 = vor.u32 %v11078_v30, %v9174_v59  ;;  %v12987_v30 = vld [vmem:[%s13816_s6] ss:$0 sm:$0xff] }
 0x220   : > { %v3562_v11 = vpop.f32.mrf.mxu0  ;;  %v3581_v37 = vpop.f32.mrf.mxu1  ;;  %v3549_v53 = vadd.f32 %v3548_v36, %v3530_v22  ;;  %3936 = vmatpush.bf16.msra.mxu2 %v9175_v29 }
 0x221   : > { %v3563_v57 = vadd.f32 %v3562_v11, %v3544_v52  ;;  %v9179_v11 = vor.u32 %v11077_v17, %v9176_v34  ;;  %v9160_v52 = vld [vmem:[%s13817_s7 + $0x48] sm:$0xf0]  ;;  %v11193_v17 = vld [vmem:[#allocation5 + $0x384] sm:$0xf]  ;;  %v11201_v34 = vld [vmem:[#allocation5 + $0x3bc] sm:$0xf0] }
 0x222   : > { %v9163_v31 = vor.u32 %v11073_v26, %v9160_v52  ;;  %v10086_v26 = vld [vmem:[#allocation5 + $0x700] sm:$0xf] }
 0x223   : > { %v3582_v56 = vadd.f32 %v3581_v37, %v3563_v57  ;;  %3955 = vmatpush.bf16.msra.mxu3 %v9179_v11  ;;  %v11313_v52 = vld [vmem:[#allocation5 + $0x73c] sm:$0xf0] }
 0x224   : > { %3937 = vmatpush.bf16.msra.mxu2 %v9167_v19  ;;  %v11185_v19 = vld [vmem:[#allocation5 + $0x33c] sm:$0xf0] }
 0x225   : > { %v3531_v55 = vpop.f32.mrf.mxu2  ;;  %v3550_v23 = vpop.f32.mrf.mxu3 }
 0x226   : > { %v3532_v47 = vadd.f32 %v3531_v55, %v3513_v28  ;;  %v9144_v28 = vld [vmem:[%s13817_s7 + $0x28] sm:$0xf0] }
 0x227   : > { %3956 = vmatpush.bf16.msra.mxu3 %v9171_v46 }
 0x228   : > { %v3564_v60 = vpop.f32.mrf.mxu0  ;;  %v3583_v10 = vpop.f32.mrf.mxu1  ;;  %v3551_v5 = vadd.f32 %v3550_v23, %v3532_v47  ;;  %v9158_v23 = vld [vmem:[%s13817_s7 + $0x40] sm:$0xf]  ;;  %v11067_v47 = vld [vmem:[%s13817_s7 + $0x14] sm:$0xf] }
 0x229   : > { %v3565_v45 = vadd.f32 %v3564_v60, %v3546_v21  ;;  %v9159_v0 = vor.u32 %v11074_v40, %v9158_v23  ;;  %v9139_v3 = vor.u32 %v11067_v47, %v9136_v14  ;;  %v11129_v47 = vld [vmem:[#allocation5 + $0x184] sm:$0xf] }
 0x22b   : > { %v3584_v43 = vadd.f32 %v3583_v10, %v3565_v45  ;;  %3938 = vmatpush.bf16.msra.mxu2 %v9159_v0  ;;  %3957 = vmatpush.bf16.msra.mxu3 %v9163_v31  ;;  %v11161_v0 = vld [vmem:[#allocation5 + $0x284] sm:$0xf] }
 0x22d   : > { %v3600_v18 = vpop.f32.mrf.mxu2  ;;  %v3619_v63 = vpop.f32.mrf.mxu3 }
 0x22e   : > { %v3601_v8 = vadd.f32 %v3600_v18, %v3582_v56  ;;  %v9150_v18 = vld [vmem:[%s13817_s7 + $0x30] sm:$0xf]  ;;  %v11071_v56 = vld [vmem:[%s13817_s7 + $0x34] sm:$0xf] }
 0x22f   : > { %v9151_v41 = vor.u32 %v11072_v15, %v9150_v18  ;;  %v9510_v18 = vld [vmem:[#allocation5 + $0x280] sm:$0xf] }
 0x230   : > { %v3567_v1 = vpop.f32.mrf.mxu0  ;;  %v3620_v25 = vadd.f32 %v3619_v63, %v3601_v8  ;;  %v3586_v13 = vpop.f32.mrf.mxu1  ;;  %v9152_v63 = vld [vmem:[%s13817_s7 + $0x38] sm:$0xf0]  ;;  %v11169_v15 = vld [vmem:[#allocation5 + $0x2bc] sm:$0xf0] }
 0x231   : > { %v3568_v9 = vadd.f32 %v3567_v1, %v3549_v53  ;;  %v9155_v62 = vor.u32 %v11071_v56, %v9152_v63  ;;  %3939 = vmatpush.bf16.msra.mxu2 %v9151_v41  ;;  %v11297_v63 = vld [vmem:[#allocation5 + $0x6bc] sm:$0xf0] }
 0x232   : > { %vm3630_vm9 = vcmp.gt.f32.partialorder %v3620_v25, 0.0  ;;  %v3638_v35 = vmul.f32 0.01, %v3620_v25 }
 0x233   : > { %v3587_v51 = vadd.f32 %v3586_v13, %v3568_v9  ;;  %3958 = vmatpush.bf16.msra.mxu3 %v9155_v62  ;;  %v11066_v9 = vld [vmem:[%s13817_s7 + $0x4] sm:$0xf0]  ;;  %v11145_v62 = vld [vmem:[#allocation5 + $0x204] sm:$0xf] }
 0x234   : > { %v3646_v54 = vsel %vm3630_vm9, %v3620_v25, %v3638_v35  ;;  %v9142_v25 = vld [vmem:[%s13817_s7 + $0x20] sm:$0xf]  ;;  %v9134_v35 = vld [vmem:[%s13817_s7 + $0x10] sm:$0xf]  ;;  %v9127_v58 = vor.u32 %v11066_v9, %v9126_v49 }
 0x235   : > { %v3602_v12 = vpop.f32.mrf.mxu2  ;;  %v3621_v27 = vpop.f32.mrf.mxu3 }
 0x236   : > { %v3603_v48 = vadd.f32 %v3602_v12, %v3584_v43  ;;  %v11070_v12 = vld [vmem:[%s13817_s7 + $0x24] sm:$0xf0] }
 0x238   : > { %v3622_v16 = vadd.f32 %v3621_v27, %v3603_v48  ;;  %v3569_v36 = vpop.f32.mrf.mxu0  ;;  %v3588_v60 = vpop.f32.mrf.mxu1  ;;  %v11069_v48 = vld [vmem:[%s13817_s7 + $0x24] sm:$0xf]  ;;  %v9143_v27 = vor.u32 %v11070_v12, %v9142_v25  ;;  %v11153_v25 = vld [vmem:[#allocation5 + $0x23c] sm:$0xf0] }
 0x239   : > { %v3570_v37 = vadd.f32 %v3569_v36, %v3551_v5  ;;  %v9147_v53 = vor.u32 %v11069_v48, %v9144_v28  ;;  %v11329_v36 = vld [vmem:[#allocation5 + $0x7bc] sm:$0xf0]  ;;  %v10152_v5 = vld [vmem:[#allocation5 + $0x7c0] sm:$0xf0] }
 0x23a   : > { %vm3632_vm10 = vcmp.gt.f32.partialorder %v3622_v16, 0.0  ;;  %v3640_v44 = vmul.f32 0.01, %v3622_v16  ;;  %3940 = vmatpush.bf16.msra.mxu2 %v9143_v27  ;;  %v10155_v4 = vor.u32 %v11321_v32, %v10152_v5  ;;  %v9958_v12 = vld [vmem:[#allocation5 + $0x600] sm:$0xf] }
 0x23b   : > { %v3589_v50 = vadd.f32 %v3588_v60, %v3570_v37  ;;  %3959 = vmatpush.bf16.msra.mxu3 %v9147_v53  ;;  %v9576_v37 = vld [vmem:[#allocation5 + $0x340] sm:$0xf0]  ;;  %v11281_v48 = vld [vmem:[#allocation5 + $0x63c] sm:$0xf0] }
 0x23c   : > { %v3648_v39 = vsel %vm3632_vm10, %v3622_v16, %v3640_v44  ;;  %v11068_v16 = vld [vmem:[%s13817_s7 + $0x14] sm:$0xf0]  ;;  %v11065_v44 = vld [vmem:[%s13817_s7 + $0x4] sm:$0xf]  ;;  %v9959_v49 = vor.u32 %v11281_v48, %v9958_v12 }
 0x23d   : > { %v3654_v24 = vpack.c.bf16 %v3648_v39, %v3646_v54  ;;  %v3605_v6 = vpop.f32.mrf.mxu2  ;;  %v3624_v2 = vpop.f32.mrf.mxu3  ;;  %v9135_v13 = vor.u32 %v11068_v16, %v9134_v35  ;;  %v9131_v20 = vor.u32 %v11065_v44, %v9128_v38  ;;  %v9640_v54 = vld [vmem:[#allocation5 + $0x3c0] sm:$0xf0]  ;;  %v9638_v39 = vld [vmem:[#allocation5 + $0x380] sm:$0xf] }
 0x23e   : > { %v3606_v55 = vadd.f32 %v3605_v6, %v3587_v51  ;;  %v9643_v29 = vor.u32 %v11193_v17, %v9640_v54  ;;  %v9639_v11 = vor.u32 %v11201_v34, %v9638_v39  ;;  %v11177_v51 = vld [vmem:[#allocation5 + $0x304] sm:$0xf] }
 0x23f   : > { %3816 = vmatmul.bf16.vlgmr.msra.gmra.mxu1 %v3654_v24  ;;  %3941 = vmatpush.bf16.msra.mxu2 %v9135_v13  ;;  %v10150_v24 = vld [vmem:[#allocation5 + $0x780] sm:$0xf]  ;;  %v9579_v23 = vor.u32 %v11177_v51, %v9576_v37  ;;  %v11305_v60 = vld [vmem:[#allocation5 + $0x704] sm:$0xf] }
 0x240   : > { %v3625_v57 = vadd.f32 %v3624_v2, %v3606_v55  ;;  %3960 = vmatpush.bf16.msra.mxu3 %v9139_v3  ;;  %v3798_v59 = vpop.f32.mrf.mxu0  ;;  %v10151_v33 = vor.u32 %v11329_v36, %v10150_v24  ;;  %v9574_v55 = vld [vmem:[#allocation5 + $0x300] sm:$0xf]  ;;  %5557 = vmatpush.bf16.msrb.mxu0 %v9639_v11  ;;  %v11273_v53 = vld [vmem:[#allocation5 + $0x604] sm:$0xf] }
 0x241   : > { %v3799_v6 = vadd.f32 %v12987_v30, %v3798_v59  ;;  %v9575_v40 = vor.u32 %v11185_v19, %v9574_v55  ;;  %v9960_v35 = vld [vmem:[#allocation5 + $0x640] sm:$0xf0]  ;;  %v9382_v24 = vld [vmem:[#allocation5 + $0x180] sm:$0xf] }
 0x242   : > { %v3642_v45 = vmul.f32 0.01, %v3625_v57  ;;  %vm3634_vm11 = vcmp.gt.f32.partialorder %v3625_v57, 0.0  ;;  %5576 = vmatpush.bf16.msrb.mxu1 %v10151_v33  ;;  %v9384_v13 = vld [vmem:[#allocation5 + $0x1c0] sm:$0xf0]  ;;  %v9963_v44 = vor.u32 %v11273_v53, %v9960_v35 }
 0x243   : > { %3942 = vmatpush.bf16.msra.mxu2 %v9127_v58  ;;  %v9387_v58 = vor.u32 %v11129_v47, %v9384_v13  ;;  %v11137_v36 = vld [vmem:[#allocation5 + $0x1bc] sm:$0xf0]  ;;  %v11257_v32 = vld [vmem:[#allocation5 + $0x584] sm:$0xf]  ;;  %v11194_v53 = vld [vmem:[#allocation5 + $0x38c] sm:$0xf] }
 0x244   : > { %v3650_v1 = vsel %vm3634_vm11, %v3625_v57, %v3642_v45  ;;  %3961 = vmatpush.bf16.msra.mxu3 %v9131_v20  ;;  %v10088_v57 = vld [vmem:[#allocation5 + $0x740] sm:$0xf0]  ;;  %5558 = vmatpush.bf16.msrb.mxu0 %v9575_v40  ;;  %v9383_v11 = vor.u32 %v11137_v36, %v9382_v24  ;;  %v11265_v33 = vld [vmem:[#allocation5 + $0x5bc] sm:$0xf0]  ;;  %v9648_v35 = vld [vmem:[#allocation5 + $0x3c8] sm:$0xf0] }
 0x245   : > { %v3607_v7 = vpop.f32.mrf.mxu2  ;;  %v3626_v10 = vpop.f32.mrf.mxu3  ;;  %v10091_v31 = vor.u32 %v11305_v60, %v10088_v57  ;;  %v10024_v45 = vld [vmem:[#allocation5 + $0x6c0] sm:$0xf0]  ;;  %v11121_v55 = vld [vmem:[#allocation5 + $0x13c] sm:$0xf0]  ;;  %v9651_v47 = vor.u32 %v11194_v53, %v9648_v35  ;;  %v11202_v13 = vld [vmem:[#allocation5 + $0x3c4] sm:$0xf0] }
 0x246   : > { %v3608_v21 = vadd.f32 %v3607_v7, %v3589_v50  ;;  %v10087_v50 = vor.u32 %v11313_v52, %v10086_v26  ;;  %v9512_v7 = vld [vmem:[#allocation5 + $0x2c0] sm:$0xf0]  ;;  %v9830_v19 = vld [vmem:[#allocation5 + $0x500] sm:$0xf]  ;;  %v9328_v53 = vld [vmem:[#allocation5 + $0x148] sm:$0xf0] }
 0x247   : > { %5595 = vmatpush.bf16.msrb.mxu2 %v9643_v29  ;;  %v9515_v56 = vor.u32 %v11161_v0, %v9512_v7  ;;  %v9896_v5 = vld [vmem:[#allocation5 + $0x5c0] sm:$0xf0]  ;;  %v9254_v7 = vld [vmem:[#allocation5 + $0x80] sm:$0xf]  ;;  %v9326_v35 = vld [vmem:[#allocation5 + $0x108] sm:$0xf] }
 0x248   : > { %v3627_v8 = vadd.f32 %v3626_v10, %v3608_v21  ;;  %v3800_v2 = vpop.f32.mrf.mxu0  ;;  %5614 = vmatpush.bf16.msrb.mxu3 %v10155_v4  ;;  %v10022_v21 = vld [vmem:[#allocation5 + $0x680] sm:$0xf]  ;;  %v11289_v10 = vld [vmem:[#allocation5 + $0x684] sm:$0xf]  ;;  %5577 = vmatpush.bf16.msrb.mxu1 %v10087_v50 }
 0x249   : > { %v10023_v41 = vor.u32 %v11297_v63, %v10022_v21  ;;  %v9318_v4 = vld [vmem:[#allocation5 + $0x100] sm:$0xf]  ;;  %v11241_v26 = vld [vmem:[#allocation5 + $0x504] sm:$0xf] }
 0x24a   : > { %vm3636_vm12 = vcmp.gt.f32.partialorder %v3627_v8, 0.0  ;;  %v3644_v61 = vmul.f32 0.01, %v3627_v8  ;;  %v9832_v52 = vld [vmem:[#allocation5 + $0x540] sm:$0xf0] }
 0x24b   : > { %5596 = vmatpush.bf16.msrb.mxu2 %v9579_v23  ;;  %v9319_v23 = vor.u32 %v11121_v55, %v9318_v4  ;;  %v11097_v60 = vld [vmem:[#allocation5 + $0x84] sm:$0xf]  ;;  %v9835_v50 = vor.u32 %v11241_v26, %v9832_v52  ;;  %v11233_v21 = vld [vmem:[#allocation5 + $0x4bc] sm:$0xf0]  ;;  %v11290_v55 = vld [vmem:[#allocation5 + $0x68c] sm:$0xf] }
 0x24c   : > { %v3652_v22 = vsel %vm3636_vm12, %v3627_v8, %v3644_v61  ;;  %v9511_v8 = vor.u32 %v11169_v15, %v9510_v18  ;;  %v9448_v61 = vld [vmem:[#allocation5 + $0x240] sm:$0xf0]  ;;  %5615 = vmatpush.bf16.msrb.mxu3 %v10091_v31  ;;  %5578 = vmatpush.bf16.msrb.mxu1 %v10023_v41  ;;  %v11105_v31 = vld [vmem:[#allocation5 + $0xbc] sm:$0xf0]  ;;  %v9456_v26 = vld [vmem:[#allocation5 + $0x248] sm:$0xf0] }
 0x24d   : > { %v3656_v43 = vpack.c.bf16 %v3652_v22, %v3650_v1  ;;  %v10027_v1 = vor.u32 %v11289_v10, %v10024_v45  ;;  %v9446_v22 = vld [vmem:[#allocation5 + $0x200] sm:$0xf]  ;;  %v9451_v28 = vor.u32 %v11145_v62, %v9448_v61  ;;  %v9256_v57 = vld [vmem:[#allocation5 + $0xc0] sm:$0xf0]  ;;  %v9255_v15 = vor.u32 %v11105_v31, %v9254_v7  ;;  %v9454_v52 = vld [vmem:[#allocation5 + $0x208] sm:$0xf] }
 0x24e   : > { %5559 = vmatpush.bf16.msrb.mxu0 %v9511_v8  ;;  %v9447_v3 = vor.u32 %v11153_v25, %v9446_v22  ;;  %v9259_v0 = vor.u32 %v11097_v60, %v9256_v57  ;;  %v9766_v18 = vld [vmem:[#allocation5 + $0x480] sm:$0xf]  ;;  %v9768_v63 = vld [vmem:[#allocation5 + $0x4c0] sm:$0xf0]  ;;  %v9966_v57 = vld [vmem:[#allocation5 + $0x608] sm:$0xf] }
 0x24f   : > { %3821 = vmatmul.bf16.gmra.mxu1 %v3656_v43  ;;  %v3801_v43 = vadd.f32 %v12987_v30, %v3800_v2  ;;  %5597 = vmatpush.bf16.msrb.mxu2 %v9515_v56  ;;  %v9899_v2 = vor.u32 %v11257_v32, %v9896_v5  ;;  %v11225_v56 = vld [vmem:[#allocation5 + $0x484] sm:$0xf]  ;;  %v9767_v10 = vor.u32 %v11233_v21, %v9766_v18  ;;  %v9190_v62 = vld [vmem:[#allocation5] sm:$0xf]  ;;  %v9520_v5 = vld [vmem:[#allocation5 + $0x2c8] sm:$0xf0] }
 0x250   : > { %v3803_v14 = vpop.f32.mrf.mxu0  ;;  %5616 = vmatpush.bf16.msrb.mxu3 %v10027_v1  ;;  %5579 = vmatpush.bf16.msrb.mxu1 %v9959_v49  ;;  %v9771_v45 = vor.u32 %v11225_v56, %v9768_v63  ;;  %v11081_v8 = vld [vmem:[#allocation5 + $0x4] sm:$0xf]  ;;  %v11089_v1 = vld [vmem:[#allocation5 + $0x3c] sm:$0xf0]  ;;  %v11274_v18 = vld [vmem:[#allocation5 + $0x60c] sm:$0xf] }
 0x251   : > { %v3804_v38 = vadd.f32 %v12987_v30, %v3803_v14  ;;  %v9192_v41 = vld [vmem:[#allocation5 + $0x40] sm:$0xf0]  ;;  %v9702_v22 = vld [vmem:[#allocation5 + $0x400] sm:$0xf]  ;;  %v9191_v25 = vor.u32 %v11089_v1, %v9190_v62  ;;  %v10158_v14 = vld [vmem:[#allocation5 + $0x788] sm:$0xf] }
 0x252   : > { %5560 = vmatpush.bf16.msrb.mxu0 %v9447_v3  ;;  %v9195_v61 = vor.u32 %v11081_v8, %v9192_v41  ;;  %v11209_v48 = vld [vmem:[#allocation5 + $0x404] sm:$0xf]  ;;  %v11330_v3 = vld [vmem:[#allocation5 + $0x7c4] sm:$0xf0]  ;;  %v3849_v56 = vld [vmem:[%s13818_s8] sm:$0x3] }
 0x253   : > { %5598 = vmatpush.bf16.msrb.mxu2 %v9451_v28  ;;  %v11130_v63 = vld [vmem:[#allocation5 + $0x18c] sm:$0xf]  ;;  %v11138_v41 = vld [vmem:[#allocation5 + $0x1c4] sm:$0xf0] }
 0x254   : > { %5617 = vmatpush.bf16.msrb.mxu3 %v9963_v44  ;;  %v11322_v44 = vld [vmem:[#allocation5 + $0x78c] sm:$0xf]  ;;  %v9902_v62 = vld [vmem:[#allocation5 + $0x588] sm:$0xf] }
 0x256   : > { %5561 = vmatpush.bf16.msrb.mxu0 %v9383_v11  ;;  %v10096_v11 = vld [vmem:[#allocation5 + $0x748] sm:$0xf0] }
 0x257   : > { %5599 = vmatpush.bf16.msrb.mxu2 %v9387_v58  ;;  %v10160_v58 = vld [vmem:[#allocation5 + $0x7c8] sm:$0xf0] }
 0x258   : > { %v3805_v17 = vpop.f32.mrf.mxu0  ;;  %5618 = vmatpush.bf16.msrb.mxu3 %v9899_v2  ;;  %v9518_v2 = vld [vmem:[#allocation5 + $0x288] sm:$0xf] }
 0x259   : > { %v3806_v54 = vadd.f32 %v12987_v30, %v3805_v17  ;;  %v9320_v30 = vld [vmem:[#allocation5 + $0x140] sm:$0xf0]  ;;  %v9582_v17 = vld [vmem:[#allocation5 + $0x308] sm:$0xf] }
 0x25a   : > { %5562 = vmatpush.bf16.msrb.mxu0 %v9319_v23 }
 0x25c   : > { %5619 = vmatpush.bf16.msrb.mxu3 %v9835_v50  ;;  %v11154_v50 = vld [vmem:[#allocation5 + $0x244] sm:$0xf0] }
 0x25d   : > { %v9455_v7 = vor.u32 %v11154_v50, %v9454_v52  ;;  %v11210_v50 = vld [vmem:[#allocation5 + $0x40c] sm:$0xf] }
 0x25e   : > { %5563 = vmatpush.bf16.msrb.mxu0 %v9255_v15  ;;  %v9968_v15 = vld [vmem:[#allocation5 + $0x648] sm:$0xf0] }
 0x25f   : > { %v9971_v21 = vor.u32 %v11274_v18, %v9968_v15 }
 0x260   : > { %5620 = vmatpush.bf16.msrb.mxu3 %v9771_v45  ;;  %v9390_v45 = vld [vmem:[#allocation5 + $0x188] sm:$0xf] }
 0x262   : > { %5564 = vmatpush.bf16.msrb.mxu0 %v9191_v25 }
 0x2bc   : > { %v3817_v42 = vpop.f32.mrf.mxu1 }
 0x2bd   : > { %v3818_v46 = vadd.f32 %v3817_v42, %v3799_v6  ;;  %v9894_v6 = vld [vmem:[#allocation5 + $0x580] sm:$0xf]  ;;  %v11113_v42 = vld [vmem:[#allocation5 + $0x104] sm:$0xf] }
 0x2be   : > { %v9895_v51 = vor.u32 %v11265_v33, %v9894_v6  ;;  %v9323_v37 = vor.u32 %v11113_v42, %v9320_v30  ;;  %v11306_v6 = vld [vmem:[#allocation5 + $0x70c] sm:$0xf]  ;;  %v11170_v42 = vld [vmem:[#allocation5 + $0x2c4] sm:$0xf0] }
 0x2bf   : > { %3827 = vst [vmem:[%s12995_s28] sm:$0xff] %v3818_v46  ;;  %v11162_v33 = vld [vmem:[#allocation5 + $0x28c] sm:$0xf]  ;;  %v10099_v32 = vor.u32 %v11306_v6, %v10096_v11  ;;  %v10030_v30 = vld [vmem:[#allocation5 + $0x688] sm:$0xf]  ;;  %v9519_v4 = vor.u32 %v11170_v42, %v9518_v2 }
 0x2c0   : > { %5580 = vmatpush.bf16.msrb.mxu1 %v9895_v51  ;;  %5600 = vmatpush.bf16.msrb.mxu2 %v9323_v37  ;;  %v9523_v51 = vor.u32 %v11162_v33, %v9520_v5  ;;  %v11298_v37 = vld [vmem:[#allocation5 + $0x6c4] sm:$0xf0]  ;;  %v9776_v33 = vld [vmem:[#allocation5 + $0x4c8] sm:$0xf0] }
 0x2c1   : > { %v9200_v5 = vld [vmem:[#allocation5 + $0x48] sm:$0xf0] }
 0x2c4   : > { %v3819_v27 = vpop.f32.mrf.mxu1  ;;  %5601 = vmatpush.bf16.msrb.mxu2 %v9259_v0  ;;  %v11282_v0 = vld [vmem:[#allocation5 + $0x644] sm:$0xf0] }
 0x2c5   : > { %v3820_v16 = vadd.f32 %v3819_v27, %v3801_v43  ;;  %v11217_v43 = vld [vmem:[#allocation5 + $0x43c] sm:$0xf0]  ;;  %v9704_v27 = vld [vmem:[#allocation5 + $0x440] sm:$0xf0]  ;;  %v9967_v31 = vor.u32 %v11282_v0, %v9966_v57  ;;  %v9712_v57 = vld [vmem:[#allocation5 + $0x448] sm:$0xf0] }
 0x2c6   : > { %v9703_v12 = vor.u32 %v11217_v43, %v9702_v22  ;;  %v9707_v28 = vor.u32 %v11209_v48, %v9704_v27  ;;  %v9391_v43 = vor.u32 %v11138_v41, %v9390_v45  ;;  %v9904_v48 = vld [vmem:[#allocation5 + $0x5c8] sm:$0xf0]  ;;  %v9654_v45 = vld [vmem:[#allocation5 + $0x390] sm:$0xf] }
 0x2c7   : > { %3828 = vst [vmem:[%s12995_s28 + $0x8] sm:$0xff] %v3820_v16  ;;  %v3831_v9 = vpack.c.bf16 %v3820_v16, %v3818_v46  ;;  %v11249_v46 = vld [vmem:[#allocation5 + $0x53c] sm:$0xf0]  ;;  %v9646_v16 = vld [vmem:[#allocation5 + $0x388] sm:$0xf] }
 0x2c8   : > { %v9831_v40 = vor.u32 %v11249_v46, %v9830_v19  ;;  %5602 = vmatpush.bf16.msrb.mxu2 %v9195_v61  ;;  %5621 = vmatpush.bf16.msrb.mxu3 %v9707_v28  ;;  %v9647_v49 = vor.u32 %v11202_v13, %v9646_v16  ;;  %v10032_v19 = vld [vmem:[#allocation5 + $0x6c8] sm:$0xf0]  ;;  %v10031_v46 = vor.u32 %v11298_v37, %v10030_v30  ;;  %v11266_v61 = vld [vmem:[#allocation5 + $0x5c4] sm:$0xf0]  ;;  %v11203_v41 = vld [vmem:[#allocation5 + $0x3cc] sm:$0xf0] }
 0x2c9   : > { %3943 = vmatmul.bf16.vlgmr.msra.gmra.mxu2 %v3831_v9  ;;  %3962 = vmatmul.bf16.vlgmr.msra.gmra.mxu3 %v3831_v9  ;;  %v10159_v9 = vor.u32 %v11330_v3, %v10158_v14  ;;  %v10035_v23 = vor.u32 %v11290_v55, %v10032_v19  ;;  %v9903_v25 = vor.u32 %v11266_v61, %v9902_v62  ;;  %v11114_v27 = vld [vmem:[#allocation5 + $0x10c] sm:$0xf]  ;;  %v11122_v16 = vld [vmem:[#allocation5 + $0x144] sm:$0xf0]  ;;  %v10166_v62 = vld [vmem:[#allocation5 + $0x790] sm:$0xf] }
 0x2ca   : > { %5581 = vmatpush.bf16.msrb.mxu1 %v9831_v40  ;;  %5633 = vmatpush.bf16.msra.mxu0 %v9647_v49  ;;  %v11146_v40 = vld [vmem:[#allocation5 + $0x20c] sm:$0xf]  ;;  %v9327_v13 = vor.u32 %v11122_v16, %v9326_v35  ;;  %v9838_v14 = vld [vmem:[#allocation5 + $0x508] sm:$0xf]  ;;  %v11331_v61 = vld [vmem:[#allocation5 + $0x7cc] sm:$0xf0] }
 0x2cb   : > { %v9459_v60 = vor.u32 %v11146_v40, %v9456_v26  ;;  %v11250_v3 = vld [vmem:[#allocation5 + $0x544] sm:$0xf0]  ;;  %v11242_v49 = vld [vmem:[#allocation5 + $0x50c] sm:$0xf]  ;;  %v9590_v35 = vld [vmem:[#allocation5 + $0x310] sm:$0xf] }
 0x2cc   : > { %v3822_v20 = vpop.f32.mrf.mxu1  ;;  %5671 = vmatpush.bf16.msra.mxu2 %v9651_v47  ;;  %v9331_v47 = vor.u32 %v11114_v27, %v9328_v53  ;;  %v9198_v30 = vld [vmem:[#allocation5 + $0x8] sm:$0xf]  ;;  %v11179_v27 = vld [vmem:[#allocation5 + $0x314] sm:$0xf]  ;;  %v11187_v16 = vld [vmem:[#allocation5 + $0x34c] sm:$0xf0] }
 0x2cd   : > { %v3823_v59 = vadd.f32 %v3822_v20, %v3804_v38  ;;  %v10163_v38 = vor.u32 %v11322_v44, %v10160_v58  ;;  %v11178_v20 = vld [vmem:[#allocation5 + $0x30c] sm:$0xf]  ;;  %v13009_v44 = vperm.slane %v3849_v56, 1  ;;  %v9839_v58 = vor.u32 %v11250_v3, %v9838_v14  ;;  %v9710_v37 = vld [vmem:[#allocation5 + $0x408] sm:$0xf] }
 0x2ce   : > { %5582 = vmatpush.bf16.msrb.mxu1 %v9767_v10  ;;  %v9392_v10 = vld [vmem:[#allocation5 + $0x1c8] sm:$0xf0]  ;;  %v9592_v53 = vld [vmem:[#allocation5 + $0x350] sm:$0xf0]  ;;  %v10102_v14 = vld [vmem:[#allocation5 + $0x710] sm:$0xf] }
 0x2cf   : > { %3829 = vst [vmem:[%s12995_s28 + $0x10] sm:$0xff] %v3823_v59  ;;  %5690 = vmatpush.bf16.msra.mxu3 %v10163_v38  ;;  %v9395_v8 = vor.u32 %v11130_v63, %v9392_v10  ;;  %v9840_v38 = vld [vmem:[#allocation5 + $0x548] sm:$0xf0]  ;;  %v11195_v63 = vld [vmem:[#allocation5 + $0x394] sm:$0xf] }
 0x2d0   : > { %v9656_v10 = vld [vmem:[#allocation5 + $0x3d0] sm:$0xf0]  ;;  %v11315_v3 = vld [vmem:[#allocation5 + $0x74c] sm:$0xf0] }
 0x2d2   : > { %5583 = vmatpush.bf16.msrb.mxu1 %v9703_v12  ;;  %v11258_v12 = vld [vmem:[#allocation5 + $0x58c] sm:$0xf] }
 0x2d3   : > { %5691 = vmatpush.bf16.msra.mxu3 %v10099_v32  ;;  %v9907_v28 = vor.u32 %v11258_v12, %v9904_v48  ;;  %v11082_v32 = vld [vmem:[#allocation5 + $0xc] sm:$0xf]  ;;  %v11323_v12 = vld [vmem:[#allocation5 + $0x794] sm:$0xf] }
 0x2d4   : > { %v3824_v39 = vpop.f32.mrf.mxu1  ;;  %v9203_v26 = vor.u32 %v11082_v32, %v9200_v5  ;;  %v10168_v48 = vld [vmem:[#allocation5 + $0x7d0] sm:$0xf0] }
 0x2d5   : > { %v3825_v29 = vadd.f32 %v3824_v39, %v3806_v54  ;;  %v11186_v39 = vld [vmem:[#allocation5 + $0x344] sm:$0xf0]  ;;  %v11147_v32 = vld [vmem:[#allocation5 + $0x214] sm:$0xf] }
 0x2d6   : > { %5652 = vmatpush.bf16.msra.mxu1 %v10159_v9  ;;  %v9583_v24 = vor.u32 %v11186_v39, %v9582_v17  ;;  %v13007_v9 = vperm.slane %v3849_v56, 0  ;;  %v9264_v17 = vld [vmem:[#allocation5 + $0xc8] sm:$0xf0]  ;;  %v11106_v39 = vld [vmem:[#allocation5 + $0xc4] sm:$0xf0]  ;;  %v9715_v56 = vor.u32 %v11210_v50, %v9712_v57 }
 0x2d7   : > { %3830 = vst [vmem:[%s12995_s28 + $0x18] sm:$0xff] %v3825_v29  ;;  %v3832_v34 = vpack.c.bf16 %v3825_v29, %v3823_v59  ;;  %v9584_v59 = vld [vmem:[#allocation5 + $0x348] sm:$0xf0]  ;;  %v10094_v29 = vld [vmem:[#allocation5 + $0x708] sm:$0xf]  ;;  %5692 = vmatpush.bf16.msra.mxu3 %v10035_v23  ;;  %s11615_s28 = scalar_lea.hbm %s13824_s14, 64 }
 0x2d8   : > { %v9587_v54 = vor.u32 %v11178_v20, %v9584_v59  ;;  %5634 = vmatpush.bf16.msra.mxu0 %v9583_v24  ;;  %v11098_v20 = vld [vmem:[#allocation5 + $0x8c] sm:$0xf]  ;;  %v9843_v59 = vor.u32 %v11242_v49, %v9840_v38  ;;  %v11234_v24 = vld [vmem:[#allocation5 + $0x4c4] sm:$0xf0]  ;;  %v11307_v49 = vld [vmem:[#allocation5 + $0x714] sm:$0xf]  ;;  %p11617_p4 = scmp.lt.s32.totalorder %s11615_s28, %s11611_s22 }
 0x2d9   : > { %3948 = vmatmul.bf16.gmra.mxu2 %v3832_v34  ;;  %3967 = vmatmul.bf16.gmra.mxu3 %v3832_v34  ;;  %v11314_v34 = vld [vmem:[#allocation5 + $0x744] sm:$0xf0]  ;;  %v10104_v38 = vld [vmem:[#allocation5 + $0x750] sm:$0xf0] }
 0x2da   : > { %v10095_v36 = vor.u32 %v11314_v34, %v10094_v29  ;;  %5672 = vmatpush.bf16.msra.mxu2 %v9587_v54  ;;  %v9262_v54 = vld [vmem:[#allocation5 + $0x88] sm:$0xf]  ;;  %v9267_v29 = vor.u32 %v11098_v20, %v9264_v17  ;;  %v11163_v20 = vld [vmem:[#allocation5 + $0x294] sm:$0xf]  ;;  %p11618_p7 = por %p11617_p4, %p11616_p3 }
 0x2db   : > { %5693 = vmatpush.bf16.msra.mxu3 %v9971_v21  ;;  %v9774_v34 = vld [vmem:[#allocation5 + $0x488] sm:$0xf]  ;;  %v9263_v6 = vor.u32 %v11106_v39, %v9262_v54  ;;  %v9528_v17 = vld [vmem:[#allocation5 + $0x2d0] sm:$0xf0]  ;;  %v9526_v54 = vld [vmem:[#allocation5 + $0x290] sm:$0xf] }
 0x2dc   : > { %5653 = vmatpush.bf16.msra.mxu1 %v10095_v36  ;;  %5635 = vmatpush.bf16.msra.mxu0 %v9519_v4  ;;  %v11226_v36 = vld [vmem:[#allocation5 + $0x48c] sm:$0xf]  ;;  %v9775_v11 = vor.u32 %v11234_v24, %v9774_v34  ;;  %v11090_v4 = vld [vmem:[#allocation5 + $0x44] sm:$0xf0]  ;;  %v11171_v39 = vld [vmem:[#allocation5 + $0x2cc] sm:$0xf0]  ;;  %p11619_p8 = pnand %p11618_p7, %p11614_p2 }
 0x2dd   : > { %v9779_v42 = vor.u32 %v11226_v36, %v9776_v33  ;;  %v9199_v52 = vor.u32 %v11090_v4, %v9198_v30  ;;  %v10038_v34 = vld [vmem:[#allocation5 + $0x690] sm:$0xf]  ;;  %v11291_v36 = vld [vmem:[#allocation5 + $0x694] sm:$0xf] }
 0x2de   : > { %5673 = vmatpush.bf16.msra.mxu2 %v9523_v51  ;;  %v11299_v24 = vld [vmem:[#allocation5 + $0x6cc] sm:$0xf0]  ;;  %v10040_v33 = vld [vmem:[#allocation5 + $0x6d0] sm:$0xf0] }
 0x2df   : > { %5694 = vmatpush.bf16.msra.mxu3 %v9907_v28  ;;  %v10171_v28 = vor.u32 %v11323_v12, %v10168_v48  ;;  %v9464_v5 = vld [vmem:[#allocation5 + $0x250] sm:$0xf0]  ;;  %v9462_v30 = vld [vmem:[#allocation5 + $0x210] sm:$0xf] }
 0x2e0   : > { %5654 = vmatpush.bf16.msra.mxu1 %v10031_v46  ;;  %5636 = vmatpush.bf16.msra.mxu0 %v9455_v7  ;;  %v11218_v46 = vld [vmem:[#allocation5 + $0x444] sm:$0xf0]  ;;  %v11155_v4 = vld [vmem:[#allocation5 + $0x24c] sm:$0xf0]  ;;  %v11275_v50 = vld [vmem:[#allocation5 + $0x614] sm:$0xf] }
 0x2e1   : > { %v9976_v57 = vld [vmem:[#allocation5 + $0x650] sm:$0xf0] }
 0x2e2   : > { %5674 = vmatpush.bf16.msra.mxu2 %v9459_v60  ;;  %v9711_v60 = vor.u32 %v11218_v46, %v9710_v37  ;;  %v9974_v37 = vld [vmem:[#allocation5 + $0x610] sm:$0xf]  ;;  %v11115_v12 = vld [vmem:[#allocation5 + $0x114] sm:$0xf] }
 0x2e3   : > { %5695 = vmatpush.bf16.msra.mxu3 %v9843_v59  ;;  %v10107_v59 = vor.u32 %v11307_v49, %v10104_v38  ;;  %v11283_v46 = vld [vmem:[#allocation5 + $0x64c] sm:$0xf0]  ;;  %v9848_v49 = vld [vmem:[#allocation5 + $0x550] sm:$0xf0] }
 0x2e4   : > { %5655 = vmatpush.bf16.msra.mxu1 %v9967_v31  ;;  %5637 = vmatpush.bf16.msra.mxu0 %v9391_v43  ;;  %v9655_v43 = vor.u32 %v11203_v41, %v9654_v45  ;;  %v9398_v45 = vld [vmem:[#allocation5 + $0x190] sm:$0xf]  ;;  %v9272_v38 = vld [vmem:[#allocation5 + $0xd0] sm:$0xf0] }
 0x2e5   : > { %v11139_v41 = vld [vmem:[#allocation5 + $0x1cc] sm:$0xf0] }
 0x2e6   : > { %5675 = vmatpush.bf16.msra.mxu2 %v9395_v8  ;;  %v9659_v8 = vor.u32 %v11195_v63, %v9656_v10  ;;  %v9400_v10 = vld [vmem:[#allocation5 + $0x1d0] sm:$0xf0] }
 0x2e7   : > { %5696 = vmatpush.bf16.msra.mxu3 %v9779_v42  ;;  %v10043_v42 = vor.u32 %v11291_v36, %v10040_v33  ;;  %v9208_v33 = vld [vmem:[#allocation5 + $0x50] sm:$0xf0] }
 0x2e8   : > { %5656 = vmatpush.bf16.msra.mxu1 %v9903_v25  ;;  %5638 = vmatpush.bf16.msra.mxu0 %v9327_v13  ;;  %v10167_v25 = vor.u32 %v11331_v61, %v10166_v62  ;;  %v9591_v13 = vor.u32 %v11187_v16, %v9590_v35  ;;  %v9910_v62 = vld [vmem:[#allocation5 + $0x590] sm:$0xf] }
 0x2e9   : > { %v11267_v61 = vld [vmem:[#allocation5 + $0x5cc] sm:$0xf0] }
 0x2ea   : > { %5676 = vmatpush.bf16.msra.mxu2 %v9331_v47  ;;  %v9595_v47 = vor.u32 %v11179_v27, %v9592_v53  ;;  %v9336_v27 = vld [vmem:[#allocation5 + $0x150] sm:$0xf0]  ;;  %v11123_v53 = vld [vmem:[#allocation5 + $0x14c] sm:$0xf0] }
 0x2eb   : > { %5697 = vmatpush.bf16.msra.mxu3 %v9715_v56  ;;  %v9339_v35 = vor.u32 %v11115_v12, %v9336_v27  ;;  %v11164_v12 = vld [vmem:[#allocation5 + $0x29c] sm:$0xf] }
 0x2ec   : > { %5657 = vmatpush.bf16.msra.mxu1 %v9839_v58  ;;  %5639 = vmatpush.bf16.msra.mxu0 %v9263_v6  ;;  %v10103_v58 = vor.u32 %v11315_v3, %v10102_v14  ;;  %v9527_v6 = vor.u32 %v11171_v39, %v9526_v54  ;;  %v11243_v14 = vld [vmem:[#allocation5 + $0x514] sm:$0xf] }
 0x2ed   : > { %v9851_v54 = vor.u32 %v11243_v14, %v9848_v49  ;;  %v10048_v14 = vld [vmem:[#allocation5 + $0x6d8] sm:$0xf0] }
 0x2ee   : > { %5677 = vmatpush.bf16.msra.mxu2 %v9267_v29  ;;  %v9531_v29 = vor.u32 %v11163_v20, %v9528_v17  ;;  %v9270_v20 = vld [vmem:[#allocation5 + $0x90] sm:$0xf] }
 0x2ef   : > { %v9782_v17 = vld [vmem:[#allocation5 + $0x490] sm:$0xf] }
 0x2f0   : > { %5658 = vmatpush.bf16.msra.mxu1 %v9775_v11  ;;  %5640 = vmatpush.bf16.msra.mxu0 %v9199_v52  ;;  %v10039_v11 = vor.u32 %v11299_v24, %v10038_v34  ;;  %v9463_v52 = vor.u32 %v11155_v4, %v9462_v30  ;;  %v11227_v34 = vld [vmem:[#allocation5 + $0x494] sm:$0xf] }
 0x2f1   : > { %v9784_v24 = vld [vmem:[#allocation5 + $0x4d0] sm:$0xf0] }
 0x2f2   : > { %5678 = vmatpush.bf16.msra.mxu2 %v9203_v26  ;;  %v9467_v26 = vor.u32 %v11147_v32, %v9464_v5  ;;  %v9206_v32 = vld [vmem:[#allocation5 + $0x10] sm:$0xf] }
 0x2f3   : > { %v11091_v5 = vld [vmem:[#allocation5 + $0x4c] sm:$0xf0] }
 0x2f4   : > { %5659 = vmatpush.bf16.msra.mxu1 %v9711_v60  ;;  %v9975_v60 = vor.u32 %v11283_v46, %v9974_v37  ;;  %v9207_v4 = vor.u32 %v11091_v5, %v9206_v32  ;;  %v9408_v32 = vld [vmem:[#allocation5 + $0x1d8] sm:$0xf0]  ;;  %v9406_v5 = vld [vmem:[#allocation5 + $0x198] sm:$0xf] }
 0x34c   : > { %v3944_v1 = vpop.f32.mrf.mxu2  ;;  %v3963_v22 = vpop.f32.mrf.mxu3 }
 0x34d   : > { %v3945_v51 = vadd.f32 %v3944_v1, %v13007_v9  ;;  %v3964_v2 = vadd.f32 %v3963_v22, %v13009_v44 }
 0x34f   : > { %v3973_v0 = vmax.f32 %v3945_v51, 0.0  ;;  %v3974_v7 = vmax.f32 %v3964_v2, 0.0 }
 0x354   : > { %v3946_v55 = vpop.f32.mrf.mxu2  ;;  %v3965_v19 = vpop.f32.mrf.mxu3 }
 0x355   : > { %v3947_v23 = vadd.f32 %v3946_v55, %v13007_v9  ;;  %v3966_v40 = vadd.f32 %v3965_v19, %v13009_v44 }
 0x357   : > { %v3975_v31 = vmax.f32 %v3947_v23, 0.0  ;;  %v3976_v18 = vmax.f32 %v3966_v40, 0.0 }
 0x359   : > { %v13015_v15 = vpack.c.bf16 %v3975_v31, %v3973_v0  ;;  %v13017_v21 = vpack.c.bf16 %v3976_v18, %v3974_v7 }
 0x35b   : > { %5565 = vmatmul.bf16.vlgmr.msrb.gmra.mxu0 %v13015_v15  ;;  %5584 = vmatmul.bf16.vlgmr.msrb.gmra.mxu1 %v13017_v21 }
 0x35c   : > { %5603 = vmatmul.bf16.vlgmr.msrb.gmra.mxu2 %v13015_v15  ;;  %5622 = vmatmul.bf16.vlgmr.msrb.gmra.mxu3 %v13017_v21  ;;  %v3949_v1 = vpop.f32.mrf.mxu2  ;;  %v3968_v22 = vpop.f32.mrf.mxu3 }
 0x35d   : > { %5747 = vmatpush.bf16.msrb.mxu2 %v9659_v8  ;;  %5709 = vmatpush.bf16.msrb.mxu0 %v9655_v43  ;;  %v3950_v51 = vadd.f32 %v3949_v1, %v13007_v9  ;;  %v3969_v2 = vadd.f32 %v3968_v22, %v13009_v44  ;;  %v9399_v1 = vor.u32 %v11139_v41, %v9398_v45  ;;  %v11259_v43 = vld [vmem:[#allocation5 + $0x594] sm:$0xf]  ;;  %v9598_v45 = vld [vmem:[#allocation5 + $0x318] sm:$0xf] }
 0x35e   : > { %5728 = vmatpush.bf16.msrb.mxu1 %v10167_v25  ;;  %5766 = vmatpush.bf16.msrb.mxu3 %v10171_v28  ;;  %v9911_v22 = vor.u32 %v11267_v61, %v9910_v62  ;;  %v9912_v25 = vld [vmem:[#allocation5 + $0x5d0] sm:$0xf0]  ;;  %v9334_v28 = vld [vmem:[#allocation5 + $0x110] sm:$0xf]  ;;  %v10110_v61 = vld [vmem:[#allocation5 + $0x718] sm:$0xf] }
 0x35f   : > { %v3977_v0 = vmax.f32 %v3950_v51, 0.0  ;;  %v3978_v7 = vmax.f32 %v3969_v2, 0.0  ;;  %v9915_v48 = vor.u32 %v11259_v43, %v9912_v25  ;;  %v9335_v16 = vor.u32 %v11123_v53, %v9334_v28  ;;  %v9718_v51 = vld [vmem:[#allocation5 + $0x410] sm:$0xf]  ;;  %v10112_v25 = vld [vmem:[#allocation5 + $0x758] sm:$0xf0] }
 0x360   : > { %v11219_v2 = vld [vmem:[#allocation5 + $0x44c] sm:$0xf0]  ;;  %v9534_v28 = vld [vmem:[#allocation5 + $0x298] sm:$0xf] }
 0x361   : > { %5748 = vmatpush.bf16.msrb.mxu2 %v9595_v47  ;;  %5710 = vmatpush.bf16.msrb.mxu0 %v9591_v13  ;;  %v9846_v47 = vld [vmem:[#allocation5 + $0x510] sm:$0xf]  ;;  %v9719_v37 = vor.u32 %v11219_v2, %v9718_v51  ;;  %v11172_v53 = vld [vmem:[#allocation5 + $0x2d4] sm:$0xf0] }
 0x362   : > { %5729 = vmatpush.bf16.msrb.mxu1 %v10103_v58  ;;  %5767 = vmatpush.bf16.msrb.mxu3 %v10107_v59  ;;  %v11251_v13 = vld [vmem:[#allocation5 + $0x54c] sm:$0xf0]  ;;  %v11099_v58 = vld [vmem:[#allocation5 + $0x94] sm:$0xf]  ;;  %v11140_v2 = vld [vmem:[#allocation5 + $0x1d4] sm:$0xf0] }
 0x363   : > { %v9847_v3 = vor.u32 %v11251_v13, %v9846_v47  ;;  %v11107_v59 = vld [vmem:[#allocation5 + $0xcc] sm:$0xf0]  ;;  %v9275_v39 = vor.u32 %v11099_v58, %v9272_v38  ;;  %v11300_v47 = vld [vmem:[#allocation5 + $0x6d4] sm:$0xf0]  ;;  %v11292_v13 = vld [vmem:[#allocation5 + $0x69c] sm:$0xf] }
 0x364   : > { %v3951_v55 = vpop.f32.mrf.mxu2  ;;  %v3970_v19 = vpop.f32.mrf.mxu3  ;;  %v9271_v36 = vor.u32 %v11107_v59, %v9270_v20  ;;  %v11148_v58 = vld [vmem:[#allocation5 + $0x21c] sm:$0xf]  ;;  %v9470_v20 = vld [vmem:[#allocation5 + $0x218] sm:$0xf]  ;;  %v10051_v59 = vor.u32 %v11292_v13, %v10048_v14 }
 0x365   : > { %v3952_v23 = vadd.f32 %v3951_v55, %v13007_v9  ;;  %v3971_v40 = vadd.f32 %v3970_v19, %v13009_v44  ;;  %5749 = vmatpush.bf16.msrb.mxu2 %v9531_v29  ;;  %5711 = vmatpush.bf16.msrb.mxu0 %v9527_v6  ;;  %v9979_v9 = vor.u32 %v11275_v50, %v9976_v57  ;;  %v11131_v44 = vld [vmem:[#allocation5 + $0x194] sm:$0xf]  ;;  %v11235_v29 = vld [vmem:[#allocation5 + $0x4cc] sm:$0xf0]  ;;  %v10174_v50 = vld [vmem:[#allocation5 + $0x798] sm:$0xf] }
 0x366   : > { %5730 = vmatpush.bf16.msrb.mxu1 %v10039_v11  ;;  %5768 = vmatpush.bf16.msrb.mxu3 %v10043_v42  ;;  %v9403_v8 = vor.u32 %v11131_v44, %v9400_v10  ;;  %v9783_v6 = vor.u32 %v11235_v29, %v9782_v17  ;;  %v11083_v11 = vld [vmem:[#allocation5 + $0x14] sm:$0xf]  ;;  %v9787_v42 = vor.u32 %v11227_v34, %v9784_v24  ;;  %v11332_v57 = vld [vmem:[#allocation5 + $0x7d4] sm:$0xf0]  ;;  %v9600_v10 = vld [vmem:[#allocation5 + $0x358] sm:$0xf0] }
 0x367   : > { %v3979_v31 = vmax.f32 %v3952_v23, 0.0  ;;  %v3980_v18 = vmax.f32 %v3971_v40, 0.0  ;;  %v9211_v30 = vor.u32 %v11083_v11, %v9208_v33  ;;  %v11211_v55 = vld [vmem:[#allocation5 + $0x414] sm:$0xf]  ;;  %v11196_v23 = vld [vmem:[#allocation5 + $0x39c] sm:$0xf] }
 0x368   : > { %v9720_v19 = vld [vmem:[#allocation5 + $0x450] sm:$0xf0]  ;;  %v9664_v40 = vld [vmem:[#allocation5 + $0x3d8] sm:$0xf0]  ;;  %v11156_v17 = vld [vmem:[#allocation5 + $0x254] sm:$0xf0] }
 0x369   : > { %v13027_v56 = vpack.c.bf16 %v3979_v31, %v3977_v0  ;;  %v13029_v63 = vpack.c.bf16 %v3980_v18, %v3978_v7  ;;  %5750 = vmatpush.bf16.msrb.mxu2 %v9467_v26  ;;  %5712 = vmatpush.bf16.msrb.mxu0 %v9463_v52  ;;  %v9723_v46 = vor.u32 %v11211_v55, %v9720_v19  ;;  %v9662_v26 = vld [vmem:[#allocation5 + $0x398] sm:$0xf]  ;;  %v11324_v31 = vld [vmem:[#allocation5 + $0x79c] sm:$0xf] }
 0x36a   : > { %5731 = vmatpush.bf16.msrb.mxu1 %v9975_v60  ;;  %5769 = vmatpush.bf16.msrb.mxu3 %v9979_v9  ;;  %v9667_v52 = vor.u32 %v11196_v23, %v9664_v40  ;;  %v11204_v60 = vld [vmem:[#allocation5 + $0x3d4] sm:$0xf0]  ;;  %v10175_v7 = vor.u32 %v11332_v57, %v10174_v50  ;;  %v10176_v18 = vld [vmem:[#allocation5 + $0x7d8] sm:$0xf0]  ;;  %v9471_v34 = vor.u32 %v11156_v17, %v9470_v20  ;;  %v9672_v20 = vld [vmem:[#allocation5 + $0x3e0] sm:$0xf0] }
 0x36b   : > { %5570 = vmatmul.bf16.gmra.mxu0 %v13027_v56  ;;  %5589 = vmatmul.bf16.gmra.mxu1 %v13029_v63  ;;  %v9663_v0 = vor.u32 %v11204_v60, %v9662_v26  ;;  %v11180_v9 = vld [vmem:[#allocation5 + $0x31c] sm:$0xf]  ;;  %v10179_v44 = vor.u32 %v11324_v31, %v10176_v18  ;;  %v9342_v26 = vld [vmem:[#allocation5 + $0x118] sm:$0xf] }
 0x36c   : > { %5608 = vmatmul.bf16.gmra.mxu2 %v13027_v56  ;;  %5627 = vmatmul.bf16.gmra.mxu3 %v13029_v63  ;;  %v9603_v41 = vor.u32 %v11180_v9, %v9600_v10  ;;  %v9472_v38 = vld [vmem:[#allocation5 + $0x258] sm:$0xf0]  ;;  %v9854_v57 = vld [vmem:[#allocation5 + $0x518] sm:$0xf] }
 0x36d   : > { %5751 = vmatpush.bf16.msrb.mxu2 %v9403_v8  ;;  %5713 = vmatpush.bf16.msrb.mxu0 %v9399_v1  ;;  %v11188_v8 = vld [vmem:[#allocation5 + $0x354] sm:$0xf0]  ;;  %v9475_v29 = vor.u32 %v11148_v58, %v9472_v38  ;;  %v11132_v33 = vld [vmem:[#allocation5 + $0x19c] sm:$0xf]  ;;  %v11197_v38 = vld [vmem:[#allocation5 + $0x3a4] sm:$0xf] }
 0x36e   : > { %5732 = vmatpush.bf16.msrb.mxu1 %v9911_v22  ;;  %5770 = vmatpush.bf16.msrb.mxu3 %v9915_v48  ;;  %v9599_v62 = vor.u32 %v11188_v8, %v9598_v45  ;;  %v11316_v1 = vld [vmem:[#allocation5 + $0x754] sm:$0xf0]  ;;  %v11308_v22 = vld [vmem:[#allocation5 + $0x71c] sm:$0xf]  ;;  %v9411_v51 = vor.u32 %v11132_v33, %v9408_v32  ;;  %v9675_v17 = vor.u32 %v11197_v38, %v9672_v20  ;;  %v9608_v32 = vld [vmem:[#allocation5 + $0x360] sm:$0xf0] }
 0x36f   : > { %v10111_v43 = vor.u32 %v11316_v1, %v10110_v61  ;;  %v9536_v48 = vld [vmem:[#allocation5 + $0x2d8] sm:$0xf0]  ;;  %v10115_v27 = vor.u32 %v11308_v22, %v10112_v25  ;;  %v9278_v10 = vld [vmem:[#allocation5 + $0x98] sm:$0xf]  ;;  %v9352_v20 = vld [vmem:[#allocation5 + $0x160] sm:$0xf0] }
 0x370   : > { %v11260_v55 = vld [vmem:[#allocation5 + $0x59c] sm:$0xf]  ;;  %v11108_v45 = vld [vmem:[#allocation5 + $0xd4] sm:$0xf0] }
 0x371   : > { %5752 = vmatpush.bf16.msrb.mxu2 %v9339_v35  ;;  %5714 = vmatpush.bf16.msrb.mxu0 %v9335_v16  ;;  %v10046_v35 = vld [vmem:[#allocation5 + $0x698] sm:$0xf]  ;;  %v9539_v16 = vor.u32 %v11164_v12, %v9536_v48  ;;  %v9920_v19 = vld [vmem:[#allocation5 + $0x5d8] sm:$0xf0] }
 0x372   : > { %5733 = vmatpush.bf16.msrb.mxu1 %v9847_v3  ;;  %5771 = vmatpush.bf16.msrb.mxu3 %v9851_v54  ;;  %v9535_v3 = vor.u32 %v11172_v53, %v9534_v28  ;;  %v10047_v49 = vor.u32 %v11300_v47, %v10046_v35  ;;  %v9982_v54 = vld [vmem:[#allocation5 + $0x618] sm:$0xf]  ;;  %v9923_v23 = vor.u32 %v11260_v55, %v9920_v19  ;;  %v9344_v40 = vld [vmem:[#allocation5 + $0x158] sm:$0xf0]  ;;  %v10120_v19 = vld [vmem:[#allocation5 + $0x760] sm:$0xf0] }
 0x373   : > { %v9856_v18 = vld [vmem:[#allocation5 + $0x558] sm:$0xf0]  ;;  %v9790_v8 = vld [vmem:[#allocation5 + $0x498] sm:$0xf] }
 0x374   : > { %v11100_v9 = vld [vmem:[#allocation5 + $0x9c] sm:$0xf]  ;;  %v11236_v61 = vld [vmem:[#allocation5 + $0x4d4] sm:$0xf0] }
 0x375   : > { %5753 = vmatpush.bf16.msrb.mxu2 %v9275_v39  ;;  %5715 = vmatpush.bf16.msrb.mxu0 %v9271_v36  ;;  %v11284_v39 = vld [vmem:[#allocation5 + $0x654] sm:$0xf0]  ;;  %v11276_v36 = vld [vmem:[#allocation5 + $0x61c] sm:$0xf]  ;;  %v9791_v25 = vor.u32 %v11236_v61, %v9790_v8  ;;  %v11157_v8 = vld [vmem:[#allocation5 + $0x25c] sm:$0xf0] }
 0x376   : > { %5734 = vmatpush.bf16.msrb.mxu1 %v9783_v6  ;;  %5772 = vmatpush.bf16.msrb.mxu3 %v9787_v42  ;;  %v9983_v24 = vor.u32 %v11284_v39, %v9982_v54  ;;  %v9984_v6 = vld [vmem:[#allocation5 + $0x658] sm:$0xf0]  ;;  %v9918_v42 = vld [vmem:[#allocation5 + $0x598] sm:$0xf]  ;;  %v11205_v54 = vld [vmem:[#allocation5 + $0x3dc] sm:$0xf0] }
 0x377   : > { %v9987_v11 = vor.u32 %v11276_v36, %v9984_v6  ;;  %v11228_v1 = vld [vmem:[#allocation5 + $0x49c] sm:$0xf]  ;;  %v11092_v28 = vld [vmem:[#allocation5 + $0x54] sm:$0xf0]  ;;  %v10182_v39 = vld [vmem:[#allocation5 + $0x7a0] sm:$0xf] }
 0x378   : > { %v9792_v22 = vld [vmem:[#allocation5 + $0x4d8] sm:$0xf0]  ;;  %v9726_v53 = vld [vmem:[#allocation5 + $0x418] sm:$0xf]  ;;  %v11325_v36 = vld [vmem:[#allocation5 + $0x7a4] sm:$0xf] }
 0x379   : > { %5754 = vmatpush.bf16.msrb.mxu2 %v9211_v30  ;;  %5716 = vmatpush.bf16.msrb.mxu0 %v9207_v4  ;;  %v11268_v30 = vld [vmem:[#allocation5 + $0x5d4] sm:$0xf0]  ;;  %v9407_v4 = vor.u32 %v11140_v2, %v9406_v5  ;;  %v11084_v12 = vld [vmem:[#allocation5 + $0x1c] sm:$0xf]  ;;  %v10184_v6 = vld [vmem:[#allocation5 + $0x7e0] sm:$0xf0] }
 0x37a   : > { %5735 = vmatpush.bf16.msrb.mxu1 %v9719_v37  ;;  %5773 = vmatpush.bf16.msrb.mxu3 %v9723_v46  ;;  %v9919_v37 = vor.u32 %v11268_v30, %v9918_v42  ;;  %v11116_v46 = vld [vmem:[#allocation5 + $0x11c] sm:$0xf]  ;;  %v11220_v35 = vld [vmem:[#allocation5 + $0x454] sm:$0xf0]  ;;  %v10187_v33 = vor.u32 %v11325_v36, %v10184_v6  ;;  %v9606_v5 = vld [vmem:[#allocation5 + $0x320] sm:$0xf] }
 0x37b   : > { %5641 = vmatmul.bf16.vlgmr.msra.gmra.mxu0 %v13015_v15  ;;  %5660 = vmatmul.bf16.vlgmr.msra.gmra.mxu1 %v13017_v21  ;;  %v9347_v60 = vor.u32 %v11116_v46, %v9344_v40  ;;  %v9216_v48 = vld [vmem:[#allocation5 + $0x58] sm:$0xf0]  ;;  %v9727_v14 = vor.u32 %v11220_v35, %v9726_v53  ;;  %v10118_v30 = vld [vmem:[#allocation5 + $0x720] sm:$0xf]  ;;  %v11165_v46 = vld [vmem:[#allocation5 + $0x2a4] sm:$0xf] }
 0x37c   : > { %5679 = vmatmul.bf16.vlgmr.msra.gmra.mxu2 %v13015_v15  ;;  %5698 = vmatmul.bf16.vlgmr.msra.gmra.mxu3 %v13017_v21  ;;  %v9219_v47 = vor.u32 %v11084_v12, %v9216_v48  ;;  %v11133_v48 = vld [vmem:[#allocation5 + $0x1a4] sm:$0xf]  ;;  %v11141_v35 = vld [vmem:[#allocation5 + $0x1dc] sm:$0xf0] }
 0x37d   : > { %5823 = vmatpush.bf16.msra.mxu2 %v9667_v52  ;;  %5785 = vmatpush.bf16.msra.mxu0 %v9663_v0  ;;  %v11124_v52 = vld [vmem:[#allocation5 + $0x154] sm:$0xf0]  ;;  %v9864_v6 = vld [vmem:[#allocation5 + $0x560] sm:$0xf0] }
 0x37e   : > { %5804 = vmatpush.bf16.msra.mxu1 %v10175_v7  ;;  %5842 = vmatpush.bf16.msra.mxu3 %v10179_v44  ;;  %v9343_v50 = vor.u32 %v11124_v52, %v9342_v26  ;;  %v11252_v0 = vld [vmem:[#allocation5 + $0x554] sm:$0xf0]  ;;  %v11244_v7 = vld [vmem:[#allocation5 + $0x51c] sm:$0xf]  ;;  %v9542_v26 = vld [vmem:[#allocation5 + $0x2a0] sm:$0xf] }
 0x37f   : > { %v9855_v31 = vor.u32 %v11252_v0, %v9854_v57  ;;  %v9280_v44 = vld [vmem:[#allocation5 + $0xd8] sm:$0xf0]  ;;  %v11173_v52 = vld [vmem:[#allocation5 + $0x2dc] sm:$0xf0]  ;;  %v11293_v0 = vld [vmem:[#allocation5 + $0x6a4] sm:$0xf] }
 0x380   : > { %v11301_v57 = vld [vmem:[#allocation5 + $0x6dc] sm:$0xf0] }
 0x381   : > { %5824 = vmatpush.bf16.msra.mxu2 %v9603_v41  ;;  %5786 = vmatpush.bf16.msra.mxu0 %v9599_v62  ;;  %v9859_v41 = vor.u32 %v11244_v7, %v9856_v18  ;;  %v9283_v62 = vor.u32 %v11100_v9, %v9280_v44  ;;  %v10056_v7 = vld [vmem:[#allocation5 + $0x6e0] sm:$0xf0] }
 0x382   : > { %5805 = vmatpush.bf16.msra.mxu1 %v10111_v43  ;;  %5843 = vmatpush.bf16.msra.mxu3 %v10115_v27  ;;  %v9279_v43 = vor.u32 %v11108_v45, %v9278_v10  ;;  %v9214_v27 = vld [vmem:[#allocation5 + $0x18] sm:$0xf]  ;;  %v11149_v9 = vld [vmem:[#allocation5 + $0x224] sm:$0xf]  ;;  %v9478_v10 = vld [vmem:[#allocation5 + $0x220] sm:$0xf]  ;;  %v10059_v45 = vor.u32 %v11293_v0, %v10056_v7 }
 0x383   : > { %v9215_v13 = vor.u32 %v11092_v28, %v9214_v27  ;;  %v9480_v44 = vld [vmem:[#allocation5 + $0x260] sm:$0xf0]  ;;  %v9414_v28 = vld [vmem:[#allocation5 + $0x1a0] sm:$0xf] }
 0x384   : > { %v9483_v61 = vor.u32 %v11149_v9, %v9480_v44  ;;  %v9416_v27 = vld [vmem:[#allocation5 + $0x1e0] sm:$0xf0]  ;;  %v11221_v0 = vld [vmem:[#allocation5 + $0x45c] sm:$0xf0]  ;;  %v11198_v44 = vld [vmem:[#allocation5 + $0x3ac] sm:$0xf] }
 0x385   : > { %5825 = vmatpush.bf16.msra.mxu2 %v9539_v16  ;;  %5787 = vmatpush.bf16.msra.mxu0 %v9535_v3  ;;  %v9795_v16 = vor.u32 %v11228_v1, %v9792_v22  ;;  %v11212_v3 = vld [vmem:[#allocation5 + $0x41c] sm:$0xf]  ;;  %v9479_v1 = vor.u32 %v11157_v8, %v9478_v10  ;;  %v9419_v53 = vor.u32 %v11133_v48, %v9416_v27  ;;  %v11213_v7 = vld [vmem:[#allocation5 + $0x424] sm:$0xf]  ;;  %v9680_v10 = vld [vmem:[#allocation5 + $0x3e8] sm:$0xf0] }
 0x386   : > { %5806 = vmatpush.bf16.msra.mxu1 %v10047_v49  ;;  %5844 = vmatpush.bf16.msra.mxu3 %v10051_v59  ;;  %v9728_v49 = vld [vmem:[#allocation5 + $0x458] sm:$0xf0]  ;;  %v9670_v59 = vld [vmem:[#allocation5 + $0x3a0] sm:$0xf]  ;;  %v9683_v8 = vor.u32 %v11198_v44, %v9680_v10  ;;  %v11182_v48 = vld [vmem:[#allocation5 + $0x32c] sm:$0xf] }
 0x387   : > { %v9731_v58 = vor.u32 %v11212_v3, %v9728_v49  ;;  %v11261_v3 = vld [vmem:[#allocation5 + $0x5a4] sm:$0xf]  ;;  %v9616_v27 = vld [vmem:[#allocation5 + $0x368] sm:$0xf0] }
 0x388   : > { %v9928_v49 = vld [vmem:[#allocation5 + $0x5e0] sm:$0xf0]  ;;  %v11118_v44 = vld [vmem:[#allocation5 + $0x12c] sm:$0xf] }
 0x389   : > { %5826 = vmatpush.bf16.msra.mxu2 %v9475_v29  ;;  %5788 = vmatpush.bf16.msra.mxu0 %v9471_v34  ;;  %v11333_v29 = vld [vmem:[#allocation5 + $0x7dc] sm:$0xf0]  ;;  %v9671_v34 = vor.u32 %v11205_v54, %v9670_v59  ;;  %v9931_v38 = vor.u32 %v11261_v3, %v9928_v49  ;;  %v11310_v3 = vld [vmem:[#allocation5 + $0x72c] sm:$0xf] }
 0x38a   : > { %5807 = vmatpush.bf16.msra.mxu1 %v9983_v24  ;;  %5845 = vmatpush.bf16.msra.mxu3 %v9987_v11  ;;  %v10183_v24 = vor.u32 %v11333_v29, %v10182_v39  ;;  %v11181_v11 = vld [vmem:[#allocation5 + $0x324] sm:$0xf]  ;;  %v9350_v59 = vld [vmem:[#allocation5 + $0x120] sm:$0xf]  ;;  %v10128_v49 = vld [vmem:[#allocation5 + $0x768] sm:$0xf0] }
 0x38b   : > { %5646 = vmatmul.bf16.gmra.mxu0 %v13027_v56  ;;  %5665 = vmatmul.bf16.gmra.mxu1 %v13029_v63  ;;  %v9611_v2 = vor.u32 %v11181_v11, %v9608_v32  ;;  %v9862_v29 = vld [vmem:[#allocation5 + $0x520] sm:$0xf]  ;;  %v11101_v11 = vld [vmem:[#allocation5 + $0xa4] sm:$0xf]  ;;  %v9360_v10 = vld [vmem:[#allocation5 + $0x168] sm:$0xf0] }
 0x38c   : > { %5684 = vmatmul.bf16.gmra.mxu2 %v13027_v56  ;;  %5703 = vmatmul.bf16.gmra.mxu3 %v13029_v63  ;;  %v9286_v32 = vld [vmem:[#allocation5 + $0xa0] sm:$0xf] }
 0x38d   : > { %5827 = vmatpush.bf16.msra.mxu2 %v9411_v51  ;;  %5789 = vmatpush.bf16.msra.mxu0 %v9407_v4  ;;  %v11189_v51 = vld [vmem:[#allocation5 + $0x35c] sm:$0xf0] }
 0x38e   : > { %5808 = vmatpush.bf16.msra.mxu1 %v9919_v37  ;;  %5846 = vmatpush.bf16.msra.mxu3 %v9923_v23  ;;  %v9607_v42 = vor.u32 %v11189_v51, %v9606_v5  ;;  %v11317_v4 = vld [vmem:[#allocation5 + $0x75c] sm:$0xf0]  ;;  %v11309_v37 = vld [vmem:[#allocation5 + $0x724] sm:$0xf] }
 0x38f   : > { %v10119_v55 = vor.u32 %v11317_v4, %v10118_v30  ;;  %v9544_v23 = vld [vmem:[#allocation5 + $0x2e0] sm:$0xf0]  ;;  %v10123_v40 = vor.u32 %v11309_v37, %v10120_v19  ;;  %v11109_v5 = vld [vmem:[#allocation5 + $0xdc] sm:$0xf0] }
 0x390   : > { %v9798_v51 = vld [vmem:[#allocation5 + $0x4a0] sm:$0xf]  ;;  %v11229_v4 = vld [vmem:[#allocation5 + $0x4a4] sm:$0xf]  ;;  %v9287_v37 = vor.u32 %v11109_v5, %v9286_v32  ;;  %v9488_v32 = vld [vmem:[#allocation5 + $0x268] sm:$0xf0] }
 0x391   : > { %5828 = vmatpush.bf16.msra.mxu2 %v9347_v60  ;;  %5790 = vmatpush.bf16.msra.mxu0 %v9343_v50  ;;  %v10054_v60 = vld [vmem:[#allocation5 + $0x6a0] sm:$0xf]  ;;  %v9547_v50 = vor.u32 %v11165_v46, %v9544_v23  ;;  %v9800_v19 = vld [vmem:[#allocation5 + $0x4e0] sm:$0xf0]  ;;  %v9486_v5 = vld [vmem:[#allocation5 + $0x228] sm:$0xf] }
 0x392   : > { %5809 = vmatpush.bf16.msra.mxu1 %v9855_v31  ;;  %5847 = vmatpush.bf16.msra.mxu3 %v9859_v41  ;;  %v9543_v31 = vor.u32 %v11173_v52, %v9542_v26  ;;  %v10055_v18 = vor.u32 %v11301_v57, %v10054_v60  ;;  %v9990_v41 = vld [vmem:[#allocation5 + $0x620] sm:$0xf]  ;;  %v11085_v46 = vld [vmem:[#allocation5 + $0x24] sm:$0xf] }
 0x393   : > { %v11237_v30 = vld [vmem:[#allocation5 + $0x4dc] sm:$0xf0]  ;;  %v9224_v23 = vld [vmem:[#allocation5 + $0x60] sm:$0xf0] }
 0x394   : > { %v9227_v26 = vor.u32 %v11085_v46, %v9224_v23  ;;  %v9222_v52 = vld [vmem:[#allocation5 + $0x20] sm:$0xf]  ;;  %v11134_v23 = vld [vmem:[#allocation5 + $0x1ac] sm:$0xf] }
 0x395   : > { %5829 = vmatpush.bf16.msra.mxu2 %v9283_v62  ;;  %5791 = vmatpush.bf16.msra.mxu0 %v9279_v43  ;;  %v11285_v62 = vld [vmem:[#allocation5 + $0x65c] sm:$0xf0]  ;;  %v11277_v43 = vld [vmem:[#allocation5 + $0x624] sm:$0xf] }
 0x396   : > { %5810 = vmatpush.bf16.msra.mxu1 %v9791_v25  ;;  %5848 = vmatpush.bf16.msra.mxu3 %v9795_v16  ;;  %v9991_v22 = vor.u32 %v11285_v62, %v9990_v41  ;;  %v9992_v25 = vld [vmem:[#allocation5 + $0x660] sm:$0xf0]  ;;  %v9926_v16 = vld [vmem:[#allocation5 + $0x5a0] sm:$0xf]  ;;  %v11206_v41 = vld [vmem:[#allocation5 + $0x3e4] sm:$0xf0] }
 0x397   : > { %v9995_v12 = vor.u32 %v11277_v43, %v9992_v25  ;;  %v11093_v60 = vld [vmem:[#allocation5 + $0x5c] sm:$0xf0]  ;;  %v10190_v62 = vld [vmem:[#allocation5 + $0x7a8] sm:$0xf]  ;;  %v11326_v43 = vld [vmem:[#allocation5 + $0x7ac] sm:$0xf] }
 0x398   : > { %v9223_v57 = vor.u32 %v11093_v60, %v9222_v52  ;;  %v10192_v25 = vld [vmem:[#allocation5 + $0x7e8] sm:$0xf0]  ;;  %v11142_v60 = vld [vmem:[#allocation5 + $0x1e4] sm:$0xf0] }
 0x399   : > { %5830 = vmatpush.bf16.msra.mxu2 %v9219_v47  ;;  %5792 = vmatpush.bf16.msra.mxu0 %v9215_v13  ;;  %v11269_v47 = vld [vmem:[#allocation5 + $0x5dc] sm:$0xf0]  ;;  %v9415_v13 = vor.u32 %v11141_v35, %v9414_v28  ;;  %v9614_v28 = vld [vmem:[#allocation5 + $0x328] sm:$0xf] }
 0x39a   : > { %5811 = vmatpush.bf16.msra.mxu1 %v9727_v14  ;;  %5849 = vmatpush.bf16.msra.mxu3 %v9731_v58  ;;  %v9927_v14 = vor.u32 %v11269_v47, %v9926_v16  ;;  %v11117_v58 = vld [vmem:[#allocation5 + $0x124] sm:$0xf]  ;;  %v11190_v35 = vld [vmem:[#allocation5 + $0x364] sm:$0xf0] }
 0x39b   : > { %5717 = vmatmul.bf16.vlgmr.msrb.gmra.mxu0 %v13015_v15  ;;  %5736 = vmatmul.bf16.vlgmr.msrb.gmra.mxu1 %v13017_v21  ;;  %v9355_v54 = vor.u32 %v11117_v58, %v9352_v20  ;;  %v10126_v16 = vld [vmem:[#allocation5 + $0x728] sm:$0xf]  ;;  %v10131_v58 = vor.u32 %v11310_v3, %v10128_v49  ;;  %v9552_v20 = vld [vmem:[#allocation5 + $0x2e8] sm:$0xf0] }
 0x39c   : > { %5755 = vmatmul.bf16.vlgmr.msrb.gmra.mxu2 %v13015_v15  ;;  %5774 = vmatmul.bf16.vlgmr.msrb.gmra.mxu3 %v13017_v21  ;;  %v11318_v47 = vld [vmem:[#allocation5 + $0x764] sm:$0xf0]  ;;  %v11230_v49 = vld [vmem:[#allocation5 + $0x4ac] sm:$0xf] }
 0x39d   : > { %5899 = vmatpush.bf16.msrb.mxu2 %v9675_v17  ;;  %5861 = vmatpush.bf16.msrb.mxu0 %v9671_v34  ;;  %v11125_v17 = vld [vmem:[#allocation5 + $0x15c] sm:$0xf0] }
 0x39e   : > { %5880 = vmatpush.bf16.msrb.mxu1 %v10183_v24  ;;  %5918 = vmatpush.bf16.msrb.mxu3 %v10187_v33  ;;  %v9351_v39 = vor.u32 %v11125_v17, %v9350_v59  ;;  %v11253_v34 = vld [vmem:[#allocation5 + $0x55c] sm:$0xf0]  ;;  %v11245_v24 = vld [vmem:[#allocation5 + $0x524] sm:$0xf]  ;;  %v9550_v59 = vld [vmem:[#allocation5 + $0x2a8] sm:$0xf] }
 0x39f   : > { %v9863_v36 = vor.u32 %v11253_v34, %v9862_v29  ;;  %v9288_v33 = vld [vmem:[#allocation5 + $0xe0] sm:$0xf0]  ;;  %v11302_v29 = vld [vmem:[#allocation5 + $0x6e4] sm:$0xf0] }
 0x3a1   : > { %5900 = vmatpush.bf16.msrb.mxu2 %v9611_v2  ;;  %5862 = vmatpush.bf16.msrb.mxu0 %v9607_v42  ;;  %v9867_v2 = vor.u32 %v11245_v24, %v9864_v6  ;;  %v9291_v42 = vor.u32 %v11101_v11, %v9288_v33  ;;  %v10064_v6 = vld [vmem:[#allocation5 + $0x6e8] sm:$0xf0] }
 0x3a2   : > { %5881 = vmatpush.bf16.msrb.mxu1 %v10119_v55  ;;  %5919 = vmatpush.bf16.msrb.mxu3 %v10123_v40  ;;  %v9799_v55 = vor.u32 %v11237_v30, %v9798_v51  ;;  %v9803_v40 = vor.u32 %v11229_v4, %v9800_v19  ;;  %v11150_v33 = vld [vmem:[#allocation5 + $0x22c] sm:$0xf]  ;;  %v11286_v30 = vld [vmem:[#allocation5 + $0x664] sm:$0xf0] }
 0x3a3   : > { %v9491_v51 = vor.u32 %v11150_v33, %v9488_v32  ;;  %v10000_v19 = vld [vmem:[#allocation5 + $0x668] sm:$0xf0] }
 0x3a4   : > { %v11214_v32 = vld [vmem:[#allocation5 + $0x42c] sm:$0xf] }
 0x3a5   : > { %5901 = vmatpush.bf16.msrb.mxu2 %v9547_v50  ;;  %5863 = vmatpush.bf16.msrb.mxu0 %v9543_v31  ;;  %v9734_v50 = vld [vmem:[#allocation5 + $0x420] sm:$0xf]  ;;  %v9736_v31 = vld [vmem:[#allocation5 + $0x460] sm:$0xf0] }
 0x3a6   : > { %5882 = vmatpush.bf16.msrb.mxu1 %v10055_v18  ;;  %5920 = vmatpush.bf16.msrb.mxu3 %v10059_v45  ;;  %v9735_v18 = vor.u32 %v11221_v0, %v9734_v50  ;;  %v9739_v9 = vor.u32 %v11213_v7, %v9736_v31  ;;  %v9678_v45 = vld [vmem:[#allocation5 + $0x3a8] sm:$0xf]  ;;  %v11262_v31 = vld [vmem:[#allocation5 + $0x5ac] sm:$0xf] }
 0x3a7   : > { %v9934_v50 = vld [vmem:[#allocation5 + $0x5a8] sm:$0xf] }
 0x3a9   : > { %5902 = vmatpush.bf16.msrb.mxu2 %v9483_v61  ;;  %5864 = vmatpush.bf16.msrb.mxu0 %v9479_v1  ;;  %v11334_v61 = vld [vmem:[#allocation5 + $0x7e4] sm:$0xf0]  ;;  %v9679_v1 = vor.u32 %v11206_v41, %v9678_v45 }
 0x3aa   : > { %5883 = vmatpush.bf16.msrb.mxu1 %v9991_v22  ;;  %5921 = vmatpush.bf16.msrb.mxu3 %v9995_v12  ;;  %v10191_v22 = vor.u32 %v11334_v61, %v10190_v62  ;;  %v10195_v12 = vor.u32 %v11326_v43, %v10192_v25  ;;  %v9358_v45 = vld [vmem:[#allocation5 + $0x128] sm:$0xf]  ;;  %v11246_v43 = vld [vmem:[#allocation5 + $0x52c] sm:$0xf] }
 0x3ab   : > { %5722 = vmatmul.bf16.gmra.mxu0 %v13027_v56  ;;  %5741 = vmatmul.bf16.gmra.mxu1 %v13029_v63  ;;  %v11126_v41 = vld [vmem:[#allocation5 + $0x164] sm:$0xf0]  ;;  %v9872_v25 = vld [vmem:[#allocation5 + $0x568] sm:$0xf0] }
 0x3ac   : > { %5760 = vmatmul.bf16.gmra.mxu2 %v13027_v56  ;;  %5779 = vmatmul.bf16.gmra.mxu3 %v13029_v63  ;;  %v9870_v62 = vld [vmem:[#allocation5 + $0x528] sm:$0xf] }
 0x3ad   : > { %5903 = vmatpush.bf16.msrb.mxu2 %v9419_v53  ;;  %5865 = vmatpush.bf16.msrb.mxu0 %v9415_v13  ;;  %v9619_v53 = vor.u32 %v11182_v48, %v9616_v27  ;;  %v9615_v13 = vor.u32 %v11190_v35, %v9614_v28  ;;  %v11254_v61 = vld [vmem:[#allocation5 + $0x564] sm:$0xf0]  ;;  %v9875_v48 = vor.u32 %v11246_v43, %v9872_v25  ;;  %v11102_v27 = vld [vmem:[#allocation5 + $0xac] sm:$0xf]  ;;  %v11311_v43 = vld [vmem:[#allocation5 + $0x734] sm:$0xf] }
 0x3ae   : > { %5884 = vmatpush.bf16.msrb.mxu1 %v9927_v14  ;;  %5922 = vmatpush.bf16.msrb.mxu3 %v9931_v38  ;;  %v10127_v14 = vor.u32 %v11318_v47, %v10126_v16  ;;  %v11166_v38 = vld [vmem:[#allocation5 + $0x2ac] sm:$0xf]  ;;  %v11110_v16 = vld [vmem:[#allocation5 + $0xe4] sm:$0xf0]  ;;  %v10136_v25 = vld [vmem:[#allocation5 + $0x770] sm:$0xf0] }
 0x3af   : > { %v9555_v17 = vor.u32 %v11166_v38, %v9552_v20  ;;  %v9296_v28 = vld [vmem:[#allocation5 + $0xe8] sm:$0xf0]  ;;  %v9806_v47 = vld [vmem:[#allocation5 + $0x4a8] sm:$0xf] }
 0x3b0   : > { %v9299_v35 = vor.u32 %v11102_v27, %v9296_v28  ;;  %v10139_v27 = vor.u32 %v11311_v43, %v10136_v25  ;;  %v9368_v43 = vld [vmem:[#allocation5 + $0x170] sm:$0xf0]  ;;  %v9366_v25 = vld [vmem:[#allocation5 + $0x130] sm:$0xf] }
 0x3b1   : > { %5904 = vmatpush.bf16.msrb.mxu2 %v9355_v54  ;;  %5866 = vmatpush.bf16.msrb.mxu0 %v9351_v39  ;;  %v11174_v54 = vld [vmem:[#allocation5 + $0x2e4] sm:$0xf0] }
 0x3b2   : > { %5885 = vmatpush.bf16.msrb.mxu1 %v9863_v36  ;;  %5923 = vmatpush.bf16.msrb.mxu3 %v9867_v2  ;;  %v10062_v39 = vld [vmem:[#allocation5 + $0x6a8] sm:$0xf]  ;;  %v9551_v34 = vor.u32 %v11174_v54, %v9550_v59  ;;  %v11294_v36 = vld [vmem:[#allocation5 + $0x6ac] sm:$0xf] }
 0x3b3   : > { %v10063_v24 = vor.u32 %v11302_v29, %v10062_v39  ;;  %v10067_v11 = vor.u32 %v11294_v36, %v10064_v6  ;;  %v11158_v2 = vld [vmem:[#allocation5 + $0x264] sm:$0xf0]  ;;  %v11086_v59 = vld [vmem:[#allocation5 + $0x2c] sm:$0xf] }
 0x3b4   : > { %v9487_v4 = vor.u32 %v11158_v2, %v9486_v5  ;;  %v9230_v54 = vld [vmem:[#allocation5 + $0x28] sm:$0xf]  ;;  %v9744_v5 = vld [vmem:[#allocation5 + $0x468] sm:$0xf0] }
 0x3b5   : > { %5905 = vmatpush.bf16.msrb.mxu2 %v9291_v42  ;;  %5867 = vmatpush.bf16.msrb.mxu0 %v9287_v37  ;;  %v9998_v42 = vld [vmem:[#allocation5 + $0x628] sm:$0xf]  ;;  %v9747_v2 = vor.u32 %v11214_v32, %v9744_v5  ;;  %v11159_v5 = vld [vmem:[#allocation5 + $0x26c] sm:$0xf0] }
 0x3b6   : > { %5886 = vmatpush.bf16.msrb.mxu1 %v9799_v55  ;;  %5924 = vmatpush.bf16.msrb.mxu3 %v9803_v40  ;;  %v9999_v37 = vor.u32 %v11286_v30, %v9998_v42  ;;  %v11278_v55 = vld [vmem:[#allocation5 + $0x62c] sm:$0xf]  ;;  %v11094_v29 = vld [vmem:[#allocation5 + $0x64] sm:$0xf0]  ;;  %v11199_v42 = vld [vmem:[#allocation5 + $0x3b4] sm:$0xf] }
 0x3b7   : > { %v10003_v46 = vor.u32 %v11278_v55, %v10000_v19  ;;  %v9424_v40 = vld [vmem:[#allocation5 + $0x1e8] sm:$0xf0]  ;;  %v9688_v30 = vld [vmem:[#allocation5 + $0x3f0] sm:$0xf0]  ;;  %v11207_v19 = vld [vmem:[#allocation5 + $0x3ec] sm:$0xf0] }
 0x3b8   : > { %v9427_v52 = vor.u32 %v11134_v23, %v9424_v40  ;;  %v9691_v55 = vor.u32 %v11199_v42, %v9688_v30  ;;  %v11335_v23 = vld [vmem:[#allocation5 + $0x7ec] sm:$0xf0] }
 0x3b9   : > { %5906 = vmatpush.bf16.msrb.mxu2 %v9227_v26  ;;  %5868 = vmatpush.bf16.msrb.mxu0 %v9223_v57  ;;  %v9422_v26 = vld [vmem:[#allocation5 + $0x1a8] sm:$0xf] }
 0x3ba   : > { %5887 = vmatpush.bf16.msrb.mxu1 %v9735_v18  ;;  %5925 = vmatpush.bf16.msrb.mxu3 %v9739_v9  ;;  %v11270_v57 = vld [vmem:[#allocation5 + $0x5e4] sm:$0xf0]  ;;  %v9423_v0 = vor.u32 %v11142_v60, %v9422_v26  ;;  %v9936_v18 = vld [vmem:[#allocation5 + $0x5e8] sm:$0xf0]  ;;  %v11327_v60 = vld [vmem:[#allocation5 + $0x7b4] sm:$0xf] }
 0x3bb   : > { %5793 = vmatmul.bf16.vlgmr.msra.gmra.mxu0 %v13015_v15  ;;  %5812 = vmatmul.bf16.vlgmr.msra.gmra.mxu1 %v13017_v21  ;;  %v9935_v7 = vor.u32 %v11270_v57, %v9934_v50  ;;  %v9939_v9 = vor.u32 %v11262_v31, %v9936_v18  ;;  %v10200_v50 = vld [vmem:[#allocation5 + $0x7f0] sm:$0xf0]  ;;  %v9622_v31 = vld [vmem:[#allocation5 + $0x330] sm:$0xf] }
 0x3bc   : > { %5831 = vmatmul.bf16.vlgmr.msra.gmra.mxu2 %v13015_v15  ;;  %5850 = vmatmul.bf16.vlgmr.msra.gmra.mxu3 %v13017_v21  ;;  %v10203_v57 = vor.u32 %v11327_v60, %v10200_v50  ;;  %v11135_v60 = vld [vmem:[#allocation5 + $0x1b4] sm:$0xf] }
 0x3bd   : > { %5975 = vmatpush.bf16.msra.mxu2 %v9683_v8  ;;  %5937 = vmatpush.bf16.msra.mxu0 %v9679_v1  ;;  %v9363_v8 = vor.u32 %v11118_v44, %v9360_v10  ;;  %v9359_v1 = vor.u32 %v11126_v41, %v9358_v45  ;;  %v11191_v10 = vld [vmem:[#allocation5 + $0x36c] sm:$0xf0]  ;;  %v9432_v50 = vld [vmem:[#allocation5 + $0x1f0] sm:$0xf0] }
 0x3be   : > { %5956 = vmatpush.bf16.msra.mxu1 %v10191_v22  ;;  %5994 = vmatpush.bf16.msra.mxu3 %v10195_v12  ;;  %v9871_v22 = vor.u32 %v11254_v61, %v9870_v62  ;;  %v13062_v12 = vld [vmem:[%s13820_s10] sm:$0xff]  ;;  %v10134_v45 = vld [vmem:[#allocation5 + $0x730] sm:$0xf] }
 0x3bf   : > { %v13065_v38 = vperm.slane %v13062_v12, 0  ;;  %v13075_v40 = vperm.slane %v13062_v12, 1 }
 0x3c1   : > { %5976 = vmatpush.bf16.msra.mxu2 %v9619_v53  ;;  %5938 = vmatpush.bf16.msra.mxu0 %v9615_v13  ;;  %v9294_v53 = vld [vmem:[#allocation5 + $0xa8] sm:$0xf] }
 0x3c2   : > { %5957 = vmatpush.bf16.msra.mxu1 %v10127_v14  ;;  %5995 = vmatpush.bf16.msra.mxu3 %v10131_v58  ;;  %v11238_v13 = vld [vmem:[#allocation5 + $0x4e4] sm:$0xf0]  ;;  %v9295_v14 = vor.u32 %v11110_v16, %v9294_v53  ;;  %v9808_v58 = vld [vmem:[#allocation5 + $0x4e8] sm:$0xf0]  ;;  %v11167_v53 = vld [vmem:[#allocation5 + $0x2b4] sm:$0xf] }
 0x3c3   : > { %v9807_v3 = vor.u32 %v11238_v13, %v9806_v47  ;;  %v9811_v20 = vor.u32 %v11230_v49, %v9808_v58  ;;  %v9558_v16 = vld [vmem:[#allocation5 + $0x2b0] sm:$0xf] }
 0x3c4   : > { %v11303_v49 = vld [vmem:[#allocation5 + $0x6ec] sm:$0xf0] }
 0x3c5   : > { %5977 = vmatpush.bf16.msra.mxu2 %v9555_v17  ;;  %5939 = vmatpush.bf16.msra.mxu0 %v9551_v34  ;;  %v9232_v17 = vld [vmem:[#allocation5 + $0x68] sm:$0xf0]  ;;  %v9742_v34 = vld [vmem:[#allocation5 + $0x428] sm:$0xf] }
 0x3c6   : > { %5958 = vmatpush.bf16.msra.mxu1 %v10063_v24  ;;  %5996 = vmatpush.bf16.msra.mxu3 %v10067_v11  ;;  %v9235_v39 = vor.u32 %v11086_v59, %v9232_v17  ;;  %v11222_v24 = vld [vmem:[#allocation5 + $0x464] sm:$0xf0]  ;;  %v9231_v11 = vor.u32 %v11094_v29, %v9230_v54  ;;  %v11295_v59 = vld [vmem:[#allocation5 + $0x6b4] sm:$0xf] }
 0x3c7   : > { %v9743_v33 = vor.u32 %v11222_v24, %v9742_v34  ;;  %v10072_v17 = vld [vmem:[#allocation5 + $0x6f0] sm:$0xf0] }
 0x3c8   : > { %v10075_v29 = vor.u32 %v11295_v59, %v10072_v17  ;;  %v11151_v34 = vld [vmem:[#allocation5 + $0x234] sm:$0xf] }
 0x3c9   : > { %5978 = vmatpush.bf16.msra.mxu2 %v9491_v51  ;;  %5940 = vmatpush.bf16.msra.mxu0 %v9487_v4  ;;  %v9686_v4 = vld [vmem:[#allocation5 + $0x3b0] sm:$0xf]  ;;  %v9496_v24 = vld [vmem:[#allocation5 + $0x270] sm:$0xf0] }
 0x3ca   : > { %5959 = vmatpush.bf16.msra.mxu1 %v9999_v37  ;;  %5997 = vmatpush.bf16.msra.mxu3 %v10003_v46  ;;  %v10198_v46 = vld [vmem:[#allocation5 + $0x7b0] sm:$0xf]  ;;  %v9687_v26 = vor.u32 %v11207_v19, %v9686_v4  ;;  %v9499_v32 = vor.u32 %v11151_v34, %v9496_v24  ;;  %v11279_v19 = vld [vmem:[#allocation5 + $0x634] sm:$0xf] }
 0x3cb   : > { %5798 = vmatmul.bf16.gmra.mxu0 %v13027_v56  ;;  %5817 = vmatmul.bf16.gmra.mxu1 %v13029_v63  ;;  %v9302_v34 = vld [vmem:[#allocation5 + $0xb0] sm:$0xf] }
 0x3cc   : > { %5836 = vmatmul.bf16.gmra.mxu2 %v13027_v56  ;;  %5855 = vmatmul.bf16.gmra.mxu3 %v13029_v63 }
 0x3cd   : > { %5979 = vmatpush.bf16.msra.mxu2 %v9427_v52  ;;  %5941 = vmatpush.bf16.msra.mxu0 %v9423_v0  ;;  %v10199_v52 = vor.u32 %v11335_v23, %v10198_v46  ;;  %v11183_v0 = vld [vmem:[#allocation5 + $0x334] sm:$0xf] }
 0x3ce   : > { %5960 = vmatpush.bf16.msra.mxu1 %v9935_v7  ;;  %5998 = vmatpush.bf16.msra.mxu3 %v9939_v9  ;;  %v9624_v7 = vld [vmem:[#allocation5 + $0x370] sm:$0xf0] }
 0x3cf   : > { %v9627_v44 = vor.u32 %v11183_v0, %v9624_v7  ;;  %v10008_v46 = vld [vmem:[#allocation5 + $0x670] sm:$0xf0]  ;;  %v9435_v7 = vor.u32 %v11135_v60, %v9432_v50  ;;  %v11095_v60 = vld [vmem:[#allocation5 + $0x6c] sm:$0xf0] }
 0x3d0   : > { %v9750_v50 = vld [vmem:[#allocation5 + $0x430] sm:$0xf] }
 0x3d1   : > { %5980 = vmatpush.bf16.msra.mxu2 %v9363_v8  ;;  %5942 = vmatpush.bf16.msra.mxu0 %v9359_v1  ;;  %v11319_v8 = vld [vmem:[#allocation5 + $0x76c] sm:$0xf0]  ;;  %v9623_v1 = vor.u32 %v11191_v10, %v9622_v31 }
 0x3d2   : > { %5961 = vmatpush.bf16.msra.mxu1 %v9871_v22  ;;  %5999 = vmatpush.bf16.msra.mxu3 %v9875_v48  ;;  %v10135_v22 = vor.u32 %v11319_v8, %v10134_v45  ;;  %v11143_v31 = vld [vmem:[#allocation5 + $0x1ec] sm:$0xf0] }
 0x3d5   : > { %5981 = vmatpush.bf16.msra.mxu2 %v9299_v35  ;;  %5943 = vmatpush.bf16.msra.mxu0 %v9295_v14  ;;  %v9560_v35 = vld [vmem:[#allocation5 + $0x2f0] sm:$0xf0]  ;;  %v11175_v14 = vld [vmem:[#allocation5 + $0x2ec] sm:$0xf0] }
 0x3d6   : > { %5962 = vmatpush.bf16.msra.mxu1 %v9807_v3  ;;  %6000 = vmatpush.bf16.msra.mxu3 %v9811_v20  ;;  %v9563_v13 = vor.u32 %v11167_v53, %v9560_v35  ;;  %v10070_v3 = vld [vmem:[#allocation5 + $0x6b0] sm:$0xf]  ;;  %v9559_v58 = vor.u32 %v11175_v14, %v9558_v16 }
 0x3d7   : > { %v10071_v20 = vor.u32 %v11303_v49, %v10070_v3  ;;  %v11127_v53 = vld [vmem:[#allocation5 + $0x16c] sm:$0xf0] }
 0x3d8   : > { %v5566_v36 = vpop.f32.mrf.mxu0  ;;  %v5585_v6 = vpop.f32.mrf.mxu1  ;;  %v9878_v35 = vld [vmem:[#allocation5 + $0x530] sm:$0xf]  ;;  %v9367_v3 = vor.u32 %v11127_v53, %v9366_v25  ;;  %v11336_v53 = vld [vmem:[#allocation5 + $0x7f4] sm:$0xf0] }
 0x3d9   : > { %v5567_v51 = vadd.f32 %v5566_v36, %v13065_v38  ;;  %5982 = vmatpush.bf16.msra.mxu2 %v9235_v39  ;;  %5944 = vmatpush.bf16.msra.mxu0 %v9231_v11  ;;  %v9494_v36 = vld [vmem:[#allocation5 + $0x230] sm:$0xf] }
 0x3da   : > { %5963 = vmatpush.bf16.msra.mxu1 %v9743_v33  ;;  %6001 = vmatpush.bf16.msra.mxu3 %v9747_v2  ;;  %v11287_v2 = vld [vmem:[#allocation5 + $0x66c] sm:$0xf0] }
 0x3db   : > { %v13068_v37 = vadd.f32 %v5585_v6, %v5567_v51  ;;  %5869 = vmatmul.bf16.vlgmr.msrb.gmra.mxu0 %v13015_v15  ;;  %5888 = vmatmul.bf16.vlgmr.msrb.gmra.mxu1 %v13017_v21  ;;  %v10006_v51 = vld [vmem:[#allocation5 + $0x630] sm:$0xf] }
 0x3dc   : > { %5907 = vmatmul.bf16.vlgmr.msrb.gmra.mxu2 %v13015_v15  ;;  %5926 = vmatmul.bf16.vlgmr.msrb.gmra.mxu3 %v13017_v21  ;;  %v11255_v16 = vld [vmem:[#allocation5 + $0x56c] sm:$0xf0] }
 0x3dd   : > { %6051 = vmatpush.bf16.msrb.mxu2 %v9691_v55  ;;  %6013 = vmatpush.bf16.msrb.mxu0 %v9687_v26  ;;  %v6165_v54 = vmax.f32 %v13068_v37, 0.0  ;;  %v9495_v37 = vor.u32 %v11159_v5, %v9494_v36  ;;  %v10007_v55 = vor.u32 %v11287_v2, %v10006_v51  ;;  %v10011_v26 = vor.u32 %v11279_v19, %v10008_v46  ;;  %v11231_v2 = vld [vmem:[#allocation5 + $0x4b4] sm:$0xf]  ;;  %v9238_v46 = vld [vmem:[#allocation5 + $0x30] sm:$0xf] }
 0x3de   : > { %6032 = vmatpush.bf16.msrb.mxu1 %v10199_v52  ;;  %6070 = vmatpush.bf16.msrb.mxu3 %v10203_v57  ;;  %v9430_v57 = vld [vmem:[#allocation5 + $0x1b0] sm:$0xf]  ;;  %v9879_v49 = vor.u32 %v11255_v16, %v9878_v35  ;;  %v9240_v19 = vld [vmem:[#allocation5 + $0x70] sm:$0xf0] }
 0x3df   : > { %v5604_v18 = vpop.f32.mrf.mxu2  ;;  %v5623_v9 = vpop.f32.mrf.mxu3  ;;  %v9431_v45 = vor.u32 %v11143_v31, %v9430_v57  ;;  %v11223_v57 = vld [vmem:[#allocation5 + $0x46c] sm:$0xf0] }
 0x3e0   : > { %v5605_v41 = vadd.f32 %v5604_v18, %v13075_v40  ;;  %v5568_v62 = vpop.f32.mrf.mxu0  ;;  %v5587_v61 = vpop.f32.mrf.mxu1  ;;  %v9942_v18 = vld [vmem:[#allocation5 + $0x5b0] sm:$0xf] }
 0x3e1   : > { %v5569_v48 = vadd.f32 %v5568_v62, %v13065_v38  ;;  %6052 = vmatpush.bf16.msrb.mxu2 %v9627_v44  ;;  %6014 = vmatpush.bf16.msrb.mxu0 %v9623_v1  ;;  %v9944_v62 = vld [vmem:[#allocation5 + $0x5f0] sm:$0xf0] }
 0x3e2   : > { %v13079_v28 = vadd.f32 %v5623_v9, %v5605_v41  ;;  %6033 = vmatpush.bf16.msrb.mxu1 %v10135_v22  ;;  %6071 = vmatpush.bf16.msrb.mxu3 %v10139_v27  ;;  %v11271_v9 = vld [vmem:[#allocation5 + $0x5ec] sm:$0xf0]  ;;  %v11263_v41 = vld [vmem:[#allocation5 + $0x5b4] sm:$0xf] }
 0x3e3   : > { %v5588_v47 = vadd.f32 %v5587_v61, %v5569_v48  ;;  %v9943_v8 = vor.u32 %v11271_v9, %v9942_v18  ;;  %v9947_v61 = vor.u32 %v11263_v41, %v9944_v62  ;;  %v11119_v22 = vld [vmem:[#allocation5 + $0x134] sm:$0xf]  ;;  %v9239_v9 = vor.u32 %v11095_v60, %v9238_v46  ;;  %v9566_v46 = vld [vmem:[#allocation5 + $0x2b8] sm:$0xf] }
 0x3e4   : > { %v6166_v44 = vmax.f32 %v13079_v28, 0.0  ;;  %v9371_v28 = vor.u32 %v11119_v22, %v9368_v43  ;;  %v13108_v41 = vperm.slane %v13062_v12, 3  ;;  %v11200_v22 = vld [vmem:[#allocation5 + $0x3bc] sm:$0xf]  ;;  %v10078_v60 = vld [vmem:[#allocation5 + $0x6b8] sm:$0xf] }
 0x3e5   : > { %v6181_v39 = vmax.f32 %v5588_v47, 0.0  ;;  %6053 = vmatpush.bf16.msrb.mxu2 %v9563_v13  ;;  %6015 = vmatpush.bf16.msrb.mxu0 %v9559_v58  ;;  %v11247_v58 = vld [vmem:[#allocation5 + $0x534] sm:$0xf]  ;;  %v9696_v43 = vld [vmem:[#allocation5 + $0x3f8] sm:$0xf0] }
 0x3e6   : > { %6034 = vmatpush.bf16.msrb.mxu1 %v10071_v20  ;;  %6072 = vmatpush.bf16.msrb.mxu3 %v10075_v29  ;;  %v9880_v20 = vld [vmem:[#allocation5 + $0x570] sm:$0xf0] }
 0x3e7   : > { %v13082_v6 = vpack.c.bf16 %v6181_v39, %v6165_v54  ;;  %v5606_v11 = vpop.f32.mrf.mxu2  ;;  %v5625_v33 = vpop.f32.mrf.mxu3  ;;  %v9883_v17 = vor.u32 %v11247_v58, %v9880_v20  ;;  %v11103_v39 = vld [vmem:[#allocation5 + $0xb4] sm:$0xf]  ;;  %v11184_v58 = vld [vmem:[#allocation5 + $0x33c] sm:$0xf] }
 0x3e8   : > { %v5607_v42 = vadd.f32 %v5606_v11, %v13075_v40  ;;  %v5571_v30 = vpop.f32.mrf.mxu0  ;;  %v5590_v4 = vpop.f32.mrf.mxu1  ;;  %v9304_v29 = vld [vmem:[#allocation5 + $0xf0] sm:$0xf0]  ;;  %v11111_v11 = vld [vmem:[#allocation5 + $0xec] sm:$0xf0]  ;;  %v9632_v20 = vld [vmem:[#allocation5 + $0x378] sm:$0xf0] }
 0x3e9   : > { %v5572_v23 = vadd.f32 %v5571_v30, %v13065_v38  ;;  %6054 = vmatpush.bf16.msrb.mxu2 %v9499_v32  ;;  %6016 = vmatpush.bf16.msrb.mxu0 %v9495_v37  ;;  %v9307_v36 = vor.u32 %v11103_v39, %v9304_v29  ;;  %v11239_v32 = vld [vmem:[#allocation5 + $0x4ec] sm:$0xf0]  ;;  %v9303_v5 = vor.u32 %v11111_v11, %v9302_v34  ;;  %v11192_v34 = vld [vmem:[#allocation5 + $0x374] sm:$0xf0] }
 0x3ea   : > { %v5626_v52 = vadd.f32 %v5625_v33, %v5607_v42  ;;  %6035 = vmatpush.bf16.msrb.mxu1 %v10007_v55  ;;  %6073 = vmatpush.bf16.msrb.mxu3 %v10011_v26  ;;  %v9814_v33 = vld [vmem:[#allocation5 + $0x4b0] sm:$0xf]  ;;  %v9816_v42 = vld [vmem:[#allocation5 + $0x4f0] sm:$0xf0]  ;;  %v9635_v29 = vor.u32 %v11184_v58, %v9632_v20  ;;  %v11136_v20 = vld [vmem:[#allocation5 + $0x1bc] sm:$0xf] }
 0x3eb   : > { %v13086_v0 = vadd.f32 %v5590_v4, %v5572_v23  ;;  %5874 = vmatmul.bf16.gmra.mxu0 %v13027_v56  ;;  %5893 = vmatmul.bf16.gmra.mxu1 %v13029_v63  ;;  %v9815_v51 = vor.u32 %v11239_v32, %v9814_v33  ;;  %v13101_v4 = vperm.slane %v13062_v12, 2  ;;  %v9819_v37 = vor.u32 %v11231_v2, %v9816_v42  ;;  %v11087_v55 = vld [vmem:[#allocation5 + $0x34] sm:$0xf]  ;;  %v11312_v2 = vld [vmem:[#allocation5 + $0x73c] sm:$0xf] }
 0x3ec   : > { %v6182_v10 = vmax.f32 %v5626_v52, 0.0  ;;  %5912 = vmatmul.bf16.gmra.mxu2 %v13027_v56  ;;  %5931 = vmatmul.bf16.gmra.mxu3 %v13029_v63  ;;  %v9243_v52 = vor.u32 %v11087_v55, %v9240_v19  ;;  %v10144_v42 = vld [vmem:[#allocation5 + $0x778] sm:$0xf0] }
 0x3ed   : > { %6055 = vmatpush.bf16.msrb.mxu2 %v9435_v7  ;;  %6017 = vmatpush.bf16.msrb.mxu0 %v9431_v45  ;;  %v9752_v45 = vld [vmem:[#allocation5 + $0x470] sm:$0xf0]  ;;  %v11168_v55 = vld [vmem:[#allocation5 + $0x2bc] sm:$0xf] }
 0x3ee   : > { %v13093_v1 = vpack.c.bf16 %v6182_v10, %v6166_v44  ;;  %6036 = vmatpush.bf16.msrb.mxu1 %v9943_v8  ;;  %6074 = vmatpush.bf16.msrb.mxu3 %v9947_v61  ;;  %v9751_v44 = vor.u32 %v11223_v57, %v9750_v50  ;;  %v11215_v10 = vld [vmem:[#allocation5 + $0x434] sm:$0xf]  ;;  %v9568_v19 = vld [vmem:[#allocation5 + $0x2f8] sm:$0xf0]  ;;  %v11304_v50 = vld [vmem:[#allocation5 + $0x6f4] sm:$0xf0] }
 0x3ef   : > { %v5609_v48 = vpop.f32.mrf.mxu2  ;;  %v5628_v27 = vpop.f32.mrf.mxu3  ;;  %v9755_v62 = vor.u32 %v11215_v10, %v9752_v45  ;;  %v11152_v45 = vld [vmem:[#allocation5 + $0x23c] sm:$0xf] }
 0x3f0   : > { %v5610_v47 = vadd.f32 %v5609_v48, %v13075_v40  ;;  %v5573_v13 = vpop.f32.mrf.mxu0  ;;  %v5592_v14 = vpop.f32.mrf.mxu1  ;;  %v9699_v48 = vor.u32 %v11200_v22, %v9696_v43 }
 0x3f1   : > { %v5574_v59 = vadd.f32 %v5573_v13, %v13065_v38  ;;  %6056 = vmatpush.bf16.msrb.mxu2 %v9371_v28  ;;  %6018 = vmatpush.bf16.msrb.mxu0 %v9367_v3  ;;  %v6197_v38 = vmax.f32 %v13086_v0, 0.0  ;;  %v10206_v28 = vld [vmem:[#allocation5 + $0x7b8] sm:$0xf]  ;;  %v10208_v3 = vld [vmem:[#allocation5 + $0x7f8] sm:$0xf0] }
 0x3f2   : > { %v13097_v54 = vadd.f32 %v5628_v27, %v5610_v47  ;;  %6037 = vmatpush.bf16.msrb.mxu1 %v9879_v49  ;;  %6075 = vmatpush.bf16.msrb.mxu3 %v9883_v17  ;;  %v11208_v27 = vld [vmem:[#allocation5 + $0x3f4] sm:$0xf0]  ;;  %v10207_v13 = vor.u32 %v11336_v53, %v10206_v28 }
 0x3f3   : > { %v5593_v24 = vadd.f32 %v5592_v14, %v5574_v59  ;;  %v11328_v14 = vld [vmem:[#allocation5 + $0x7bc] sm:$0xf]  ;;  %v9630_v59 = vld [vmem:[#allocation5 + $0x338] sm:$0xf] }
 0x3f4   : > { %v6198_v35 = vmax.f32 %v13097_v54, 0.0  ;;  %v10211_v49 = vor.u32 %v11328_v14, %v10208_v3  ;;  %v11288_v28 = vld [vmem:[#allocation5 + $0x674] sm:$0xf0]  ;;  %v10016_v14 = vld [vmem:[#allocation5 + $0x678] sm:$0xf0] }
 0x3f5   : > { %v6213_v30 = vmax.f32 %v5593_v24, 0.0  ;;  %6057 = vmatpush.bf16.msrb.mxu2 %v9307_v36  ;;  %6019 = vmatpush.bf16.msrb.mxu0 %v9303_v5  ;;  %v10142_v24 = vld [vmem:[#allocation5 + $0x738] sm:$0xf]  ;;  %v9631_v5 = vor.u32 %v11192_v34, %v9630_v59  ;;  %v9440_v59 = vld [vmem:[#allocation5 + $0x1f8] sm:$0xf0] }
 0x3f6   : > { %6038 = vmatpush.bf16.msrb.mxu1 %v9815_v51  ;;  %6076 = vmatpush.bf16.msrb.mxu3 %v9819_v37  ;;  %v11320_v36 = vld [vmem:[#allocation5 + $0x774] sm:$0xf0] }
 0x3f7   : > { %v5611_v23 = vpop.f32.mrf.mxu2  ;;  %v5630_v26 = vpop.f32.mrf.mxu3  ;;  %v13103_v7 = vpack.c.bf16 %v6213_v30, %v6197_v38  ;;  %v10143_v51 = vor.u32 %v11320_v36, %v10142_v24  ;;  %v10147_v30 = vor.u32 %v11312_v2, %v10144_v42  ;;  %v11144_v34 = vld [vmem:[#allocation5 + $0x1f4] sm:$0xf0]  ;;  %v9952_v2 = vld [vmem:[#allocation5 + $0x5f8] sm:$0xf0] }
 0x3f8   : > { %v5612_v0 = vadd.f32 %v5611_v23, %v13075_v40  ;;  %v5642_v31 = vpop.f32.mrf.mxu0  ;;  %v5661_v18 = vpop.f32.mrf.mxu1  ;;  %v9694_v40 = vld [vmem:[#allocation5 + $0x3b8] sm:$0xf] }
 0x3f9   : > { %v5643_v8 = vadd.f32 %v5642_v31, %v13101_v4  ;;  %6058 = vmatpush.bf16.msrb.mxu2 %v9243_v52  ;;  %6020 = vmatpush.bf16.msrb.mxu0 %v9239_v9  ;;  %v9695_v47 = vor.u32 %v11208_v27, %v9694_v40  ;;  %v11176_v52 = vld [vmem:[#allocation5 + $0x2f4] sm:$0xf0]  ;;  %v11296_v31 = vld [vmem:[#allocation5 + $0x6bc] sm:$0xf] }
 0x3fa   : > { %v5631_v61 = vadd.f32 %v5630_v26, %v5612_v0  ;;  %6039 = vmatpush.bf16.msrb.mxu1 %v9751_v44  ;;  %6077 = vmatpush.bf16.msrb.mxu3 %v9755_v62  ;;  %v9571_v26 = vor.u32 %v11168_v55, %v9568_v19  ;;  %v9567_v57 = vor.u32 %v11176_v52, %v9566_v46  ;;  %v9502_v62 = vld [vmem:[#allocation5 + $0x238] sm:$0xf]  ;;  %v9376_v55 = vld [vmem:[#allocation5 + $0x178] sm:$0xf0] }
 0x3fb   : > { %v13110_v25 = vadd.f32 %v5661_v18, %v5643_v8  ;;  %5945 = vmatmul.bf16.vlgmr.msra.gmra.mxu0 %v13015_v15  ;;  %5964 = vmatmul.bf16.vlgmr.msra.gmra.mxu1 %v13017_v21  ;;  %v10079_v0 = vor.u32 %v11304_v50, %v10078_v60  ;;  %v10080_v18 = vld [vmem:[#allocation5 + $0x6f8] sm:$0xf0]  ;;  %v10014_v27 = vld [vmem:[#allocation5 + $0x638] sm:$0xf] }
 0x3fc   : > { %v6214_v16 = vmax.f32 %v5631_v61, 0.0  ;;  %5983 = vmatmul.bf16.vlgmr.msra.gmra.mxu2 %v13015_v15  ;;  %6002 = vmatmul.bf16.vlgmr.msra.gmra.mxu3 %v13017_v21  ;;  %v10083_v10 = vor.u32 %v11296_v31, %v10080_v18  ;;  %v9504_v8 = vld [vmem:[#allocation5 + $0x278] sm:$0xf0]  ;;  %v9950_v24 = vld [vmem:[#allocation5 + $0x5b8] sm:$0xf] }
 0x3fd   : > { %6127 = vmatpush.bf16.msra.mxu2 %v9699_v48  ;;  %6089 = vmatpush.bf16.msra.mxu0 %v9695_v47  ;;  %v6167_v9 = vmax.f32 %v13110_v25, 0.0  ;;  %v9507_v40 = vor.u32 %v11152_v45, %v9504_v8  ;;  %v11160_v48 = vld [vmem:[#allocation5 + $0x274] sm:$0xf0]  ;;  %v10015_v47 = vor.u32 %v11288_v28, %v10014_v27 }
 0x3fe   : > { %6108 = vmatpush.bf16.msra.mxu1 %v10207_v13  ;;  %v13117_v17 = vpack.c.bf16 %v6214_v16, %v6198_v35  ;;  %6146 = vmatpush.bf16.msra.mxu3 %v10211_v49  ;;  %v9503_v16 = vor.u32 %v11160_v48, %v9502_v62  ;;  %v11280_v13 = vld [vmem:[#allocation5 + $0x63c] sm:$0xf]  ;;  %v11272_v36 = vld [vmem:[#allocation5 + $0x5f4] sm:$0xf0] }
 0x3ff   : > { %v5680_v54 = vpop.f32.mrf.mxu2  ;;  %v5699_v39 = vpop.f32.mrf.mxu3  ;;  %v10019_v49 = vor.u32 %v11280_v13, %v10016_v14  ;;  %v9374_v19 = vld [vmem:[#allocation5 + $0x138] sm:$0xf]  ;;  %v11104_v62 = vld [vmem:[#allocation5 + $0xbc] sm:$0xf]  ;;  %v13143_v14 = vperm.slane %v13062_v12, 4 }
 0x400   : > { %v5681_v11 = vadd.f32 %v5680_v54, %v13108_v41  ;;  %v5644_v33 = vpop.f32.mrf.mxu0  ;;  %v5663_v32 = vpop.f32.mrf.mxu1  ;;  %v9438_v54 = vld [vmem:[#allocation5 + $0x1b8] sm:$0xf] }
 0x401   : > { %v5645_v38 = vadd.f32 %v5644_v33, %v13101_v4  ;;  %6128 = vmatpush.bf16.msra.mxu2 %v9635_v29  ;;  %6090 = vmatpush.bf16.msra.mxu0 %v9631_v5  ;;  %v9443_v29 = vor.u32 %v11136_v20, %v9440_v59  ;;  %v9951_v5 = vor.u32 %v11272_v36, %v9950_v24  ;;  %v9886_v52 = vld [vmem:[#allocation5 + $0x538] sm:$0xf] }
 0x402   : > { %v13121_v37 = vadd.f32 %v5699_v39, %v5681_v11  ;;  %6109 = vmatpush.bf16.msra.mxu1 %v10143_v51  ;;  %6147 = vmatpush.bf16.msra.mxu3 %v10147_v30  ;;  %v11264_v51 = vld [vmem:[#allocation5 + $0x5bc] sm:$0xf]  ;;  %v11256_v60 = vld [vmem:[#allocation5 + $0x574] sm:$0xf0] }
 0x403   : > { %v5664_v23 = vadd.f32 %v5663_v32, %v5645_v38  ;;  %v9439_v32 = vor.u32 %v11144_v34, %v9438_v54  ;;  %v9955_v42 = vor.u32 %v11264_v51, %v9952_v2  ;;  %v11120_v30 = vld [vmem:[#allocation5 + $0x13c] sm:$0xf]  ;;  %v9887_v18 = vor.u32 %v11256_v60, %v9886_v52  ;;  %v11112_v27 = vld [vmem:[#allocation5 + $0xf4] sm:$0xf0] }
 0x404   : > { %v6168_v11 = vmax.f32 %v13121_v37, 0.0  ;;  %v9822_v28 = vld [vmem:[#allocation5 + $0x4b8] sm:$0xf]  ;;  %v11216_v2 = vld [vmem:[#allocation5 + $0x43c] sm:$0xf]  ;;  %v13164_v60 = vperm.slane %v13062_v12, 5 }
 0x405   : > { %v6183_v44 = vmax.f32 %v5664_v23, 0.0  ;;  %6129 = vmatpush.bf16.msra.mxu2 %v9571_v26  ;;  %6091 = vmatpush.bf16.msra.mxu0 %v9567_v57  ;;  %v9379_v23 = vor.u32 %v11120_v30, %v9376_v55  ;;  %v11128_v26 = vld [vmem:[#allocation5 + $0x174] sm:$0xf0]  ;;  %v11351_v12 = vld [vmem:[%s13821_s11 + $0x70] sm:$0xff] }
 0x406   : > { %6110 = vmatpush.bf16.msra.mxu1 %v10079_v0  ;;  %6148 = vmatpush.bf16.msra.mxu3 %v10083_v10  ;;  %v9375_v31 = vor.u32 %v11128_v26, %v9374_v19  ;;  %v9246_v20 = vld [vmem:[#allocation5 + $0x38] sm:$0xf] }
 0x407   : > { %v13124_v61 = vpack.c.bf16 %v6183_v44, %v6167_v9  ;;  %v5682_v22 = vpop.f32.mrf.mxu2  ;;  %v5701_v43 = vpop.f32.mrf.mxu3  ;;  %v11248_v9 = vld [vmem:[#allocation5 + $0x53c] sm:$0xf]  ;;  %v11096_v34 = vld [vmem:[#allocation5 + $0x74] sm:$0xf0] }
 0x408   : > { %v5683_v53 = vadd.f32 %v5682_v22, %v13108_v41  ;;  %v5647_v25 = vpop.f32.mrf.mxu0  ;;  %v5666_v35 = vpop.f32.mrf.mxu1  ;;  %v9888_v44 = vld [vmem:[#allocation5 + $0x578] sm:$0xf0]  ;;  %v9758_v24 = vld [vmem:[#allocation5 + $0x438] sm:$0xf] }
 0x409   : > { %v5648_v3 = vadd.f32 %v5647_v25, %v13101_v4  ;;  %6130 = vmatpush.bf16.msra.mxu2 %v9507_v40  ;;  %6092 = vmatpush.bf16.msra.mxu0 %v9503_v16  ;;  %v9891_v45 = vor.u32 %v11248_v9, %v9888_v44  ;;  %v9312_v22 = vld [vmem:[#allocation5 + $0xf8] sm:$0xf0]  ;;  %v11224_v36 = vld [vmem:[#allocation5 + $0x474] sm:$0xf0]  ;;  %v11359_v9 = vld [vmem:[%s13821_s11 + $0xb0] sm:$0xff] }
 0x40a   : > { %v5702_v58 = vadd.f32 %v5701_v43, %v5683_v53  ;;  %6111 = vmatpush.bf16.msra.mxu1 %v10015_v47  ;;  %6149 = vmatpush.bf16.msra.mxu3 %v10019_v49  ;;  %v9310_v43 = vld [vmem:[#allocation5 + $0xb8] sm:$0xf]  ;;  %v9315_v48 = vor.u32 %v11104_v62, %v9312_v22  ;;  %v11232_v16 = vld [vmem:[#allocation5 + $0x4bc] sm:$0xf]  ;;  %v9759_v51 = vor.u32 %v11224_v36, %v9758_v24 }
 0x40b   : > { %v13128_v39 = vadd.f32 %v5666_v35, %v5648_v3  ;;  %5950 = vmatmul.bf16.gmra.mxu0 %v13027_v56  ;;  %5969 = vmatmul.bf16.gmra.mxu1 %v13029_v63  ;;  %v11240_v53 = vld [vmem:[#allocation5 + $0x4f4] sm:$0xf0]  ;;  %v9311_v25 = vor.u32 %v11112_v27, %v9310_v43  ;;  %v9824_v47 = vld [vmem:[#allocation5 + $0x4f8] sm:$0xf0]  ;;  %v11358_v27 = vld [vmem:[%s13821_s11 + $0xa8] sm:$0xff] }
 0x40c   : > { %v6184_v33 = vmax.f32 %v5702_v58, 0.0  ;;  %5988 = vmatmul.bf16.gmra.mxu2 %v13027_v56  ;;  %6007 = vmatmul.bf16.gmra.mxu3 %v13029_v63  ;;  %v9823_v35 = vor.u32 %v11240_v53, %v9822_v28  ;;  %v9827_v3 = vor.u32 %v11232_v16, %v9824_v47  ;;  %v11088_v49 = vld [vmem:[#allocation5 + $0x3c] sm:$0xf]  ;;  %v11366_v28 = vld [vmem:[%s13821_s11 + $0xe8] sm:$0xff] }
 0x40d   : > { %6131 = vmatpush.bf16.msra.mxu2 %v9443_v29  ;;  %6093 = vmatpush.bf16.msra.mxu0 %v9439_v32  ;;  %v9248_v58 = vld [vmem:[#allocation5 + $0x78] sm:$0xf0] }
 0x40e   : > { %v13135_v38 = vpack.c.bf16 %v6184_v33, %v6168_v11  ;;  %6112 = vmatpush.bf16.msra.mxu1 %v9951_v5  ;;  %6150 = vmatpush.bf16.msra.mxu3 %v9955_v42  ;;  %v9251_v29 = vor.u32 %v11088_v49, %v9248_v58  ;;  %v9247_v5 = vor.u32 %v11096_v34, %v9246_v20  ;;  %v9760_v42 = vld [vmem:[#allocation5 + $0x478] sm:$0xf0] }
 0x40f   : > { %v5685_v37 = vpop.f32.mrf.mxu2  ;;  %v5704_v46 = vpop.f32.mrf.mxu3  ;;  %v9763_v55 = vor.u32 %v11216_v2, %v9760_v42  ;;  %v11340_v24 = vld [vmem:[%s13821_s11 + $0x18] sm:$0xff] }
 0x410   : > { %v5686_v50 = vadd.f32 %v5685_v37, %v13108_v41  ;;  %v5649_v57 = vpop.f32.mrf.mxu0  ;;  %v5668_v0 = vpop.f32.mrf.mxu1  ;;  %v11348_v36 = vld [vmem:[%s13821_s11 + $0x58] sm:$0xff] }
 0x411   : > { %v5650_v10 = vadd.f32 %v5649_v57, %v13101_v4  ;;  %6132 = vmatpush.bf16.msra.mxu2 %v9379_v23  ;;  %6094 = vmatpush.bf16.msra.mxu0 %v9375_v31  ;;  %v6199_v4 = vmax.f32 %v13128_v39, 0.0  ;;  %v11360_v23 = vld [vmem:[%s13821_s11 + $0xb8] sm:$0xff] }
 0x412   : > { %v13139_v8 = vadd.f32 %v5704_v46, %v5686_v50  ;;  %6113 = vmatpush.bf16.msra.mxu1 %v9887_v18  ;;  %6151 = vmatpush.bf16.msra.mxu3 %v9891_v45  ;;  %v11352_v46 = vld [vmem:[%s13821_s11 + $0x78] sm:$0xff]  ;;  %v11343_v18 = vld [vmem:[%s13821_s11 + $0x30] sm:$0xff] }
 0x413   : > { %v5669_v40 = vadd.f32 %v5668_v0, %v5650_v10  ;;  %v11368_v50 = vld [vmem:[%s13821_s11 + $0xf8] sm:$0xff] }
 0x414   : > { %v6200_v26 = vmax.f32 %v13139_v8, 0.0  ;;  %v11367_v8 = vld [vmem:[%s13821_s11 + $0xf0] sm:$0xff] }
 0x415   : > { %v6215_v13 = vmax.f32 %v5669_v40, 0.0  ;;  %6133 = vmatpush.bf16.msra.mxu2 %v9315_v48  ;;  %6095 = vmatpush.bf16.msra.mxu0 %v9311_v25  ;;  %v11342_v40 = vld [vmem:[%s13821_s11 + $0x28] sm:$0xff] }
 0x416   : > { %6114 = vmatpush.bf16.msra.mxu1 %v9823_v35  ;;  %6152 = vmatpush.bf16.msra.mxu3 %v9827_v3  ;;  %v11350_v48 = vld [vmem:[%s13821_s11 + $0x68] sm:$0xff]  ;;  %v11357_v3 = vld [vmem:[%s13821_s11 + $0xa0] sm:$0xff] }
 0x417   : > { %v5687_v59 = vpop.f32.mrf.mxu2  ;;  %v5706_v54 = vpop.f32.mrf.mxu3  ;;  %v13145_v11 = vpack.c.bf16 %v6215_v13, %v6199_v4  ;;  %v11341_v4 = vld [vmem:[%s13821_s11 + $0x20] sm:$0xff] }
 0x418   : > { %v5688_v39 = vadd.f32 %v5687_v59, %v13108_v41  ;;  %v5718_v33 = vpop.f32.mrf.mxu0  ;;  %v5737_v32 = vpop.f32.mrf.mxu1  ;;  %v11344_v41 = vld [vmem:[%s13821_s11 + $0x38] sm:$0xff]  ;;  %v11349_v13 = vld [vmem:[%s13821_s11 + $0x60] sm:$0xff] }
 0x419   : > { %v5719_v30 = vadd.f32 %v5718_v33, %v13143_v14  ;;  %6134 = vmatpush.bf16.msra.mxu2 %v9251_v29  ;;  %6096 = vmatpush.bf16.msra.mxu0 %v9247_v5  ;;  %v11364_v5 = vld [vmem:[%s13821_s11 + $0xd8] sm:$0xff] }
 0x41a   : > { %v5707_v19 = vadd.f32 %v5706_v54, %v5688_v39  ;;  %6115 = vmatpush.bf16.msra.mxu1 %v9759_v51  ;;  %6153 = vmatpush.bf16.msra.mxu3 %v9763_v55  ;;  %v11365_v54 = vld [vmem:[%s13821_s11 + $0xe0] sm:$0xff]  ;;  %v11356_v39 = vld [vmem:[%s13821_s11 + $0x98] sm:$0xff]  ;;  %v11347_v55 = vld [vmem:[%s13821_s11 + $0x50] sm:$0xff] }
 0x41b   : > { %v5738_v37 = vadd.f32 %v5737_v32, %v5719_v30  ;;  %6021 = vmatmul.bf16.vlgmr.msrb.gmra.mxu0 %v13015_v15  ;;  %6040 = vmatmul.bf16.vlgmr.msrb.gmra.mxu1 %v13017_v21  ;;  %v11339_v30 = vld [vmem:[%s13821_s11 + $0x10] sm:$0xff] }
 0x41c   : > { %v6216_v52 = vmax.f32 %v5707_v19, 0.0  ;;  %6059 = vmatmul.bf16.vlgmr.msrb.gmra.mxu2 %v13015_v15  ;;  %6078 = vmatmul.bf16.vlgmr.msrb.gmra.mxu3 %v13017_v21  ;;  %v11355_v19 = vld [vmem:[%s13821_s11 + $0x90] sm:$0xff] }
 0x41d   : > { %7289 = vmatpush.bf16.msrb.mxu0 %v11344_v41  ;;  %7327 = vmatpush.bf16.msrb.mxu2 %v11360_v23  ;;  %v6169_v53 = vmax.f32 %v5738_v37, 0.0 }
 0x41e   : > { %7308 = vmatpush.bf16.msrb.mxu1 %v11352_v46  ;;  %v13169_v57 = vpack.c.bf16 %v6216_v52, %v6200_v26  ;;  %7346 = vmatpush.bf16.msrb.mxu3 %v11368_v50  ;;  %v11363_v26 = vld [vmem:[%s13821_s11 + $0xd0] sm:$0xff] }
 0x41f   : > { %v5756_v0 = vpop.f32.mrf.mxu2  ;;  %v5775_v31 = vpop.f32.mrf.mxu3 }
 0x420   : > { %v5757_v44 = vadd.f32 %v5756_v0, %v13164_v60  ;;  %v5720_v10 = vpop.f32.mrf.mxu0  ;;  %v5739_v45 = vpop.f32.mrf.mxu1  ;;  %v11338_v0 = vld [vmem:[%s13821_s11 + $0x8] sm:$0xff] }
 0x421   : > { %v5721_v62 = vadd.f32 %v5720_v10, %v13143_v14  ;;  %7290 = vmatpush.bf16.msrb.mxu0 %v11343_v18  ;;  %7328 = vmatpush.bf16.msrb.mxu2 %v11359_v9  ;;  %v11362_v9 = vld [vmem:[%s13821_s11 + $0xc8] sm:$0xff] }
 0x422   : > { %v5776_v22 = vadd.f32 %v5775_v31, %v5757_v44  ;;  %7309 = vmatpush.bf16.msrb.mxu1 %v11351_v12  ;;  %7347 = vmatpush.bf16.msrb.mxu3 %v11367_v8  ;;  %v11346_v31 = vld [vmem:[%s13821_s11 + $0x48] sm:$0xff]  ;;  %v11345_v8 = vld [vmem:[%s13821_s11 + $0x40] sm:$0xff] }
 0x423   : > { %v5740_v43 = vadd.f32 %v5739_v45, %v5721_v62  ;;  %v11337_v45 = vld [vmem:[%s13821_s11] sm:$0xff] }
 0x424   : > { %v6170_v33 = vmax.f32 %v5776_v22, 0.0 }
 0x425   : > { %v6185_v25 = vmax.f32 %v5740_v43, 0.0  ;;  %7291 = vmatpush.bf16.msrb.mxu0 %v11342_v40  ;;  %7329 = vmatpush.bf16.msrb.mxu2 %v11358_v27  ;;  %v11361_v27 = vld [vmem:[%s13821_s11 + $0xc0] sm:$0xff] }
 0x426   : > { %7310 = vmatpush.bf16.msrb.mxu1 %v11350_v48  ;;  %7348 = vmatpush.bf16.msrb.mxu3 %v11366_v28  ;;  %v11353_v48 = vld [vmem:[%s13821_s11 + $0x80] sm:$0xff] }
 0x427   : > { %v13197_v35 = vpack.c.bf16 %v6185_v25, %v6169_v53  ;;  %v5758_v16 = vpop.f32.mrf.mxu2  ;;  %v5777_v47 = vpop.f32.mrf.mxu3  ;;  %v11384_v53 = vld [vmem:[%s13821_s11 + $0x178] sm:$0xff] }
 0x428   : > { %v5759_v49 = vadd.f32 %v5758_v16, %v13164_v60  ;;  %v5723_v58 = vpop.f32.mrf.mxu0  ;;  %v5742_v20 = vpop.f32.mrf.mxu1  ;;  %v11392_v25 = vld [vmem:[%s13821_s11 + $0x1b8] sm:$0xff] }
 0x429   : > { %v5724_v59 = vadd.f32 %v5723_v58, %v13143_v14  ;;  %7292 = vmatpush.bf16.msrb.mxu0 %v11341_v4  ;;  %7330 = vmatpush.bf16.msrb.mxu2 %v11357_v3  ;;  %v11400_v4 = vld [vmem:[%s13821_s11 + $0x1f8] sm:$0xff]  ;;  %v11391_v58 = vld [vmem:[%s13821_s11 + $0x1b0] sm:$0xff] }
 0x42a   : > { %v5778_v29 = vadd.f32 %v5777_v47, %v5759_v49  ;;  %7311 = vmatpush.bf16.msrb.mxu1 %v11349_v13  ;;  %7349 = vmatpush.bf16.msrb.mxu3 %v11365_v54  ;;  %v11399_v54 = vld [vmem:[%s13821_s11 + $0x1f0] sm:$0xff] }
 0x42b   : > { %v5743_v34 = vadd.f32 %v5742_v20, %v5724_v59  ;;  %6026 = vmatmul.bf16.gmra.mxu0 %v13027_v56  ;;  %6045 = vmatmul.bf16.gmra.mxu1 %v13029_v63 }
 0x42c   : > { %v6186_v32 = vmax.f32 %v5778_v29, 0.0  ;;  %6064 = vmatmul.bf16.gmra.mxu2 %v13027_v56  ;;  %6083 = vmatmul.bf16.gmra.mxu3 %v13029_v63  ;;  %v11374_v29 = vld [vmem:[%s13821_s11 + $0x128] sm:$0xff] }
 0x42d   : > { %7293 = vmatpush.bf16.msrb.mxu0 %v11340_v24  ;;  %7331 = vmatpush.bf16.msrb.mxu2 %v11356_v39  ;;  %v6201_v18 = vmax.f32 %v5743_v34, 0.0  ;;  %v11382_v34 = vld [vmem:[%s13821_s11 + $0x168] sm:$0xff] }
 0x42e   : > { %v13229_v51 = vpack.c.bf16 %v6186_v32, %v6170_v33  ;;  %7312 = vmatpush.bf16.msrb.mxu1 %v11348_v36  ;;  %7350 = vmatpush.bf16.msrb.mxu3 %v11364_v5  ;;  %v11390_v24 = vld [vmem:[%s13821_s11 + $0x1a8] sm:$0xff]  ;;  %v11373_v32 = vld [vmem:[%s13821_s11 + $0x120] sm:$0xff] }
 0x42f   : > { %v5761_v2 = vpop.f32.mrf.mxu2  ;;  %v5780_v42 = vpop.f32.mrf.mxu3  ;;  %v11398_v36 = vld [vmem:[%s13821_s11 + $0x1e8] sm:$0xff]  ;;  %v11381_v5 = vld [vmem:[%s13821_s11 + $0x160] sm:$0xff] }
 0x430   : > { %v5762_v37 = vadd.f32 %v5761_v2, %v13164_v60  ;;  %v5725_v41 = vpop.f32.mrf.mxu0  ;;  %v5744_v46 = vpop.f32.mrf.mxu1  ;;  %v11389_v2 = vld [vmem:[%s13821_s11 + $0x1a0] sm:$0xff] }
 0x431   : > { %v5726_v23 = vadd.f32 %v5725_v41, %v13143_v14  ;;  %7294 = vmatpush.bf16.msrb.mxu0 %v11339_v30  ;;  %7332 = vmatpush.bf16.msrb.mxu2 %v11355_v19  ;;  %v11354_v14 = vld [vmem:[%s13821_s11 + $0x88] sm:$0xff]  ;;  %v11372_v19 = vld [vmem:[%s13821_s11 + $0x118] sm:$0xff] }
 0x432   : > { %v5781_v52 = vadd.f32 %v5780_v42, %v5762_v37  ;;  %7313 = vmatpush.bf16.msrb.mxu1 %v11347_v55  ;;  %7351 = vmatpush.bf16.msrb.mxu3 %v11363_v26  ;;  %v11397_v55 = vld [vmem:[%s13821_s11 + $0x1e0] sm:$0xff]  ;;  %v11380_v37 = vld [vmem:[%s13821_s11 + $0x158] sm:$0xff] }
 0x433   : > { %v5745_v50 = vadd.f32 %v5744_v46, %v5726_v23  ;;  %v11388_v41 = vld [vmem:[%s13821_s11 + $0x198] sm:$0xff] }
 0x434   : > { %v6202_v16 = vmax.f32 %v5781_v52, 0.0  ;;  %v11396_v46 = vld [vmem:[%s13821_s11 + $0x1d8] sm:$0xff]  ;;  %v11371_v52 = vld [vmem:[%s13821_s11 + $0x110] sm:$0xff] }
 0x435   : > { %v6217_v12 = vmax.f32 %v5745_v50, 0.0  ;;  %7295 = vmatpush.bf16.msrb.mxu0 %v11338_v0  ;;  %7333 = vmatpush.bf16.msrb.mxu2 %v11354_v14  ;;  %v11370_v14 = vld [vmem:[%s13821_s11 + $0x108] sm:$0xff] }
 0x436   : > { %7314 = vmatpush.bf16.msrb.mxu1 %v11346_v31  ;;  %7352 = vmatpush.bf16.msrb.mxu3 %v11362_v9  ;;  %v11395_v31 = vld [vmem:[%s13821_s11 + $0x1d0] sm:$0xff]  ;;  %v11394_v9 = vld [vmem:[%s13821_s11 + $0x1c8] sm:$0xff] }
 0x437   : > { %v5763_v44 = vpop.f32.mrf.mxu2  ;;  %v5782_v10 = vpop.f32.mrf.mxu3  ;;  %v13263_v62 = vpack.c.bf16 %v6217_v12, %v6201_v18  ;;  %v11378_v18 = vld [vmem:[%s13821_s11 + $0x148] sm:$0xff] }
 0x438   : > { %v5764_v22 = vadd.f32 %v5763_v44, %v13164_v60  ;;  %v13266_v43 = vpop.f32.mrf.mxu0  ;;  %v13268_v40 = vpop.f32.mrf.mxu1  ;;  %v11376_v60 = vld [vmem:[%s13821_s11 + $0x138] sm:$0xff]  ;;  %v11386_v12 = vld [vmem:[%s13821_s11 + $0x188] sm:$0xff] }
 0x439   : > { %7296 = vmatpush.bf16.msrb.mxu0 %v11337_v45  ;;  %7334 = vmatpush.bf16.msrb.mxu2 %v11353_v48  ;;  %v11369_v45 = vld [vmem:[%s13821_s11 + $0x100] sm:$0xff] }
 0x43a   : > { %v5783_v28 = vadd.f32 %v5782_v10, %v5764_v22  ;;  %7315 = vmatpush.bf16.msrb.mxu1 %v11345_v8  ;;  %7353 = vmatpush.bf16.msrb.mxu3 %v11361_v27  ;;  %v11377_v8 = vld [vmem:[%s13821_s11 + $0x140] sm:$0xff] }
 0x43b   : > { %6097 = vmatmul.bf16.vlgmr.msra.gmra.mxu0 %v13015_v15  ;;  %6116 = vmatmul.bf16.vlgmr.msra.gmra.mxu1 %v13017_v21  ;;  %v11385_v22 = vld [vmem:[%s13821_s11 + $0x180] sm:$0xff] }
 0x43c   : > { %v6218_v47 = vmax.f32 %v5783_v28, 0.0  ;;  %6135 = vmatmul.bf16.vlgmr.msra.gmra.mxu2 %v13015_v15  ;;  %6154 = vmatmul.bf16.vlgmr.msra.gmra.mxu3 %v13017_v21  ;;  %v11375_v15 = vld [vmem:[%s13821_s11 + $0x130] sm:$0xff]  ;;  %v11393_v28 = vld [vmem:[%s13821_s11 + $0x1c0] sm:$0xff] }
 0x43d   : > { %7365 = vmatpush.bf16.msra.mxu0 %v11376_v60  ;;  %7403 = vmatpush.bf16.msra.mxu2 %v11392_v25  ;;  %v11383_v21 = vld [vmem:[%s13821_s11 + $0x170] sm:$0xff]  ;;  %v11408_v60 = vld [vmem:[%s13821_s11 + $0x238] sm:$0xff] }
 0x43e   : > { %7384 = vmatpush.bf16.msra.mxu1 %v11384_v53  ;;  %v13292_v13 = vpack.c.bf16 %v6218_v47, %v6202_v16  ;;  %7422 = vmatpush.bf16.msra.mxu3 %v11400_v4  ;;  %v11416_v53 = vld [vmem:[%s13821_s11 + $0x278] sm:$0xff]  ;;  %v11407_v47 = vld [vmem:[%s13821_s11 + $0x230] sm:$0xff] }
 0x43f   : > { %v13294_v3 = vpop.f32.mrf.mxu2  ;;  %v13296_v49 = vpop.f32.mrf.mxu3  ;;  %v11424_v25 = vld [vmem:[%s13821_s11 + $0x2b8] sm:$0xff] }
 0x440   : > { %v13307_v20 = vpop.f32.mrf.mxu0  ;;  %v13309_v59 = vpop.f32.mrf.mxu1 }
 0x441   : > { %7366 = vmatpush.bf16.msra.mxu0 %v11375_v15  ;;  %7404 = vmatpush.bf16.msra.mxu2 %v11391_v58  ;;  %v11406_v58 = vld [vmem:[%s13821_s11 + $0x228] sm:$0xff] }
 0x442   : > { %7385 = vmatpush.bf16.msra.mxu1 %v11383_v21  ;;  %7423 = vmatpush.bf16.msra.mxu3 %v11399_v54  ;;  %v11431_v21 = vld [vmem:[%s13821_s11 + $0x2f0] sm:$0xff]  ;;  %v11414_v54 = vld [vmem:[%s13821_s11 + $0x268] sm:$0xff] }
 0x445   : > { %7367 = vmatpush.bf16.msra.mxu0 %v11374_v29  ;;  %7405 = vmatpush.bf16.msra.mxu2 %v11390_v24  ;;  %v11422_v29 = vld [vmem:[%s13821_s11 + $0x2a8] sm:$0xff] }
 0x446   : > { %7386 = vmatpush.bf16.msra.mxu1 %v11382_v34  ;;  %7424 = vmatpush.bf16.msra.mxu3 %v11398_v36  ;;  %v11430_v34 = vld [vmem:[%s13821_s11 + $0x2e8] sm:$0xff] }
 0x447   : > { %v13326_v39 = vpop.f32.mrf.mxu2  ;;  %v13328_v33 = vpop.f32.mrf.mxu3 }
 0x448   : > { %v13339_v42 = vpop.f32.mrf.mxu0  ;;  %v13341_v30 = vpop.f32.mrf.mxu1 }
 0x449   : > { %7368 = vmatpush.bf16.msra.mxu0 %v11373_v32  ;;  %7406 = vmatpush.bf16.msra.mxu2 %v11389_v2  ;;  %v11405_v32 = vld [vmem:[%s13821_s11 + $0x220] sm:$0xff] }
 0x44a   : > { %7387 = vmatpush.bf16.msra.mxu1 %v11381_v5  ;;  %7425 = vmatpush.bf16.msra.mxu3 %v11397_v55  ;;  %v11413_v5 = vld [vmem:[%s13821_s11 + $0x260] sm:$0xff] }
 0x44b   : > { %6102 = vmatmul.bf16.gmra.mxu0 %v13027_v56  ;;  %6121 = vmatmul.bf16.gmra.mxu1 %v13029_v63  ;;  %v11421_v2 = vld [vmem:[%s13821_s11 + $0x2a0] sm:$0xff] }
 0x44c   : > { %6140 = vmatmul.bf16.gmra.mxu2 %v13027_v56  ;;  %6159 = vmatmul.bf16.gmra.mxu3 %v13029_v63  ;;  %v11379_v56 = vld [vmem:[%s13821_s11 + $0x150] sm:$0xff] }
 0x44d   : > { %7369 = vmatpush.bf16.msra.mxu0 %v11372_v19  ;;  %7407 = vmatpush.bf16.msra.mxu2 %v11388_v41  ;;  %v11387_v63 = vld [vmem:[%s13821_s11 + $0x190] sm:$0xff]  ;;  %v11404_v41 = vld [vmem:[%s13821_s11 + $0x218] sm:$0xff] }
 0x44e   : > { %7388 = vmatpush.bf16.msra.mxu1 %v11380_v37  ;;  %7426 = vmatpush.bf16.msra.mxu3 %v11396_v46  ;;  %v11429_v37 = vld [vmem:[%s13821_s11 + $0x2e0] sm:$0xff]  ;;  %v11412_v46 = vld [vmem:[%s13821_s11 + $0x258] sm:$0xff] }
 0x44f   : > { %v13362_v23 = vpop.f32.mrf.mxu2  ;;  %v13364_v26 = vpop.f32.mrf.mxu3 }
 0x450   : > { %v13375_v50 = vpop.f32.mrf.mxu0  ;;  %v13377_v0 = vpop.f32.mrf.mxu1 }
 0x451   : > { %7370 = vmatpush.bf16.msra.mxu0 %v11371_v52  ;;  %7408 = vmatpush.bf16.msra.mxu2 %v11387_v63  ;;  %v11420_v52 = vld [vmem:[%s13821_s11 + $0x298] sm:$0xff] }
 0x452   : > { %7389 = vmatpush.bf16.msra.mxu1 %v11379_v56  ;;  %7427 = vmatpush.bf16.msra.mxu3 %v11395_v31  ;;  %v11534_v56 = vld [vmem:[%s13820_s10] sm:$0xff] }
 0x453   : > { %v13496_v63 = vperm.slane %v11534_v56, 6 }
 0x455   : > { %7371 = vmatpush.bf16.msra.mxu0 %v11370_v14  ;;  %7409 = vmatpush.bf16.msra.mxu2 %v11386_v12  ;;  %v5797_v31 = vadd.f32 %v13307_v20, %v13496_v63  ;;  %v11419_v20 = vld [vmem:[%s13821_s11 + $0x290] sm:$0xff] }
 0x456   : > { %7390 = vmatpush.bf16.msra.mxu1 %v11378_v18  ;;  %7428 = vmatpush.bf16.msra.mxu3 %v11394_v9 }
 0x457   : > { %v13394_v44 = vpop.f32.mrf.mxu2  ;;  %v13396_v10 = vpop.f32.mrf.mxu3 }
 0x458   : > { %v13407_v48 = vpop.f32.mrf.mxu0  ;;  %v13409_v27 = vpop.f32.mrf.mxu1 }
 0x459   : > { %7372 = vmatpush.bf16.msra.mxu0 %v11369_v45  ;;  %7410 = vmatpush.bf16.msra.mxu2 %v11385_v22  ;;  %v11427_v22 = vld [vmem:[%s13821_s11 + $0x2d0] sm:$0xff] }
 0x45a   : > { %7391 = vmatpush.bf16.msra.mxu1 %v11377_v8  ;;  %7429 = vmatpush.bf16.msra.mxu3 %v11393_v28  ;;  %v5816_v28 = vadd.f32 %v13309_v59, %v5797_v31  ;;  %v5800_v31 = vadd.f32 %v13339_v42, %v13496_v63 }
 0x45b   : > { %7297 = vmatmul.bf16.vlgmr.msrb.gmra.mxu0 %v13082_v6  ;;  %7316 = vmatmul.bf16.vlgmr.msrb.gmra.mxu1 %v13093_v1  ;;  %v11432_v6 = vld [vmem:[%s13821_s11 + $0x2f8] sm:$0xff] }
 0x45c   : > { %7335 = vmatmul.bf16.vlgmr.msrb.gmra.mxu2 %v13124_v61  ;;  %7354 = vmatmul.bf16.vlgmr.msrb.gmra.mxu3 %v13135_v38  ;;  %v11415_v61 = vld [vmem:[%s13821_s11 + $0x270] sm:$0xff]  ;;  %v5819_v42 = vadd.f32 %v13341_v30, %v5800_v31  ;;  %v13612_v30 = vld [vmem:[%s13820_s10 + $0x8] sm:$0xff] }
 0x45d   : > { %7441 = vmatpush.bf16.msrb.mxu0 %v11408_v60  ;;  %7479 = vmatpush.bf16.msrb.mxu2 %v11424_v25  ;;  %v11423_v38 = vld [vmem:[%s13821_s11 + $0x2b0] sm:$0xff]  ;;  %v11454_v31 = vld [vmem:[%s13821_s11 + $0x3a8] sm:$0xff] }
 0x45e   : > { %7460 = vmatpush.bf16.msrb.mxu1 %v11416_v53  ;;  %7498 = vmatpush.bf16.msrb.mxu3 %v11432_v6  ;;  %v11418_v53 = vld [vmem:[%s13821_s11 + $0x288] sm:$0xff]  ;;  %v6187_v6 = vmax.f32 %v5816_v28, 0.0  ;;  %v6203_v28 = vmax.f32 %v5819_v42, 0.0 }
 0x45f   : > { %v13430_v1 = vpop.f32.mrf.mxu2  ;;  %v13432_v16 = vpop.f32.mrf.mxu3 }
 0x460   : > { %v13443_v4 = vpop.f32.mrf.mxu0  ;;  %v13445_v15 = vpop.f32.mrf.mxu1 }
 0x461   : > { %7442 = vmatpush.bf16.msrb.mxu0 %v11407_v47  ;;  %7480 = vmatpush.bf16.msrb.mxu2 %v11423_v38 }
 0x462   : > { %7461 = vmatpush.bf16.msrb.mxu1 %v11415_v61  ;;  %7499 = vmatpush.bf16.msrb.mxu3 %v11431_v21  ;;  %v11417_v21 = vld [vmem:[%s13821_s11 + $0x280] sm:$0xff] }
 0x465   : > { %7443 = vmatpush.bf16.msrb.mxu0 %v11406_v58  ;;  %7481 = vmatpush.bf16.msrb.mxu2 %v11422_v29 }
 0x466   : > { %7462 = vmatpush.bf16.msrb.mxu1 %v11414_v54  ;;  %7500 = vmatpush.bf16.msrb.mxu3 %v11430_v34 }
 0x467   : > { %v13462_v24 = vpop.f32.mrf.mxu2  ;;  %v13464_v36 = vpop.f32.mrf.mxu3 }
 0x468   : > { %v13475_v55 = vpop.f32.mrf.mxu0  ;;  %v13477_v19 = vpop.f32.mrf.mxu1 }
 0x469   : > { %7444 = vmatpush.bf16.msrb.mxu0 %v11405_v32  ;;  %7482 = vmatpush.bf16.msrb.mxu2 %v11421_v2  ;;  %v11425_v32 = vld [vmem:[%s13821_s11 + $0x2c0] sm:$0xff] }
 0x46a   : > { %7463 = vmatpush.bf16.msrb.mxu1 %v11413_v5  ;;  %7501 = vmatpush.bf16.msrb.mxu3 %v11429_v37  ;;  %v11440_v37 = vld [vmem:[%s13821_s11 + $0x338] sm:$0xff] }
 0x46b   : > { %7302 = vmatmul.bf16.gmra.mxu0 %v13103_v7  ;;  %7321 = vmatmul.bf16.gmra.mxu1 %v13117_v17  ;;  %v13498_v7 = vperm.slane %v11534_v56, 7  ;;  %v11428_v17 = vld [vmem:[%s13821_s11 + $0x2d8] sm:$0xff]  ;;  %v11439_v56 = vld [vmem:[%s13821_s11 + $0x330] sm:$0xff] }
 0x46c   : > { %7340 = vmatmul.bf16.gmra.mxu2 %v13145_v11  ;;  %7359 = vmatmul.bf16.gmra.mxu3 %v13169_v57  ;;  %v11403_v11 = vld [vmem:[%s13821_s11 + $0x210] sm:$0xff] }
 0x46d   : > { %7445 = vmatpush.bf16.msrb.mxu0 %v11404_v41  ;;  %v5835_v14 = vadd.f32 %v13326_v39, %v13498_v7  ;;  %7483 = vmatpush.bf16.msrb.mxu2 %v11420_v52  ;;  %v11411_v57 = vld [vmem:[%s13821_s11 + $0x250] sm:$0xff]  ;;  %v5795_v39 = vadd.f32 %v13266_v43, %v13496_v63  ;;  %v5833_v9 = vadd.f32 %v13294_v3, %v13498_v7  ;;  %v11402_v43 = vld [vmem:[%s13821_s11 + $0x208] sm:$0xff]  ;;  %v11448_v41 = vld [vmem:[%s13821_s11 + $0x378] sm:$0xff] }
 0x46e   : > { %7464 = vmatpush.bf16.msrb.mxu1 %v11412_v46  ;;  %7502 = vmatpush.bf16.msrb.mxu3 %v11428_v17  ;;  %v11410_v3 = vld [vmem:[%s13821_s11 + $0x248] sm:$0xff]  ;;  %v5802_v46 = vadd.f32 %v13375_v50, %v13496_v63  ;;  %v11447_v17 = vld [vmem:[%s13821_s11 + $0x370] sm:$0xff]  ;;  %v5838_v50 = vadd.f32 %v13362_v23, %v13498_v7 }
 0x46f   : > { %v13509_v18 = vpop.f32.mrf.mxu2  ;;  %v13511_v12 = vpop.f32.mrf.mxu3  ;;  %v5854_v60 = vadd.f32 %v13328_v33, %v5835_v14  ;;  %v5814_v25 = vadd.f32 %v13268_v40, %v5795_v39  ;;  %v5852_v59 = vadd.f32 %v13296_v49, %v5833_v9  ;;  %v11426_v33 = vld [vmem:[%s13821_s11 + $0x2c8] sm:$0xff]  ;;  %v11401_v40 = vld [vmem:[%s13821_s11 + $0x200] sm:$0xff] }
 0x470   : > { %v13526_v45 = vpop.f32.mrf.mxu0  ;;  %v13528_v8 = vpop.f32.mrf.mxu1  ;;  %v11409_v49 = vld [vmem:[%s13821_s11 + $0x240] sm:$0xff]  ;;  %v11446_v39 = vld [vmem:[%s13821_s11 + $0x368] sm:$0xff]  ;;  %v5857_v23 = vadd.f32 %v13364_v26, %v5838_v50 }
 0x471   : > { %7446 = vmatpush.bf16.msrb.mxu0 %v11403_v11  ;;  %7484 = vmatpush.bf16.msrb.mxu2 %v11419_v20  ;;  %v6188_v47 = vmax.f32 %v5854_v60, 0.0  ;;  %v6171_v58 = vmax.f32 %v5814_v25, 0.0  ;;  %v6172_v54 = vmax.f32 %v5852_v59, 0.0  ;;  %v5821_v11 = vadd.f32 %v13377_v0, %v5802_v46  ;;  %v11438_v20 = vld [vmem:[%s13821_s11 + $0x328] sm:$0xff] }
 0x472   : > { %7465 = vmatpush.bf16.msrb.mxu1 %v11411_v57  ;;  %7503 = vmatpush.bf16.msrb.mxu3 %v11427_v22  ;;  %v11445_v22 = vld [vmem:[%s13821_s11 + $0x360] sm:$0xff]  ;;  %v6204_v60 = vmax.f32 %v5857_v23, 0.0  ;;  %v13622_v59 = vperm.slane %v13612_v30, 0 }
 0x473   : > { %v6235_v5 = vpack.c.bf16 %v6187_v6, %v6171_v58  ;;  %v6236_v2 = vpack.c.bf16 %v6188_v47, %v6172_v54  ;;  %v6219_v63 = vmax.f32 %v5821_v11, 0.0  ;;  %v11436_v6 = vld [vmem:[%s13821_s11 + $0x318] sm:$0xff]  ;;  %v11442_v11 = vld [vmem:[%s13821_s11 + $0x348] sm:$0xff] }
 0x474   : > { %v11444_v47 = vld [vmem:[%s13821_s11 + $0x358] sm:$0xff] }
 0x475   : > { %7447 = vmatpush.bf16.msrb.mxu0 %v11402_v43  ;;  %7485 = vmatpush.bf16.msrb.mxu2 %v11418_v53  ;;  %v6251_v53 = vpack.c.bf16 %v6219_v63, %v6203_v28 }
 0x476   : > { %7466 = vmatpush.bf16.msrb.mxu1 %v11410_v3  ;;  %7504 = vmatpush.bf16.msrb.mxu3 %v11426_v33  ;;  %v11456_v3 = vld [vmem:[%s13821_s11 + $0x3b8] sm:$0xff]  ;;  %v13625_v33 = vperm.slane %v13612_v30, 1 }
 0x477   : > { %v13549_v61 = vpop.f32.mrf.mxu2  ;;  %v13551_v38 = vpop.f32.mrf.mxu3 }
 0x478   : > { %v13562_v29 = vpop.f32.mrf.mxu0  ;;  %v13564_v34 = vpop.f32.mrf.mxu1 }
 0x479   : > { %7448 = vmatpush.bf16.msrb.mxu0 %v11401_v40  ;;  %7486 = vmatpush.bf16.msrb.mxu2 %v11417_v21  ;;  %v13636_v40 = vperm.slane %v13612_v30, 2  ;;  %v11455_v21 = vld [vmem:[%s13821_s11 + $0x3b0] sm:$0xff] }
 0x47a   : > { %7467 = vmatpush.bf16.msrb.mxu1 %v11409_v49  ;;  %7505 = vmatpush.bf16.msrb.mxu3 %v11425_v32  ;;  %v13639_v49 = vperm.slane %v13612_v30, 3  ;;  %v5871_v32 = vadd.f32 %v13407_v48, %v13622_v59 }
 0x47b   : > { %7373 = vmatmul.bf16.vlgmr.msra.gmra.mxu0 %v13197_v35  ;;  %7392 = vmatmul.bf16.vlgmr.msra.gmra.mxu1 %v13229_v51  ;;  %v5840_v35 = vadd.f32 %v13394_v44, %v13498_v7  ;;  %v5947_v48 = vadd.f32 %v13562_v29, %v13636_v40 }
 0x47c   : > { %7411 = vmatmul.bf16.vlgmr.msra.gmra.mxu2 %v6235_v5  ;;  %7430 = vmatmul.bf16.vlgmr.msra.gmra.mxu3 %v6236_v2  ;;  %v11464_v2 = vld [vmem:[%s13821_s11 + $0x3f8] sm:$0xff]  ;;  %v5890_v29 = vadd.f32 %v13409_v27, %v5871_v32 }
 0x47d   : > { %7517 = vmatpush.bf16.msra.mxu0 %v11440_v37  ;;  %v5859_v57 = vadd.f32 %v13396_v10, %v5840_v35  ;;  %v11437_v10 = vld [vmem:[%s13821_s11 + $0x320] sm:$0xff]  ;;  %7555 = vmatpush.bf16.msra.mxu2 %v11456_v3  ;;  %v11435_v37 = vld [vmem:[%s13821_s11 + $0x310] sm:$0xff] }
 0x47e   : > { %7536 = vmatpush.bf16.msra.mxu1 %v11448_v41  ;;  %v11443_v41 = vld [vmem:[%s13821_s11 + $0x350] sm:$0xff]  ;;  %7574 = vmatpush.bf16.msra.mxu3 %v11464_v2  ;;  %v6173_v23 = vmax.f32 %v5890_v29, 0.0  ;;  %v5914_v2 = vadd.f32 %v13509_v18, %v13625_v33  ;;  %v11450_v18 = vld [vmem:[%s13821_s11 + $0x388] sm:$0xff] }
 0x47f   : > { %v5984_v51 = vpop.f32.mrf.mxu2  ;;  %v13581_v52 = vpop.f32.mrf.mxu3  ;;  %v6220_v7 = vmax.f32 %v5859_v57, 0.0 }
 0x480   : > { %v5948_v14 = vpop.f32.mrf.mxu0  ;;  %v5967_v44 = vpop.f32.mrf.mxu1 }
 0x481   : > { %7518 = vmatpush.bf16.msra.mxu0 %v11439_v56  ;;  %v6252_v25 = vpack.c.bf16 %v6220_v7, %v6204_v60  ;;  %v5949_v58 = vadd.f32 %v5948_v14, %v13636_v40  ;;  %7556 = vmatpush.bf16.msra.mxu2 %v11455_v21  ;;  %v5916_v21 = vadd.f32 %v13549_v61, %v13625_v33  ;;  %v11460_v61 = vld [vmem:[%s13821_s11 + $0x3d8] sm:$0xff] }
 0x482   : > { %7537 = vmatpush.bf16.msra.mxu1 %v11447_v17 }
 0x483   : > { %v5968_v50 = vadd.f32 %v5967_v44, %v5949_v58  ;;  %v5966_v44 = vadd.f32 %v13564_v34, %v5947_v48  ;;  %v11462_v34 = vld [vmem:[%s13821_s11 + $0x3e8] sm:$0xff]  ;;  %v11451_v58 = vld [vmem:[%s13821_s11 + $0x390] sm:$0xff] }
 0x485   : > { %7519 = vmatpush.bf16.msra.mxu0 %v11438_v20  ;;  %7557 = vmatpush.bf16.msra.mxu2 %v11454_v31 }
 0x486   : > { %7538 = vmatpush.bf16.msra.mxu1 %v11446_v39  ;;  %v6191_v39 = vmax.f32 %v5968_v50, 0.0 }
 0x487   : > { %v5986_v0 = vpop.f32.mrf.mxu2  ;;  %v6005_v9 = vpop.f32.mrf.mxu3 }
 0x488   : > { %v13614_v26 = vpop.f32.mrf.mxu0  ;;  %v13616_v43 = vpop.f32.mrf.mxu1  ;;  %v5987_v54 = vadd.f32 %v5986_v0, %v13639_v49 }
 0x489   : > { %7520 = vmatpush.bf16.msra.mxu0 %v11437_v10  ;;  %v6175_v10 = vmax.f32 %v5966_v44, 0.0 }
 0x48a   : > { %7539 = vmatpush.bf16.msra.mxu1 %v11445_v22  ;;  %v6006_v14 = vadd.f32 %v6005_v9, %v5987_v54  ;;  %v11441_v9 = vld [vmem:[%s13821_s11 + $0x340] sm:$0xff] }
 0x48b   : > { %7378 = vmatmul.bf16.gmra.mxu0 %v13263_v62  ;;  %7397 = vmatmul.bf16.gmra.mxu1 %v13292_v13  ;;  %v5873_v62 = vadd.f32 %v13443_v4, %v13622_v59  ;;  %v5911_v13 = vadd.f32 %v13462_v24, %v13625_v33  ;;  %v5909_v4 = vadd.f32 %v13430_v1, %v13625_v33 }
 0x48c   : > { %7416 = vmatmul.bf16.gmra.mxu2 %v6251_v53  ;;  %7435 = vmatmul.bf16.gmra.mxu3 %v6252_v25  ;;  %v5985_v1 = vadd.f32 %v5984_v51, %v13639_v49  ;;  %v6192_v42 = vmax.f32 %v6006_v14, 0.0  ;;  %v11452_v25 = vld [vmem:[%s13821_s11 + $0x398] sm:$0xff] }
 0x48d   : > { %7521 = vmatpush.bf16.msra.mxu0 %v11436_v6  ;;  %v5892_v56 = vadd.f32 %v13445_v15, %v5873_v62  ;;  %v5930_v17 = vadd.f32 %v13464_v36, %v5911_v13  ;;  %v5928_v51 = vadd.f32 %v13432_v16, %v5909_v4  ;;  %v11463_v15 = vld [vmem:[%s13821_s11 + $0x3f0] sm:$0xff]  ;;  %v11434_v36 = vld [vmem:[%s13821_s11 + $0x308] sm:$0xff]  ;;  %v11453_v16 = vld [vmem:[%s13821_s11 + $0x3a0] sm:$0xff]  ;;  %v6239_v6 = vpack.c.bf16 %v6191_v39, %v6175_v10 }
 0x48e   : > { %7540 = vmatpush.bf16.msra.mxu1 %v11444_v47  ;;  %v6004_v57 = vadd.f32 %v13581_v52, %v5985_v1  ;;  %7575 = vmatpush.bf16.msra.mxu3 %v11463_v15  ;;  %v11433_v52 = vld [vmem:[%s13821_s11 + $0x300] sm:$0xff]  ;;  %v5878_v13 = vadd.f32 %v13526_v45, %v13622_v59  ;;  %v5876_v4 = vadd.f32 %v13475_v55, %v13622_v59 }
 0x48f   : > { %v13654_v5 = vpop.f32.mrf.mxu2  ;;  %v13656_v24 = vpop.f32.mrf.mxu3  ;;  %v6189_v20 = vmax.f32 %v5892_v56, 0.0  ;;  %v6190_v27 = vmax.f32 %v5930_v17, 0.0  ;;  %v6174_v63 = vmax.f32 %v5928_v51, 0.0  ;;  %7558 = vmatpush.bf16.msra.mxu2 %v11453_v16  ;;  %v11461_v62 = vld [vmem:[%s13821_s11 + $0x3e0] sm:$0xff]  ;;  %v5935_v55 = vadd.f32 %v13551_v38, %v5916_v21 }
 0x490   : > { %v5953_v46 = vpop.f32.mrf.mxu0  ;;  %v13670_v35 = vpop.f32.mrf.mxu1  ;;  %v6176_v22 = vmax.f32 %v6004_v57, 0.0  ;;  %v5990_v48 = vadd.f32 %v13654_v5, %v13639_v49  ;;  %v5897_v56 = vadd.f32 %v13528_v8, %v5878_v13  ;;  %v4258_v16 = vperm.slane %v13612_v30, 5  ;;  %v11457_v39 = vld [vmem:[%s13821_s11 + $0x3c0] sm:$0xff] }
 0x491   : > { %7522 = vmatpush.bf16.msra.mxu0 %v11435_v37  ;;  %v6237_v3 = vpack.c.bf16 %v6189_v20, %v6173_v23  ;;  %v6238_v53 = vpack.c.bf16 %v6190_v27, %v6174_v63  ;;  %v5954_v54 = vadd.f32 %v5953_v46, %v13636_v40  ;;  %v6222_v17 = vmax.f32 %v5935_v55, 0.0 }
 0x492   : > { %7541 = vmatpush.bf16.msra.mxu1 %v11443_v41  ;;  %7576 = vmatpush.bf16.msra.mxu3 %v11462_v34  ;;  %v6240_v47 = vpack.c.bf16 %v6192_v42, %v6176_v22  ;;  %v5952_v41 = vadd.f32 %v13614_v26, %v13636_v40  ;;  %v5895_v26 = vadd.f32 %v13477_v19, %v5876_v4  ;;  %v6221_v5 = vmax.f32 %v5897_v56, 0.0 }
 0x493   : > { %7559 = vmatpush.bf16.msra.mxu2 %v11452_v25  ;;  %v5973_v59 = vadd.f32 %v13670_v35, %v5954_v54  ;;  %v5933_v40 = vadd.f32 %v13511_v12, %v5914_v2  ;;  %v6009_v38 = vadd.f32 %v13656_v24, %v5990_v48  ;;  %v11449_v35 = vld [vmem:[%s13821_s11 + $0x380] sm:$0xff]  ;;  %v4257_v27 = vperm.slane %v13612_v30, 4 }
 0x494   : > { %v5971_v8 = vadd.f32 %v13616_v43, %v5952_v41  ;;  %v6205_v50 = vmax.f32 %v5895_v26, 0.0  ;;  %v11458_v43 = vld [vmem:[%s13821_s11 + $0x3c8] sm:$0xff]  ;;  %v4259_v4 = vperm.slane %v13612_v30, 6 }
 0x495   : > { %7523 = vmatpush.bf16.msra.mxu0 %v11434_v36  ;;  %v6223_v31 = vmax.f32 %v5973_v59, 0.0  ;;  %v6206_v12 = vmax.f32 %v5933_v40, 0.0  ;;  %v6208_v24 = vmax.f32 %v6009_v38, 0.0 }
 0x496   : > { %7542 = vmatpush.bf16.msra.mxu1 %v11442_v11  ;;  %7577 = vmatpush.bf16.msra.mxu3 %v11461_v62  ;;  %v6207_v51 = vmax.f32 %v5971_v8, 0.0  ;;  %v6253_v11 = vpack.c.bf16 %v6221_v5, %v6205_v50 }
 0x497   : > { %v5991_v7 = vpop.f32.mrf.mxu2  ;;  %v6010_v0 = vpop.f32.mrf.mxu3  ;;  %7560 = vmatpush.bf16.msra.mxu2 %v11451_v58  ;;  %v6254_v44 = vpack.c.bf16 %v6222_v17, %v6206_v12 }
 0x498   : > { %v13702_v28 = vpop.f32.mrf.mxu0  ;;  %v13704_v60 = vpop.f32.mrf.mxu1  ;;  %v5992_v32 = vadd.f32 %v5991_v7, %v13639_v49  ;;  %v11459_v49 = vld [vmem:[%s13821_s11 + $0x3d0] sm:$0xff]  ;;  %v6255_v57 = vpack.c.bf16 %v6223_v31, %v6207_v51 }
 0x499   : > { %7524 = vmatpush.bf16.msra.mxu0 %v11433_v52  ;;  %v6023_v63 = vadd.f32 %v13702_v28, %v4257_v27 }
 0x49a   : > { %7543 = vmatpush.bf16.msra.mxu1 %v11441_v9  ;;  %7578 = vmatpush.bf16.msra.mxu3 %v11460_v61  ;;  %v6011_v33 = vadd.f32 %v6010_v0, %v5992_v32 }
 0x49b   : > { %7449 = vmatmul.bf16.vlgmr.msrb.gmra.mxu0 %v6237_v3  ;;  %7468 = vmatmul.bf16.vlgmr.msrb.gmra.mxu1 %v6238_v53  ;;  %v6042_v3 = vadd.f32 %v13704_v60, %v6023_v63 }
 0x49c   : > { %7487 = vmatmul.bf16.vlgmr.msrb.gmra.mxu2 %v6239_v6  ;;  %7506 = vmatmul.bf16.vlgmr.msrb.gmra.mxu3 %v6240_v47  ;;  %v6224_v19 = vmax.f32 %v6011_v33, 0.0 }
 0x49d   : > { %7561 = vmatpush.bf16.msra.mxu2 %v11450_v18  ;;  %v6177_v47 = vmax.f32 %v6042_v3, 0.0 }
 0x49e   : > { %7579 = vmatpush.bf16.msra.mxu3 %v11459_v49  ;;  %v6256_v20 = vpack.c.bf16 %v6224_v19, %v6208_v24 }
 0x49f   : > { %v6060_v45 = vpop.f32.mrf.mxu2  ;;  %v6079_v37 = vpop.f32.mrf.mxu3 }
 0x4a0   : > { %v6024_v1 = vpop.f32.mrf.mxu0  ;;  %v6043_v46 = vpop.f32.mrf.mxu1  ;;  %v6061_v7 = vadd.f32 %v6060_v45, %v4258_v16 }
 0x4a1   : > { %7562 = vmatpush.bf16.msra.mxu2 %v11449_v35  ;;  %v6025_v42 = vadd.f32 %v6024_v1, %v4257_v27  ;;  %v4260_v1 = vperm.slane %v13612_v30, 7 }
 0x4a2   : > { %7580 = vmatpush.bf16.msra.mxu3 %v11458_v43  ;;  %v6080_v53 = vadd.f32 %v6079_v37, %v6061_v7 }
 0x4a3   : > { %v6044_v10 = vadd.f32 %v6043_v46, %v6025_v42 }
 0x4a4   : > { %v6178_v62 = vmax.f32 %v6080_v53, 0.0 }
 0x4a5   : > { %v6193_v25 = vmax.f32 %v6044_v10, 0.0 }
 0x4a6   : > { %7581 = vmatpush.bf16.msra.mxu3 %v11457_v39 }
 0x4a7   : > { %v6062_v14 = vpop.f32.mrf.mxu2  ;;  %v6081_v29 = vpop.f32.mrf.mxu3  ;;  %v6241_v32 = vpack.c.bf16 %v6193_v25, %v6177_v47 }
 0x4a8   : > { %v6027_v15 = vpop.f32.mrf.mxu0  ;;  %v6046_v36 = vpop.f32.mrf.mxu1  ;;  %v6063_v23 = vadd.f32 %v6062_v14, %v4258_v16 }
 0x4a9   : > { %v6028_v41 = vadd.f32 %v6027_v15, %v4257_v27 }
 0x4aa   : > { %v6082_v22 = vadd.f32 %v6081_v29, %v6063_v23 }
 0x4ab   : > { %7454 = vmatmul.bf16.gmra.mxu0 %v6253_v11  ;;  %7473 = vmatmul.bf16.gmra.mxu1 %v6254_v44  ;;  %v6047_v26 = vadd.f32 %v6046_v36, %v6028_v41 }
 0x4ac   : > { %7492 = vmatmul.bf16.gmra.mxu2 %v6255_v57  ;;  %7511 = vmatmul.bf16.gmra.mxu3 %v6256_v20  ;;  %v6194_v6 = vmax.f32 %v6082_v22, 0.0 }
 0x4ad   : > { %v6209_v31 = vmax.f32 %v6047_v26, 0.0 }
 0x4ae   : > { %v6242_v28 = vpack.c.bf16 %v6194_v6, %v6178_v62 }
 0x4af   : > { %v6065_v0 = vpop.f32.mrf.mxu2  ;;  %v6084_v34 = vpop.f32.mrf.mxu3 }
 0x4b0   : > { %v6029_v52 = vpop.f32.mrf.mxu0  ;;  %v6048_v9 = vpop.f32.mrf.mxu1  ;;  %v6066_v60 = vadd.f32 %v6065_v0, %v4258_v16 }
 0x4b1   : > { %v6030_v2 = vadd.f32 %v6029_v52, %v4257_v27 }
 0x4b2   : > { %v6085_v40 = vadd.f32 %v6084_v34, %v6066_v60 }
 0x4b3   : > { %v6049_v55 = vadd.f32 %v6048_v9, %v6030_v2  ;;  %v11533_v9 = vld [vmem:[%s13822_s12] ss:$0 sm:$0xff] }
 0x4b4   : > { %v6210_v19 = vmax.f32 %v6085_v40, 0.0 }
 0x4b5   : > { %v6225_v38 = vmax.f32 %v6049_v55, 0.0 }
 0x4b7   : > { %v6067_v13 = vpop.f32.mrf.mxu2  ;;  %v6086_v21 = vpop.f32.mrf.mxu3  ;;  %v6257_v24 = vpack.c.bf16 %v6225_v38, %v6209_v31 }
 0x4b8   : > { %v6098_v58 = vpop.f32.mrf.mxu0  ;;  %v6117_v54 = vpop.f32.mrf.mxu1  ;;  %v6068_v45 = vadd.f32 %v6067_v13, %v4258_v16 }
 0x4b9   : > { %v6099_v61 = vadd.f32 %v6098_v58, %v4259_v4 }
 0x4ba   : > { %v6087_v18 = vadd.f32 %v6086_v21, %v6068_v45 }
 0x4bb   : > { %7525 = vmatmul.bf16.vlgmr.msra.gmra.mxu0 %v6241_v32  ;;  %7544 = vmatmul.bf16.vlgmr.msra.gmra.mxu1 %v6242_v28  ;;  %v6118_v59 = vadd.f32 %v6117_v54, %v6099_v61 }
 0x4bc   : > { %v6226_v5 = vmax.f32 %v6087_v18, 0.0 }
 0x4bd   : > { %v6179_v17 = vmax.f32 %v6118_v59, 0.0 }
 0x4be   : > { %v6258_v15 = vpack.c.bf16 %v6226_v5, %v6210_v19 }
 0x4bf   : > { %v6136_v37 = vpop.f32.mrf.mxu2  ;;  %v6155_v48 = vpop.f32.mrf.mxu3 }
 0x4c0   : > { %v6100_v46 = vpop.f32.mrf.mxu0  ;;  %v6119_v56 = vpop.f32.mrf.mxu1  ;;  %v6137_v8 = vadd.f32 %v6136_v37, %v4260_v1 }
 0x4c1   : > { %v6101_v33 = vadd.f32 %v6100_v46, %v4259_v4 }
 0x4c2   : > { %v6156_v30 = vadd.f32 %v6155_v48, %v6137_v8 }
 0x4c3   : > { %v6120_v49 = vadd.f32 %v6119_v56, %v6101_v33 }
 0x4c4   : > { %v6180_v11 = vmax.f32 %v6156_v30, 0.0 }
 0x4c5   : > { %v6195_v35 = vmax.f32 %v6120_v49, 0.0 }
 0x4c7   : > { %v6243_v50 = vpack.c.bf16 %v6195_v35, %v6179_v17  ;;  %v6138_v12 = vpop.f32.mrf.mxu2  ;;  %v6157_v14 = vpop.f32.mrf.mxu3 }
 0x4c8   : > { %v6139_v29 = vadd.f32 %v6138_v12, %v4260_v1  ;;  %v6103_v43 = vpop.f32.mrf.mxu0  ;;  %v6122_v51 = vpop.f32.mrf.mxu1 }
 0x4c9   : > { %7563 = vmatmul.bf16.vlgmr.msra.gmra.mxu2 %v6243_v50  ;;  %v6104_v57 = vadd.f32 %v6103_v43, %v4259_v4 }
 0x4ca   : > { %v6158_v36 = vadd.f32 %v6157_v14, %v6139_v29 }
 0x4cb   : > { %7530 = vmatmul.bf16.gmra.mxu0 %v6257_v24  ;;  %7549 = vmatmul.bf16.gmra.mxu1 %v6258_v15  ;;  %v6123_v23 = vadd.f32 %v6122_v51, %v6104_v57 }
 0x4cc   : > { %v6196_v44 = vmax.f32 %v6158_v36, 0.0 }
 0x4cd   : > { %v6211_v34 = vmax.f32 %v6123_v23, 0.0 }
 0x4ce   : > { %v6244_v20 = vpack.c.bf16 %v6196_v44, %v6180_v11 }
 0x4cf   : > { %v6141_v27 = vpop.f32.mrf.mxu2  ;;  %v6160_v16 = vpop.f32.mrf.mxu3 }
 0x4d0   : > { %7582 = vmatmul.bf16.vlgmr.msra.gmra.mxu3 %v6244_v20  ;;  %v6105_v39 = vpop.f32.mrf.mxu0  ;;  %v6124_v42 = vpop.f32.mrf.mxu1  ;;  %v6142_v0 = vadd.f32 %v6141_v27, %v4260_v1 }
 0x4d1   : > { %v6106_v63 = vadd.f32 %v6105_v39, %v4259_v4 }
 0x4d2   : > { %v6161_v53 = vadd.f32 %v6160_v16, %v6142_v0 }
 0x4d3   : > { %v6125_v7 = vadd.f32 %v6124_v42, %v6106_v63 }
 0x4d4   : > { %v6212_v58 = vmax.f32 %v6161_v53, 0.0 }
 0x4d5   : > { %v6227_v52 = vmax.f32 %v6125_v7, 0.0 }
 0x4d7   : > { %v6259_v10 = vpack.c.bf16 %v6227_v52, %v6211_v34  ;;  %v6143_v22 = vpop.f32.mrf.mxu2  ;;  %v6162_v3 = vpop.f32.mrf.mxu3 }
 0x4d8   : > { %v6144_v25 = vadd.f32 %v6143_v22, %v4260_v1  ;;  %v7298_v6 = vpop.f32.mrf.mxu0  ;;  %v7317_v47 = vpop.f32.mrf.mxu1 }
 0x4d9   : > { %v7299_v62 = vadd.f32 %v11533_v9, %v7298_v6  ;;  %7568 = vmatmul.bf16.gmra.mxu2 %v6259_v10 }
 0x4da   : > { %v6163_v13 = vadd.f32 %v6162_v3, %v6144_v25 }
 0x4db   : > { %v7318_v21 = vadd.f32 %v7317_v47, %v7299_v62 }
 0x4dc   : > { %v6228_v54 = vmax.f32 %v6163_v13, 0.0 }
 0x4de   : > { %v6260_v32 = vpack.c.bf16 %v6228_v54, %v6212_v58 }
 0x4df   : > { %v7336_v28 = vpop.f32.mrf.mxu2  ;;  %v7355_v4 = vpop.f32.mrf.mxu3 }
 0x4e0   : > { %v7337_v2 = vadd.f32 %v7336_v28, %v7318_v21  ;;  %7587 = vmatmul.bf16.gmra.mxu3 %v6260_v32  ;;  %v7300_v45 = vpop.f32.mrf.mxu0  ;;  %v7319_v61 = vpop.f32.mrf.mxu1 }
 0x4e1   : > { %v7301_v41 = vadd.f32 %v11533_v9, %v7300_v45 }
 0x4e2   : > { %v7356_v60 = vadd.f32 %v7355_v4, %v7337_v2 }
 0x4e3   : > { %v7320_v37 = vadd.f32 %v7319_v61, %v7301_v41 }
 0x4e7   : > { %v7338_v48 = vpop.f32.mrf.mxu2  ;;  %v7357_v1 = vpop.f32.mrf.mxu3 }
 0x4e8   : > { %v7339_v46 = vadd.f32 %v7338_v48, %v7320_v37  ;;  %v7303_v56 = vpop.f32.mrf.mxu0  ;;  %v7322_v55 = vpop.f32.mrf.mxu1 }
 0x4e9   : > { %v7304_v18 = vadd.f32 %v11533_v9, %v7303_v56 }
 0x4ea   : > { %v7358_v59 = vadd.f32 %v7357_v1, %v7339_v46 }
 0x4eb   : > { %v7323_v33 = vadd.f32 %v7322_v55, %v7304_v18 }
 0x4ef   : > { %v7341_v26 = vpop.f32.mrf.mxu2  ;;  %v7360_v40 = vpop.f32.mrf.mxu3 }
 0x4f0   : > { %v7342_v49 = vadd.f32 %v7341_v26, %v7323_v33  ;;  %v7305_v8 = vpop.f32.mrf.mxu0  ;;  %v7324_v38 = vpop.f32.mrf.mxu1 }
 0x4f1   : > { %v7306_v5 = vadd.f32 %v11533_v9, %v7305_v8 }
 0x4f2   : > { %v7361_v17 = vadd.f32 %v7360_v40, %v7342_v49 }
 0x4f3   : > { %v7325_v35 = vadd.f32 %v7324_v38, %v7306_v5 }
 0x4f7   : > { %v7343_v31 = vpop.f32.mrf.mxu2  ;;  %v7362_v12 = vpop.f32.mrf.mxu3 }
 0x4f8   : > { %v7344_v19 = vadd.f32 %v7343_v31, %v7325_v35  ;;  %v7374_v50 = vpop.f32.mrf.mxu0  ;;  %v7393_v14 = vpop.f32.mrf.mxu1 }
 0x4f9   : > { %v7375_v22 = vadd.f32 %v7374_v50, %v7356_v60 }
 0x4fa   : > { %v7363_v30 = vadd.f32 %v7362_v12, %v7344_v19 }
 0x4fb   : > { %v7394_v25 = vadd.f32 %v7393_v14, %v7375_v22 }
 0x4ff   : > { %v7412_v29 = vpop.f32.mrf.mxu2  ;;  %v7431_v24 = vpop.f32.mrf.mxu3 }
 0x500   : > { %v7376_v43 = vpop.f32.mrf.mxu0  ;;  %v7395_v51 = vpop.f32.mrf.mxu1  ;;  %v7413_v47 = vadd.f32 %v7412_v29, %v7394_v25 }
 0x501   : > { %v7377_v13 = vadd.f32 %v7376_v43, %v7358_v59 }
 0x502   : > { %v7432_v21 = vadd.f32 %v7431_v24, %v7413_v47 }
 0x503   : > { %v7396_v54 = vadd.f32 %v7395_v51, %v7377_v13 }
 0x507   : > { %v7414_v15 = vpop.f32.mrf.mxu2  ;;  %v7433_v44 = vpop.f32.mrf.mxu3 }
 0x508   : > { %v7379_v36 = vpop.f32.mrf.mxu0  ;;  %v7398_v11 = vpop.f32.mrf.mxu1  ;;  %v7415_v4 = vadd.f32 %v7414_v15, %v7396_v54 }
 0x509   : > { %v7380_v45 = vadd.f32 %v7379_v36, %v7361_v17 }
 0x50a   : > { %v7434_v37 = vadd.f32 %v7433_v44, %v7415_v4 }
 0x50b   : > { %v7399_v48 = vadd.f32 %v7398_v11, %v7380_v45 }
 0x50f   : > { %v7417_v20 = vpop.f32.mrf.mxu2  ;;  %v7436_v16 = vpop.f32.mrf.mxu3 }
 0x510   : > { %v7381_v57 = vpop.f32.mrf.mxu0  ;;  %v7400_v27 = vpop.f32.mrf.mxu1  ;;  %v7418_v56 = vadd.f32 %v7417_v20, %v7399_v48 }
 0x511   : > { %v7382_v59 = vadd.f32 %v7381_v57, %v7363_v30 }
 0x512   : > { %v7437_v8 = vadd.f32 %v7436_v16, %v7418_v56 }
 0x513   : > { %v7401_v5 = vadd.f32 %v7400_v27, %v7382_v59 }
 0x517   : > { %v7419_v42 = vpop.f32.mrf.mxu2  ;;  %v7438_v63 = vpop.f32.mrf.mxu3 }
 0x518   : > { %v7450_v39 = vpop.f32.mrf.mxu0  ;;  %v7469_v23 = vpop.f32.mrf.mxu1  ;;  %v7420_v31 = vadd.f32 %v7419_v42, %v7401_v5 }
 0x519   : > { %v7451_v32 = vadd.f32 %v7450_v39, %v7432_v21 }
 0x51a   : > { %v7439_v24 = vadd.f32 %v7438_v63, %v7420_v31 }
 0x51b   : > { %v7470_v61 = vadd.f32 %v7469_v23, %v7451_v32 }
 0x51f   : > { %v7488_v0 = vpop.f32.mrf.mxu2  ;;  %v7507_v52 = vpop.f32.mrf.mxu3 }
 0x520   : > { %v7452_v7 = vpop.f32.mrf.mxu0  ;;  %v7471_v34 = vpop.f32.mrf.mxu1  ;;  %v7489_v60 = vadd.f32 %v7488_v0, %v7470_v61 }
 0x521   : > { %v7453_v1 = vadd.f32 %v7452_v7, %v7434_v37 }
 0x522   : > { %v7508_v55 = vadd.f32 %v7507_v52, %v7489_v60 }
 0x523   : > { %v7472_v33 = vadd.f32 %v7471_v34, %v7453_v1 }
 0x527   : > { %v7490_v10 = vpop.f32.mrf.mxu2  ;;  %v7509_v53 = vpop.f32.mrf.mxu3 }
 0x528   : > { %v7455_v9 = vpop.f32.mrf.mxu0  ;;  %v7474_v3 = vpop.f32.mrf.mxu1  ;;  %v7491_v38 = vadd.f32 %v7490_v10, %v7472_v33 }
 0x529   : > { %v7456_v17 = vadd.f32 %v7455_v9, %v7437_v8 }
 0x52a   : > { %v7510_v19 = vadd.f32 %v7509_v53, %v7491_v38 }
 0x52b   : > { %v7475_v29 = vadd.f32 %v7474_v3, %v7456_v17 }
 0x52f   : > { %v7493_v62 = vpop.f32.mrf.mxu2  ;;  %v7512_v28 = vpop.f32.mrf.mxu3 }
 0x530   : > { %v7457_v6 = vpop.f32.mrf.mxu0  ;;  %v7476_v58 = vpop.f32.mrf.mxu1  ;;  %v7494_v15 = vadd.f32 %v7493_v62, %v7475_v29 }
 0x531   : > { %v7458_v44 = vadd.f32 %v7457_v6, %v7439_v24 }
 0x532   : > { %v7513_v20 = vadd.f32 %v7512_v28, %v7494_v15 }
 0x533   : > { %v7477_v39 = vadd.f32 %v7476_v58, %v7458_v44 }
 0x537   : > { %v7495_v41 = vpop.f32.mrf.mxu2  ;;  %v7514_v18 = vpop.f32.mrf.mxu3 }
 0x538   : > { %v7526_v2 = vpop.f32.mrf.mxu0  ;;  %v7545_v46 = vpop.f32.mrf.mxu1  ;;  %v7496_v0 = vadd.f32 %v7495_v41, %v7477_v39 }
 0x539   : > { %v7527_v26 = vadd.f32 %v7526_v2, %v7508_v55 }
 0x53a   : > { %v7515_v10 = vadd.f32 %v7514_v18, %v7496_v0 }
 0x53b   : > { %v7546_v35 = vadd.f32 %v7545_v46, %v7527_v26 }
 0x540   : > { %v7528_v49 = vpop.f32.mrf.mxu0  ;;  %v7547_v12 = vpop.f32.mrf.mxu1 }
 0x541   : > { %v7529_v43 = vadd.f32 %v7528_v49, %v7510_v19 }
 0x543   : > { %v7548_v57 = vadd.f32 %v7547_v12, %v7529_v43 }
 0x548   : > { %v7531_v11 = vpop.f32.mrf.mxu0  ;;  %v7550_v7 = vpop.f32.mrf.mxu1 }
 0x549   : > { %v7532_v42 = vadd.f32 %v7531_v11, %v7513_v20 }
 0x54b   : > { %v7551_v52 = vadd.f32 %v7550_v7, %v7532_v42 }
 0x54c   : > { %v7564_v40 = vpop.f32.mrf.mxu2 }
 0x54d   : > { %v7565_v50 = vadd.f32 %v7564_v40, %v7546_v35 }
 0x550   : > { %v7533_v9 = vpop.f32.mrf.mxu0  ;;  %v7552_v47 = vpop.f32.mrf.mxu1 }
 0x551   : > { %v7534_v53 = vadd.f32 %v7533_v9, %v7515_v10 }
 0x553   : > { %v7583_v14 = vpop.f32.mrf.mxu3  ;;  %v7553_v13 = vadd.f32 %v7552_v47, %v7534_v53 }
 0x554   : > { %v7584_v30 = vadd.f32 %v7583_v14, %v7565_v50  ;;  %v7566_v51 = vpop.f32.mrf.mxu2 }
 0x555   : > { %v7567_v27 = vadd.f32 %v7566_v51, %v7548_v57 }
 0x556   : > { %v7593_v36 = vmax.f32 %v7584_v30, 0.0 }
 0x558   : > { %7597 = vst.msk [vmem:[%s13766_s3] sm:$0xff] %vm944_vm0, %v7593_v36 }
 0x55b   : > { %v7585_v16 = vpop.f32.mrf.mxu3 }
 0x55c   : > { %v7586_v23 = vadd.f32 %v7585_v16, %v7567_v27  ;;  %v7569_v63 = vpop.f32.mrf.mxu2 }
 0x55d   : > { %v7570_v22 = vadd.f32 %v7569_v63, %v7551_v52 }
 0x55e   : > { %v7594_v34 = vmax.f32 %v7586_v23, 0.0 }
 0x560   : > { %7598 = vst.msk [vmem:[%s13766_s3 + $0x8] sm:$0xff] %vm944_vm0, %v7594_v34 }
 0x563   : > { %v7588_v3 = vpop.f32.mrf.mxu3 }
 0x564   : > { %v7589_v25 = vadd.f32 %v7588_v3, %v7570_v22  ;;  %v7571_v62 = vpop.f32.mrf.mxu2 }
 0x565   : > { %v7572_v21 = vadd.f32 %v7571_v62, %v7553_v13 }
 0x566   : > { %v7595_v6 = vmax.f32 %v7589_v25, 0.0 }
 0x568   : > { %7599 = vst.msk [vmem:[%s13766_s3 + $0x10] sm:$0xff] %vm944_vm0, %v7595_v6 }
 0x56b   : > { %v7590_v58 = vpop.f32.mrf.mxu3 }
 0x56c   : > { %v7591_v54 = vadd.f32 %v7590_v58, %v7572_v21 }
 0x56e   : > { %v7596_v32 = vmax.f32 %v7591_v54, 0.0 }
 0x570   : > { %7600 = vst.msk [vmem:[%s13766_s3 + $0x18] sm:$0xff] %vm944_vm0, %v7596_v32 }
 0x571   : > { %11622 = shalt.err (!%p11619_p8)
}
 0x572   : > { %s11673_s29 = smov 128   ;;  %s11674_s3 = smov 8  }
 0x573   : > { %11474 = dma.vmem_to_hbm [thread:$0]  (%p11788_p5), %s7624_s18, 512, %s7626_s15, %s7607_s17, %s11673_s29, %s11673_s29, %s11674_s3  }
 0x574 PF: > { %s13844_s21 = sld [smem:[#allocation11_spill]]  ;;  %p11491_p9 = scmp.ge.s32.totalorder %s11665_s16, 2 }
 0x576   : > { %p11484_p10 = pnand %p11491_p9, %p11792_p6 }
 0x578   : > { %p11485_p11 = pneg %p11484_p10 }
 0x57a   : > { %s7648_s27 = sand.u32 1, %s13844_s21  }
 0x57b   : > { %s7649_s24 = scalar_lea.sflag [#allocation4], %s7648_s27 }
 0x57c   : > { %11648 = dma.done.wait (%p11485_p11), %s7649_s24, 512  }
 0x57d   : > { %11650 = vsyncadd (%p11485_p11), %s7649_s24, 4294966784  ;;  %s13846_s16 = sld [smem:[#allocation13_spill]]  ;;  %s13849_s29 = smov %s11657_s30 }
 0x57e   : > { %s13847_s19 = sld [smem:[#allocation12_spill]] }
 0x57f   : > { %s13848_s15 = sld [smem:[#allocation14_spill]] }
 0x583   : > { %p27_p12 = scmp.ge.s32.totalorder %s13846_s16, 4  }
 0x584   : > { %s13850_s30 = smov %s13847_s19 }
 0x585   :  { %29 = sbr.rel (!%p27_p12) target bundleno = 8 (0x8), region = 128 }
 0x58a   :  { %7655 = vsyncpa [#allocation3], 1 }
 0x58b   :  { %7657 = vsyncpa [#allocation3 + $0x1], 1 }
 0x58c   :  { %7658 = vsyncpa [#allocation6], 1 }
 0x58d   :  { %7659 = vsyncpa [#allocation4], 1 }
 0x58e   :  { %7661 = vsyncpa [#allocation4 + $0x1], 1 }

</bundles_post_ra>
